<compile_context>
chip_gen: v5e
topology: v5e:2x2
jax: 0.10.0
libtpu: 0.0.40
codegen_flags: <defaults>
</compile_context>

<pallas_src>
import functools

import jax
import jax.numpy as jnp
from jax import lax
from jax.experimental import pallas as pl
from jax.experimental.pallas import tpu as pltpu


# ------------------------------ helpers -------------------------------------


def _layernorm(x, g, b, eps=1e-5):
    mean = jnp.mean(x, axis=-1, keepdims=True)
    var = jnp.mean((x - mean) ** 2, axis=-1, keepdims=True)
    return (x - mean) * lax.rsqrt(var + eps) * g + b


def _pick_tile(s, target):
    """Largest divisor of s that is <= target and a multiple of 8 (else s)."""
    if s <= target:
        return s
    for t in range(target, 7, -1):
        if s % t == 0 and t % 8 == 0:
            return t
    return s  # fallback: no tiling (can blow VMEM for large odd S)


def _pick_ff_chunk(ff_dim, target=512):
    """Largest 128-multiple divisor of ff_dim <= target (else ff_dim)."""
    if ff_dim <= target:
        return ff_dim
    for c in range(target, 127, -128):
        if ff_dim % c == 0:
            return c
    return ff_dim


def _vmem_capacity_bytes():
    cap = 64 * 1024 * 1024  # conservative default (v7x per-core VMEM)
    try:
        info = pltpu.get_tpu_info()
        cap = int(getattr(info, "vmem_capacity_bytes", cap) or cap)
    except Exception:
        pass
    return cap


# -------------------------- encoder-layer kernel -----------------------------


def _encoder_layer_kernel(*refs, nheads, tq, ff_chunk, kv_chunk, fuse_in_proj):
    if fuse_in_proj:
        (xf_ref, pw_ref, pb_ref,
         wq_ref, bq_ref, wkv_ref, bkv_ref, wo_ref, bo_ref,
         g1_ref, be1_ref, w1_ref, b1_ref, w2_ref, b2_ref, g2_ref, be2_ref,
         o_ref, k_s, v_s, pv_s) = refs
    else:
        (xf_ref,
         wq_ref, bq_ref, wkv_ref, bkv_ref, wo_ref, bo_ref,
         g1_ref, be1_ref, w1_ref, b1_ref, w2_ref, b2_ref, g2_ref, be2_ref,
         o_ref, k_s, v_s, pv_s) = refs
        pw_ref = pb_ref = None

    dim = wq_ref.shape[0]
    hd = dim // nheads
    scale = 1.0 / float(hd) ** 0.5
    seq = xf_ref.shape[1]
    ff_dim = w1_ref.shape[1]

    def to_hidden(tokens):
        """tokens (n, cin) -> (hidden f32, hidden bf16)."""
        if fuse_in_proj:
            h = (jnp.dot(tokens.astype(jnp.bfloat16), pw_ref[...],
                         preferred_element_type=jnp.float32) + pb_ref[...])
            return h, h.astype(jnp.bfloat16)
        # already hidden-sized (bf16 from the previous layer)
        return tokens.astype(jnp.float32), tokens.astype(jnp.bfloat16)

    # ---- K / V for the full sequence: computed once per batch element,
    # ---- chunked over the sequence so transients stay (kv_chunk, dim) -------
    @pl.when(pl.program_id(1) == 0)
    def _():
        for c0 in range(0, seq, kv_chunk):
            tok = xf_ref[0, c0:c0 + kv_chunk, :]
            _, hb = to_hidden(tok)
            kv = jnp.dot(hb, wkv_ref[...],
                         preferred_element_type=jnp.float32) + bkv_ref[...]
            k_s[c0:c0 + kv_chunk, :] = kv[:, :dim].astype(jnp.bfloat16)
            v_s[c0:c0 + kv_chunk, :] = kv[:, dim:].astype(jnp.bfloat16)

    # ---- per-q-tile work -----------------------------------------------------
    q0 = pl.multiple_of(pl.program_id(1) * tq, tq)
    xq = xf_ref[0, pl.ds(q0, tq), :]
    hq, hq_b = to_hidden(xq)                                        # (tq, dim)
    qm = jnp.dot(hq_b, wq_ref[...],
                 preferred_element_type=jnp.float32) + bq_ref[...]  # (tq, dim)

    # multi-head attention: per-head softmax(QK^T)V into pv scratch,
    # then ONE K=dim output-projection matmul.
    for h in range(nheads):
        sl = slice(h * hd, (h + 1) * hd)
        qh = (qm[:, sl] * scale).astype(jnp.bfloat16)               # (tq, hd)
        kh = k_s[:, sl]                                             # (S, hd) bf16
        sc = lax.dot_general(qh, kh, (((1,), (1,)), ((), ())),
                             preferred_element_type=jnp.float32)    # (tq, S)
        sc = sc - jnp.max(sc, axis=-1, keepdims=True)
        p = jnp.exp(sc)
        p = p * pl.reciprocal(jnp.sum(p, axis=-1, keepdims=True), approx=True)
        pv_s[:, sl] = jnp.dot(p.astype(jnp.bfloat16), v_s[:, sl],
                              preferred_element_type=jnp.float32)   # (tq, hd)

    attn = jnp.dot(pv_s[...].astype(jnp.bfloat16), wo_ref[...],
                   preferred_element_type=jnp.float32) + bo_ref[...]

    # TODO(synk): dropout inside the encoder layer is identity (eval mode).
    y = _layernorm(hq + attn, g1_ref[...], be1_ref[...])            # f32

    # feed forward, K-chunked over ff_dim (relu intermediate stays (tq, chunk))
    y_b = y.astype(jnp.bfloat16)
    ff = jnp.zeros(y.shape, jnp.float32)
    for c in range(0, ff_dim, ff_chunk):
        cs = slice(c, c + ff_chunk)
        hcol = jnp.dot(y_b, w1_ref[:, cs],
                       preferred_element_type=jnp.float32) + b1_ref[:, cs]
        hcol = jnp.maximum(hcol, 0.0)
        ff = ff + jnp.dot(hcol.astype(jnp.bfloat16), w2_ref[cs, :],
                          preferred_element_type=jnp.float32)
    ff = ff + b2_ref[...]

    o_ref[0] = _layernorm(y + ff, g2_ref[...], be2_ref[...]).astype(o_ref.dtype)


def encoder_layer(x, lp, nheads, in_proj=None):
    """x: (B, S, Cin) f32/bf16.  Returns (B, S, hidden) bf16.

    If in_proj is given, the 1x1x1 conv (Cin -> hidden) is fused in front of
    this encoder layer; otherwise Cin must equal hidden.
    """
    b, s, cin = x.shape
    d = lp["wq"].shape[0]
    ff_dim = lp["w1"].shape[1]
    assert d % nheads == 0

    vmem_cap = _vmem_capacity_bytes()
    big_vmem = vmem_cap >= 96 * 1024 * 1024       # v5e / v6e: 128 MiB parts
    vmem_limit = max(32 * 1024 * 1024,
                     min(int(vmem_cap * 0.8), 100 * 1024 * 1024))

    tq = _pick_tile(s, 512 if big_vmem else 256)
    num_q = s // tq
    ff_chunk = _pick_ff_chunk(ff_dim)
    kv_chunk = _pick_tile(s, 512)

    weight_args = []
    if in_proj is not None:
        weight_args += [in_proj["w"], in_proj["b"]]
    weight_args += [
        lp["wq"], lp["bq"], lp["wkv"], lp["bkv"], lp["wo"], lp["bo"],
        lp["g1"], lp["be1"], lp["w1"], lp["b1"], lp["w2"], lp["b2"],
        lp["g2"], lp["be2"],
    ]

    kernel = functools.partial(
        _encoder_layer_kernel,
        nheads=nheads, tq=tq, ff_chunk=ff_chunk, kv_chunk=kv_chunk,
        fuse_in_proj=in_proj is not None,
    )

    # advisory cost estimate so XLA schedules the 4 back-to-back layers well
    flops = b * (8 * s * d * d + 4 * s * s * d + 4 * s * d * ff_dim)
    if in_proj is not None:
        flops += b * 2 * s * cin * d
    w_bytes = sum(int(a.size) * a.dtype.itemsize for a in weight_args)
    cost = pl.CostEstimate(
        flops=int(flops),
        transcendentals=int(b * nheads * s * s),
        bytes_accessed=int(x.size * x.dtype.itemsize + b * s * d * 2 + w_bytes),
    )

    # TODO(synk): on v7x with per-core batch == 1, move the K/V pass into its
    # own pallas_call so the q axis can be marked "parallel" (2 TensorCores).
    return pl.pallas_call(
        kernel,
        grid=(b, num_q),
        out_shape=jax.ShapeDtypeStruct((b, s, d), jnp.bfloat16),
        in_specs=(
            # single full-sequence activation stream (constant over q axis ->
            # DMA'd once per batch element; q tile sliced inside the kernel)
            [pl.BlockSpec((1, s, cin), lambda bi, qi: (bi, 0, 0))]
            + [pl.BlockSpec(a.shape, lambda bi, qi: (0, 0)) for a in weight_args]
        ),
        out_specs=pl.BlockSpec((1, tq, d), lambda bi, qi: (bi, qi, 0)),
        scratch_shapes=[
            pltpu.VMEM((s, d), jnp.bfloat16),    # K  (kept un-transposed)
            pltpu.VMEM((s, d), jnp.bfloat16),    # V
            pltpu.VMEM((tq, d), jnp.float32),    # per-head attn outputs
        ],
        compiler_params=pltpu.CompilerParams(
            dimension_semantics=("parallel", "arbitrary"),
            vmem_limit_bytes=vmem_limit,
        ),
        cost_estimate=cost,
    )(x, *weight_args)


# ------------------------------ model wrapper --------------------------------


def simple_3dvit_forward(x, params, nheads):
    b, c, d, h, w = x.shape
    s = d * h * w

    # NCDHW -> (B, S, C) token layout (same token ordering as x.flatten(2))
    x_tok = x.reshape(b, c, s).transpose(0, 2, 1).astype(jnp.float32)

    # layer 1 with the 1x1x1 projection conv fused in front of it
    ht = encoder_layer(
        x_tok, params["layers"][0], nheads,
        in_proj={"w": params["proj_w"], "b": params["proj_b"]},
    )
    # remaining encoder layers consume / produce bf16 activations
    for lp in params["layers"][1:]:
        ht = encoder_layer(ht, lp, nheads)

    # output_layer: Conv3d(hidden, 1, kernel_size=1) == per-token dot with a
    # length-hidden vector.  Done in plain XLA: a Cout=1 Pallas output would
    # force lane-width-1 masked stores.
    out = (jnp.einsum("bsd,d->bs", ht.astype(jnp.float32), params["out_w"][:, 0])
           + params["out_b"][0, 0])
    return out.reshape(b, 1, d, h, w)


def init_params(key, in_channels, hidden, ff_dim, num_layers):
    bf16, f32 = jnp.bfloat16, jnp.float32

    def nrm(k, shape, dtype, scale=0.05):
        return (scale * jax.random.normal(k, shape, jnp.float32)).astype(dtype)

    keys = iter(jax.random.split(key, 4 + num_layers * 12))
    params = {
        "proj_w": nrm(next(keys), (in_channels, hidden), bf16),  # Conv3d weight^T
        "proj_b": nrm(next(keys), (1, hidden), f32),
        "out_w": nrm(next(keys), (hidden, 1), f32),
        "out_b": nrm(next(keys), (1, 1), f32),
        "layers": [],
    }
    for _ in range(num_layers):
        wq = nrm(next(keys), (hidden, hidden), bf16)
        bq = nrm(next(keys), (1, hidden), f32)
        wk = nrm(next(keys), (hidden, hidden), bf16)
        bk = nrm(next(keys), (1, hidden), f32)
        wv = nrm(next(keys), (hidden, hidden), bf16)
        bv = nrm(next(keys), (1, hidden), f32)
        lp = {
            "wq": wq, "bq": bq,
            # fused K|V projection: one (d, 2d) matmul fills the 256-wide MXU
            "wkv": jnp.concatenate([wk, wv], axis=1),          # (hidden, 2*hidden) bf16
            "bkv": jnp.concatenate([bk, bv], axis=1),          # (1, 2*hidden) f32
            "wo": nrm(next(keys), (hidden, hidden), bf16),
            "bo": nrm(next(keys), (1, hidden), f32),
            "g1": jnp.ones((1, hidden), f32),
            "be1": jnp.zeros((1, hidden), f32),
            "w1": nrm(next(keys), (hidden, ff_dim), bf16),
            "b1": nrm(next(keys), (1, ff_dim), f32),
            "w2": nrm(next(keys), (ff_dim, hidden), bf16),
            "b2": nrm(next(keys), (1, hidden), f32),
            "g2": jnp.ones((1, hidden), f32),
            "be2": jnp.zeros((1, hidden), f32),
        }
        params["layers"].append(lp)
    return params


if __name__ == "__main__":
    # Small shapes consistent with the module: B=2, C_in=4, spatial (D,H,W)=(2,4,4),
    # hidden_dim=32, num_heads=4, 4 encoder layers, default dim_feedforward=2048.
    B, C, D, H, W = 2, 4, 2, 4, 4
    HIDDEN, NHEADS, FF_DIM, NUM_LAYERS = 32, 4, 2048, 4

    key = jax.random.PRNGKey(0)
    kx, kp = jax.random.split(key)
    x = jax.random.normal(kx, (B, C, D, H, W), dtype=jnp.float32)
    params = init_params(kp, C, HIDDEN, FF_DIM, NUM_LAYERS)

    fwd = jax.jit(functools.partial(simple_3dvit_forward, nheads=NHEADS))
    out = jax.block_until_ready(fwd(x, params))
    assert out.shape == (B, 1, D, H, W), out.shape
    print("KERNEL_OK")
</pallas_src>

<mosaic_0001>
module attributes {stable_mosaic.version = 11 : i64} {
  func.func @_encoder_layer_kernel(%arg0: i32, %arg1: i32, %arg2: memref<1x32x4xf32, #tpu.memory_space<vmem>>, %arg3: memref<4x32xbf16, #tpu.memory_space<vmem>>, %arg4: memref<1x32xf32, #tpu.memory_space<vmem>>, %arg5: memref<32x32xbf16, #tpu.memory_space<vmem>>, %arg6: memref<1x32xf32, #tpu.memory_space<vmem>>, %arg7: memref<32x64xbf16, #tpu.memory_space<vmem>>, %arg8: memref<1x64xf32, #tpu.memory_space<vmem>>, %arg9: memref<32x32xbf16, #tpu.memory_space<vmem>>, %arg10: memref<1x32xf32, #tpu.memory_space<vmem>>, %arg11: memref<1x32xf32, #tpu.memory_space<vmem>>, %arg12: memref<1x32xf32, #tpu.memory_space<vmem>>, %arg13: memref<32x2048xbf16, #tpu.memory_space<vmem>>, %arg14: memref<1x2048xf32, #tpu.memory_space<vmem>>, %arg15: memref<2048x32xbf16, #tpu.memory_space<vmem>>, %arg16: memref<1x32xf32, #tpu.memory_space<vmem>>, %arg17: memref<1x32xf32, #tpu.memory_space<vmem>>, %arg18: memref<1x32xf32, #tpu.memory_space<vmem>>, %arg19: memref<1x32x32xbf16, #tpu.memory_space<vmem>>, %arg20: memref<32x32xbf16, #tpu.memory_space<vmem>>, %arg21: memref<32x32xbf16, #tpu.memory_space<vmem>>, %arg22: memref<32x32xf32, #tpu.memory_space<vmem>>) attributes {dimension_semantics = [#tpu.dimension_semantics<parallel>, #tpu.dimension_semantics<arbitrary>], iteration_bounds = array<i64: 2, 1>, scalar_prefetch = 0 : i64, scratch_operands = 3 : i64, tpu.core_type = #tpu.core_type<tc>, window_params = [{transform_indices = @transform_0, window_bounds = array<i64: 1, 32, 4>}, {pipeline_mode = #tpu.pipeline_mode<synchronous>, transform_indices = @transform_1, window_bounds = array<i64: 4, 32>}, {pipeline_mode = #tpu.pipeline_mode<synchronous>, transform_indices = @transform_2, window_bounds = array<i64: 1, 32>}, {pipeline_mode = #tpu.pipeline_mode<synchronous>, transform_indices = @transform_3, window_bounds = array<i64: 32, 32>}, {pipeline_mode = #tpu.pipeline_mode<synchronous>, transform_indices = @transform_4, window_bounds = array<i64: 1, 32>}, {pipeline_mode = #tpu.pipeline_mode<synchronous>, transform_indices = @transform_5, window_bounds = array<i64: 32, 64>}, {pipeline_mode = #tpu.pipeline_mode<synchronous>, transform_indices = @transform_6, window_bounds = array<i64: 1, 64>}, {pipeline_mode = #tpu.pipeline_mode<synchronous>, transform_indices = @transform_7, window_bounds = array<i64: 32, 32>}, {pipeline_mode = #tpu.pipeline_mode<synchronous>, transform_indices = @transform_8, window_bounds = array<i64: 1, 32>}, {pipeline_mode = #tpu.pipeline_mode<synchronous>, transform_indices = @transform_9, window_bounds = array<i64: 1, 32>}, {pipeline_mode = #tpu.pipeline_mode<synchronous>, transform_indices = @transform_10, window_bounds = array<i64: 1, 32>}, {pipeline_mode = #tpu.pipeline_mode<synchronous>, transform_indices = @transform_11, window_bounds = array<i64: 32, 2048>}, {pipeline_mode = #tpu.pipeline_mode<synchronous>, transform_indices = @transform_12, window_bounds = array<i64: 1, 2048>}, {pipeline_mode = #tpu.pipeline_mode<synchronous>, transform_indices = @transform_13, window_bounds = array<i64: 2048, 32>}, {pipeline_mode = #tpu.pipeline_mode<synchronous>, transform_indices = @transform_14, window_bounds = array<i64: 1, 32>}, {pipeline_mode = #tpu.pipeline_mode<synchronous>, transform_indices = @transform_15, window_bounds = array<i64: 1, 32>}, {pipeline_mode = #tpu.pipeline_mode<synchronous>, transform_indices = @transform_16, window_bounds = array<i64: 1, 32>}, {transform_indices = @transform_17, window_bounds = array<i64: 1, 32, 32>}]} {
    %c0_i32 = arith.constant 0 : i32
    %0 = arith.cmpi eq, %arg1, %c0_i32 : i32
    %1 = arith.extui %0 : i1 to i32
    %c0_i32_0 = arith.constant 0 : i32
    %2 = arith.cmpi ne, %1, %c0_i32_0 : i32
    scf.if %2 {
      %c0_116 = arith.constant 0 : index
      %c0_117 = arith.constant 0 : index
      %c0_118 = arith.constant 0 : index
      %210 = vector.load %arg2[%c0_116, %c0_117, %c0_118] : memref<1x32x4xf32, #tpu.memory_space<vmem>>, vector<1x32x4xf32>
      %211 = vector.shape_cast %210 : vector<1x32x4xf32> to vector<32x4xf32>
      %212 = arith.truncf %211 : vector<32x4xf32> to vector<32x4xbf16>
      %c0_119 = arith.constant 0 : index
      %c0_120 = arith.constant 0 : index
      %213 = vector.load %arg3[%c0_119, %c0_120] : memref<4x32xbf16, #tpu.memory_space<vmem>>, vector<4x32xbf16>
      %cst_121 = arith.constant dense<0.000000e+00> : vector<32x32xf32>
      %214 = tpu.matmul %212, %213, %cst_121 {dimension_numbers = #tpu.dot_dimension_numbers<[1], [0], [0], [1], [0, 0, 1, 1], [], []>} : vector<32x4xbf16>, vector<4x32xbf16>, vector<32x32xf32> -> vector<32x32xf32>
      %c0_122 = arith.constant 0 : index
      %c0_123 = arith.constant 0 : index
      %215 = vector.load %arg4[%c0_122, %c0_123] : memref<1x32xf32, #tpu.memory_space<vmem>>, vector<1x32xf32>
      %216 = vector.broadcast %215 : vector<1x32xf32> to vector<32x32xf32>
      %217 = arith.addf %214, %216 : vector<32x32xf32>
      %218 = arith.truncf %217 : vector<32x32xf32> to vector<32x32xbf16>
      %c0_124 = arith.constant 0 : index
      %c0_125 = arith.constant 0 : index
      %219 = vector.load %arg7[%c0_124, %c0_125] : memref<32x64xbf16, #tpu.memory_space<vmem>>, vector<32x64xbf16>
      %cst_126 = arith.constant dense<0.000000e+00> : vector<32x64xf32>
      %220 = tpu.matmul %218, %219, %cst_126 {dimension_numbers = #tpu.dot_dimension_numbers<[1], [0], [0], [1], [0, 0, 1, 1], [], []>} : vector<32x32xbf16>, vector<32x64xbf16>, vector<32x64xf32> -> vector<32x64xf32>
      %c0_127 = arith.constant 0 : index
      %c0_128 = arith.constant 0 : index
      %221 = vector.load %arg8[%c0_127, %c0_128] : memref<1x64xf32, #tpu.memory_space<vmem>>, vector<1x64xf32>
      %222 = vector.broadcast %221 : vector<1x64xf32> to vector<32x64xf32>
      %223 = arith.addf %220, %222 : vector<32x64xf32>
      %224 = vector.extract_strided_slice %223 {offsets = [0, 0], sizes = [32, 32], strides = [1, 1]} : vector<32x64xf32> to vector<32x32xf32>
      %225 = arith.truncf %224 : vector<32x32xf32> to vector<32x32xbf16>
      %c0_129 = arith.constant 0 : index
      %c0_130 = arith.constant 0 : index
      %226 = vector.load %arg20[%c0_129, %c0_130] : memref<32x32xbf16, #tpu.memory_space<vmem>>, vector<32x32xbf16>
      tpu.vector_store %arg20[%c0_129, %c0_130], %225 {strides = array<i32>} : memref<32x32xbf16, #tpu.memory_space<vmem>>, vector<32x32xbf16>,
      %227 = vector.extract_strided_slice %223 {offsets = [0, 32], sizes = [32, 32], strides = [1, 1]} : vector<32x64xf32> to vector<32x32xf32>
      %228 = arith.truncf %227 : vector<32x32xf32> to vector<32x32xbf16>
      %c0_131 = arith.constant 0 : index
      %c0_132 = arith.constant 0 : index
      %229 = vector.load %arg21[%c0_131, %c0_132] : memref<32x32xbf16, #tpu.memory_space<vmem>>, vector<32x32xbf16>
      tpu.vector_store %arg21[%c0_131, %c0_132], %228 {strides = array<i32>} : memref<32x32xbf16, #tpu.memory_space<vmem>>, vector<32x32xbf16>,
    } else {
    }
    %c32_i32 = arith.constant 32 : i32
    %3 = arith.muli %arg1, %c32_i32 : i32
    %4 = tpu.assume_multiple %3, 32 : i32
    %c0 = arith.constant 0 : index
    %5 = arith.index_cast %4 : i32 to index
    %c0_1 = arith.constant 0 : index
    %6 = vector.load %arg2[%c0, %5, %c0_1] : memref<1x32x4xf32, #tpu.memory_space<vmem>>, vector<1x32x4xf32>
    %7 = vector.shape_cast %6 : vector<1x32x4xf32> to vector<32x4xf32>
    %8 = arith.truncf %7 : vector<32x4xf32> to vector<32x4xbf16>
    %c0_2 = arith.constant 0 : index
    %c0_3 = arith.constant 0 : index
    %9 = vector.load %arg3[%c0_2, %c0_3] : memref<4x32xbf16, #tpu.memory_space<vmem>>, vector<4x32xbf16>
    %cst = arith.constant dense<0.000000e+00> : vector<32x32xf32>
    %10 = tpu.matmul %8, %9, %cst {dimension_numbers = #tpu.dot_dimension_numbers<[1], [0], [0], [1], [0, 0, 1, 1], [], []>} : vector<32x4xbf16>, vector<4x32xbf16>, vector<32x32xf32> -> vector<32x32xf32>
    %c0_4 = arith.constant 0 : index
    %c0_5 = arith.constant 0 : index
    %11 = vector.load %arg4[%c0_4, %c0_5] : memref<1x32xf32, #tpu.memory_space<vmem>>, vector<1x32xf32>
    %12 = vector.broadcast %11 : vector<1x32xf32> to vector<32x32xf32>
    %13 = arith.addf %10, %12 : vector<32x32xf32>
    %14 = arith.truncf %13 : vector<32x32xf32> to vector<32x32xbf16>
    %c0_6 = arith.constant 0 : index
    %c0_7 = arith.constant 0 : index
    %15 = vector.load %arg5[%c0_6, %c0_7] : memref<32x32xbf16, #tpu.memory_space<vmem>>, vector<32x32xbf16>
    %cst_8 = arith.constant dense<0.000000e+00> : vector<32x32xf32>
    %16 = tpu.matmul %14, %15, %cst_8 {dimension_numbers = #tpu.dot_dimension_numbers<[1], [0], [0], [1], [0, 0, 1, 1], [], []>} : vector<32x32xbf16>, vector<32x32xbf16>, vector<32x32xf32> -> vector<32x32xf32>
    %c0_9 = arith.constant 0 : index
    %c0_10 = arith.constant 0 : index
    %17 = vector.load %arg6[%c0_9, %c0_10] : memref<1x32xf32, #tpu.memory_space<vmem>>, vector<1x32xf32>
    %18 = vector.broadcast %17 : vector<1x32xf32> to vector<32x32xf32>
    %19 = arith.addf %16, %18 : vector<32x32xf32>
    %20 = vector.extract_strided_slice %19 {offsets = [0, 0], sizes = [32, 8], strides = [1, 1]} : vector<32x32xf32> to vector<32x8xf32>
    %cst_11 = arith.constant 0.353553385 : f32
    %21 = vector.broadcast %cst_11 : f32 to vector<32x8xf32>
    %22 = arith.mulf %20, %21 : vector<32x8xf32>
    %23 = arith.truncf %22 : vector<32x8xf32> to vector<32x8xbf16>
    %c0_12 = arith.constant 0 : index
    %c0_13 = arith.constant 0 : index
    %24 = vector.load %arg20[%c0_12, %c0_13] : memref<32x32xbf16, #tpu.memory_space<vmem>>, vector<32x8xbf16>
    %cst_14 = arith.constant dense<0.000000e+00> : vector<32x32xf32>
    %25 = tpu.matmul %23, %24, %cst_14 {dimension_numbers = #tpu.dot_dimension_numbers<[1], [1], [0], [0], [0, 0, 1, 0], [], []>} : vector<32x8xbf16>, vector<32x8xbf16>, vector<32x32xf32> -> vector<32x32xf32>
    %cst_15 = arith.constant dense<0xFF800000> : vector<32xf32>
    %26 = vector.multi_reduction <maximumf>, %25, %cst_15 [1] : vector<32x32xf32> to vector<32xf32>
    %27 = vector.shape_cast %26 : vector<32xf32> to vector<32x1xf32>
    %28 = vector.broadcast %27 : vector<32x1xf32> to vector<32x32xf32>
    %29 = arith.subf %25, %28 : vector<32x32xf32>
    %30 = math.exp %29 : vector<32x32xf32>
    %cst_16 = arith.constant dense<0.000000e+00> : vector<32xf32>
    %31 = vector.multi_reduction <add>, %30, %cst_16 [1] : vector<32x32xf32> to vector<32xf32>
    %32 = vector.shape_cast %31 : vector<32xf32> to vector<32x1xf32>
    %33 = tpu.reciprocal %32 {approx = true} : vector<32x1xf32> -> vector<32x1xf32>
    %34 = vector.broadcast %33 : vector<32x1xf32> to vector<32x32xf32>
    %35 = arith.mulf %30, %34 : vector<32x32xf32>
    %36 = arith.truncf %35 : vector<32x32xf32> to vector<32x32xbf16>
    %c0_17 = arith.constant 0 : index
    %c0_18 = arith.constant 0 : index
    %37 = vector.load %arg21[%c0_17, %c0_18] : memref<32x32xbf16, #tpu.memory_space<vmem>>, vector<32x8xbf16>
    %cst_19 = arith.constant dense<0.000000e+00> : vector<32x8xf32>
    %38 = tpu.matmul %36, %37, %cst_19 {dimension_numbers = #tpu.dot_dimension_numbers<[1], [0], [0], [1], [0, 0, 1, 1], [], []>} : vector<32x32xbf16>, vector<32x8xbf16>, vector<32x8xf32> -> vector<32x8xf32>
    %c0_20 = arith.constant 0 : index
    %c0_21 = arith.constant 0 : index
    %39 = vector.load %arg22[%c0_20, %c0_21] : memref<32x32xf32, #tpu.memory_space<vmem>>, vector<32x8xf32>
    tpu.vector_store %arg22[%c0_20, %c0_21], %38 {strides = array<i32>} : memref<32x32xf32, #tpu.memory_space<vmem>>, vector<32x8xf32>,
    %40 = vector.extract_strided_slice %19 {offsets = [0, 8], sizes = [32, 8], strides = [1, 1]} : vector<32x32xf32> to vector<32x8xf32>
    %cst_22 = arith.constant 0.353553385 : f32
    %41 = vector.broadcast %cst_22 : f32 to vector<32x8xf32>
    %42 = arith.mulf %40, %41 : vector<32x8xf32>
    %43 = arith.truncf %42 : vector<32x8xf32> to vector<32x8xbf16>
    %c0_23 = arith.constant 0 : index
    %c8 = arith.constant 8 : index
    %44 = vector.load %arg20[%c0_23, %c8] : memref<32x32xbf16, #tpu.memory_space<vmem>>, vector<32x8xbf16>
    %cst_24 = arith.constant dense<0.000000e+00> : vector<32x32xf32>
    %45 = tpu.matmul %43, %44, %cst_24 {dimension_numbers = #tpu.dot_dimension_numbers<[1], [1], [0], [0], [0, 0, 1, 0], [], []>} : vector<32x8xbf16>, vector<32x8xbf16>, vector<32x32xf32> -> vector<32x32xf32>
    %cst_25 = arith.constant dense<0xFF800000> : vector<32xf32>
    %46 = vector.multi_reduction <maximumf>, %45, %cst_25 [1] : vector<32x32xf32> to vector<32xf32>
    %47 = vector.shape_cast %46 : vector<32xf32> to vector<32x1xf32>
    %48 = vector.broadcast %47 : vector<32x1xf32> to vector<32x32xf32>
    %49 = arith.subf %45, %48 : vector<32x32xf32>
    %50 = math.exp %49 : vector<32x32xf32>
    %cst_26 = arith.constant dense<0.000000e+00> : vector<32xf32>
    %51 = vector.multi_reduction <add>, %50, %cst_26 [1] : vector<32x32xf32> to vector<32xf32>
    %52 = vector.shape_cast %51 : vector<32xf32> to vector<32x1xf32>
    %53 = tpu.reciprocal %52 {approx = true} : vector<32x1xf32> -> vector<32x1xf32>
    %54 = vector.broadcast %53 : vector<32x1xf32> to vector<32x32xf32>
    %55 = arith.mulf %50, %54 : vector<32x32xf32>
    %56 = arith.truncf %55 : vector<32x32xf32> to vector<32x32xbf16>
    %c0_27 = arith.constant 0 : index
    %c8_28 = arith.constant 8 : index
    %57 = vector.load %arg21[%c0_27, %c8_28] : memref<32x32xbf16, #tpu.memory_space<vmem>>, vector<32x8xbf16>
    %cst_29 = arith.constant dense<0.000000e+00> : vector<32x8xf32>
    %58 = tpu.matmul %56, %57, %cst_29 {dimension_numbers = #tpu.dot_dimension_numbers<[1], [0], [0], [1], [0, 0, 1, 1], [], []>} : vector<32x32xbf16>, vector<32x8xbf16>, vector<32x8xf32> -> vector<32x8xf32>
    %c0_30 = arith.constant 0 : index
    %c8_31 = arith.constant 8 : index
    %59 = vector.load %arg22[%c0_30, %c8_31] : memref<32x32xf32, #tpu.memory_space<vmem>>, vector<32x8xf32>
    tpu.vector_store %arg22[%c0_30, %c8_31], %58 {strides = array<i32>} : memref<32x32xf32, #tpu.memory_space<vmem>>, vector<32x8xf32>,
    %60 = vector.extract_strided_slice %19 {offsets = [0, 16], sizes = [32, 8], strides = [1, 1]} : vector<32x32xf32> to vector<32x8xf32>
    %cst_32 = arith.constant 0.353553385 : f32
    %61 = vector.broadcast %cst_32 : f32 to vector<32x8xf32>
    %62 = arith.mulf %60, %61 : vector<32x8xf32>
    %63 = arith.truncf %62 : vector<32x8xf32> to vector<32x8xbf16>
    %c0_33 = arith.constant 0 : index
    %c16 = arith.constant 16 : index
    %64 = vector.load %arg20[%c0_33, %c16] : memref<32x32xbf16, #tpu.memory_space<vmem>>, vector<32x8xbf16>
    %cst_34 = arith.constant dense<0.000000e+00> : vector<32x32xf32>
    %65 = tpu.matmul %63, %64, %cst_34 {dimension_numbers = #tpu.dot_dimension_numbers<[1], [1], [0], [0], [0, 0, 1, 0], [], []>} : vector<32x8xbf16>, vector<32x8xbf16>, vector<32x32xf32> -> vector<32x32xf32>
    %cst_35 = arith.constant dense<0xFF800000> : vector<32xf32>
    %66 = vector.multi_reduction <maximumf>, %65, %cst_35 [1] : vector<32x32xf32> to vector<32xf32>
    %67 = vector.shape_cast %66 : vector<32xf32> to vector<32x1xf32>
    %68 = vector.broadcast %67 : vector<32x1xf32> to vector<32x32xf32>
    %69 = arith.subf %65, %68 : vector<32x32xf32>
    %70 = math.exp %69 : vector<32x32xf32>
    %cst_36 = arith.constant dense<0.000000e+00> : vector<32xf32>
    %71 = vector.multi_reduction <add>, %70, %cst_36 [1] : vector<32x32xf32> to vector<32xf32>
    %72 = vector.shape_cast %71 : vector<32xf32> to vector<32x1xf32>
    %73 = tpu.reciprocal %72 {approx = true} : vector<32x1xf32> -> vector<32x1xf32>
    %74 = vector.broadcast %73 : vector<32x1xf32> to vector<32x32xf32>
    %75 = arith.mulf %70, %74 : vector<32x32xf32>
    %76 = arith.truncf %75 : vector<32x32xf32> to vector<32x32xbf16>
    %c0_37 = arith.constant 0 : index
    %c16_38 = arith.constant 16 : index
    %77 = vector.load %arg21[%c0_37, %c16_38] : memref<32x32xbf16, #tpu.memory_space<vmem>>, vector<32x8xbf16>
    %cst_39 = arith.constant dense<0.000000e+00> : vector<32x8xf32>
    %78 = tpu.matmul %76, %77, %cst_39 {dimension_numbers = #tpu.dot_dimension_numbers<[1], [0], [0], [1], [0, 0, 1, 1], [], []>} : vector<32x32xbf16>, vector<32x8xbf16>, vector<32x8xf32> -> vector<32x8xf32>
    %c0_40 = arith.constant 0 : index
    %c16_41 = arith.constant 16 : index
    %79 = vector.load %arg22[%c0_40, %c16_41] : memref<32x32xf32, #tpu.memory_space<vmem>>, vector<32x8xf32>
    tpu.vector_store %arg22[%c0_40, %c16_41], %78 {strides = array<i32>} : memref<32x32xf32, #tpu.memory_space<vmem>>, vector<32x8xf32>,
    %80 = vector.extract_strided_slice %19 {offsets = [0, 24], sizes = [32, 8], strides = [1, 1]} : vector<32x32xf32> to vector<32x8xf32>
    %cst_42 = arith.constant 0.353553385 : f32
    %81 = vector.broadcast %cst_42 : f32 to vector<32x8xf32>
    %82 = arith.mulf %80, %81 : vector<32x8xf32>
    %83 = arith.truncf %82 : vector<32x8xf32> to vector<32x8xbf16>
    %c0_43 = arith.constant 0 : index
    %c24 = arith.constant 24 : index
    %84 = vector.load %arg20[%c0_43, %c24] : memref<32x32xbf16, #tpu.memory_space<vmem>>, vector<32x8xbf16>
    %cst_44 = arith.constant dense<0.000000e+00> : vector<32x32xf32>
    %85 = tpu.matmul %83, %84, %cst_44 {dimension_numbers = #tpu.dot_dimension_numbers<[1], [1], [0], [0], [0, 0, 1, 0], [], []>} : vector<32x8xbf16>, vector<32x8xbf16>, vector<32x32xf32> -> vector<32x32xf32>
    %cst_45 = arith.constant dense<0xFF800000> : vector<32xf32>
    %86 = vector.multi_reduction <maximumf>, %85, %cst_45 [1] : vector<32x32xf32> to vector<32xf32>
    %87 = vector.shape_cast %86 : vector<32xf32> to vector<32x1xf32>
    %88 = vector.broadcast %87 : vector<32x1xf32> to vector<32x32xf32>
    %89 = arith.subf %85, %88 : vector<32x32xf32>
    %90 = math.exp %89 : vector<32x32xf32>
    %cst_46 = arith.constant dense<0.000000e+00> : vector<32xf32>
    %91 = vector.multi_reduction <add>, %90, %cst_46 [1] : vector<32x32xf32> to vector<32xf32>
    %92 = vector.shape_cast %91 : vector<32xf32> to vector<32x1xf32>
    %93 = tpu.reciprocal %92 {approx = true} : vector<32x1xf32> -> vector<32x1xf32>
    %94 = vector.broadcast %93 : vector<32x1xf32> to vector<32x32xf32>
    %95 = arith.mulf %90, %94 : vector<32x32xf32>
    %96 = arith.truncf %95 : vector<32x32xf32> to vector<32x32xbf16>
    %c0_47 = arith.constant 0 : index
    %c24_48 = arith.constant 24 : index
    %97 = vector.load %arg21[%c0_47, %c24_48] : memref<32x32xbf16, #tpu.memory_space<vmem>>, vector<32x8xbf16>
    %cst_49 = arith.constant dense<0.000000e+00> : vector<32x8xf32>
    %98 = tpu.matmul %96, %97, %cst_49 {dimension_numbers = #tpu.dot_dimension_numbers<[1], [0], [0], [1], [0, 0, 1, 1], [], []>} : vector<32x32xbf16>, vector<32x8xbf16>, vector<32x8xf32> -> vector<32x8xf32>
    %c0_50 = arith.constant 0 : index
    %c24_51 = arith.constant 24 : index
    %99 = vector.load %arg22[%c0_50, %c24_51] : memref<32x32xf32, #tpu.memory_space<vmem>>, vector<32x8xf32>
    tpu.vector_store %arg22[%c0_50, %c24_51], %98 {strides = array<i32>} : memref<32x32xf32, #tpu.memory_space<vmem>>, vector<32x8xf32>,
    %c0_52 = arith.constant 0 : index
    %c0_53 = arith.constant 0 : index
    %100 = vector.load %arg22[%c0_52, %c0_53] : memref<32x32xf32, #tpu.memory_space<vmem>>, vector<32x32xf32>
    %101 = arith.truncf %100 : vector<32x32xf32> to vector<32x32xbf16>
    %c0_54 = arith.constant 0 : index
    %c0_55 = arith.constant 0 : index
    %102 = vector.load %arg9[%c0_54, %c0_55] : memref<32x32xbf16, #tpu.memory_space<vmem>>, vector<32x32xbf16>
    %cst_56 = arith.constant dense<0.000000e+00> : vector<32x32xf32>
    %103 = tpu.matmul %101, %102, %cst_56 {dimension_numbers = #tpu.dot_dimension_numbers<[1], [0], [0], [1], [0, 0, 1, 1], [], []>} : vector<32x32xbf16>, vector<32x32xbf16>, vector<32x32xf32> -> vector<32x32xf32>
    %c0_57 = arith.constant 0 : index
    %c0_58 = arith.constant 0 : index
    %104 = vector.load %arg10[%c0_57, %c0_58] : memref<1x32xf32, #tpu.memory_space<vmem>>, vector<1x32xf32>
    %105 = vector.broadcast %104 : vector<1x32xf32> to vector<32x32xf32>
    %106 = arith.addf %103, %105 : vector<32x32xf32>
    %107 = arith.addf %13, %106 : vector<32x32xf32>
    %c0_59 = arith.constant 0 : index
    %c0_60 = arith.constant 0 : index
    %108 = vector.load %arg11[%c0_59, %c0_60] : memref<1x32xf32, #tpu.memory_space<vmem>>, vector<1x32xf32>
    %c0_61 = arith.constant 0 : index
    %c0_62 = arith.constant 0 : index
    %109 = vector.load %arg12[%c0_61, %c0_62] : memref<1x32xf32, #tpu.memory_space<vmem>>, vector<1x32xf32>
    %cst_63 = arith.constant dense<0.000000e+00> : vector<32xf32>
    %110 = vector.multi_reduction <add>, %107, %cst_63 [1] : vector<32x32xf32> to vector<32xf32>
    %111 = vector.shape_cast %110 : vector<32xf32> to vector<32x1xf32>
    %cst_64 = arith.constant 3.200000e+01 : f32
    %112 = vector.broadcast %cst_64 : f32 to vector<32x1xf32>
    %113 = arith.divf %111, %112 : vector<32x1xf32>
    %114 = vector.broadcast %113 : vector<32x1xf32> to vector<32x32xf32>
    %115 = arith.subf %107, %114 : vector<32x32xf32>
    %116 = arith.mulf %115, %115 : vector<32x32xf32>
    %cst_65 = arith.constant dense<0.000000e+00> : vector<32xf32>
    %117 = vector.multi_reduction <add>, %116, %cst_65 [1] : vector<32x32xf32> to vector<32xf32>
    %118 = vector.shape_cast %117 : vector<32xf32> to vector<32x1xf32>
    %cst_66 = arith.constant 3.200000e+01 : f32
    %119 = vector.broadcast %cst_66 : f32 to vector<32x1xf32>
    %120 = arith.divf %118, %119 : vector<32x1xf32>
    %121 = vector.broadcast %113 : vector<32x1xf32> to vector<32x32xf32>
    %122 = arith.subf %107, %121 : vector<32x32xf32>
    %cst_67 = arith.constant 9.99999974E-6 : f32
    %123 = vector.broadcast %cst_67 : f32 to vector<32x1xf32>
    %124 = arith.addf %120, %123 : vector<32x1xf32>
    %125 = math.rsqrt %124 : vector<32x1xf32>
    %126 = vector.broadcast %125 : vector<32x1xf32> to vector<32x32xf32>
    %127 = arith.mulf %122, %126 : vector<32x32xf32>
    %128 = vector.broadcast %108 : vector<1x32xf32> to vector<32x32xf32>
    %129 = arith.mulf %127, %128 : vector<32x32xf32>
    %130 = vector.broadcast %109 : vector<1x32xf32> to vector<32x32xf32>
    %131 = arith.addf %129, %130 : vector<32x32xf32>
    %132 = arith.truncf %131 : vector<32x32xf32> to vector<32x32xbf16>
    %cst_68 = arith.constant 0.000000e+00 : f32
    %133 = vector.broadcast %cst_68 : f32 to vector<32x32xf32>
    %c0_69 = arith.constant 0 : index
    %c0_70 = arith.constant 0 : index
    %134 = vector.load %arg13[%c0_69, %c0_70] : memref<32x2048xbf16, #tpu.memory_space<vmem>>, vector<32x512xbf16>
    %cst_71 = arith.constant dense<0.000000e+00> : vector<32x512xf32>
    %135 = tpu.matmul %132, %134, %cst_71 {dimension_numbers = #tpu.dot_dimension_numbers<[1], [0], [0], [1], [0, 0, 1, 1], [], []>} : vector<32x32xbf16>, vector<32x512xbf16>, vector<32x512xf32> -> vector<32x512xf32>
    %c0_72 = arith.constant 0 : index
    %c0_73 = arith.constant 0 : index
    %136 = vector.load %arg14[%c0_72, %c0_73] : memref<1x2048xf32, #tpu.memory_space<vmem>>, vector<1x512xf32>
    %137 = vector.broadcast %136 : vector<1x512xf32> to vector<32x512xf32>
    %138 = arith.addf %135, %137 : vector<32x512xf32>
    %cst_74 = arith.constant 0.000000e+00 : f32
    %139 = vector.broadcast %cst_74 : f32 to vector<32x512xf32>
    %140 = arith.maximumf %138, %139 : vector<32x512xf32>
    %141 = arith.truncf %140 : vector<32x512xf32> to vector<32x512xbf16>
    %c0_75 = arith.constant 0 : index
    %c0_76 = arith.constant 0 : index
    %142 = vector.load %arg15[%c0_75, %c0_76] : memref<2048x32xbf16, #tpu.memory_space<vmem>>, vector<512x32xbf16>
    %cst_77 = arith.constant dense<0.000000e+00> : vector<32x32xf32>
    %143 = tpu.matmul %141, %142, %cst_77 {dimension_numbers = #tpu.dot_dimension_numbers<[1], [0], [0], [1], [0, 0, 1, 1], [], []>} : vector<32x512xbf16>, vector<512x32xbf16>, vector<32x32xf32> -> vector<32x32xf32>
    %144 = arith.addf %133, %143 : vector<32x32xf32>
    %c0_78 = arith.constant 0 : index
    %c512 = arith.constant 512 : index
    %145 = vector.load %arg13[%c0_78, %c512] : memref<32x2048xbf16, #tpu.memory_space<vmem>>, vector<32x512xbf16>
    %cst_79 = arith.constant dense<0.000000e+00> : vector<32x512xf32>
    %146 = tpu.matmul %132, %145, %cst_79 {dimension_numbers = #tpu.dot_dimension_numbers<[1], [0], [0], [1], [0, 0, 1, 1], [], []>} : vector<32x32xbf16>, vector<32x512xbf16>, vector<32x512xf32> -> vector<32x512xf32>
    %c0_80 = arith.constant 0 : index
    %c512_81 = arith.constant 512 : index
    %147 = vector.load %arg14[%c0_80, %c512_81] : memref<1x2048xf32, #tpu.memory_space<vmem>>, vector<1x512xf32>
    %148 = vector.broadcast %147 : vector<1x512xf32> to vector<32x512xf32>
    %149 = arith.addf %146, %148 : vector<32x512xf32>
    %cst_82 = arith.constant 0.000000e+00 : f32
    %150 = vector.broadcast %cst_82 : f32 to vector<32x512xf32>
    %151 = arith.maximumf %149, %150 : vector<32x512xf32>
    %152 = arith.truncf %151 : vector<32x512xf32> to vector<32x512xbf16>
    %c512_83 = arith.constant 512 : index
    %c0_84 = arith.constant 0 : index
    %153 = vector.load %arg15[%c512_83, %c0_84] : memref<2048x32xbf16, #tpu.memory_space<vmem>>, vector<512x32xbf16>
    %cst_85 = arith.constant dense<0.000000e+00> : vector<32x32xf32>
    %154 = tpu.matmul %152, %153, %cst_85 {dimension_numbers = #tpu.dot_dimension_numbers<[1], [0], [0], [1], [0, 0, 1, 1], [], []>} : vector<32x512xbf16>, vector<512x32xbf16>, vector<32x32xf32> -> vector<32x32xf32>
    %155 = arith.addf %144, %154 : vector<32x32xf32>
    %c0_86 = arith.constant 0 : index
    %c1024 = arith.constant 1024 : index
    %156 = vector.load %arg13[%c0_86, %c1024] : memref<32x2048xbf16, #tpu.memory_space<vmem>>, vector<32x512xbf16>
    %cst_87 = arith.constant dense<0.000000e+00> : vector<32x512xf32>
    %157 = tpu.matmul %132, %156, %cst_87 {dimension_numbers = #tpu.dot_dimension_numbers<[1], [0], [0], [1], [0, 0, 1, 1], [], []>} : vector<32x32xbf16>, vector<32x512xbf16>, vector<32x512xf32> -> vector<32x512xf32>
    %c0_88 = arith.constant 0 : index
    %c1024_89 = arith.constant 1024 : index
    %158 = vector.load %arg14[%c0_88, %c1024_89] : memref<1x2048xf32, #tpu.memory_space<vmem>>, vector<1x512xf32>
    %159 = vector.broadcast %158 : vector<1x512xf32> to vector<32x512xf32>
    %160 = arith.addf %157, %159 : vector<32x512xf32>
    %cst_90 = arith.constant 0.000000e+00 : f32
    %161 = vector.broadcast %cst_90 : f32 to vector<32x512xf32>
    %162 = arith.maximumf %160, %161 : vector<32x512xf32>
    %163 = arith.truncf %162 : vector<32x512xf32> to vector<32x512xbf16>
    %c1024_91 = arith.constant 1024 : index
    %c0_92 = arith.constant 0 : index
    %164 = vector.load %arg15[%c1024_91, %c0_92] : memref<2048x32xbf16, #tpu.memory_space<vmem>>, vector<512x32xbf16>
    %cst_93 = arith.constant dense<0.000000e+00> : vector<32x32xf32>
    %165 = tpu.matmul %163, %164, %cst_93 {dimension_numbers = #tpu.dot_dimension_numbers<[1], [0], [0], [1], [0, 0, 1, 1], [], []>} : vector<32x512xbf16>, vector<512x32xbf16>, vector<32x32xf32> -> vector<32x32xf32>
    %166 = arith.addf %155, %165 : vector<32x32xf32>
    %c0_94 = arith.constant 0 : index
    %c1536 = arith.constant 1536 : index
    %167 = vector.load %arg13[%c0_94, %c1536] : memref<32x2048xbf16, #tpu.memory_space<vmem>>, vector<32x512xbf16>
    %cst_95 = arith.constant dense<0.000000e+00> : vector<32x512xf32>
    %168 = tpu.matmul %132, %167, %cst_95 {dimension_numbers = #tpu.dot_dimension_numbers<[1], [0], [0], [1], [0, 0, 1, 1], [], []>} : vector<32x32xbf16>, vector<32x512xbf16>, vector<32x512xf32> -> vector<32x512xf32>
    %c0_96 = arith.constant 0 : index
    %c1536_97 = arith.constant 1536 : index
    %169 = vector.load %arg14[%c0_96, %c1536_97] : memref<1x2048xf32, #tpu.memory_space<vmem>>, vector<1x512xf32>
    %170 = vector.broadcast %169 : vector<1x512xf32> to vector<32x512xf32>
    %171 = arith.addf %168, %170 : vector<32x512xf32>
    %cst_98 = arith.constant 0.000000e+00 : f32
    %172 = vector.broadcast %cst_98 : f32 to vector<32x512xf32>
    %173 = arith.maximumf %171, %172 : vector<32x512xf32>
    %174 = arith.truncf %173 : vector<32x512xf32> to vector<32x512xbf16>
    %c1536_99 = arith.constant 1536 : index
    %c0_100 = arith.constant 0 : index
    %175 = vector.load %arg15[%c1536_99, %c0_100] : memref<2048x32xbf16, #tpu.memory_space<vmem>>, vector<512x32xbf16>
    %cst_101 = arith.constant dense<0.000000e+00> : vector<32x32xf32>
    %176 = tpu.matmul %174, %175, %cst_101 {dimension_numbers = #tpu.dot_dimension_numbers<[1], [0], [0], [1], [0, 0, 1, 1], [], []>} : vector<32x512xbf16>, vector<512x32xbf16>, vector<32x32xf32> -> vector<32x32xf32>
    %177 = arith.addf %166, %176 : vector<32x32xf32>
    %c0_102 = arith.constant 0 : index
    %c0_103 = arith.constant 0 : index
    %178 = vector.load %arg16[%c0_102, %c0_103] : memref<1x32xf32, #tpu.memory_space<vmem>>, vector<1x32xf32>
    %179 = vector.broadcast %178 : vector<1x32xf32> to vector<32x32xf32>
    %180 = arith.addf %177, %179 : vector<32x32xf32>
    %181 = arith.addf %131, %180 : vector<32x32xf32>
    %c0_104 = arith.constant 0 : index
    %c0_105 = arith.constant 0 : index
    %182 = vector.load %arg17[%c0_104, %c0_105] : memref<1x32xf32, #tpu.memory_space<vmem>>, vector<1x32xf32>
    %c0_106 = arith.constant 0 : index
    %c0_107 = arith.constant 0 : index
    %183 = vector.load %arg18[%c0_106, %c0_107] : memref<1x32xf32, #tpu.memory_space<vmem>>, vector<1x32xf32>
    %cst_108 = arith.constant dense<0.000000e+00> : vector<32xf32>
    %184 = vector.multi_reduction <add>, %181, %cst_108 [1] : vector<32x32xf32> to vector<32xf32>
    %185 = vector.shape_cast %184 : vector<32xf32> to vector<32x1xf32>
    %cst_109 = arith.constant 3.200000e+01 : f32
    %186 = vector.broadcast %cst_109 : f32 to vector<32x1xf32>
    %187 = arith.divf %185, %186 : vector<32x1xf32>
    %188 = vector.broadcast %187 : vector<32x1xf32> to vector<32x32xf32>
    %189 = arith.subf %181, %188 : vector<32x32xf32>
    %190 = arith.mulf %189, %189 : vector<32x32xf32>
    %cst_110 = arith.constant dense<0.000000e+00> : vector<32xf32>
    %191 = vector.multi_reduction <add>, %190, %cst_110 [1] : vector<32x32xf32> to vector<32xf32>
    %192 = vector.shape_cast %191 : vector<32xf32> to vector<32x1xf32>
    %cst_111 = arith.constant 3.200000e+01 : f32
    %193 = vector.broadcast %cst_111 : f32 to vector<32x1xf32>
    %194 = arith.divf %192, %193 : vector<32x1xf32>
    %195 = vector.broadcast %187 : vector<32x1xf32> to vector<32x32xf32>
    %196 = arith.subf %181, %195 : vector<32x32xf32>
    %cst_112 = arith.constant 9.99999974E-6 : f32
    %197 = vector.broadcast %cst_112 : f32 to vector<32x1xf32>
    %198 = arith.addf %194, %197 : vector<32x1xf32>
    %199 = math.rsqrt %198 : vector<32x1xf32>
    %200 = vector.broadcast %199 : vector<32x1xf32> to vector<32x32xf32>
    %201 = arith.mulf %196, %200 : vector<32x32xf32>
    %202 = vector.broadcast %182 : vector<1x32xf32> to vector<32x32xf32>
    %203 = arith.mulf %201, %202 : vector<32x32xf32>
    %204 = vector.broadcast %183 : vector<1x32xf32> to vector<32x32xf32>
    %205 = arith.addf %203, %204 : vector<32x32xf32>
    %206 = arith.truncf %205 : vector<32x32xf32> to vector<32x32xbf16>
    %c0_113 = arith.constant 0 : index
    %c0_114 = arith.constant 0 : index
    %c0_115 = arith.constant 0 : index
    %207 = vector.load %arg19[%c0_113, %c0_114, %c0_115] : memref<1x32x32xbf16, #tpu.memory_space<vmem>>, vector<1x32x32xbf16>
    %208 = vector.shape_cast %207 : vector<1x32x32xbf16> to vector<32x32xbf16>
    %209 = vector.shape_cast %206 : vector<32x32xbf16> to vector<1x32x32xbf16>
    tpu.vector_store %arg19[%c0_113, %c0_114, %c0_115], %209 {strides = array<i32>} : memref<1x32x32xbf16, #tpu.memory_space<vmem>>, vector<1x32x32xbf16>,
    return
  }
  func.func @transform_0(%arg0: i32, %arg1: i32) -> (i32, i32, i32) {
    %c0_i32 = arith.constant 0 : i32
    %c0_i32_0 = arith.constant 0 : i32
    %c0_i32_1 = arith.constant 0 : i32
    return %arg0, %c0_i32, %c0_i32_0 : i32, i32, i32
  }
  func.func @transform_1(%arg0: i32, %arg1: i32) -> (i32, i32) {
    %c0_i32 = arith.constant 0 : i32
    %c0_i32_0 = arith.constant 0 : i32
    %c0_i32_1 = arith.constant 0 : i32
    return %c0_i32, %c0_i32_0 : i32, i32
  }
  func.func @transform_2(%arg0: i32, %arg1: i32) -> (i32, i32) {
    %c0_i32 = arith.constant 0 : i32
    %c0_i32_0 = arith.constant 0 : i32
    %c0_i32_1 = arith.constant 0 : i32
    return %c0_i32, %c0_i32_0 : i32, i32
  }
  func.func @transform_3(%arg0: i32, %arg1: i32) -> (i32, i32) {
    %c0_i32 = arith.constant 0 : i32
    %c0_i32_0 = arith.constant 0 : i32
    %c0_i32_1 = arith.constant 0 : i32
    return %c0_i32, %c0_i32_0 : i32, i32
  }
  func.func @transform_4(%arg0: i32, %arg1: i32) -> (i32, i32) {
    %c0_i32 = arith.constant 0 : i32
    %c0_i32_0 = arith.constant 0 : i32
    %c0_i32_1 = arith.constant 0 : i32
    return %c0_i32, %c0_i32_0 : i32, i32
  }
  func.func @transform_5(%arg0: i32, %arg1: i32) -> (i32, i32) {
    %c0_i32 = arith.constant 0 : i32
    %c0_i32_0 = arith.constant 0 : i32
    %c0_i32_1 = arith.constant 0 : i32
    return %c0_i32, %c0_i32_0 : i32, i32
  }
  func.func @transform_6(%arg0: i32, %arg1: i32) -> (i32, i32) {
    %c0_i32 = arith.constant 0 : i32
    %c0_i32_0 = arith.constant 0 : i32
    %c0_i32_1 = arith.constant 0 : i32
    return %c0_i32, %c0_i32_0 : i32, i32
  }
  func.func @transform_7(%arg0: i32, %arg1: i32) -> (i32, i32) {
    %c0_i32 = arith.constant 0 : i32
    %c0_i32_0 = arith.constant 0 : i32
    %c0_i32_1 = arith.constant 0 : i32
    return %c0_i32, %c0_i32_0 : i32, i32
  }
  func.func @transform_8(%arg0: i32, %arg1: i32) -> (i32, i32) {
    %c0_i32 = arith.constant 0 : i32
    %c0_i32_0 = arith.constant 0 : i32
    %c0_i32_1 = arith.constant 0 : i32
    return %c0_i32, %c0_i32_0 : i32, i32
  }
  func.func @transform_9(%arg0: i32, %arg1: i32) -> (i32, i32) {
    %c0_i32 = arith.constant 0 : i32
    %c0_i32_0 = arith.constant 0 : i32
    %c0_i32_1 = arith.constant 0 : i32
    return %c0_i32, %c0_i32_0 : i32, i32
  }
  func.func @transform_10(%arg0: i32, %arg1: i32) -> (i32, i32) {
    %c0_i32 = arith.constant 0 : i32
    %c0_i32_0 = arith.constant 0 : i32
    %c0_i32_1 = arith.constant 0 : i32
    return %c0_i32, %c0_i32_0 : i32, i32
  }
  func.func @transform_11(%arg0: i32, %arg1: i32) -> (i32, i32) {
    %c0_i32 = arith.constant 0 : i32
    %c0_i32_0 = arith.constant 0 : i32
    %c0_i32_1 = arith.constant 0 : i32
    return %c0_i32, %c0_i32_0 : i32, i32
  }
  func.func @transform_12(%arg0: i32, %arg1: i32) -> (i32, i32) {
    %c0_i32 = arith.constant 0 : i32
    %c0_i32_0 = arith.constant 0 : i32
    %c0_i32_1 = arith.constant 0 : i32
    return %c0_i32, %c0_i32_0 : i32, i32
  }
  func.func @transform_13(%arg0: i32, %arg1: i32) -> (i32, i32) {
    %c0_i32 = arith.constant 0 : i32
    %c0_i32_0 = arith.constant 0 : i32
    %c0_i32_1 = arith.constant 0 : i32
    return %c0_i32, %c0_i32_0 : i32, i32
  }
  func.func @transform_14(%arg0: i32, %arg1: i32) -> (i32, i32) {
    %c0_i32 = arith.constant 0 : i32
    %c0_i32_0 = arith.constant 0 : i32
    %c0_i32_1 = arith.constant 0 : i32
    return %c0_i32, %c0_i32_0 : i32, i32
  }
  func.func @transform_15(%arg0: i32, %arg1: i32) -> (i32, i32) {
    %c0_i32 = arith.constant 0 : i32
    %c0_i32_0 = arith.constant 0 : i32
    %c0_i32_1 = arith.constant 0 : i32
    return %c0_i32, %c0_i32_0 : i32, i32
  }
  func.func @transform_16(%arg0: i32, %arg1: i32) -> (i32, i32) {
    %c0_i32 = arith.constant 0 : i32
    %c0_i32_0 = arith.constant 0 : i32
    %c0_i32_1 = arith.constant 0 : i32
    return %c0_i32, %c0_i32_0 : i32, i32
  }
  func.func @transform_17(%arg0: i32, %arg1: i32) -> (i32, i32, i32) {
    %c0_i32 = arith.constant 0 : i32
    %c0_i32_0 = arith.constant 0 : i32
    return %arg0, %arg1, %c0_i32 : i32, i32, i32
  }
}

module attributes {stable_mosaic.version = 11 : i64} {
  func.func @_encoder_layer_kernel(%arg0: i32, %arg1: i32, %arg2: memref<1x32x32xbf16, #tpu.memory_space<vmem>>, %arg3: memref<32x32xbf16, #tpu.memory_space<vmem>>, %arg4: memref<1x32xf32, #tpu.memory_space<vmem>>, %arg5: memref<32x64xbf16, #tpu.memory_space<vmem>>, %arg6: memref<1x64xf32, #tpu.memory_space<vmem>>, %arg7: memref<32x32xbf16, #tpu.memory_space<vmem>>, %arg8: memref<1x32xf32, #tpu.memory_space<vmem>>, %arg9: memref<1x32xf32, #tpu.memory_space<vmem>>, %arg10: memref<1x32xf32, #tpu.memory_space<vmem>>, %arg11: memref<32x2048xbf16, #tpu.memory_space<vmem>>, %arg12: memref<1x2048xf32, #tpu.memory_space<vmem>>, %arg13: memref<2048x32xbf16, #tpu.memory_space<vmem>>, %arg14: memref<1x32xf32, #tpu.memory_space<vmem>>, %arg15: memref<1x32xf32, #tpu.memory_space<vmem>>, %arg16: memref<1x32xf32, #tpu.memory_space<vmem>>, %arg17: memref<1x32x32xbf16, #tpu.memory_space<vmem>>, %arg18: memref<32x32xbf16, #tpu.memory_space<vmem>>, %arg19: memref<32x32xbf16, #tpu.memory_space<vmem>>, %arg20: memref<32x32xf32, #tpu.memory_space<vmem>>) attributes {dimension_semantics = [#tpu.dimension_semantics<parallel>, #tpu.dimension_semantics<arbitrary>], iteration_bounds = array<i64: 2, 1>, scalar_prefetch = 0 : i64, scratch_operands = 3 : i64, tpu.core_type = #tpu.core_type<tc>, window_params = [{transform_indices = @transform_0, window_bounds = array<i64: 1, 32, 32>}, {pipeline_mode = #tpu.pipeline_mode<synchronous>, transform_indices = @transform_1, window_bounds = array<i64: 32, 32>}, {pipeline_mode = #tpu.pipeline_mode<synchronous>, transform_indices = @transform_2, window_bounds = array<i64: 1, 32>}, {pipeline_mode = #tpu.pipeline_mode<synchronous>, transform_indices = @transform_3, window_bounds = array<i64: 32, 64>}, {pipeline_mode = #tpu.pipeline_mode<synchronous>, transform_indices = @transform_4, window_bounds = array<i64: 1, 64>}, {pipeline_mode = #tpu.pipeline_mode<synchronous>, transform_indices = @transform_5, window_bounds = array<i64: 32, 32>}, {pipeline_mode = #tpu.pipeline_mode<synchronous>, transform_indices = @transform_6, window_bounds = array<i64: 1, 32>}, {pipeline_mode = #tpu.pipeline_mode<synchronous>, transform_indices = @transform_7, window_bounds = array<i64: 1, 32>}, {pipeline_mode = #tpu.pipeline_mode<synchronous>, transform_indices = @transform_8, window_bounds = array<i64: 1, 32>}, {pipeline_mode = #tpu.pipeline_mode<synchronous>, transform_indices = @transform_9, window_bounds = array<i64: 32, 2048>}, {pipeline_mode = #tpu.pipeline_mode<synchronous>, transform_indices = @transform_10, window_bounds = array<i64: 1, 2048>}, {pipeline_mode = #tpu.pipeline_mode<synchronous>, transform_indices = @transform_11, window_bounds = array<i64: 2048, 32>}, {pipeline_mode = #tpu.pipeline_mode<synchronous>, transform_indices = @transform_12, window_bounds = array<i64: 1, 32>}, {pipeline_mode = #tpu.pipeline_mode<synchronous>, transform_indices = @transform_13, window_bounds = array<i64: 1, 32>}, {pipeline_mode = #tpu.pipeline_mode<synchronous>, transform_indices = @transform_14, window_bounds = array<i64: 1, 32>}, {transform_indices = @transform_15, window_bounds = array<i64: 1, 32, 32>}]} {
    %c0_i32 = arith.constant 0 : i32
    %0 = arith.cmpi eq, %arg1, %c0_i32 : i32
    %1 = arith.extui %0 : i1 to i32
    %c0_i32_0 = arith.constant 0 : i32
    %2 = arith.cmpi ne, %1, %c0_i32_0 : i32
    scf.if %2 {
      %c0_111 = arith.constant 0 : index
      %c0_112 = arith.constant 0 : index
      %c0_113 = arith.constant 0 : index
      %204 = vector.load %arg2[%c0_111, %c0_112, %c0_113] : memref<1x32x32xbf16, #tpu.memory_space<vmem>>, vector<1x32x32xbf16>
      %205 = vector.shape_cast %204 : vector<1x32x32xbf16> to vector<32x32xbf16>
      %c0_114 = arith.constant 0 : index
      %c0_115 = arith.constant 0 : index
      %206 = vector.load %arg5[%c0_114, %c0_115] : memref<32x64xbf16, #tpu.memory_space<vmem>>, vector<32x64xbf16>
      %cst_116 = arith.constant dense<0.000000e+00> : vector<32x64xf32>
      %207 = tpu.matmul %205, %206, %cst_116 {dimension_numbers = #tpu.dot_dimension_numbers<[1], [0], [0], [1], [0, 0, 1, 1], [], []>} : vector<32x32xbf16>, vector<32x64xbf16>, vector<32x64xf32> -> vector<32x64xf32>
      %c0_117 = arith.constant 0 : index
      %c0_118 = arith.constant 0 : index
      %208 = vector.load %arg6[%c0_117, %c0_118] : memref<1x64xf32, #tpu.memory_space<vmem>>, vector<1x64xf32>
      %209 = vector.broadcast %208 : vector<1x64xf32> to vector<32x64xf32>
      %210 = arith.addf %207, %209 : vector<32x64xf32>
      %211 = vector.extract_strided_slice %210 {offsets = [0, 0], sizes = [32, 32], strides = [1, 1]} : vector<32x64xf32> to vector<32x32xf32>
      %212 = arith.truncf %211 : vector<32x32xf32> to vector<32x32xbf16>
      %c0_119 = arith.constant 0 : index
      %c0_120 = arith.constant 0 : index
      %213 = vector.load %arg18[%c0_119, %c0_120] : memref<32x32xbf16, #tpu.memory_space<vmem>>, vector<32x32xbf16>
      tpu.vector_store %arg18[%c0_119, %c0_120], %212 {strides = array<i32>} : memref<32x32xbf16, #tpu.memory_space<vmem>>, vector<32x32xbf16>,
      %214 = vector.extract_strided_slice %210 {offsets = [0, 32], sizes = [32, 32], strides = [1, 1]} : vector<32x64xf32> to vector<32x32xf32>
      %215 = arith.truncf %214 : vector<32x32xf32> to vector<32x32xbf16>
      %c0_121 = arith.constant 0 : index
      %c0_122 = arith.constant 0 : index
      %216 = vector.load %arg19[%c0_121, %c0_122] : memref<32x32xbf16, #tpu.memory_space<vmem>>, vector<32x32xbf16>
      tpu.vector_store %arg19[%c0_121, %c0_122], %215 {strides = array<i32>} : memref<32x32xbf16, #tpu.memory_space<vmem>>, vector<32x32xbf16>,
    } else {
    }
    %c32_i32 = arith.constant 32 : i32
    %3 = arith.muli %arg1, %c32_i32 : i32
    %4 = tpu.assume_multiple %3, 32 : i32
    %c0 = arith.constant 0 : index
    %5 = arith.index_cast %4 : i32 to index
    %c0_1 = arith.constant 0 : index
    %6 = vector.load %arg2[%c0, %5, %c0_1] : memref<1x32x32xbf16, #tpu.memory_space<vmem>>, vector<1x32x32xbf16>
    %7 = vector.shape_cast %6 : vector<1x32x32xbf16> to vector<32x32xbf16>
    %8 = arith.extf %7 : vector<32x32xbf16> to vector<32x32xf32>
    %c0_2 = arith.constant 0 : index
    %c0_3 = arith.constant 0 : index
    %9 = vector.load %arg3[%c0_2, %c0_3] : memref<32x32xbf16, #tpu.memory_space<vmem>>, vector<32x32xbf16>
    %cst = arith.constant dense<0.000000e+00> : vector<32x32xf32>
    %10 = tpu.matmul %7, %9, %cst {dimension_numbers = #tpu.dot_dimension_numbers<[1], [0], [0], [1], [0, 0, 1, 1], [], []>} : vector<32x32xbf16>, vector<32x32xbf16>, vector<32x32xf32> -> vector<32x32xf32>
    %c0_4 = arith.constant 0 : index
    %c0_5 = arith.constant 0 : index
    %11 = vector.load %arg4[%c0_4, %c0_5] : memref<1x32xf32, #tpu.memory_space<vmem>>, vector<1x32xf32>
    %12 = vector.broadcast %11 : vector<1x32xf32> to vector<32x32xf32>
    %13 = arith.addf %10, %12 : vector<32x32xf32>
    %14 = vector.extract_strided_slice %13 {offsets = [0, 0], sizes = [32, 8], strides = [1, 1]} : vector<32x32xf32> to vector<32x8xf32>
    %cst_6 = arith.constant 0.353553385 : f32
    %15 = vector.broadcast %cst_6 : f32 to vector<32x8xf32>
    %16 = arith.mulf %14, %15 : vector<32x8xf32>
    %17 = arith.truncf %16 : vector<32x8xf32> to vector<32x8xbf16>
    %c0_7 = arith.constant 0 : index
    %c0_8 = arith.constant 0 : index
    %18 = vector.load %arg18[%c0_7, %c0_8] : memref<32x32xbf16, #tpu.memory_space<vmem>>, vector<32x8xbf16>
    %cst_9 = arith.constant dense<0.000000e+00> : vector<32x32xf32>
    %19 = tpu.matmul %17, %18, %cst_9 {dimension_numbers = #tpu.dot_dimension_numbers<[1], [1], [0], [0], [0, 0, 1, 0], [], []>} : vector<32x8xbf16>, vector<32x8xbf16>, vector<32x32xf32> -> vector<32x32xf32>
    %cst_10 = arith.constant dense<0xFF800000> : vector<32xf32>
    %20 = vector.multi_reduction <maximumf>, %19, %cst_10 [1] : vector<32x32xf32> to vector<32xf32>
    %21 = vector.shape_cast %20 : vector<32xf32> to vector<32x1xf32>
    %22 = vector.broadcast %21 : vector<32x1xf32> to vector<32x32xf32>
    %23 = arith.subf %19, %22 : vector<32x32xf32>
    %24 = math.exp %23 : vector<32x32xf32>
    %cst_11 = arith.constant dense<0.000000e+00> : vector<32xf32>
    %25 = vector.multi_reduction <add>, %24, %cst_11 [1] : vector<32x32xf32> to vector<32xf32>
    %26 = vector.shape_cast %25 : vector<32xf32> to vector<32x1xf32>
    %27 = tpu.reciprocal %26 {approx = true} : vector<32x1xf32> -> vector<32x1xf32>
    %28 = vector.broadcast %27 : vector<32x1xf32> to vector<32x32xf32>
    %29 = arith.mulf %24, %28 : vector<32x32xf32>
    %30 = arith.truncf %29 : vector<32x32xf32> to vector<32x32xbf16>
    %c0_12 = arith.constant 0 : index
    %c0_13 = arith.constant 0 : index
    %31 = vector.load %arg19[%c0_12, %c0_13] : memref<32x32xbf16, #tpu.memory_space<vmem>>, vector<32x8xbf16>
    %cst_14 = arith.constant dense<0.000000e+00> : vector<32x8xf32>
    %32 = tpu.matmul %30, %31, %cst_14 {dimension_numbers = #tpu.dot_dimension_numbers<[1], [0], [0], [1], [0, 0, 1, 1], [], []>} : vector<32x32xbf16>, vector<32x8xbf16>, vector<32x8xf32> -> vector<32x8xf32>
    %c0_15 = arith.constant 0 : index
    %c0_16 = arith.constant 0 : index
    %33 = vector.load %arg20[%c0_15, %c0_16] : memref<32x32xf32, #tpu.memory_space<vmem>>, vector<32x8xf32>
    tpu.vector_store %arg20[%c0_15, %c0_16], %32 {strides = array<i32>} : memref<32x32xf32, #tpu.memory_space<vmem>>, vector<32x8xf32>,
    %34 = vector.extract_strided_slice %13 {offsets = [0, 8], sizes = [32, 8], strides = [1, 1]} : vector<32x32xf32> to vector<32x8xf32>
    %cst_17 = arith.constant 0.353553385 : f32
    %35 = vector.broadcast %cst_17 : f32 to vector<32x8xf32>
    %36 = arith.mulf %34, %35 : vector<32x8xf32>
    %37 = arith.truncf %36 : vector<32x8xf32> to vector<32x8xbf16>
    %c0_18 = arith.constant 0 : index
    %c8 = arith.constant 8 : index
    %38 = vector.load %arg18[%c0_18, %c8] : memref<32x32xbf16, #tpu.memory_space<vmem>>, vector<32x8xbf16>
    %cst_19 = arith.constant dense<0.000000e+00> : vector<32x32xf32>
    %39 = tpu.matmul %37, %38, %cst_19 {dimension_numbers = #tpu.dot_dimension_numbers<[1], [1], [0], [0], [0, 0, 1, 0], [], []>} : vector<32x8xbf16>, vector<32x8xbf16>, vector<32x32xf32> -> vector<32x32xf32>
    %cst_20 = arith.constant dense<0xFF800000> : vector<32xf32>
    %40 = vector.multi_reduction <maximumf>, %39, %cst_20 [1] : vector<32x32xf32> to vector<32xf32>
    %41 = vector.shape_cast %40 : vector<32xf32> to vector<32x1xf32>
    %42 = vector.broadcast %41 : vector<32x1xf32> to vector<32x32xf32>
    %43 = arith.subf %39, %42 : vector<32x32xf32>
    %44 = math.exp %43 : vector<32x32xf32>
    %cst_21 = arith.constant dense<0.000000e+00> : vector<32xf32>
    %45 = vector.multi_reduction <add>, %44, %cst_21 [1] : vector<32x32xf32> to vector<32xf32>
    %46 = vector.shape_cast %45 : vector<32xf32> to vector<32x1xf32>
    %47 = tpu.reciprocal %46 {approx = true} : vector<32x1xf32> -> vector<32x1xf32>
    %48 = vector.broadcast %47 : vector<32x1xf32> to vector<32x32xf32>
    %49 = arith.mulf %44, %48 : vector<32x32xf32>
    %50 = arith.truncf %49 : vector<32x32xf32> to vector<32x32xbf16>
    %c0_22 = arith.constant 0 : index
    %c8_23 = arith.constant 8 : index
    %51 = vector.load %arg19[%c0_22, %c8_23] : memref<32x32xbf16, #tpu.memory_space<vmem>>, vector<32x8xbf16>
    %cst_24 = arith.constant dense<0.000000e+00> : vector<32x8xf32>
    %52 = tpu.matmul %50, %51, %cst_24 {dimension_numbers = #tpu.dot_dimension_numbers<[1], [0], [0], [1], [0, 0, 1, 1], [], []>} : vector<32x32xbf16>, vector<32x8xbf16>, vector<32x8xf32> -> vector<32x8xf32>
    %c0_25 = arith.constant 0 : index
    %c8_26 = arith.constant 8 : index
    %53 = vector.load %arg20[%c0_25, %c8_26] : memref<32x32xf32, #tpu.memory_space<vmem>>, vector<32x8xf32>
    tpu.vector_store %arg20[%c0_25, %c8_26], %52 {strides = array<i32>} : memref<32x32xf32, #tpu.memory_space<vmem>>, vector<32x8xf32>,
    %54 = vector.extract_strided_slice %13 {offsets = [0, 16], sizes = [32, 8], strides = [1, 1]} : vector<32x32xf32> to vector<32x8xf32>
    %cst_27 = arith.constant 0.353553385 : f32
    %55 = vector.broadcast %cst_27 : f32 to vector<32x8xf32>
    %56 = arith.mulf %54, %55 : vector<32x8xf32>
    %57 = arith.truncf %56 : vector<32x8xf32> to vector<32x8xbf16>
    %c0_28 = arith.constant 0 : index
    %c16 = arith.constant 16 : index
    %58 = vector.load %arg18[%c0_28, %c16] : memref<32x32xbf16, #tpu.memory_space<vmem>>, vector<32x8xbf16>
    %cst_29 = arith.constant dense<0.000000e+00> : vector<32x32xf32>
    %59 = tpu.matmul %57, %58, %cst_29 {dimension_numbers = #tpu.dot_dimension_numbers<[1], [1], [0], [0], [0, 0, 1, 0], [], []>} : vector<32x8xbf16>, vector<32x8xbf16>, vector<32x32xf32> -> vector<32x32xf32>
    %cst_30 = arith.constant dense<0xFF800000> : vector<32xf32>
    %60 = vector.multi_reduction <maximumf>, %59, %cst_30 [1] : vector<32x32xf32> to vector<32xf32>
    %61 = vector.shape_cast %60 : vector<32xf32> to vector<32x1xf32>
    %62 = vector.broadcast %61 : vector<32x1xf32> to vector<32x32xf32>
    %63 = arith.subf %59, %62 : vector<32x32xf32>
    %64 = math.exp %63 : vector<32x32xf32>
    %cst_31 = arith.constant dense<0.000000e+00> : vector<32xf32>
    %65 = vector.multi_reduction <add>, %64, %cst_31 [1] : vector<32x32xf32> to vector<32xf32>
    %66 = vector.shape_cast %65 : vector<32xf32> to vector<32x1xf32>
    %67 = tpu.reciprocal %66 {approx = true} : vector<32x1xf32> -> vector<32x1xf32>
    %68 = vector.broadcast %67 : vector<32x1xf32> to vector<32x32xf32>
    %69 = arith.mulf %64, %68 : vector<32x32xf32>
    %70 = arith.truncf %69 : vector<32x32xf32> to vector<32x32xbf16>
    %c0_32 = arith.constant 0 : index
    %c16_33 = arith.constant 16 : index
    %71 = vector.load %arg19[%c0_32, %c16_33] : memref<32x32xbf16, #tpu.memory_space<vmem>>, vector<32x8xbf16>
    %cst_34 = arith.constant dense<0.000000e+00> : vector<32x8xf32>
    %72 = tpu.matmul %70, %71, %cst_34 {dimension_numbers = #tpu.dot_dimension_numbers<[1], [0], [0], [1], [0, 0, 1, 1], [], []>} : vector<32x32xbf16>, vector<32x8xbf16>, vector<32x8xf32> -> vector<32x8xf32>
    %c0_35 = arith.constant 0 : index
    %c16_36 = arith.constant 16 : index
    %73 = vector.load %arg20[%c0_35, %c16_36] : memref<32x32xf32, #tpu.memory_space<vmem>>, vector<32x8xf32>
    tpu.vector_store %arg20[%c0_35, %c16_36], %72 {strides = array<i32>} : memref<32x32xf32, #tpu.memory_space<vmem>>, vector<32x8xf32>,
    %74 = vector.extract_strided_slice %13 {offsets = [0, 24], sizes = [32, 8], strides = [1, 1]} : vector<32x32xf32> to vector<32x8xf32>
    %cst_37 = arith.constant 0.353553385 : f32
    %75 = vector.broadcast %cst_37 : f32 to vector<32x8xf32>
    %76 = arith.mulf %74, %75 : vector<32x8xf32>
    %77 = arith.truncf %76 : vector<32x8xf32> to vector<32x8xbf16>
    %c0_38 = arith.constant 0 : index
    %c24 = arith.constant 24 : index
    %78 = vector.load %arg18[%c0_38, %c24] : memref<32x32xbf16, #tpu.memory_space<vmem>>, vector<32x8xbf16>
    %cst_39 = arith.constant dense<0.000000e+00> : vector<32x32xf32>
    %79 = tpu.matmul %77, %78, %cst_39 {dimension_numbers = #tpu.dot_dimension_numbers<[1], [1], [0], [0], [0, 0, 1, 0], [], []>} : vector<32x8xbf16>, vector<32x8xbf16>, vector<32x32xf32> -> vector<32x32xf32>
    %cst_40 = arith.constant dense<0xFF800000> : vector<32xf32>
    %80 = vector.multi_reduction <maximumf>, %79, %cst_40 [1] : vector<32x32xf32> to vector<32xf32>
    %81 = vector.shape_cast %80 : vector<32xf32> to vector<32x1xf32>
    %82 = vector.broadcast %81 : vector<32x1xf32> to vector<32x32xf32>
    %83 = arith.subf %79, %82 : vector<32x32xf32>
    %84 = math.exp %83 : vector<32x32xf32>
    %cst_41 = arith.constant dense<0.000000e+00> : vector<32xf32>
    %85 = vector.multi_reduction <add>, %84, %cst_41 [1] : vector<32x32xf32> to vector<32xf32>
    %86 = vector.shape_cast %85 : vector<32xf32> to vector<32x1xf32>
    %87 = tpu.reciprocal %86 {approx = true} : vector<32x1xf32> -> vector<32x1xf32>
    %88 = vector.broadcast %87 : vector<32x1xf32> to vector<32x32xf32>
    %89 = arith.mulf %84, %88 : vector<32x32xf32>
    %90 = arith.truncf %89 : vector<32x32xf32> to vector<32x32xbf16>
    %c0_42 = arith.constant 0 : index
    %c24_43 = arith.constant 24 : index
    %91 = vector.load %arg19[%c0_42, %c24_43] : memref<32x32xbf16, #tpu.memory_space<vmem>>, vector<32x8xbf16>
    %cst_44 = arith.constant dense<0.000000e+00> : vector<32x8xf32>
    %92 = tpu.matmul %90, %91, %cst_44 {dimension_numbers = #tpu.dot_dimension_numbers<[1], [0], [0], [1], [0, 0, 1, 1], [], []>} : vector<32x32xbf16>, vector<32x8xbf16>, vector<32x8xf32> -> vector<32x8xf32>
    %c0_45 = arith.constant 0 : index
    %c24_46 = arith.constant 24 : index
    %93 = vector.load %arg20[%c0_45, %c24_46] : memref<32x32xf32, #tpu.memory_space<vmem>>, vector<32x8xf32>
    tpu.vector_store %arg20[%c0_45, %c24_46], %92 {strides = array<i32>} : memref<32x32xf32, #tpu.memory_space<vmem>>, vector<32x8xf32>,
    %c0_47 = arith.constant 0 : index
    %c0_48 = arith.constant 0 : index
    %94 = vector.load %arg20[%c0_47, %c0_48] : memref<32x32xf32, #tpu.memory_space<vmem>>, vector<32x32xf32>
    %95 = arith.truncf %94 : vector<32x32xf32> to vector<32x32xbf16>
    %c0_49 = arith.constant 0 : index
    %c0_50 = arith.constant 0 : index
    %96 = vector.load %arg7[%c0_49, %c0_50] : memref<32x32xbf16, #tpu.memory_space<vmem>>, vector<32x32xbf16>
    %cst_51 = arith.constant dense<0.000000e+00> : vector<32x32xf32>
    %97 = tpu.matmul %95, %96, %cst_51 {dimension_numbers = #tpu.dot_dimension_numbers<[1], [0], [0], [1], [0, 0, 1, 1], [], []>} : vector<32x32xbf16>, vector<32x32xbf16>, vector<32x32xf32> -> vector<32x32xf32>
    %c0_52 = arith.constant 0 : index
    %c0_53 = arith.constant 0 : index
    %98 = vector.load %arg8[%c0_52, %c0_53] : memref<1x32xf32, #tpu.memory_space<vmem>>, vector<1x32xf32>
    %99 = vector.broadcast %98 : vector<1x32xf32> to vector<32x32xf32>
    %100 = arith.addf %97, %99 : vector<32x32xf32>
    %101 = arith.addf %8, %100 : vector<32x32xf32>
    %c0_54 = arith.constant 0 : index
    %c0_55 = arith.constant 0 : index
    %102 = vector.load %arg9[%c0_54, %c0_55] : memref<1x32xf32, #tpu.memory_space<vmem>>, vector<1x32xf32>
    %c0_56 = arith.constant 0 : index
    %c0_57 = arith.constant 0 : index
    %103 = vector.load %arg10[%c0_56, %c0_57] : memref<1x32xf32, #tpu.memory_space<vmem>>, vector<1x32xf32>
    %cst_58 = arith.constant dense<0.000000e+00> : vector<32xf32>
    %104 = vector.multi_reduction <add>, %101, %cst_58 [1] : vector<32x32xf32> to vector<32xf32>
    %105 = vector.shape_cast %104 : vector<32xf32> to vector<32x1xf32>
    %cst_59 = arith.constant 3.200000e+01 : f32
    %106 = vector.broadcast %cst_59 : f32 to vector<32x1xf32>
    %107 = arith.divf %105, %106 : vector<32x1xf32>
    %108 = vector.broadcast %107 : vector<32x1xf32> to vector<32x32xf32>
    %109 = arith.subf %101, %108 : vector<32x32xf32>
    %110 = arith.mulf %109, %109 : vector<32x32xf32>
    %cst_60 = arith.constant dense<0.000000e+00> : vector<32xf32>
    %111 = vector.multi_reduction <add>, %110, %cst_60 [1] : vector<32x32xf32> to vector<32xf32>
    %112 = vector.shape_cast %111 : vector<32xf32> to vector<32x1xf32>
    %cst_61 = arith.constant 3.200000e+01 : f32
    %113 = vector.broadcast %cst_61 : f32 to vector<32x1xf32>
    %114 = arith.divf %112, %113 : vector<32x1xf32>
    %115 = vector.broadcast %107 : vector<32x1xf32> to vector<32x32xf32>
    %116 = arith.subf %101, %115 : vector<32x32xf32>
    %cst_62 = arith.constant 9.99999974E-6 : f32
    %117 = vector.broadcast %cst_62 : f32 to vector<32x1xf32>
    %118 = arith.addf %114, %117 : vector<32x1xf32>
    %119 = math.rsqrt %118 : vector<32x1xf32>
    %120 = vector.broadcast %119 : vector<32x1xf32> to vector<32x32xf32>
    %121 = arith.mulf %116, %120 : vector<32x32xf32>
    %122 = vector.broadcast %102 : vector<1x32xf32> to vector<32x32xf32>
    %123 = arith.mulf %121, %122 : vector<32x32xf32>
    %124 = vector.broadcast %103 : vector<1x32xf32> to vector<32x32xf32>
    %125 = arith.addf %123, %124 : vector<32x32xf32>
    %126 = arith.truncf %125 : vector<32x32xf32> to vector<32x32xbf16>
    %cst_63 = arith.constant 0.000000e+00 : f32
    %127 = vector.broadcast %cst_63 : f32 to vector<32x32xf32>
    %c0_64 = arith.constant 0 : index
    %c0_65 = arith.constant 0 : index
    %128 = vector.load %arg11[%c0_64, %c0_65] : memref<32x2048xbf16, #tpu.memory_space<vmem>>, vector<32x512xbf16>
    %cst_66 = arith.constant dense<0.000000e+00> : vector<32x512xf32>
    %129 = tpu.matmul %126, %128, %cst_66 {dimension_numbers = #tpu.dot_dimension_numbers<[1], [0], [0], [1], [0, 0, 1, 1], [], []>} : vector<32x32xbf16>, vector<32x512xbf16>, vector<32x512xf32> -> vector<32x512xf32>
    %c0_67 = arith.constant 0 : index
    %c0_68 = arith.constant 0 : index
    %130 = vector.load %arg12[%c0_67, %c0_68] : memref<1x2048xf32, #tpu.memory_space<vmem>>, vector<1x512xf32>
    %131 = vector.broadcast %130 : vector<1x512xf32> to vector<32x512xf32>
    %132 = arith.addf %129, %131 : vector<32x512xf32>
    %cst_69 = arith.constant 0.000000e+00 : f32
    %133 = vector.broadcast %cst_69 : f32 to vector<32x512xf32>
    %134 = arith.maximumf %132, %133 : vector<32x512xf32>
    %135 = arith.truncf %134 : vector<32x512xf32> to vector<32x512xbf16>
    %c0_70 = arith.constant 0 : index
    %c0_71 = arith.constant 0 : index
    %136 = vector.load %arg13[%c0_70, %c0_71] : memref<2048x32xbf16, #tpu.memory_space<vmem>>, vector<512x32xbf16>
    %cst_72 = arith.constant dense<0.000000e+00> : vector<32x32xf32>
    %137 = tpu.matmul %135, %136, %cst_72 {dimension_numbers = #tpu.dot_dimension_numbers<[1], [0], [0], [1], [0, 0, 1, 1], [], []>} : vector<32x512xbf16>, vector<512x32xbf16>, vector<32x32xf32> -> vector<32x32xf32>
    %138 = arith.addf %127, %137 : vector<32x32xf32>
    %c0_73 = arith.constant 0 : index
    %c512 = arith.constant 512 : index
    %139 = vector.load %arg11[%c0_73, %c512] : memref<32x2048xbf16, #tpu.memory_space<vmem>>, vector<32x512xbf16>
    %cst_74 = arith.constant dense<0.000000e+00> : vector<32x512xf32>
    %140 = tpu.matmul %126, %139, %cst_74 {dimension_numbers = #tpu.dot_dimension_numbers<[1], [0], [0], [1], [0, 0, 1, 1], [], []>} : vector<32x32xbf16>, vector<32x512xbf16>, vector<32x512xf32> -> vector<32x512xf32>
    %c0_75 = arith.constant 0 : index
    %c512_76 = arith.constant 512 : index
    %141 = vector.load %arg12[%c0_75, %c512_76] : memref<1x2048xf32, #tpu.memory_space<vmem>>, vector<1x512xf32>
    %142 = vector.broadcast %141 : vector<1x512xf32> to vector<32x512xf32>
    %143 = arith.addf %140, %142 : vector<32x512xf32>
    %cst_77 = arith.constant 0.000000e+00 : f32
    %144 = vector.broadcast %cst_77 : f32 to vector<32x512xf32>
    %145 = arith.maximumf %143, %144 : vector<32x512xf32>
    %146 = arith.truncf %145 : vector<32x512xf32> to vector<32x512xbf16>
    %c512_78 = arith.constant 512 : index
    %c0_79 = arith.constant 0 : index
    %147 = vector.load %arg13[%c512_78, %c0_79] : memref<2048x32xbf16, #tpu.memory_space<vmem>>, vector<512x32xbf16>
    %cst_80 = arith.constant dense<0.000000e+00> : vector<32x32xf32>
    %148 = tpu.matmul %146, %147, %cst_80 {dimension_numbers = #tpu.dot_dimension_numbers<[1], [0], [0], [1], [0, 0, 1, 1], [], []>} : vector<32x512xbf16>, vector<512x32xbf16>, vector<32x32xf32> -> vector<32x32xf32>
    %149 = arith.addf %138, %148 : vector<32x32xf32>
    %c0_81 = arith.constant 0 : index
    %c1024 = arith.constant 1024 : index
    %150 = vector.load %arg11[%c0_81, %c1024] : memref<32x2048xbf16, #tpu.memory_space<vmem>>, vector<32x512xbf16>
    %cst_82 = arith.constant dense<0.000000e+00> : vector<32x512xf32>
    %151 = tpu.matmul %126, %150, %cst_82 {dimension_numbers = #tpu.dot_dimension_numbers<[1], [0], [0], [1], [0, 0, 1, 1], [], []>} : vector<32x32xbf16>, vector<32x512xbf16>, vector<32x512xf32> -> vector<32x512xf32>
    %c0_83 = arith.constant 0 : index
    %c1024_84 = arith.constant 1024 : index
    %152 = vector.load %arg12[%c0_83, %c1024_84] : memref<1x2048xf32, #tpu.memory_space<vmem>>, vector<1x512xf32>
    %153 = vector.broadcast %152 : vector<1x512xf32> to vector<32x512xf32>
    %154 = arith.addf %151, %153 : vector<32x512xf32>
    %cst_85 = arith.constant 0.000000e+00 : f32
    %155 = vector.broadcast %cst_85 : f32 to vector<32x512xf32>
    %156 = arith.maximumf %154, %155 : vector<32x512xf32>
    %157 = arith.truncf %156 : vector<32x512xf32> to vector<32x512xbf16>
    %c1024_86 = arith.constant 1024 : index
    %c0_87 = arith.constant 0 : index
    %158 = vector.load %arg13[%c1024_86, %c0_87] : memref<2048x32xbf16, #tpu.memory_space<vmem>>, vector<512x32xbf16>
    %cst_88 = arith.constant dense<0.000000e+00> : vector<32x32xf32>
    %159 = tpu.matmul %157, %158, %cst_88 {dimension_numbers = #tpu.dot_dimension_numbers<[1], [0], [0], [1], [0, 0, 1, 1], [], []>} : vector<32x512xbf16>, vector<512x32xbf16>, vector<32x32xf32> -> vector<32x32xf32>
    %160 = arith.addf %149, %159 : vector<32x32xf32>
    %c0_89 = arith.constant 0 : index
    %c1536 = arith.constant 1536 : index
    %161 = vector.load %arg11[%c0_89, %c1536] : memref<32x2048xbf16, #tpu.memory_space<vmem>>, vector<32x512xbf16>
    %cst_90 = arith.constant dense<0.000000e+00> : vector<32x512xf32>
    %162 = tpu.matmul %126, %161, %cst_90 {dimension_numbers = #tpu.dot_dimension_numbers<[1], [0], [0], [1], [0, 0, 1, 1], [], []>} : vector<32x32xbf16>, vector<32x512xbf16>, vector<32x512xf32> -> vector<32x512xf32>
    %c0_91 = arith.constant 0 : index
    %c1536_92 = arith.constant 1536 : index
    %163 = vector.load %arg12[%c0_91, %c1536_92] : memref<1x2048xf32, #tpu.memory_space<vmem>>, vector<1x512xf32>
    %164 = vector.broadcast %163 : vector<1x512xf32> to vector<32x512xf32>
    %165 = arith.addf %162, %164 : vector<32x512xf32>
    %cst_93 = arith.constant 0.000000e+00 : f32
    %166 = vector.broadcast %cst_93 : f32 to vector<32x512xf32>
    %167 = arith.maximumf %165, %166 : vector<32x512xf32>
    %168 = arith.truncf %167 : vector<32x512xf32> to vector<32x512xbf16>
    %c1536_94 = arith.constant 1536 : index
    %c0_95 = arith.constant 0 : index
    %169 = vector.load %arg13[%c1536_94, %c0_95] : memref<2048x32xbf16, #tpu.memory_space<vmem>>, vector<512x32xbf16>
    %cst_96 = arith.constant dense<0.000000e+00> : vector<32x32xf32>
    %170 = tpu.matmul %168, %169, %cst_96 {dimension_numbers = #tpu.dot_dimension_numbers<[1], [0], [0], [1], [0, 0, 1, 1], [], []>} : vector<32x512xbf16>, vector<512x32xbf16>, vector<32x32xf32> -> vector<32x32xf32>
    %171 = arith.addf %160, %170 : vector<32x32xf32>
    %c0_97 = arith.constant 0 : index
    %c0_98 = arith.constant 0 : index
    %172 = vector.load %arg14[%c0_97, %c0_98] : memref<1x32xf32, #tpu.memory_space<vmem>>, vector<1x32xf32>
    %173 = vector.broadcast %172 : vector<1x32xf32> to vector<32x32xf32>
    %174 = arith.addf %171, %173 : vector<32x32xf32>
    %175 = arith.addf %125, %174 : vector<32x32xf32>
    %c0_99 = arith.constant 0 : index
    %c0_100 = arith.constant 0 : index
    %176 = vector.load %arg15[%c0_99, %c0_100] : memref<1x32xf32, #tpu.memory_space<vmem>>, vector<1x32xf32>
    %c0_101 = arith.constant 0 : index
    %c0_102 = arith.constant 0 : index
    %177 = vector.load %arg16[%c0_101, %c0_102] : memref<1x32xf32, #tpu.memory_space<vmem>>, vector<1x32xf32>
    %cst_103 = arith.constant dense<0.000000e+00> : vector<32xf32>
    %178 = vector.multi_reduction <add>, %175, %cst_103 [1] : vector<32x32xf32> to vector<32xf32>
    %179 = vector.shape_cast %178 : vector<32xf32> to vector<32x1xf32>
    %cst_104 = arith.constant 3.200000e+01 : f32
    %180 = vector.broadcast %cst_104 : f32 to vector<32x1xf32>
    %181 = arith.divf %179, %180 : vector<32x1xf32>
    %182 = vector.broadcast %181 : vector<32x1xf32> to vector<32x32xf32>
    %183 = arith.subf %175, %182 : vector<32x32xf32>
    %184 = arith.mulf %183, %183 : vector<32x32xf32>
    %cst_105 = arith.constant dense<0.000000e+00> : vector<32xf32>
    %185 = vector.multi_reduction <add>, %184, %cst_105 [1] : vector<32x32xf32> to vector<32xf32>
    %186 = vector.shape_cast %185 : vector<32xf32> to vector<32x1xf32>
    %cst_106 = arith.constant 3.200000e+01 : f32
    %187 = vector.broadcast %cst_106 : f32 to vector<32x1xf32>
    %188 = arith.divf %186, %187 : vector<32x1xf32>
    %189 = vector.broadcast %181 : vector<32x1xf32> to vector<32x32xf32>
    %190 = arith.subf %175, %189 : vector<32x32xf32>
    %cst_107 = arith.constant 9.99999974E-6 : f32
    %191 = vector.broadcast %cst_107 : f32 to vector<32x1xf32>
    %192 = arith.addf %188, %191 : vector<32x1xf32>
    %193 = math.rsqrt %192 : vector<32x1xf32>
    %194 = vector.broadcast %193 : vector<32x1xf32> to vector<32x32xf32>
    %195 = arith.mulf %190, %194 : vector<32x32xf32>
    %196 = vector.broadcast %176 : vector<1x32xf32> to vector<32x32xf32>
    %197 = arith.mulf %195, %196 : vector<32x32xf32>
    %198 = vector.broadcast %177 : vector<1x32xf32> to vector<32x32xf32>
    %199 = arith.addf %197, %198 : vector<32x32xf32>
    %200 = arith.truncf %199 : vector<32x32xf32> to vector<32x32xbf16>
    %c0_108 = arith.constant 0 : index
    %c0_109 = arith.constant 0 : index
    %c0_110 = arith.constant 0 : index
    %201 = vector.load %arg17[%c0_108, %c0_109, %c0_110] : memref<1x32x32xbf16, #tpu.memory_space<vmem>>, vector<1x32x32xbf16>
    %202 = vector.shape_cast %201 : vector<1x32x32xbf16> to vector<32x32xbf16>
    %203 = vector.shape_cast %200 : vector<32x32xbf16> to vector<1x32x32xbf16>
    tpu.vector_store %arg17[%c0_108, %c0_109, %c0_110], %203 {strides = array<i32>} : memref<1x32x32xbf16, #tpu.memory_space<vmem>>, vector<1x32x32xbf16>,
    return
  }
  func.func @transform_0(%arg0: i32, %arg1: i32) -> (i32, i32, i32) {
    %c0_i32 = arith.constant 0 : i32
    %c0_i32_0 = arith.constant 0 : i32
    %c0_i32_1 = arith.constant 0 : i32
    return %arg0, %c0_i32, %c0_i32_0 : i32, i32, i32
  }
  func.func @transform_1(%arg0: i32, %arg1: i32) -> (i32, i32) {
    %c0_i32 = arith.constant 0 : i32
    %c0_i32_0 = arith.constant 0 : i32
    %c0_i32_1 = arith.constant 0 : i32
    return %c0_i32, %c0_i32_0 : i32, i32
  }
  func.func @transform_2(%arg0: i32, %arg1: i32) -> (i32, i32) {
    %c0_i32 = arith.constant 0 : i32
    %c0_i32_0 = arith.constant 0 : i32
    %c0_i32_1 = arith.constant 0 : i32
    return %c0_i32, %c0_i32_0 : i32, i32
  }
  func.func @transform_3(%arg0: i32, %arg1: i32) -> (i32, i32) {
    %c0_i32 = arith.constant 0 : i32
    %c0_i32_0 = arith.constant 0 : i32
    %c0_i32_1 = arith.constant 0 : i32
    return %c0_i32, %c0_i32_0 : i32, i32
  }
  func.func @transform_4(%arg0: i32, %arg1: i32) -> (i32, i32) {
    %c0_i32 = arith.constant 0 : i32
    %c0_i32_0 = arith.constant 0 : i32
    %c0_i32_1 = arith.constant 0 : i32
    return %c0_i32, %c0_i32_0 : i32, i32
  }
  func.func @transform_5(%arg0: i32, %arg1: i32) -> (i32, i32) {
    %c0_i32 = arith.constant 0 : i32
    %c0_i32_0 = arith.constant 0 : i32
    %c0_i32_1 = arith.constant 0 : i32
    return %c0_i32, %c0_i32_0 : i32, i32
  }
  func.func @transform_6(%arg0: i32, %arg1: i32) -> (i32, i32) {
    %c0_i32 = arith.constant 0 : i32
    %c0_i32_0 = arith.constant 0 : i32
    %c0_i32_1 = arith.constant 0 : i32
    return %c0_i32, %c0_i32_0 : i32, i32
  }
  func.func @transform_7(%arg0: i32, %arg1: i32) -> (i32, i32) {
    %c0_i32 = arith.constant 0 : i32
    %c0_i32_0 = arith.constant 0 : i32
    %c0_i32_1 = arith.constant 0 : i32
    return %c0_i32, %c0_i32_0 : i32, i32
  }
  func.func @transform_8(%arg0: i32, %arg1: i32) -> (i32, i32) {
    %c0_i32 = arith.constant 0 : i32
    %c0_i32_0 = arith.constant 0 : i32
    %c0_i32_1 = arith.constant 0 : i32
    return %c0_i32, %c0_i32_0 : i32, i32
  }
  func.func @transform_9(%arg0: i32, %arg1: i32) -> (i32, i32) {
    %c0_i32 = arith.constant 0 : i32
    %c0_i32_0 = arith.constant 0 : i32
    %c0_i32_1 = arith.constant 0 : i32
    return %c0_i32, %c0_i32_0 : i32, i32
  }
  func.func @transform_10(%arg0: i32, %arg1: i32) -> (i32, i32) {
    %c0_i32 = arith.constant 0 : i32
    %c0_i32_0 = arith.constant 0 : i32
    %c0_i32_1 = arith.constant 0 : i32
    return %c0_i32, %c0_i32_0 : i32, i32
  }
  func.func @transform_11(%arg0: i32, %arg1: i32) -> (i32, i32) {
    %c0_i32 = arith.constant 0 : i32
    %c0_i32_0 = arith.constant 0 : i32
    %c0_i32_1 = arith.constant 0 : i32
    return %c0_i32, %c0_i32_0 : i32, i32
  }
  func.func @transform_12(%arg0: i32, %arg1: i32) -> (i32, i32) {
    %c0_i32 = arith.constant 0 : i32
    %c0_i32_0 = arith.constant 0 : i32
    %c0_i32_1 = arith.constant 0 : i32
    return %c0_i32, %c0_i32_0 : i32, i32
  }
  func.func @transform_13(%arg0: i32, %arg1: i32) -> (i32, i32) {
    %c0_i32 = arith.constant 0 : i32
    %c0_i32_0 = arith.constant 0 : i32
    %c0_i32_1 = arith.constant 0 : i32
    return %c0_i32, %c0_i32_0 : i32, i32
  }
  func.func @transform_14(%arg0: i32, %arg1: i32) -> (i32, i32) {
    %c0_i32 = arith.constant 0 : i32
    %c0_i32_0 = arith.constant 0 : i32
    %c0_i32_1 = arith.constant 0 : i32
    return %c0_i32, %c0_i32_0 : i32, i32
  }
  func.func @transform_15(%arg0: i32, %arg1: i32) -> (i32, i32, i32) {
    %c0_i32 = arith.constant 0 : i32
    %c0_i32_0 = arith.constant 0 : i32
    return %arg0, %arg1, %c0_i32 : i32, i32, i32
  }
}

</mosaic_0001>

<bundles_post_ra>
// kernel: simple_3dvit_forward.4
= control target key start
LH: loop header
LB: loop body
LE: loop exit
PB: predicated region body
PF: predicated region fallthrough
CT: control target
= control target key end

     0   :  { %s5004_s24 = smov 0   ;;  %s5006_s25 = smov 0   ;;  %s6220_s0 = inlined_call_operand.vmem [shape: f32[2,32,4], index: 0, kind: input, shape index: {}]   ;;  %s6221_s1 = inlined_call_operand.vmem [shape: bf16[4,32], index: 1, kind: input, shape index: {}]   ;;  %s6222_s2 = inlined_call_operand.vmem [shape: f32[1,32], index: 2, kind: input, shape index: {}]   ;;  %s6223_s3 = inlined_call_operand.vmem [shape: bf16[32,32], index: 3, kind: input, shape index: {}]   ;;  %s6224_s4 = inlined_call_operand.vmem [shape: f32[1,32], index: 4, kind: input, shape index: {}]   ;;  %s6225_s5 = inlined_call_operand.vmem [shape: bf16[32,64], index: 5, kind: input, shape index: {}]   ;;  %s6226_s6 = inlined_call_operand.vmem [shape: f32[1,64], index: 6, kind: input, shape index: {}]   ;;  %s6227_s7 = inlined_call_operand.vmem [shape: bf16[32,32], index: 7, kind: input, shape index: {}]   ;;  %s6228_s8 = inlined_call_operand.vmem [shape: f32[1,32], index: 8, kind: input, shape index: {}]   ;;  %s6229_s9 = inlined_call_operand.vmem [shape: f32[1,32], index: 9, kind: input, shape index: {}]   ;;  %s6230_s10 = inlined_call_operand.vmem [shape: f32[1,32], index: 10, kind: input, shape index: {}]   ;;  %s6231_s11 = inlined_call_operand.vmem [shape: bf16[32,2048], index: 11, kind: input, shape index: {}]   ;;  %s6232_s12 = inlined_call_operand.vmem [shape: f32[1,2048], index: 12, kind: input, shape index: {}]   ;;  %s6233_s13 = inlined_call_operand.vmem [shape: bf16[2048,32], index: 13, kind: input, shape index: {}]   ;;  %s6234_s14 = inlined_call_operand.vmem [shape: f32[1,32], index: 14, kind: input, shape index: {}]   ;;  %s6235_s15 = inlined_call_operand.vmem [shape: f32[1,32], index: 15, kind: input, shape index: {}]   ;;  %s6236_s16 = inlined_call_operand.vmem [shape: f32[1,32], index: 16, kind: input, shape index: {}]   ;;  %s6237_s17 = inlined_call_operand.vmem [shape: bf16[2,32,32], index: 17, kind: output, shape index: {}]  }
   0x1   :  { %6240 = sst [smem:[#allocation5_spill]] %s6220_s0  ;;  %s5008_s26 = smov 0  }
   0x2   :  { %6241 = sst [smem:[#allocation6_spill]] %s6221_s1 }
   0x3 LB: > { %s39_s27 = sadd.s32 1, %s4900_s25  ;;  %p3780_p0 = scmp.ge.s32.totalorder %s4904_s26, 1  ;;  %s4904_s26 = sphi %s5008_s26, %s27_s26   ;;  %s4900_s25 = sphi %s5006_s25, %s6245_s25   ;;  %s4896_s24 = sphi %s5004_s24, %s6244_s24  }
   0x4   : > { %p41_p1 = scmp.ge.s32.totalorder %s39_s27, 2  ;;  %p501_p2 = scmp.lt.s32.totalorder %s4904_s26, 3 }
   0x6   : > { %s6247_s27 = smov (%p41_p1, %s39_s27), 0  ;;  %p502_p3 = pnand %p3780_p0, %p501_p2 }
   0x7   : > { %s6242_s0 = sld [smem:[#allocation6_spill]] (!%p502_p3)  ;;  %p557_p4 = scmp.lt.s32.totalorder (!%p502_p3), %s4896_s24, 1 }
   0x8   : > { %505 = sbr.rel (%p502_p3) target bundleno = 2677 (0xa75), region = 88  ;;  %s6243_s21 = sld [smem:[#allocation5_spill]] (!%p502_p3) }
   0x9   : > { %s4906_s1 = smov (!%p502_p3), 120   ;;  %s4907_s20 = smov (!%p502_p3), 112  }
   0xa   : > { %s4910_s23 = smov (!%p502_p3), 8   ;;  %s4911_s28 = smov (!%p502_p3), 16  }
   0xb   : > { %s4912_s29 = smov (!%p502_p3), 24  }
   0xd   : > { %v583_v0 = vld [vmem:[%s6242_s0] sm:$0x3]  ;;  %vm595_vm0 = vcmask 1041408   ;;  %s6249_s24 = smov (!%p557_p4, %s4896_s24), 1  ;;  %vm588_vm1 = vcmask 31744   ;;  %v4576_v10 = vld [vmem:[%s6225_s5 + $0x8] sm:$0xff] }
   0xe   : > { %v597_v1 = vsel %vm595_vm0, %v583_v0, 0  ;;  %v703_v2 = vld [vmem:[%s6242_s0] sm:$0x3]  ;;  %s4573_s19 = sshll.u32 %s6249_s24, 5  ;;  %653 = vmatpush.bf16.msra.mxu1 %v4576_v10  ;;  %v4578_v12 = vld [vmem:[%s6223_s3 + $0x8] sm:$0xff]  ;;  %vm640_vm2 = vcmask 261120  }
   0xf   : > { %606 = vmatpush.bf16.msra.mxu0 %v597_v1  ;;  %4757 = vmatpush.bf16.msra.mxu2 %v597_v1  ;;  %v717_v3 = vsel %vm595_vm0, %v703_v2, 0  ;;  %s561_s22 = scalar_lea.vmem %s6243_s21, %s4573_s19  ;;  %v4575_v11 = vld [vmem:[%s6225_s5] sm:$0xff]  ;;  %vm670_vm3 = vcmask 257024   ;;  %vm806_vm4 = vcmask 64512   ;;  %s4908_s21 = smov 104   ;;  %vm1091_vm5 = vcmask 130112  }
  0x10   : > { %v577_v4 = vld [vmem:[%s561_s22] sm:$0xff]  ;;  %v578_v5 = vld [vmem:[%s561_s22 + $0x8] sm:$0xff]  ;;  %v579_v6 = vld [vmem:[%s561_s22 + $0x10] sm:$0xff]  ;;  %773 = vmatpush.bf16.msra.mxu3 %v4578_v12  ;;  %vm1256_vm6 = vcmask 195712   ;;  %vm1421_vm7 = vcmask 261312   ;;  %s4574_s0 = sshll.u32 %s6249_s24, 4 }
  0x11   : > { %v581_v7 = vpack.c.bf16 %v578_v5, %v577_v4  ;;  %v580_v8 = vld [vmem:[%s561_s22 + $0x18] sm:$0xff]  ;;  %v4577_v13 = vld [vmem:[%s6223_s3] sm:$0xff]  ;;  %s4909_s22 = smov 96  }
  0x12   : > { %v582_v9 = vpack.c.bf16 %v580_v8, %v579_v6  ;;  %654 = vmatpush.bf16.msra.mxu1 %v4575_v11  ;;  %v4790_v15 = vld [vmem:[%s6222_s2] ss:$0 sm:$0xff] }
  0x13   : > { %726 = vmatpush.bf16.msrb.mxu2 %v717_v3  ;;  %3785 = vmatmul.msk.bf16.vlgmr.msra.gmra.mxu0 %vm588_vm1, %v581_v7  ;;  %v4791_v26 = vld [vmem:[%s6222_s2] ss:$0 sm:$0xff] }
  0x14   : > { %3786 = vmatmul.msk.bf16.vlgmr.msra.gmra.mxu2 %vm588_vm1, %v582_v9  ;;  %774 = vmatpush.bf16.msra.mxu3 %v4577_v13  ;;  %v4792_v36 = vld [vmem:[%s6226_s6] ss:$0 sm:$0xff] }
  0x15   : > { %v4793_v50 = vld [vmem:[%s6224_s4] ss:$0 sm:$0xff] }
  0x24   : > { %3797 = vmatmul.msk.bf16.vlgmr.msrb.gmra.mxu2 %vm588_vm1, %v581_v7 }
  0x34   : > { %3798 = vmatmul.msk.bf16.gmra.mxu2 %vm588_vm1, %v582_v9 }
  0x90   : > { %v608_v14 = vpop.f32.mrf.mxu0 }
  0x91   : > { %v609_v18 = vadd.f32 %v4790_v15, %v608_v14 }
  0x97   : > { %v613_v16 = vpop.f32.mrf.mxu2 }
  0x98   : > { %v610_v17 = vpop.f32.mrf.mxu0  ;;  %v614_v24 = vadd.f32 %v4790_v15, %v613_v16 }
  0x99   : > { %v611_v19 = vadd.f32 %v4790_v15, %v610_v17 }
  0x9b   : > { %v618_v20 = vpack.c.bf16 %v611_v19, %v609_v18 }
  0x9d   : > { %3795 = vmatmul.msk.bf16.vlgmr.msra.gmra.mxu1 %vm640_vm2, %v618_v20 }
  0x9f   : > { %v615_v21 = vpop.f32.mrf.mxu2 }
  0xa0   : > { %v616_v22 = vadd.f32 %v4790_v15, %v615_v21 }
  0xa2   : > { %v619_v25 = vpack.c.bf16 %v616_v22, %v614_v24 }
  0xa7   : > { %v728_v23 = vpop.f32.mrf.mxu2 }
  0xa8   : > { %v5054_v28 = vadd.f32 %v4791_v26, %v728_v23 }
  0xad   : > { %3796 = vmatmul.msk.bf16.gmra.mxu1 %vm640_vm2, %v619_v25 }
  0xaf   : > { %v730_v27 = vpop.f32.mrf.mxu2 }
  0xb0   : > { %v5056_v29 = vadd.f32 %v4791_v26, %v730_v27 }
  0xb2   : > { %v738_v30 = vpack.c.bf16 %v5056_v29, %v5054_v28 }
  0xb4   : > { %3807 = vmatmul.msk.bf16.vlgmr.msra.gmra.mxu3 %vm640_vm2, %v738_v30 }
  0xb7   : > { %v733_v31 = vpop.f32.mrf.mxu2 }
  0xb8   : > { %v5061_v32 = vadd.f32 %v4791_v26, %v733_v31 }
  0xbf   : > { %v735_v33 = vpop.f32.mrf.mxu2 }
  0xc0   : > { %v5063_v34 = vadd.f32 %v4791_v26, %v735_v33 }
  0xc2   : > { %v739_v35 = vpack.c.bf16 %v5063_v34, %v5061_v32 }
  0xc4   : > { %3808 = vmatmul.msk.bf16.gmra.mxu3 %vm640_vm2, %v739_v35 }
 0x11a   : > { %v656_v37 = vpop.f32.mrf.mxu1 }
 0x11b   : > { %v657_v38 = vadd.f32 %v4792_v36, %v656_v37 }
 0x11d   : > { %v666_v39 = vpack.c.bf16 %v657_v38, %v657_v38 }
 0x11f   : > { %671 = vst.msk [vmem:[#allocation2] sm:$0xf] %vm670_vm3, %v666_v39 }
 0x122   : > { %v658_v40 = vpop.f32.mrf.mxu1 }
 0x123   : > { %v659_v41 = vadd.f32 %v4792_v36, %v658_v40 }
 0x125   : > { %v667_v42 = vpack.c.bf16 %v659_v41, %v659_v41 }
 0x127   : > { %672 = vst.msk [vmem:[#allocation2 + $0x4] sm:$0xf] %vm670_vm3, %v667_v42 }
 0x12a   : > { %v661_v43 = vpop.f32.mrf.mxu1 }
 0x12b   : > { %v662_v44 = vadd.f32 %v4792_v36, %v661_v43 }
 0x12d   : > { %v668_v45 = vpack.c.bf16 %v662_v44, %v662_v44 }
 0x12e   : > { %v4579_v60 = vld [vmem:[#allocation2] sm:$0xff] }
 0x12f   : > { %673 = vst.msk [vmem:[#allocation2 + $0x8] sm:$0xf] %vm670_vm3, %v668_v45  ;;  %v4583_v61 = vld [vmem:[#allocation2] sm:$0xff]  ;;  %v814_v63 = vsel %vm806_vm4, %v4579_v60, 0 }
 0x130   : > { %v4587_v2 = vld [vmem:[#allocation2] sm:$0xff] }
 0x131   : > { %v4591_v8 = vld [vmem:[#allocation2] sm:$0xff] }
 0x132   : > { %v663_v46 = vpop.f32.mrf.mxu1 }
 0x133   : > { %v664_v47 = vadd.f32 %v4792_v36, %v663_v46 }
 0x135   : > { %v669_v48 = vpack.c.bf16 %v664_v47, %v664_v47 }
 0x137   : > { %674 = vst.msk [vmem:[#allocation2 + $0xc] sm:$0xf] %vm670_vm3, %v669_v48  ;;  %v776_v49 = vpop.f32.mrf.mxu3 }
 0x138   : > { %v777_v51 = vadd.f32 %v4793_v50, %v776_v49 }
 0x13a   : > { %v786_v57 = vmul.f32 0.35355338, %v777_v51 }
 0x13e   : > { %v4584_v52 = vld [vmem:[#allocation2 + $0x8] sm:$0xff] }
 0x13f   : > { %v4580_v53 = vld [vmem:[#allocation2 + $0x8] sm:$0xff]  ;;  %v778_v54 = vpop.f32.mrf.mxu3  ;;  %951 = vrot.lane.b32.xlu0 %v4584_v52, %s4906_s1 }
 0x140   : > { %v779_v55 = vadd.f32 %v4793_v50, %v778_v54  ;;  %v817_v56 = vsel %vm806_vm4, %v4580_v53, 0  ;;  %v4588_v0 = vld [vmem:[#allocation2 + $0x8] sm:$0xff] }
 0x141   : > { %825 = vmatpush.bf16.xpose.msrb.mxu0 %v817_v56  ;;  %v4592_v9 = vld [vmem:[#allocation2 + $0x8] sm:$0xff] }
 0x142   : > { %v787_v58 = vmul.f32 0.35355338, %v779_v55 }
 0x144   : > { %v790_v59 = vpack.c.bf16 %v787_v58, %v786_v57 }
 0x146   : > { %935 = vrot.lane.b32.xlu1 %v790_v59, %s4906_s1 }
 0x147   : > { %v781_v62 = vpop.f32.mrf.mxu3  ;;  %949 = vrot.lane.b32.xlu0 %v4583_v61, %s4906_s1 }
 0x148   : > { %v782_v1 = vadd.f32 %v4793_v50, %v781_v62 }
 0x149   : > { %826 = vmatpush.bf16.xpose.msrb.mxu0 %v814_v63 }
 0x14a   : > { %v788_v5 = vmul.f32 0.35355338, %v782_v1 }
 0x14e   : > { %1116 = vrot.lane.b32.xlu1 %v4588_v0, %s4907_s20 }
 0x14f   : > { %v783_v3 = vpop.f32.mrf.mxu3  ;;  %1114 = vrot.lane.b32.xlu0 %v4587_v2, %s4907_s20 }
 0x150   : > { %v784_v4 = vadd.f32 %v4793_v50, %v783_v3  ;;  %3817 = vmatmul.msk.bf16.vlgmr.msrb.gmra.mxu0 %vm806_vm4, %v790_v59 }
 0x152   : > { %v789_v6 = vmul.f32 0.35355338, %v784_v4 }
 0x154   : > { %v791_v7 = vpack.c.bf16 %v789_v6, %v788_v5 }
 0x156   : > { %937 = vrot.lane.b32.xlu2 %v791_v7, %s4906_s1  ;;  %1279 = vrot.lane.b32.xlu1 %v4591_v8, %s4908_s21 }
 0x157   : > { %1265 = vrot.lane.b32.xlu0 %v790_v59, %s4908_s21 }
 0x15e   : > { %1281 = vrot.lane.b32.xlu2 %v4592_v9, %s4908_s21  ;;  %1102 = vrot.lane.b32.xlu1 %v791_v7, %s4907_s20 }
 0x15f   : > { %683 = vrot.lane.b32.xlu0 %v668_v45, %s4909_s22 }
 0x160   : > { %3818 = vmatmul.msk.bf16.gmra.mxu0 %vm806_vm4, %v791_v7 }
 0x166   : > { %1100 = vrot.lane.b32.xlu2 %v790_v59, %s4907_s20  ;;  %685 = vrot.lane.b32.xlu1 %v669_v48, %s4909_s22 }
 0x167   : > { %681 = vrot.lane.b32.xlu0 %v667_v42, %s4909_s22 }
 0x16e   : > { %1267 = vrot.lane.b32.xlu2 %v791_v7, %s4908_s21 }
 0x176   : > { %679 = vrot.lane.b32.xlu2 %v666_v39, %s4909_s22 }
 0x1b0   : > { %v938_v10 = vpop.permute.xlu2 %937 }
 0x1b1   : > { %v952_v11 = vpop.permute.xlu0 %951 }
 0x1b2   : > { %v963_v12 = vsel %vm806_vm4, %v952_v11, 0 }
 0x1b3   : > { %971 = vmatpush.bf16.xpose.msrb.mxu1 %v963_v12 }
 0x1b8   : > { %v936_v13 = vpop.permute.xlu1 %935  ;;  %v1282_v14 = vpop.permute.xlu2 %1281 }
 0x1b9   : > { %v950_v15 = vpop.permute.xlu0 %949  ;;  %v1293_v17 = vsel %vm806_vm4, %v1282_v14, 0 }
 0x1ba   : > { %v960_v16 = vsel %vm806_vm4, %v950_v15, 0 }
 0x1bb   : > { %972 = vmatpush.bf16.xpose.msrb.mxu1 %v960_v16 }
 0x1c0   : > { %v1101_v18 = vpop.permute.xlu2 %1100  ;;  %v1117_v19 = vpop.permute.xlu1 %1116 }
 0x1c1   : > { %v1128_v20 = vsel %vm806_vm4, %v1117_v19, 0  ;;  %v1115_v21 = vpop.permute.xlu0 %1114 }
 0x1c2   : > { %1136 = vmatpush.bf16.xpose.msra.mxu0 %v1128_v20  ;;  %3837 = vmatmul.msk.bf16.vlgmr.msrb.gmra.mxu1 %vm806_vm4, %v936_v13  ;;  %v1125_v24 = vsel %vm806_vm4, %v1115_v21, 0 }
 0x1c3   : > { %1301 = vmatpush.bf16.xpose.msra.mxu1 %v1293_v17 }
 0x1c8   : > { %v1268_v22 = vpop.permute.xlu2 %1267  ;;  %v1280_v23 = vpop.permute.xlu1 %1279 }
 0x1c9   : > { %v1290_v25 = vsel %vm806_vm4, %v1280_v23, 0  ;;  %v1266_v26 = vpop.permute.xlu0 %1265 }
 0x1ca   : > { %1137 = vmatpush.bf16.xpose.msra.mxu0 %v1125_v24 }
 0x1cb   : > { %1302 = vmatpush.bf16.xpose.msra.mxu1 %v1290_v25 }
 0x1cd   : > { %v828_v41 = vpop.f32.mrf.mxu0 }
 0x1ce   : > { %v838_v44 = vsel %vm640_vm2, %v828_v41, -inf }
 0x1d0   : > { %v680_v27 = vpop.permute.xlu2 %679  ;;  %v1103_v30 = vpop.permute.xlu1 %1102 }
 0x1d1   : > { %691 = vst.msk [vmem:[#allocation3] sm:$0xf] %vm670_vm3, %v680_v27  ;;  %3857 = vmatmul.msk.bf16.vlgmr.msra.gmra.mxu0 %vm806_vm4, %v1101_v18  ;;  %v684_v31 = vpop.permute.xlu0 %683 }
 0x1d2   : > { %693 = vst.msk [vmem:[#allocation3 + $0x8] sm:$0xf] %vm670_vm3, %v684_v31  ;;  %3838 = vmatmul.msk.bf16.gmra.mxu1 %vm806_vm4, %v938_v10 }
 0x1d5   : > { %v830_v42 = vpop.f32.mrf.mxu0 }
 0x1d6   : > { %v841_v45 = vsel %vm640_vm2, %v830_v42, -inf }
 0x1d8   : > { %v686_v33 = vpop.permute.xlu1 %685 }
 0x1d9   : > { %694 = vst.msk [vmem:[#allocation3 + $0xc] sm:$0xf] %vm670_vm3, %v686_v33  ;;  %v682_v35 = vpop.permute.xlu0 %681 }
 0x1da   : > { %692 = vst.msk [vmem:[#allocation3 + $0x4] sm:$0xf] %vm670_vm3, %v682_v35 }
 0x1dd   : > { %v833_v43 = vpop.f32.mrf.mxu0 }
 0x1de   : > { %v844_v47 = vsel %vm640_vm2, %v833_v43, -inf }
 0x1e0   : > { %v4590_v36 = vld [vmem:[#allocation3 + $0x8] sm:$0xff] }
 0x1e1   : > { %v4586_v37 = vld [vmem:[#allocation3 + $0x8] sm:$0xff]  ;;  %3858 = vmatmul.msk.bf16.gmra.mxu0 %vm806_vm4, %v1103_v30  ;;  %1211 = vrot.lane.b32.xlu1 %v4590_v36, %s4907_s20  ;;  %v4585_v39 = vld [vmem:[#allocation3] sm:$0xff] }
 0x1e2   : > { %v4582_v38 = vld [vmem:[#allocation3 + $0x8] sm:$0xff]  ;;  %1046 = vrot.lane.b32.xlu0 %v4586_v37, %s4906_s1  ;;  %3877 = vmatmul.msk.bf16.vlgmr.msra.gmra.mxu1 %vm806_vm4, %v1266_v26  ;;  %v4581_v40 = vld [vmem:[#allocation3] sm:$0xff] }
 0x1e3   : > { %912 = vmatpush.bf16.msra.mxu2 %v4582_v38  ;;  %1044 = vrot.lane.b32.xlu2 %v4585_v39, %s4906_s1 }
 0x1e5   : > { %v5115_v46 = vpop.f32.mrf.mxu0 }
 0x1e6   : > { %v847_v48 = vsel %vm640_vm2, %v5115_v46, -inf }
 0x1e7   : > { %913 = vmatpush.bf16.msra.mxu2 %v4581_v40 }
 0x1f2   : > { %3878 = vmatmul.msk.bf16.gmra.mxu1 %vm806_vm4, %v1268_v22 }
 0x20b   : > { %842 = vmax.xlane.f32.xlu1 %v841_v45 }
 0x20c   : > { %839 = vmax.xlane.f32.xlu0 %v838_v44 }
 0x213   : > { %845 = vmax.xlane.f32.xlu1 %v844_v47 }
 0x214   : > { %848 = vmax.xlane.f32.xlu0 %v847_v48 }
 0x23d   : > { %v1045_v60 = vpop.permute.xlu2 %1044 }
 0x23f   : > { %v5120_v49 = vpop.f32.mrf.mxu1 }
 0x240   : > { %v984_v50 = vsel %vm640_vm2, %v5120_v49, -inf }
 0x241   : > { %985 = vmax.xlane.f32.xlu2 %v984_v50 }
 0x247   : > { %v5124_v51 = vpop.f32.mrf.mxu1 }
 0x248   : > { %v987_v52 = vsel %vm640_vm2, %v5124_v51, -inf }
 0x249   : > { %988 = vmax.xlane.f32.xlu2 %v987_v52 }
 0x24e   : > { %v5128_v53 = vpop.f32.mrf.mxu0 }
 0x24f   : > { %v1149_v54 = vsel %vm640_vm2, %v5128_v53, -inf  ;;  %v5132_v55 = vpop.f32.mrf.mxu1 }
 0x250   : > { %1150 = vmax.xlane.f32.xlu0 %v1149_v54  ;;  %v990_v62 = vsel %vm640_vm2, %v5132_v55, -inf }
 0x253   : > { %v1212_v56 = vpop.permute.xlu1 %1211 }
 0x254   : > { %v1047_v57 = vpop.permute.xlu0 %1046  ;;  %1227 = vmatpush.bf16.msrb.mxu2 %v1212_v56 }
 0x255   : > { %1062 = vmatpush.bf16.msrb.mxu3 %v1047_v57 }
 0x256   : > { %v5134_v58 = vpop.f32.mrf.mxu0 }
 0x257   : > { %v1152_v59 = vsel %vm640_vm2, %v5134_v58, -inf  ;;  %v5138_v61 = vpop.f32.mrf.mxu1 }
 0x258   : > { %1153 = vmax.xlane.f32.xlu2 %v1152_v59  ;;  %v993_v18 = vsel %vm640_vm2, %v5138_v61, -inf }
 0x259   : > { %1063 = vmatpush.bf16.msrb.mxu3 %v1045_v60 }
 0x25e   : > { %v5144_v0 = vpop.f32.mrf.mxu0 }
 0x25f   : > { %v5142_v63 = vpop.f32.mrf.mxu1  ;;  %v1155_v1 = vsel %vm640_vm2, %v5144_v0, -inf }
 0x260   : > { %991 = vmax.xlane.f32.xlu2 %v990_v62  ;;  %v1314_v31 = vsel %vm640_vm2, %v5142_v63, -inf }
 0x266   : > { %v5168_v21 = vpop.f32.mrf.mxu0 }
 0x267   : > { %v5148_v2 = vpop.f32.mrf.mxu1  ;;  %v1158_v22 = vsel %vm640_vm2, %v5168_v21, -inf }
 0x268   : > { %1156 = vmax.xlane.f32.xlu2 %v1155_v1  ;;  %v1317_v19 = vsel %vm640_vm2, %v5148_v2, -inf  ;;  %v4589_v1 = vld [vmem:[#allocation3] sm:$0xff] }
 0x26f   : > { %v5150_v3 = vpop.f32.mrf.mxu1 }
 0x270   : > { %v1320_v23 = vsel %vm640_vm2, %v5150_v3, -inf }
 0x277   : > { %v5152_v4 = vpop.f32.mrf.mxu1 }
 0x278   : > { %v1323_v5 = vsel %vm640_vm2, %v5152_v4, -inf }
 0x279   : > { %1324 = vmax.xlane.f32.xlu2 %v1323_v5  ;;  %v4594_v5 = vld [vmem:[#allocation3 + $0x8] sm:$0xff] }
 0x27e   : > { %v843_v7 = vpop.xlane.xlu1 %842 }
 0x27f   : > { %v840_v6 = vpop.xlane.xlu0 %839  ;;  %v851_v9 = vsub.f32 %v830_v42, %v843_v7 }
 0x280   : > { %v850_v8 = vsub.f32 %v828_v41, %v840_v6 }
 0x281   : > { %v856_v11 = vmul.f32 1.442695, %v851_v9 }
 0x282   : > { %v854_v10 = vmul.f32 1.442695, %v850_v8 }
 0x284   : > { %4800 = vpow2.f32 %v854_v10 }
 0x285   : > { %4802 = vpow2.f32 %v856_v11 }
 0x286   : > { %v846_v16 = vpop.xlane.xlu1 %845 }
 0x287   : > { %v852_v17 = vsub.f32 %v833_v43, %v846_v16  ;;  %v849_v24 = vpop.xlane.xlu0 %848 }
 0x288   : > { %v853_v26 = vsub.f32 %v5115_v46, %v849_v24 }
 0x289   : > { %v858_v20 = vmul.f32 1.442695, %v852_v17 }
 0x28a   : > { %v5156_v12 = vpop.eup %4800  ;;  %v860_v30 = vmul.f32 1.442695, %v853_v26 }
 0x28b   : > { %v5158_v13 = vpop.eup %4802  ;;  %v862_v14 = vsel %vm640_vm2, %v5156_v12, 0.0  ;;  %4804 = vpow2.f32 %v858_v20 }
 0x28c   : > { %863 = vadd.xlane.f32.xlu1 %v862_v14  ;;  %v865_v15 = vsel %vm640_vm2, %v5158_v13, 0.0  ;;  %4806 = vpow2.f32 %v860_v30 }
 0x28d   : > { %866 = vadd.xlane.f32.xlu0 %v865_v15 }
 0x291   : > { %v5174_v25 = vpop.eup %4804 }
 0x292   : > { %v868_v27 = vsel %vm640_vm2, %v5174_v25, 0.0  ;;  %v5181_v33 = vpop.eup %4806 }
 0x293   : > { %v871_v35 = vsel %vm640_vm2, %v5181_v33, 0.0 }
 0x294   : > { %994 = vmax.xlane.f32.xlu1 %v993_v18 }
 0x295   : > { %1318 = vmax.xlane.f32.xlu0 %v1317_v19 }
 0x29c   : > { %1159 = vmax.xlane.f32.xlu1 %v1158_v22 }
 0x29d   : > { %1321 = vmax.xlane.f32.xlu0 %v1320_v23 }
 0x2a4   : > { %869 = vadd.xlane.f32.xlu1 %v868_v27 }
 0x2ac   : > { %1315 = vmax.xlane.f32.xlu1 %v1314_v31 }
 0x2b4   : > { %872 = vadd.xlane.f32.xlu1 %v871_v35  ;;  %v986_v36 = vpop.xlane.xlu2 %985 }
 0x2b5   : > { %v996_v37 = vsub.f32 %v5120_v49, %v986_v36 }
 0x2b7   : > { %v1000_v38 = vmul.f32 1.442695, %v996_v37 }
 0x2b9   : > { %4808 = vpow2.f32 %v1000_v38 }
 0x2bc   : > { %v989_v39 = vpop.xlane.xlu2 %988 }
 0x2bd   : > { %v997_v40 = vsub.f32 %v5124_v51, %v989_v39 }
 0x2bf   : > { %v5187_v41 = vpop.eup %4808  ;;  %v1002_v42 = vmul.f32 1.442695, %v997_v40 }
 0x2c0   : > { %v1008_v43 = vsel %vm640_vm2, %v5187_v41, 0.0 }
 0x2c1   : > { %4810 = vpow2.f32 %v1002_v42  ;;  %1009 = vadd.xlane.f32.xlu2 %v1008_v43 }
 0x2c3   : > { %v1151_v44 = vpop.xlane.xlu0 %1150 }
 0x2c4   : > { %v1161_v45 = vsub.f32 %v5128_v53, %v1151_v44 }
 0x2c6   : > { %v1165_v46 = vmul.f32 1.442695, %v1161_v45 }
 0x2c7   : > { %v5192_v47 = vpop.eup %4810 }
 0x2c8   : > { %4812 = vpow2.f32 %v1165_v46  ;;  %v1011_v48 = vsel %vm640_vm2, %v5192_v47, 0.0 }
 0x2c9   : > { %1012 = vadd.xlane.f32.xlu1 %v1011_v48 }
 0x2cb   : > { %v1154_v49 = vpop.xlane.xlu2 %1153 }
 0x2cc   : > { %v1162_v50 = vsub.f32 %v5134_v58, %v1154_v49 }
 0x2ce   : > { %v5197_v51 = vpop.eup %4812  ;;  %v1167_v52 = vmul.f32 1.442695, %v1162_v50 }
 0x2cf   : > { %v1173_v54 = vsel %vm640_vm2, %v5197_v51, 0.0 }
 0x2d0   : > { %4814 = vpow2.f32 %v1167_v52  ;;  %1174 = vadd.xlane.f32.xlu2 %v1173_v54 }
 0x2d3   : > { %v992_v53 = vpop.xlane.xlu2 %991 }
 0x2d4   : > { %v998_v56 = vsub.f32 %v5132_v55, %v992_v53 }
 0x2d6   : > { %v5202_v57 = vpop.eup %4814  ;;  %v1004_v59 = vmul.f32 1.442695, %v998_v56 }
 0x2d7   : > { %v1176_v60 = vsel %vm640_vm2, %v5202_v57, 0.0 }
 0x2d8   : > { %4816 = vpow2.f32 %v1004_v59  ;;  %1177 = vadd.xlane.f32.xlu1 %v1176_v60 }
 0x2db   : > { %v1157_v16 = vpop.xlane.xlu2 %1156 }
 0x2dc   : > { %v1163_v19 = vsub.f32 %v5144_v0, %v1157_v16 }
 0x2de   : > { %v5206_v58 = vpop.eup %4816  ;;  %v1169_v22 = vmul.f32 1.442695, %v1163_v19 }
 0x2df   : > { %v1014_v62 = vsel %vm640_vm2, %v5206_v58, 0.0 }
 0x2e0   : > { %1015 = vadd.xlane.f32.xlu0 %v1014_v62 }
 0x2e8   : > { %1209 = vrot.lane.b32.xlu2 %v4589_v1, %s4907_s20  ;;  %s6198_s20 = scalar_lea.vmem %s6237_s17, %s4574_s0 }
 0x2ec   : > { %v1325_v24 = vpop.xlane.xlu2 %1324 }
 0x2ed   : > { %v1329_v27 = vsub.f32 %v5152_v4, %v1325_v24 }
 0x2ef   : > { %v1336_v30 = vmul.f32 1.442695, %v1329_v27 }
 0x2f4   : > { %1376 = vrot.lane.b32.xlu0 %v4594_v5, %s4908_s21 }
 0x2ff   : > { %v864_v55 = vpop.xlane.xlu1 %863 }
 0x300   : > { %4818 = vrcp.f32 %v864_v55  ;;  %v867_v6 = vpop.xlane.xlu0 %866 }
 0x301   : > { %4820 = vrcp.f32 %v867_v6  ;;  %v4593_v6 = vld [vmem:[#allocation3] sm:$0xff] }
 0x306   : > { %v4819_v7 = vpop.eup %4818 }
 0x307   : > { %v4821_v8 = vpop.eup %4820  ;;  %v878_v9 = vmul.f32 %v4819_v7, %v5156_v12  ;;  %v995_v10 = vpop.xlane.xlu1 %994 }
 0x308   : > { %v879_v11 = vmul.f32 %v4821_v8, %v5158_v13  ;;  %v999_v14 = vsub.f32 %v5138_v61, %v995_v10  ;;  %v1319_v15 = vpop.xlane.xlu0 %1318 }
 0x309   : > { %v1327_v39 = vsub.f32 %v5148_v2, %v1319_v15 }
 0x30a   : > { %v882_v17 = vpack.c.bf16 %v879_v11, %v878_v9  ;;  %v1006_v18 = vmul.f32 1.442695, %v999_v14 }
 0x30b   : > { %v1332_v43 = vmul.f32 1.442695, %v1327_v39 }
 0x30c   : > { %4822 = vpow2.f32 %v1006_v18  ;;  %3827 = vmatmul.msk.bf16.vlgmr.msra.gmra.mxu2 %vm640_vm2, %v882_v17 }
 0x30d   : > { %4824 = vpow2.f32 %v1169_v22 }
 0x30f   : > { %v5217_v20 = vpop.xlane.xlu1 %1159 }
 0x310   : > { %v1322_v23 = vpop.xlane.xlu0 %1321  ;;  %v1164_v11 = vsub.f32 %v5168_v21, %v5217_v20 }
 0x311   : > { %v1328_v12 = vsub.f32 %v5150_v3, %v1322_v23 }
 0x312   : > { %v5220_v26 = vpop.eup %4822  ;;  %v1171_v15 = vmul.f32 1.442695, %v1164_v11 }
 0x313   : > { %v1334_v13 = vmul.f32 1.442695, %v1328_v12  ;;  %v1017_v61 = vsel %vm640_vm2, %v5220_v26, 0.0  ;;  %v5225_v31 = vpop.eup %4824 }
 0x314   : > { %1018 = vadd.xlane.f32.xlu1 %v1017_v61  ;;  %v1179_v36 = vsel %vm640_vm2, %v5225_v31, 0.0 }
 0x315   : > { %4826 = vpow2.f32 %v1334_v13 }
 0x316   : > { %4828 = vpow2.f32 %v1336_v30 }
 0x317   : > { %v870_v0 = vpop.xlane.xlu1 %869 }
 0x31b   : > { %v5227_v35 = vpop.eup %4826 }
 0x31c   : > { %v1344_v3 = vsel %vm640_vm2, %v5227_v35, 0.0  ;;  %v5234_v38 = vpop.eup %4828 }
 0x31d   : > { %1345 = vadd.xlane.f32.xlu2 %v1344_v3  ;;  %v1347_v42 = vsel %vm640_vm2, %v5234_v38, 0.0 }
 0x31e   : > { %1180 = vadd.xlane.f32.xlu0 %v1179_v36 }
 0x31f   : > { %v1316_v37 = vpop.xlane.xlu1 %1315 }
 0x320   : > { %v1326_v4 = vsub.f32 %v5142_v63, %v1316_v37 }
 0x322   : > { %v1330_v40 = vmul.f32 1.442695, %v1326_v4 }
 0x324   : > { %4830 = vpow2.f32 %v1330_v40 }
 0x325   : > { %4832 = vrcp.f32 %v870_v0 }
 0x326   : > { %1348 = vadd.xlane.f32.xlu0 %v1347_v42 }
 0x327   : > { %v873_v44 = vpop.xlane.xlu1 %872 }
 0x328   : > { %4834 = vrcp.f32 %v873_v44 }
 0x329   : > { %4836 = vpow2.f32 %v1332_v43 }
 0x32a   : > { %v5239_v45 = vpop.eup %4830 }
 0x32b   : > { %v1338_v63 = vsel %vm640_vm2, %v5239_v45, 0.0  ;;  %v4833_v46 = vpop.eup %4832 }
 0x32c   : > { %1339 = vadd.xlane.f32.xlu1 %v1338_v63  ;;  %v880_v2 = vmul.f32 %v4833_v46, %v5174_v25 }
 0x32e   : > { %v4835_v48 = vpop.eup %4834 }
 0x32f   : > { %v881_v49 = vmul.f32 %v4835_v48, %v5181_v33  ;;  %v4837_v50 = vpop.eup %4836 }
 0x330   : > { %v1341_v54 = vsel %vm640_vm2, %v4837_v50, 0.0 }
 0x331   : > { %v883_v52 = vpack.c.bf16 %v881_v49, %v880_v2 }
 0x333   : > { %3828 = vmatmul.msk.bf16.gmra.mxu2 %vm640_vm2, %v883_v52 }
 0x334   : > { %1342 = vadd.xlane.f32.xlu1 %v1341_v54  ;;  %v1010_v53 = vpop.xlane.xlu2 %1009 }
 0x335   : > { %4838 = vrcp.f32 %v1010_v53 }
 0x33b   : > { %v4839_v59 = vpop.eup %4838 }
 0x33c   : > { %v1013_v56 = vpop.xlane.xlu1 %1012  ;;  %v1024_v1 = vmul.f32 %v4839_v59, %v5187_v41 }
 0x33d   : > { %4840 = vrcp.f32 %v1013_v56 }
 0x343   : > { %v1175_v60 = vpop.xlane.xlu2 %1174  ;;  %v4841_v62 = vpop.eup %4840 }
 0x344   : > { %v1025_v25 = vmul.f32 %v4841_v62, %v5192_v47  ;;  %4842 = vrcp.f32 %v1175_v60 }
 0x346   : > { %v1028_v5 = vpack.c.bf16 %v1025_v25, %v1024_v1 }
 0x348   : > { %3847 = vmatmul.msk.bf16.vlgmr.msrb.gmra.mxu3 %vm640_vm2, %v1028_v5 }
 0x34a   : > { %v4843_v7 = vpop.eup %4842 }
 0x34b   : > { %v1178_v33 = vpop.xlane.xlu1 %1177  ;;  %v1210_v55 = vpop.permute.xlu2 %1209  ;;  %v1189_v9 = vmul.f32 %v4843_v7, %v5197_v51  ;;  %v4596_v7 = vld [vmem:[%s6227_s7 + $0x8] sm:$0xff] }
 0x34c   : > { %4844 = vrcp.f32 %v1178_v33  ;;  %1228 = vmatpush.bf16.msrb.mxu2 %v1210_v55  ;;  %1464 = vmatpush.bf16.msrb.mxu0 %v4596_v7  ;;  %v3925_v7 = vld [vmem:[%s6231_s11 + $0x88] sm:$0xf] }
 0x34d   : > { %1374 = vrot.lane.b32.xlu1 %v4593_v6, %s4908_s21  ;;  %4846 = vpow2.f32 %v1171_v15 }
 0x352   : > { %v4845_v8 = vpop.eup %4844 }
 0x353   : > { %v1190_v10 = vmul.f32 %v4845_v8, %v5202_v57  ;;  %v1016_v47 = vpop.xlane.xlu0 %1015  ;;  %v4847_v16 = vpop.eup %4846  ;;  %v4595_v8 = vld [vmem:[%s6227_s7] sm:$0xff] }
 0x354   : > { %v1182_v17 = vsel %vm640_vm2, %v4847_v16, 0.0  ;;  %4848 = vrcp.f32 %v1016_v47  ;;  %1465 = vmatpush.bf16.msrb.mxu0 %v4595_v8  ;;  %v4604_v8 = vld [vmem:[%s6231_s11 + $0xc4] sm:$0xf0] }
 0x355   : > { %v1193_v41 = vpack.c.bf16 %v1190_v10, %v1189_v9 }
 0x357   : > { %3867 = vmatmul.msk.bf16.vlgmr.msrb.gmra.mxu2 %vm640_vm2, %v1193_v41 }
 0x35a   : > { %v4849_v51 = vpop.eup %4848 }
 0x35b   : > { %v1026_v22 = vmul.f32 %v4849_v51, %v5206_v58 }
 0x366   : > { %v1377_v14 = vpop.permute.xlu0 %1376 }
 0x367   : > { %1392 = vmatpush.bf16.msra.mxu3 %v1377_v14 }
 0x377   : > { %1183 = vadd.xlane.f32.xlu1 %v1182_v17 }
 0x387   : > { %v1019_v18 = vpop.xlane.xlu1 %1018 }
 0x388   : > { %4850 = vrcp.f32 %v1019_v18 }
 0x38e   : > { %v4851_v57 = vpop.eup %4850 }
 0x38f   : > { %v915_v19 = vpop.f32.mrf.mxu2  ;;  %v1027_v23 = vmul.f32 %v4851_v57, %v5220_v26 }
 0x390   : > { %925 = vst.msk [vmem:[#allocation4] sm:$0xff] %vm806_vm4, %v915_v19  ;;  %v1346_v4 = vpop.xlane.xlu2 %1345 }
 0x391   : > { %v1029_v21 = vpack.c.bf16 %v1027_v23, %v1026_v22  ;;  %v1181_v61 = vpop.xlane.xlu0 %1180  ;;  %v4794_v22 = vld [vmem:[%s6228_s8] ss:$0 sm:$0xff] }
 0x393   : > { %3848 = vmatmul.msk.bf16.gmra.mxu3 %vm640_vm2, %v1029_v21 }
 0x397   : > { %v917_v20 = vpop.f32.mrf.mxu2 }
 0x398   : > { %926 = vst.msk [vmem:[#allocation4 + $0x8] sm:$0xff] %vm806_vm4, %v917_v20 }
 0x399   : > { %v1349_v36 = vpop.xlane.xlu0 %1348 }
 0x39f   : > { %v1340_v24 = vpop.xlane.xlu1 %1339 }
 0x3a7   : > { %v1343_v12 = vpop.xlane.xlu1 %1342 }
 0x3a8   : > { %4852 = vrcp.f32 %v1343_v12 }
 0x3a9   : > { %4854 = vrcp.f32 %v1340_v24 }
 0x3aa   : > { %4856 = vrcp.f32 %v1349_v36 }
 0x3ab   : > { %4858 = vrcp.f32 %v1346_v4  ;;  %v4913_v4 = vmov 32.0  }
 0x3ac   : > { %4860 = vrcp.f32 %v1181_v61 }
 0x3ae   : > { %v4853_v27 = vpop.eup %4852 }
 0x3af   : > { %v4855_v58 = vpop.eup %4854  ;;  %v1355_v0 = vmul.f32 %v4853_v27, %v4837_v50 }
 0x3b0   : > { %v1354_v30 = vmul.f32 %v4855_v58, %v5239_v45  ;;  %v4857_v39 = vpop.eup %4856 }
 0x3b1   : > { %v4859_v40 = vpop.eup %4858  ;;  %v1357_v43 = vmul.f32 %v4857_v39, %v5234_v38 }
 0x3b2   : > { %v1358_v37 = vpack.c.bf16 %v1355_v0, %v1354_v30  ;;  %v1356_v44 = vmul.f32 %v4859_v40, %v5227_v35  ;;  %v4861_v49 = vpop.eup %4860 }
 0x3b3   : > { %v1191_v35 = vmul.f32 %v4861_v49, %v5225_v31 }
 0x3b4   : > { %v1359_v45 = vpack.c.bf16 %v1357_v43, %v1356_v44 }
 0x3b6   : > { %v920_v13 = vpop.f32.mrf.mxu2 }
 0x3b7   : > { %927 = vst.msk [vmem:[#allocation4 + $0x10] sm:$0xff] %vm806_vm4, %v920_v13 }
 0x3be   : > { %v922_v26 = vpop.f32.mrf.mxu2 }
 0x3bf   : > { %928 = vst.msk [vmem:[#allocation4 + $0x18] sm:$0xff] %vm806_vm4, %v922_v26  ;;  %v1375_v3 = vpop.permute.xlu1 %1374 }
 0x3c0   : > { %1393 = vmatpush.bf16.msra.mxu3 %v1375_v3 }
 0x3c3   : > { %3887 = vmatmul.msk.bf16.vlgmr.msra.gmra.mxu3 %vm640_vm2, %v1358_v37 }
 0x3cb   : > { %v1065_v42 = vpop.f32.mrf.mxu3 }
 0x3cc   : > { %1079 = vrot.lane.b32.xlu1 %v1065_v42, %s4910_s23 }
 0x3d3   : > { %3888 = vmatmul.msk.bf16.gmra.mxu3 %vm640_vm2, %v1359_v45  ;;  %v1067_v63 = vpop.f32.mrf.mxu3 }
 0x3d4   : > { %1081 = vrot.lane.b32.xlu0 %v1067_v63, %s4910_s23 }
 0x3da   : > { %v1230_v46 = vpop.f32.mrf.mxu2 }
 0x3db   : > { %1244 = vrot.lane.b32.xlu2 %v1230_v46, %s4911_s28 }
 0x3e2   : > { %v1232_v48 = vpop.f32.mrf.mxu2 }
 0x3e3   : > { %1246 = vrot.lane.b32.xlu0 %v1232_v48, %s4911_s28 }
 0x3ea   : > { %v1184_v2 = vpop.xlane.xlu1 %1183 }
 0x3eb   : > { %4862 = vrcp.f32 %v1184_v2 }
 0x3ec   : > { %4864 = vrcp.f32 %v4913_v4 }
 0x3f1   : > { %v4863_v38 = vpop.eup %4862 }
 0x3f2   : > { %v1192_v50 = vmul.f32 %v4863_v38, %v4847_v16 }
 0x3f4   : > { %v1194_v52 = vpack.c.bf16 %v1192_v50, %v1191_v35 }
 0x3f6   : > { %3868 = vmatmul.msk.bf16.gmra.mxu2 %vm640_vm2, %v1194_v52 }
 0x416   : > { %v1070_v54 = vpop.f32.mrf.mxu3 }
 0x417   : > { %1083 = vrot.lane.b32.xlu0 %v1070_v54, %s4910_s23 }
 0x41e   : > { %v1072_v53 = vpop.f32.mrf.mxu3 }
 0x435   : > { %v1245_v59 = vpop.permute.xlu2 %1244 }
 0x43e   : > { %v1080_v56 = vpop.permute.xlu1 %1079 }
 0x43f   : > { %1092 = vst.msk [vmem:[#allocation4] sm:$0xff] %vm1091_vm5, %v1080_v56 }
 0x440   : > { %1257 = vst.msk [vmem:[#allocation4] sm:$0xff] %vm1256_vm6, %v1245_v59 }
 0x446   : > { %v1395_v60 = vpop.f32.mrf.mxu3  ;;  %v1082_v31 = vpop.permute.xlu0 %1081 }
 0x447   : > { %1409 = vrot.lane.b32.xlu1 %v1395_v60, %s4912_s29  ;;  %1093 = vst.msk [vmem:[#allocation4 + $0x8] sm:$0xff] %vm1091_vm5, %v1082_v31 }
 0x44e   : > { %v1397_v62 = vpop.f32.mrf.mxu3 }
 0x44f   : > { %1085 = vrot.lane.b32.xlu1 %v1072_v53, %s4910_s23  ;;  %1411 = vrot.lane.b32.xlu2 %v1397_v62, %s4912_s29 }
 0x455   : > { %v1247_v1 = vpop.permute.xlu0 %1246 }
 0x456   : > { %1258 = vst.msk [vmem:[#allocation4 + $0x8] sm:$0xff] %vm1256_vm6, %v1247_v1  ;;  %v1400_v25 = vpop.f32.mrf.mxu3 }
 0x457   : > { %1413 = vrot.lane.b32.xlu1 %v1400_v25, %s4912_s29  ;;  %v3917_v25 = vld [vmem:[%s6231_s11 + $0x80] sm:$0xf] }
 0x45e   : > { %v1402_v33 = vpop.f32.mrf.mxu3 }
 0x479   : > { %v1235_v5 = vpop.f32.mrf.mxu2 }
 0x47a   : > { %1248 = vrot.lane.b32.xlu2 %v1235_v5, %s4911_s28  ;;  %v4603_v5 = vld [vmem:[%s6231_s11 + $0xbc] sm:$0xf0] }
 0x481   : > { %v1237_v55 = vpop.f32.mrf.mxu2 }
 0x482   : > { %1250 = vrot.lane.b32.xlu0 %v1237_v55, %s4911_s28  ;;  %1415 = vrot.lane.b32.xlu2 %v1402_v33, %s4912_s29  ;;  %v4601_v33 = vld [vmem:[%s6231_s11 + $0x84] sm:$0xf]  ;;  %v3918_v55 = vor.u32 %v4603_v5, %v3917_v25 }
 0x484   : > { %1664 = vmatpush.bf16.msra.mxu2 %v3918_v55  ;;  %v4639_v55 = vld [vmem:[%s6231_s11 + $0x4c] sm:$0xf0] }
 0x489   : > { %v1084_v6 = vpop.permute.xlu0 %1083 }
 0x48a   : > { %1094 = vst.msk [vmem:[#allocation4 + $0x10] sm:$0xff] %vm1091_vm5, %v1084_v6  ;;  %v3919_v6 = vld [vmem:[%s6231_s11 + $0xc0] sm:$0xf0] }
 0x4a9   : > { %v1412_v9 = vpop.permute.xlu2 %1411 }
 0x4aa   : > { %1423 = vst.msk [vmem:[#allocation4 + $0x8] sm:$0xff] %vm1421_vm7, %v1412_v9 }
 0x4b1   : > { %v1427_v11 = vld [vmem:[#allocation4 + $0x8] sm:$0xff] }
 0x4b9   : > { %v1410_v10 = vpop.permute.xlu1 %1409 }
 0x4ba   : > { %1422 = vst.msk [vmem:[#allocation4] sm:$0xff] %vm1421_vm7, %v1410_v10  ;;  %v3922_v10 = vor.u32 %v4601_v33, %v3919_v6  ;;  %v3941_v33 = vld [vmem:[%s6231_s11 + $0x10] sm:$0xf]  ;;  %v3949_v6 = vld [vmem:[%s6231_s11 + $0x18] sm:$0xf] }
 0x4bc   : > { %1683 = vmatpush.bf16.msrb.mxu1 %v3922_v10  ;;  %v4641_v10 = vld [vmem:[%s6231_s11 + $0x94] sm:$0xf] }
 0x4c1   : > { %v1086_v41 = vpop.permute.xlu1 %1085  ;;  %v1426_v47 = vld [vmem:[#allocation4] sm:$0xff] }
 0x4c2   : > { %1095 = vst.msk [vmem:[#allocation4 + $0x18] sm:$0xff] %vm1091_vm5, %v1086_v41  ;;  %v1430_v14 = vpack.c.bf16 %v1427_v11, %v1426_v47  ;;  %v3926_v41 = vor.u32 %v4604_v8, %v3925_v7  ;;  %v4602_v47 = vld [vmem:[%s6231_s11 + $0x8c] sm:$0xf]  ;;  %v3942_v8 = vor.u32 %v4639_v55, %v3941_v33  ;;  %v4665_v33 = vld [vmem:[%s6233_s13 + $0x1a0] sm:$0xff]  ;;  %v4655_v55 = vld [vmem:[%s6233_s13 + $0x150] sm:$0xff] }
 0x4c3   : > { %v3927_v11 = vld [vmem:[%s6231_s11 + $0xc8] sm:$0xf0] }
 0x4c4   : > { %3897 = vmatmul.msk.bf16.vlgmr.msrb.gmra.mxu0 %vm640_vm2, %v1430_v14  ;;  %1702 = vmatpush.bf16.msrb.mxu3 %v3926_v41  ;;  %v3959_v41 = vld [vmem:[%s6231_s11 + $0xd0] sm:$0xf0] }
 0x4c9   : > { %v1414_v16 = vpop.permute.xlu1 %1413 }
 0x4d4   : > { %v1249_v15 = vpop.permute.xlu2 %1248 }
 0x4d5   : > { %1259 = vst.msk [vmem:[#allocation4 + $0x10] sm:$0xff] %vm1256_vm6, %v1249_v15  ;;  %v3930_v15 = vor.u32 %v4602_v47, %v3927_v11  ;;  %v3962_v11 = vor.u32 %v4641_v10, %v3959_v41  ;;  %v4664_v10 = vld [vmem:[%s6233_s13 + $0x198] sm:$0xff]  ;;  %v4654_v41 = vld [vmem:[%s6233_s13 + $0x148] sm:$0xff] }
 0x4d6   : > { %1424 = vst.msk [vmem:[#allocation4 + $0x10] sm:$0xff] %vm1421_vm7, %v1414_v16  ;;  %v3901_v16 = vld [vmem:[%s6231_s11] sm:$0xf] }
 0x4d7   : > { %1721 = vmatpush.bf16.msra.mxu0 %v3930_v15  ;;  %v3967_v15 = vld [vmem:[%s6231_s11 + $0xd8] sm:$0xf0] }
 0x4dc   : > { %v1416_v18 = vpop.permute.xlu2 %1415 }
 0x4dd   : > { %v1428_v51 = vld [vmem:[#allocation4 + $0x10] sm:$0xff] }
 0x4f4   : > { %v1251_v17 = vpop.permute.xlu0 %1250 }
 0x4f5   : > { %1260 = vst.msk [vmem:[#allocation4 + $0x18] sm:$0xff] %vm1256_vm6, %v1251_v17  ;;  %v4599_v17 = vld [vmem:[%s6231_s11 + $0x3c] sm:$0xf0] }
 0x4f6   : > { %1425 = vst.msk [vmem:[#allocation4 + $0x18] sm:$0xff] %vm1421_vm7, %v1416_v18  ;;  %v4597_v18 = vld [vmem:[%s6231_s11 + $0x4] sm:$0xf] }
 0x4fd   : > { %v1429_v57 = vld [vmem:[#allocation4 + $0x18] sm:$0xff] }
 0x4fe   : > { %v1431_v19 = vpack.c.bf16 %v1429_v57, %v1428_v51  ;;  %v3902_v57 = vor.u32 %v4599_v17, %v3901_v16  ;;  %v4637_v16 = vld [vmem:[%s6231_s11 + $0x14] sm:$0xf] }
 0x500   : > { %3898 = vmatmul.msk.bf16.gmra.mxu0 %vm640_vm2, %v1431_v19  ;;  %v3903_v19 = vld [vmem:[%s6231_s11 + $0x40] sm:$0xf0]  ;;  %1665 = vmatpush.bf16.msra.mxu2 %v3902_v57  ;;  %v3943_v57 = vld [vmem:[%s6231_s11 + $0x50] sm:$0xf0] }
 0x541   : > { %v1467_v23 = vpop.f32.mrf.mxu0 }
 0x542   : > { %v1468_v21 = vadd.f32 %v4794_v22, %v1467_v23  ;;  %v3906_v23 = vor.u32 %v4597_v18, %v3903_v19  ;;  %v4638_v19 = vld [vmem:[%s6231_s11 + $0x1c] sm:$0xf] }
 0x544   : > { %v1477_v20 = vadd.f32 %v1468_v21, %v5054_v28  ;;  %v4600_v21 = vld [vmem:[%s6231_s11 + $0x44] sm:$0xf0]  ;;  %1684 = vmatpush.bf16.msrb.mxu1 %v3906_v23  ;;  %v3946_v23 = vor.u32 %v4637_v16, %v3943_v57  ;;  %v4663_v16 = vld [vmem:[%s6233_s13 + $0x190] sm:$0xff] }
 0x545   : > { %v4662_v57 = vld [vmem:[%s6233_s13 + $0x188] sm:$0xff] }
 0x546   : > { %v1483_v24 = vsel %vm640_vm2, %v1477_v20, 0.0 }
 0x547   : > { %1484 = vadd.xlane.f32.xlu0 %v1483_v24  ;;  %v3911_v24 = vld [vmem:[%s6231_s11 + $0x48] sm:$0xf0] }
 0x548   : > { %1905 = vmatpush.bf16.msra.mxu1 %v3962_v11 }
 0x549   : > { %v1469_v12 = vpop.f32.mrf.mxu0 }
 0x54a   : > { %v1470_v13 = vadd.f32 %v4794_v22, %v1469_v12 }
 0x54c   : > { %v1478_v61 = vadd.f32 %v1470_v13, %v5056_v29  ;;  %v4865_v29 = vpop.eup %4864  ;;  %1906 = vmatpush.bf16.msra.mxu1 %v3946_v23  ;;  %v4620_v23 = vld [vmem:[%s6233_s13 + $0x78] sm:$0xff] }
 0x54d   : > { %v1496_v39 = vmul.f32 32.0, %v4865_v29  ;;  %vm1500_vm8 = vweird.f32 %v4865_v29 }
 0x54e   : > { %v1486_v27 = vsel %vm640_vm2, %v1478_v61, 0.0 }
 0x54f   : > { %1487 = vadd.xlane.f32.xlu1 %v1486_v27  ;;  %v1497_v40 = vsub.f32 1.0, %v1496_v39 }
 0x551   : > { %v1498_v42 = vmul.f32 %v4865_v29, %v1497_v40 }
 0x553   : > { %v1499_v43 = vadd.f32 %v4865_v29, %v1498_v42 }
 0x555   : > { %v5310_v44 = vsel %vm1500_vm8, %v4865_v29, %v1499_v43  ;;  %v5389_v43 = vld [vmem:[%s6229_s9] ss:$0 sm:$0xff] }
 0x57d   : > { %v1472_v58 = vpop.f32.mrf.mxu0 }
 0x57e   : > { %v1473_v0 = vadd.f32 %v4794_v22, %v1472_v58 }
 0x580   : > { %v1479_v26 = vadd.f32 %v1473_v0, %v5061_v32 }
 0x582   : > { %v1489_v30 = vsel %vm640_vm2, %v1479_v26, 0.0 }
 0x583   : > { %1490 = vadd.xlane.f32.xlu2 %v1489_v30 }
 0x585   : > { %v1474_v3 = vpop.f32.mrf.mxu0 }
 0x586   : > { %v1475_v36 = vadd.f32 %v4794_v22, %v1474_v3  ;;  %v3909_v22 = vld [vmem:[%s6231_s11 + $0x8] sm:$0xf] }
 0x587   : > { %v3910_v12 = vor.u32 %v4600_v21, %v3909_v22  ;;  %v3951_v21 = vld [vmem:[%s6231_s11 + $0x58] sm:$0xf0] }
 0x588   : > { %v1480_v28 = vadd.f32 %v1475_v36, %v5063_v34 }
 0x589   : > { %1703 = vmatpush.bf16.msrb.mxu3 %v3910_v12 }
 0x58a   : > { %v1492_v37 = vsel %vm640_vm2, %v1480_v28, 0.0 }
 0x58b   : > { %1493 = vadd.xlane.f32.xlu0 %v1492_v37 }
 0x5ba   : > { %v1485_v32 = vpop.xlane.xlu0 %1484 }
 0x5bb   : > { %v1502_v45 = vmul.f32 %v5310_v44, %v1485_v32 }
 0x5bd   : > { %v5313_v63 = vsub.f32 %v1477_v20, %v1502_v45  ;;  %v4598_v20 = vld [vmem:[%s6231_s11 + $0xc] sm:$0xf] }
 0x5be   : > { %v3914_v13 = vor.u32 %v4598_v20, %v3911_v24  ;;  %v3954_v20 = vor.u32 %v4638_v19, %v3951_v21  ;;  %v4636_v21 = vld [vmem:[%s6233_s13 + $0xf8] sm:$0xff] }
 0x5bf   : > { %v1510_v34 = vmul.f32 %v5313_v63, %v5313_v63 }
 0x5c0   : > { %1722 = vmatpush.bf16.msra.mxu0 %v3914_v13 }
 0x5c1   : > { %v1514_v46 = vsel %vm640_vm2, %v1510_v34, 0.0 }
 0x5c2   : > { %v1488_v48 = vpop.xlane.xlu1 %1487  ;;  %1515 = vadd.xlane.f32.xlu1 %v1514_v46  ;;  %v5395_v46 = vld [vmem:[%s6230_s10] ss:$0 sm:$0xff] }
 0x5c3   : > { %v1503_v2 = vmul.f32 %v5310_v44, %v1488_v48 }
 0x5c5   : > { %v5319_v49 = vsub.f32 %v1478_v61, %v1503_v2 }
 0x5c7   : > { %v1511_v38 = vmul.f32 %v5319_v49, %v5319_v49 }
 0x5c9   : > { %v1517_v35 = vsel %vm640_vm2, %v1511_v38, 0.0 }
 0x5ca   : > { %1518 = vadd.xlane.f32.xlu2 %v1517_v35 }
 0x5f6   : > { %v1491_v50 = vpop.xlane.xlu2 %1490 }
 0x5f7   : > { %v1504_v52 = vmul.f32 %v5310_v44, %v1491_v50 }
 0x5f9   : > { %v5325_v54 = vsub.f32 %v1479_v26, %v1504_v52 }
 0x5fb   : > { %v1512_v53 = vmul.f32 %v5325_v54, %v5325_v54 }
 0x5fd   : > { %v1520_v56 = vsel %vm640_vm2, %v1512_v53, 0.0 }
 0x5fe   : > { %1521 = vadd.xlane.f32.xlu0 %v1520_v56  ;;  %v1494_v59 = vpop.xlane.xlu0 %1493  ;;  %v3957_v56 = vld [vmem:[%s6231_s11 + $0x90] sm:$0xf] }
 0x5ff   : > { %v1505_v60 = vmul.f32 %v5310_v44, %v1494_v59  ;;  %v4643_v59 = vld [vmem:[%s6231_s11 + $0xcc] sm:$0xf0] }
 0x601   : > { %v5331_v31 = vsub.f32 %v1480_v28, %v1505_v60  ;;  %v3965_v60 = vld [vmem:[%s6231_s11 + $0x98] sm:$0xf] }
 0x603   : > { %v1513_v62 = vmul.f32 %v5331_v31, %v5331_v31 }
 0x605   : > { %v1523_v1 = vsel %vm640_vm2, %v1513_v62, 0.0  ;;  %v3958_v62 = vor.u32 %v4643_v59, %v3957_v56  ;;  %v4650_v56 = vld [vmem:[%s6233_s13 + $0x128] sm:$0xff] }
 0x606   : > { %1524 = vadd.xlane.f32.xlu1 %v1523_v1  ;;  %v4644_v1 = vld [vmem:[%s6231_s11 + $0xd4] sm:$0xf0]  ;;  %v4666_v59 = vld [vmem:[%s6233_s13 + $0x1a8] sm:$0xff] }
 0x607   : > { %v3966_v25 = vor.u32 %v4644_v1, %v3965_v60  ;;  %1886 = vmatpush.bf16.msrb.mxu2 %v3958_v62  ;;  %v4656_v1 = vld [vmem:[%s6233_s13 + $0x158] sm:$0xff] }
 0x609   : > { %1924 = vmatpush.bf16.msra.mxu3 %v3966_v25  ;;  %v4672_v25 = vld [vmem:[%s6233_s13 + $0x1d8] sm:$0xff] }
 0x60b   : > { %1887 = vmatpush.bf16.msrb.mxu2 %v3942_v8  ;;  %v4648_v8 = vld [vmem:[%s6233_s13 + $0x118] sm:$0xff] }
 0x635   : > { %v1516_v9 = vpop.xlane.xlu1 %1515 }
 0x636   : > { %v1526_v14 = vmul.f32 %v1516_v9, %v5310_v44  ;;  %v4640_v9 = vld [vmem:[%s6231_s11 + $0x54] sm:$0xf0] }
 0x637   : > { %v3950_v47 = vor.u32 %v4640_v9, %v3949_v6  ;;  %v4671_v6 = vld [vmem:[%s6233_s13 + $0x1d0] sm:$0xff] }
 0x638   : > { %v1530_v51 = vadd.f32 1e-05, %v1526_v14  ;;  %v4642_v14 = vld [vmem:[%s6231_s11 + $0x9c] sm:$0xf] }
 0x639   : > { %1925 = vmatpush.bf16.msra.mxu3 %v3950_v47  ;;  %v4670_v47 = vld [vmem:[%s6233_s13 + $0x1c8] sm:$0xff] }
 0x63a   : > { %4866 = vrsqrt.f32 %v1530_v51  ;;  %vm1540_vm10 = vweird.f32 %v1530_v51 }
 0x63d   : > { %v1519_v61 = vpop.xlane.xlu2 %1518 }
 0x63e   : > { %v1527_v27 = vmul.f32 %v1519_v61, %v5310_v44 }
 0x640   : > { %v4867_v58 = vpop.eup %4866  ;;  %v1531_v0 = vadd.f32 1e-05, %v1527_v27 }
 0x641   : > { %v1535_v26 = vmul.f32 %v4867_v58, %v1530_v51  ;;  %vm1541_vm9 = vweird.f32 %v4867_v58  ;;  %v3970_v51 = vor.u32 %v4642_v14, %v3967_v15  ;;  %v4647_v15 = vld [vmem:[%s6233_s13 + $0x110] sm:$0xff] }
 0x642   : > { %4868 = vrsqrt.f32 %v1531_v0  ;;  %vm1542_vm11 = vmor %vm1540_vm10, %vm1541_vm9  ;;  %vm1550_vm13 = vweird.f32 %v1531_v0 }
 0x643   : > { %v1536_v30 = vmul.f32 %v4867_v58, %v1535_v26  ;;  %1943 = vmatpush.bf16.msrb.mxu0 %v3970_v51  ;;  %v4646_v51 = vld [vmem:[%s6233_s13 + $0x108] sm:$0xff] }
 0x645   : > { %v1537_v3 = vmul.f32 0.5, %v1536_v30 }
 0x647   : > { %v1538_v36 = vsub.f32 1.5, %v1537_v3  ;;  %1944 = vmatpush.bf16.msrb.mxu0 %v3954_v20 }
 0x648   : > { %v4869_v28 = vpop.eup %4868 }
 0x649   : > { %v1539_v37 = vmul.f32 %v4867_v58, %v1538_v36  ;;  %v1545_v4 = vmul.f32 %v4869_v28, %v1531_v0  ;;  %vm1551_vm12 = vweird.f32 %v4869_v28 }
 0x64a   : > { %vm1552_vm14 = vmor %vm1550_vm13, %vm1551_vm12 }
 0x64b   : > { %v1546_v29 = vmul.f32 %v4869_v28, %v1545_v4  ;;  %v1543_v39 = vsel %vm1542_vm11, %v4867_v58, %v1539_v37 }
 0x64c   : > { %v1574_v32 = vmul.f32 %v1543_v39, %v5313_v63 }
 0x64d   : > { %v1547_v40 = vmul.f32 0.5, %v1546_v29 }
 0x64e   : > { %v1581_v48 = vmul.f32 %v5389_v43, %v1574_v32 }
 0x64f   : > { %v1548_v42 = vsub.f32 1.5, %v1547_v40 }
 0x650   : > { %v5401_v35 = vadd.f32 %v5395_v46, %v1581_v48  ;;  %v4658_v48 = vld [vmem:[%s6233_s13 + $0x168] sm:$0xff] }
 0x651   : > { %v1549_v45 = vmul.f32 %v4869_v28, %v1548_v42 }
 0x653   : > { %v1553_v34 = vsel %vm1552_vm14, %v4869_v28, %v1549_v45  ;;  %v4675_v45 = vld [vmem:[%s6233_s13 + $0x1f0] sm:$0xff] }
 0x654   : > { %v1575_v2 = vmul.f32 %v1553_v34, %v5319_v49  ;;  %v4652_v34 = vld [vmem:[%s6233_s13 + $0x138] sm:$0xff] }
 0x656   : > { %v1582_v38 = vmul.f32 %v5389_v43, %v1575_v2  ;;  %v4674_v2 = vld [vmem:[%s6233_s13 + $0x1e8] sm:$0xff] }
 0x658   : > { %v5404_v63 = vadd.f32 %v5395_v46, %v1582_v38  ;;  %v4651_v38 = vld [vmem:[%s6233_s13 + $0x130] sm:$0xff] }
 0x65a   : > { %v5408_v50 = vpack.c.bf16 %v5404_v63, %v5401_v35 }
 0x65c   : > { %3931 = vmatmul.msk.bf16.vlgmr.msra.gmra.mxu2 %vm640_vm2, %v5408_v50  ;;  %3933 = vmatmul.msk.bf16.vlgmr.msrb.gmra.mxu1 %vm640_vm2, %v5408_v50 }
 0x65d   : > { %3935 = vmatmul.msk.bf16.vlgmr.msrb.gmra.mxu3 %vm640_vm2, %v5408_v50  ;;  %3937 = vmatmul.msk.bf16.vlgmr.msra.gmra.mxu0 %vm640_vm2, %v5408_v50 }
 0x65e   : > { %2236 = vmatpush.bf16.msra.mxu2 %v4652_v34 }
 0x662   : > { %2237 = vmatpush.bf16.msra.mxu2 %v4651_v38 }
 0x666   : > { %2238 = vmatpush.bf16.msra.mxu2 %v4650_v56  ;;  %v4615_v56 = vld [vmem:[%s6233_s13 + $0x50] sm:$0xff] }
 0x671   : > { %v1522_v49 = vpop.xlane.xlu0 %1521 }
 0x672   : > { %v1528_v52 = vmul.f32 %v1522_v49, %v5310_v44  ;;  %v4667_v49 = vld [vmem:[%s6233_s13 + $0x1b0] sm:$0xff] }
 0x674   : > { %v1532_v53 = vadd.f32 1e-05, %v1528_v52  ;;  %v4657_v52 = vld [vmem:[%s6233_s13 + $0x160] sm:$0xff] }
 0x676   : > { %4870 = vrsqrt.f32 %v1532_v53  ;;  %vm1560_vm0 = vweird.f32 %v1532_v53 }
 0x679   : > { %v1525_v5 = vpop.xlane.xlu1 %1524 }
 0x67a   : > { %v1529_v7 = vmul.f32 %v1525_v5, %v5310_v44  ;;  %v4649_v5 = vld [vmem:[%s6233_s13 + $0x120] sm:$0xff] }
 0x67b   : > { %2239 = vmatpush.bf16.msra.mxu2 %v4649_v5  ;;  %v4608_v5 = vld [vmem:[%s6233_s13 + $0x18] sm:$0xff] }
 0x67c   : > { %v4871_v17 = vpop.eup %4870  ;;  %v1533_v18 = vadd.f32 1e-05, %v1529_v7 }
 0x67d   : > { %v1555_v22 = vmul.f32 %v4871_v17, %v1532_v53  ;;  %vm1561_vm15 = vweird.f32 %v4871_v17  ;;  %v4673_v53 = vld [vmem:[%s6233_s13 + $0x1e0] sm:$0xff] }
 0x67e   : > { %4872 = vrsqrt.f32 %v1533_v18  ;;  %vm1562_vm1 = vmor %vm1560_vm0, %vm1561_vm15  ;;  %vm1570_vm5 = vweird.f32 %v1533_v18 }
 0x67f   : > { %v1556_v24 = vmul.f32 %v4871_v17, %v1555_v22  ;;  %2240 = vmatpush.bf16.msra.mxu2 %v4648_v8  ;;  %v4630_v8 = vld [vmem:[%s6233_s13 + $0xc8] sm:$0xff] }
 0x681   : > { %v1557_v12 = vmul.f32 0.5, %v1556_v24 }
 0x683   : > { %v1558_v13 = vsub.f32 1.5, %v1557_v12  ;;  %2241 = vmatpush.bf16.msra.mxu2 %v4647_v15  ;;  %v4645_v12 = vld [vmem:[%s6233_s13 + $0x100] sm:$0xff]  ;;  %v4623_v15 = vld [vmem:[%s6233_s13 + $0x90] sm:$0xff] }
 0x684   : > { %v4873_v61 = vpop.eup %4872 }
 0x685   : > { %v1559_v27 = vmul.f32 %v4871_v17, %v1558_v13  ;;  %v1565_v58 = vmul.f32 %v4873_v61, %v1533_v18  ;;  %vm1571_vm4 = vweird.f32 %v4873_v61  ;;  %v4669_v18 = vld [vmem:[%s6233_s13 + $0x1c0] sm:$0xff] }
 0x686   : > { %vm1572_vm6 = vmor %vm1570_vm5, %vm1571_vm4  ;;  %v4661_v13 = vld [vmem:[%s6233_s13 + $0x180] sm:$0xff] }
 0x687   : > { %v1566_v0 = vmul.f32 %v4873_v61, %v1565_v58  ;;  %v1563_v26 = vsel %vm1562_vm1, %v4871_v17, %v1559_v27  ;;  %v4653_v17 = vld [vmem:[%s6233_s13 + $0x140] sm:$0xff]  ;;  %2242 = vmatpush.bf16.msra.mxu2 %v4646_v51  ;;  %v4635_v27 = vld [vmem:[%s6233_s13 + $0xf0] sm:$0xff]  ;;  %v4612_v58 = vld [vmem:[%s6233_s13 + $0x38] sm:$0xff] }
 0x688   : > { %v1576_v36 = vmul.f32 %v1563_v26, %v5325_v54  ;;  %v4660_v54 = vld [vmem:[%s6233_s13 + $0x178] sm:$0xff] }
 0x689   : > { %v1567_v30 = vmul.f32 0.5, %v1566_v0  ;;  %2255 = vmatpush.bf16.msrb.mxu1 %v4660_v54  ;;  %v4628_v0 = vld [vmem:[%s6233_s13 + $0xb8] sm:$0xff]  ;;  %v4633_v54 = vld [vmem:[%s6233_s13 + $0xe0] sm:$0xff] }
 0x68a   : > { %v1583_v4 = vmul.f32 %v5389_v43, %v1576_v36  ;;  %v4634_v36 = vld [vmem:[%s6233_s13 + $0xe8] sm:$0xff] }
 0x68b   : > { %v1568_v3 = vsub.f32 1.5, %v1567_v30  ;;  %2243 = vmatpush.bf16.msra.mxu2 %v4645_v12 }
 0x68c   : > { %v5473_v40 = vadd.f32 %v5395_v46, %v1583_v4  ;;  %v4611_v4 = vld [vmem:[%s6233_s13 + $0x30] sm:$0xff] }
 0x68d   : > { %v1569_v28 = vmul.f32 %v4873_v61, %v1568_v3  ;;  %v4618_v3 = vld [vmem:[%s6233_s13 + $0x68] sm:$0xff] }
 0x68f   : > { %v1573_v37 = vsel %vm1572_vm6, %v4873_v61, %v1569_v28  ;;  %v4619_v61 = vld [vmem:[%s6233_s13 + $0x70] sm:$0xff] }
 0x690   : > { %v1577_v29 = vmul.f32 %v1573_v37, %v5331_v31  ;;  %v4676_v31 = vld [vmem:[%s6233_s13 + $0x1f8] sm:$0xff] }
 0x691   : > { %2293 = vmatpush.bf16.msra.mxu0 %v4676_v31  ;;  %v4610_v31 = vld [vmem:[%s6233_s13 + $0x28] sm:$0xff] }
 0x692   : > { %v1584_v39 = vmul.f32 %v5389_v43, %v1577_v29  ;;  %v4659_v43 = vld [vmem:[%s6233_s13 + $0x170] sm:$0xff] }
 0x693   : > { %2256 = vmatpush.bf16.msrb.mxu1 %v4659_v43  ;;  %v4627_v29 = vld [vmem:[%s6233_s13 + $0xb0] sm:$0xff]  ;;  %v4626_v43 = vld [vmem:[%s6233_s13 + $0xa8] sm:$0xff] }
 0x694   : > { %v5476_v42 = vadd.f32 %v5395_v46, %v1584_v39  ;;  %v4668_v46 = vld [vmem:[%s6233_s13 + $0x1b8] sm:$0xff]  ;;  %v4617_v39 = vld [vmem:[%s6233_s13 + $0x60] sm:$0xff] }
 0x695   : > { %2294 = vmatpush.bf16.msra.mxu0 %v4675_v45  ;;  %2274 = vmatpush.bf16.msrb.mxu3 %v4668_v46  ;;  %v4616_v46 = vld [vmem:[%s6233_s13 + $0x58] sm:$0xff] }
 0x696   : > { %v5480_v32 = vpack.c.bf16 %v5476_v42, %v5473_v40 }
 0x697   : > { %2257 = vmatpush.bf16.msrb.mxu1 %v4658_v48  ;;  %v4632_v48 = vld [vmem:[%s6233_s13 + $0xd8] sm:$0xff] }
 0x698   : > { %3932 = vmatmul.msk.bf16.gmra.mxu2 %vm640_vm2, %v5480_v32  ;;  %3934 = vmatmul.msk.bf16.gmra.mxu1 %vm640_vm2, %v5480_v32 }
 0x699   : > { %3936 = vmatmul.msk.bf16.gmra.mxu3 %vm640_vm2, %v5480_v32  ;;  %3938 = vmatmul.msk.bf16.gmra.mxu0 %vm640_vm2, %v5480_v32 }
 0x69a   : > { %2295 = vmatpush.bf16.msra.mxu0 %v4674_v2  ;;  %2275 = vmatpush.bf16.msrb.mxu3 %v4667_v49  ;;  %v1830_v2 = vld [vmem:[%s6232_s12 + $0x4] sm:$0xf] }
 0x69b   : > { %2258 = vmatpush.bf16.msrb.mxu1 %v4657_v52  ;;  %v4609_v52 = vld [vmem:[%s6233_s13 + $0x20] sm:$0xff]  ;;  %v5730_v12 = vperm.slane %v1830_v2, 2 }
 0x69e   : > { %2296 = vmatpush.bf16.msra.mxu0 %v4673_v53  ;;  %2276 = vmatpush.bf16.msrb.mxu3 %v4666_v59  ;;  %v4625_v53 = vld [vmem:[%s6233_s13 + $0xa0] sm:$0xff]  ;;  %v4631_v59 = vld [vmem:[%s6233_s13 + $0xd0] sm:$0xff] }
 0x69f   : > { %2259 = vmatpush.bf16.msrb.mxu1 %v4656_v1  ;;  %v5697_v1 = vperm.slane %v1830_v2, 1 }
 0x6a2   : > { %2297 = vmatpush.bf16.msra.mxu0 %v4672_v25  ;;  %2277 = vmatpush.bf16.msrb.mxu3 %v4665_v33  ;;  %v5699_v25 = vperm.slane %v1830_v2, 3  ;;  %v4624_v33 = vld [vmem:[%s6233_s13 + $0x98] sm:$0xff] }
 0x6a3   : > { %2260 = vmatpush.bf16.msrb.mxu1 %v4655_v55 }
 0x6a6   : > { %2298 = vmatpush.bf16.msra.mxu0 %v4671_v6  ;;  %2278 = vmatpush.bf16.msrb.mxu3 %v4664_v10  ;;  %v4614_v6 = vld [vmem:[%s6233_s13 + $0x48] sm:$0xff] }
 0x6a7   : > { %2261 = vmatpush.bf16.msrb.mxu1 %v4654_v41 }
 0x6a8   : > { %3971 = vmatmul.msk.bf16.vlgmr.msrb.gmra.mxu2 %vm640_vm2, %v5408_v50  ;;  %3973 = vmatmul.msk.bf16.vlgmr.msra.gmra.mxu1 %vm640_vm2, %v5408_v50 }
 0x6a9   : > { %3975 = vmatmul.msk.bf16.vlgmr.msra.gmra.mxu3 %vm640_vm2, %v5408_v50  ;;  %3977 = vmatmul.msk.bf16.vlgmr.msrb.gmra.mxu0 %vm640_vm2, %v5408_v50 }
 0x6aa   : > { %2299 = vmatpush.bf16.msra.mxu0 %v4670_v47  ;;  %2279 = vmatpush.bf16.msrb.mxu3 %v4663_v16  ;;  %v4607_v47 = vld [vmem:[%s6233_s13 + $0x10] sm:$0xff] }
 0x6ab   : > { %2262 = vmatpush.bf16.msrb.mxu1 %v4653_v17  ;;  %2504 = vmatpush.bf16.msrb.mxu2 %v4612_v58  ;;  %v4606_v58 = vld [vmem:[%s6233_s13 + $0x8] sm:$0xff] }
 0x6ae   : > { %2300 = vmatpush.bf16.msra.mxu0 %v4669_v18  ;;  %2280 = vmatpush.bf16.msrb.mxu3 %v4662_v57  ;;  %v5721_v18 = vperm.slane %v1830_v2, 0 }
 0x6af   : > { %2523 = vmatpush.bf16.msra.mxu1 %v4620_v23  ;;  %2505 = vmatpush.bf16.msrb.mxu2 %v4611_v4  ;;  %v4613_v23 = vld [vmem:[%s6233_s13 + $0x40] sm:$0xff] }
 0x6b2   : > { %2561 = vmatpush.bf16.msrb.mxu0 %v4636_v21  ;;  %2281 = vmatpush.bf16.msrb.mxu3 %v4661_v13  ;;  %v4629_v21 = vld [vmem:[%s6233_s13 + $0xc0] sm:$0xff] }
 0x6b3   : > { %2524 = vmatpush.bf16.msra.mxu1 %v4619_v61  ;;  %2506 = vmatpush.bf16.msrb.mxu2 %v4610_v31 }
 0x6b6   : > { %2562 = vmatpush.bf16.msrb.mxu0 %v4635_v27  ;;  %2542 = vmatpush.bf16.msra.mxu3 %v4628_v0 }
 0x6b7   : > { %2525 = vmatpush.bf16.msra.mxu1 %v4618_v3  ;;  %2507 = vmatpush.bf16.msrb.mxu2 %v4609_v52 }
 0x6b8   : > { %3972 = vmatmul.msk.bf16.gmra.mxu2 %vm640_vm2, %v5480_v32  ;;  %3974 = vmatmul.msk.bf16.gmra.mxu1 %vm640_vm2, %v5480_v32 }
 0x6b9   : > { %3976 = vmatmul.msk.bf16.gmra.mxu3 %vm640_vm2, %v5480_v32  ;;  %3978 = vmatmul.msk.bf16.gmra.mxu0 %vm640_vm2, %v5480_v32 }
 0x6ba   : > { %2563 = vmatpush.bf16.msrb.mxu0 %v4634_v36  ;;  %2543 = vmatpush.bf16.msra.mxu3 %v4627_v29  ;;  %v4622_v36 = vld [vmem:[%s6233_s13 + $0x88] sm:$0xff] }
 0x6bb   : > { %2526 = vmatpush.bf16.msra.mxu1 %v4617_v39  ;;  %2508 = vmatpush.bf16.msrb.mxu2 %v4608_v5 }
 0x6be   : > { %2564 = vmatpush.bf16.msrb.mxu0 %v4633_v54  ;;  %2544 = vmatpush.bf16.msra.mxu3 %v4626_v43 }
 0x6bf   : > { %2527 = vmatpush.bf16.msra.mxu1 %v4616_v46  ;;  %2509 = vmatpush.bf16.msrb.mxu2 %v4607_v47 }
 0x6c2   : > { %2565 = vmatpush.bf16.msrb.mxu0 %v4632_v48  ;;  %2545 = vmatpush.bf16.msra.mxu3 %v4625_v53 }
 0x6c3   : > { %2528 = vmatpush.bf16.msra.mxu1 %v4615_v56  ;;  %2510 = vmatpush.bf16.msrb.mxu2 %v4606_v58 }
 0x6c6   : > { %2566 = vmatpush.bf16.msrb.mxu0 %v4631_v59  ;;  %2546 = vmatpush.bf16.msra.mxu3 %v4624_v33 }
 0x6c7   : > { %2529 = vmatpush.bf16.msra.mxu1 %v4614_v6 }
 0x6ca   : > { %2567 = vmatpush.bf16.msrb.mxu0 %v4630_v8  ;;  %2547 = vmatpush.bf16.msra.mxu3 %v4623_v15  ;;  %v4253_v8 = vld [vmem:[%s6231_s11 + $0xa0] sm:$0xf] }
 0x6cb   : > { %2530 = vmatpush.bf16.msra.mxu1 %v4613_v23 }
 0x6ce   : > { %2568 = vmatpush.bf16.msrb.mxu0 %v4629_v21  ;;  %2548 = vmatpush.bf16.msra.mxu3 %v4622_v36 }
 0x6d9   : > { %v5548_v60 = vpop.f32.mrf.mxu1 }
 0x6da   : > { %v5550_v62 = vpop.f32.mrf.mxu0 }
 0x6df   : > { %v5570_v7 = vpop.f32.mrf.mxu2 }
 0x6e0   : > { %v5575_v9 = vpop.f32.mrf.mxu3 }
 0x6e1   : > { %v5586_v11 = vpop.f32.mrf.mxu1 }
 0x6e2   : > { %v5588_v14 = vpop.f32.mrf.mxu0 }
 0x6e7   : > { %v5608_v19 = vpop.f32.mrf.mxu2 }
 0x6e8   : > { %v5610_v22 = vpop.f32.mrf.mxu3 }
 0x715   : > { %v5618_v20 = vpop.f32.mrf.mxu1 }
 0x716   : > { %v5620_v24 = vpop.f32.mrf.mxu0 }
 0x71b   : > { %v5640_v26 = vpop.f32.mrf.mxu2 }
 0x71c   : > { %v5642_v30 = vpop.f32.mrf.mxu3 }
 0x71d   : > { %v5650_v28 = vpop.f32.mrf.mxu1 }
 0x71e   : > { %v5652_v37 = vpop.f32.mrf.mxu0 }
 0x723   : > { %v5672_v45 = vpop.f32.mrf.mxu2 }
 0x724   : > { %v5674_v34 = vpop.f32.mrf.mxu3 }
 0x725   : > { %v1908_v38 = vpop.f32.mrf.mxu1 }
 0x726   : > { %v1946_v49 = vpop.f32.mrf.mxu0  ;;  %v1909_v10 = vadd.f32 %v1908_v38, %v5697_v1  ;;  %v4605_v38 = vld [vmem:[%s6233_s13] sm:$0xff] }
 0x727   : > { %v1947_v16 = vadd.f32 %v1946_v49, %v5699_v25  ;;  %v4621_v49 = vld [vmem:[%s6233_s13 + $0x80] sm:$0xff]  ;;  %2511 = vmatpush.bf16.msrb.mxu2 %v4605_v38 }
 0x728   : > { %v1957_v61 = vmax.f32 %v1909_v10, 0.0  ;;  %2549 = vmatpush.bf16.msra.mxu3 %v4621_v49  ;;  %v4683_v10 = vld [vmem:[%s6231_s11 + $0xdc] sm:$0xf0] }
 0x729   : > { %v1959_v0 = vmax.f32 %v1947_v16, 0.0  ;;  %v4254_v16 = vor.u32 %v4683_v10, %v4253_v8  ;;  %v4245_v10 = vld [vmem:[%s6231_s11 + $0x28] sm:$0xf] }
 0x72b   : > { %v1889_v55 = vpop.f32.mrf.mxu2 }
 0x72c   : > { %v1927_v41 = vpop.f32.mrf.mxu3  ;;  %v1890_v4 = vadd.f32 %v1889_v55, %v5721_v18 }
 0x72d   : > { %v1910_v17 = vpop.f32.mrf.mxu1  ;;  %v1928_v39 = vadd.f32 %v1927_v41, %v5730_v12  ;;  %v4261_v41 = vld [vmem:[%s6231_s11 + $0xa8] sm:$0xf] }
 0x72e   : > { %v1911_v51 = vadd.f32 %v1910_v17, %v5697_v1  ;;  %v1948_v57 = vpop.f32.mrf.mxu0  ;;  %v1956_v52 = vmax.f32 %v1890_v4, 0.0  ;;  %v4684_v17 = vld [vmem:[%s6231_s11 + $0xe4] sm:$0xf0] }
 0x72f   : > { %v1949_v13 = vadd.f32 %v1948_v57, %v5699_v25  ;;  %v1958_v59 = vmax.f32 %v1928_v39, 0.0  ;;  %v4262_v23 = vor.u32 %v4684_v17, %v4261_v41  ;;  %v4680_v41 = vld [vmem:[%s6231_s11 + $0x64] sm:$0xf0]  ;;  %v4263_v17 = vld [vmem:[%s6231_s11 + $0xe8] sm:$0xf0] }
 0x730   : > { %v1961_v27 = vmax.f32 %v1911_v51, 0.0 }
 0x731   : > { %v1963_v3 = vmax.f32 %v1949_v13, 0.0 }
 0x732   : > { %v1973_v29 = vpack.c.bf16 %v1961_v27, %v1957_v61 }
 0x733   : > { %v1975_v54 = vpack.c.bf16 %v1963_v3, %v1959_v0  ;;  %v1891_v31 = vpop.f32.mrf.mxu2  ;;  %v1602_v0 = vld [vmem:[%s6232_s12] sm:$0xf] }
 0x734   : > { %v1892_v43 = vadd.f32 %v1891_v31, %v5721_v18  ;;  %v1929_v46 = vpop.f32.mrf.mxu3  ;;  %2263 = vmatmul.bf16.vlgmr.msrb.gmra.mxu1 %v1973_v29  ;;  %v5770_v31 = vperm.slane %v1602_v0, 1 }
 0x735   : > { %v1930_v48 = vadd.f32 %v1929_v46, %v5730_v12  ;;  %2301 = vmatmul.bf16.vlgmr.msra.gmra.mxu0 %v1975_v54  ;;  %v1913_v2 = vpop.f32.mrf.mxu1 }
 0x736   : > { %v1960_v53 = vmax.f32 %v1892_v43, 0.0  ;;  %v1951_v56 = vpop.f32.mrf.mxu0  ;;  %v1914_v47 = vadd.f32 %v1913_v2, %v5697_v1 }
 0x737   : > { %v1962_v5 = vmax.f32 %v1930_v48, 0.0  ;;  %v1952_v51 = vadd.f32 %v1951_v56, %v5699_v25  ;;  %v1689_v48 = vadd.f32 %v5586_v11, %v5770_v31  ;;  %v1607_v56 = vperm.slane %v1602_v0, 3  ;;  %v4679_v11 = vld [vmem:[%s6231_s11 + $0x5c] sm:$0xf0] }
 0x738   : > { %v1972_v33 = vpack.c.bf16 %v1960_v53, %v1956_v52  ;;  %v1965_v27 = vmax.f32 %v1914_v47, 0.0 }
 0x739   : > { %v1974_v55 = vpack.c.bf16 %v1962_v5, %v1958_v59  ;;  %v1967_v3 = vmax.f32 %v1952_v51, 0.0  ;;  %v1604_v5 = vperm.slane %v1602_v0, 0  ;;  %v1725_v47 = vadd.f32 %v5550_v62, %v1607_v56  ;;  %v4677_v51 = vld [vmem:[%s6231_s11 + $0x24] sm:$0xf] }
 0x73a   : > { %2244 = vmatmul.bf16.vlgmr.msra.gmra.mxu2 %v1972_v33  ;;  %v1739_v33 = vmax.f32 %v1689_v48, 0.0  ;;  %v4239_v62 = vld [vmem:[%s6231_s11 + $0x60] sm:$0xf0] }
 0x73b   : > { %2282 = vmatmul.bf16.vlgmr.msrb.gmra.mxu3 %v1974_v55  ;;  %v1894_v6 = vpop.f32.mrf.mxu2  ;;  %2644 = vmatpush.bf16.msra.mxu2 %v4254_v16  ;;  %v4681_v55 = vld [vmem:[%s6231_s11 + $0xa4] sm:$0xf]  ;;  %v4246_v16 = vor.u32 %v4680_v41, %v4245_v10  ;;  %v4700_v41 = vld [vmem:[%s6233_s13 + $0x278] sm:$0xff] }
 0x73c   : > { %v1932_v15 = vpop.f32.mrf.mxu3  ;;  %2682 = vmatpush.bf16.msrb.mxu3 %v4262_v23  ;;  %v1895_v4 = vadd.f32 %v1894_v6, %v5721_v18  ;;  %v1687_v6 = vadd.f32 %v5548_v60, %v5770_v31  ;;  %v4682_v60 = vld [vmem:[%s6231_s11 + $0xac] sm:$0xf] }
 0x73d   : > { %v1915_v57 = vpop.f32.mrf.mxu1  ;;  %v1933_v39 = vadd.f32 %v1932_v15, %v5730_v12  ;;  %v4678_v23 = vld [vmem:[%s6231_s11 + $0x2c] sm:$0xf] }
 0x73e   : > { %v1916_v21 = vadd.f32 %v1915_v57, %v5697_v1  ;;  %v1953_v13 = vpop.f32.mrf.mxu0  ;;  %v1964_v2 = vmax.f32 %v1895_v4, 0.0  ;;  %v4266_v57 = vor.u32 %v4682_v60, %v4263_v17  ;;  %v1737_v4 = vmax.f32 %v1725_v47, 0.0  ;;  %v4716_v47 = vld [vmem:[%s6233_s13 + $0x2f8] sm:$0xff]  ;;  %v4699_v17 = vld [vmem:[%s6233_s13 + $0x270] sm:$0xff] }
 0x73f   : > { %v1954_v61 = vadd.f32 %v1953_v13, %v5699_v25  ;;  %v1966_v49 = vmax.f32 %v1933_v39, 0.0  ;;  %v1606_v13 = vperm.slane %v1602_v0, 2  ;;  %v1668_v39 = vadd.f32 %v5570_v7, %v1604_v5 }
 0x740   : > { %v1969_v58 = vmax.f32 %v1916_v21, 0.0  ;;  %v4247_v21 = vld [vmem:[%s6231_s11 + $0x68] sm:$0xf0]  ;;  %2683 = vmatpush.bf16.msrb.mxu3 %v4246_v16  ;;  %2701 = vmatpush.bf16.msra.mxu0 %v4266_v57  ;;  %v1732_v7 = vadd.f32 %v5652_v37, %v1607_v56 }
 0x741   : > { %v1971_v36 = vmax.f32 %v1954_v61, 0.0 }
 0x742   : > { %v1977_v29 = vpack.c.bf16 %v1969_v58, %v1965_v27  ;;  %v4242_v27 = vor.u32 %v4677_v51, %v4239_v62  ;;  %v1735_v58 = vmax.f32 %v1687_v6, 0.0  ;;  %v4715_v51 = vld [vmem:[%s6233_s13 + $0x2f0] sm:$0xff] }
 0x743   : > { %v1896_v54 = vpop.f32.mrf.mxu2  ;;  %v1979_v1 = vpack.c.bf16 %v1971_v36, %v1967_v3  ;;  %v1670_v3 = vadd.f32 %v5608_v19, %v1604_v5  ;;  %v4250_v36 = vor.u32 %v4678_v23, %v4247_v21 }
 0x744   : > { %v1897_v25 = vadd.f32 %v1896_v54, %v5721_v18  ;;  %v1934_v43 = vpop.f32.mrf.mxu3  ;;  %2268 = vmatmul.bf16.gmra.mxu1 %v1977_v29  ;;  %v1727_v18 = vadd.f32 %v5588_v14, %v1607_v56  ;;  %v4255_v14 = vld [vmem:[%s6231_s11 + $0xe0] sm:$0xf0]  ;;  %v1708_v29 = vadd.f32 %v5610_v22, %v1606_v13  ;;  %v1751_v54 = vpack.c.bf16 %v1739_v33, %v1735_v58 }
 0x745   : > { %v1935_v46 = vadd.f32 %v1934_v43, %v5730_v12  ;;  %2306 = vmatmul.bf16.gmra.mxu0 %v1979_v1  ;;  %v4237_v12 = vld [vmem:[%s6231_s11 + $0x20] sm:$0xf]  ;;  %v4258_v15 = vor.u32 %v4681_v55, %v4255_v14  ;;  %v1706_v1 = vadd.f32 %v5575_v9, %v1606_v13  ;;  %v1738_v0 = vmax.f32 %v1670_v3, 0.0 }
 0x746   : > { %v1968_v38 = vmax.f32 %v1897_v25, 0.0  ;;  %v4238_v8 = vor.u32 %v4679_v11, %v4237_v12  ;;  %v1741_v61 = vmax.f32 %v1727_v18, 0.0  ;;  %2702 = vmatpush.bf16.msra.mxu0 %v4250_v36  ;;  %v1740_v43 = vmax.f32 %v1708_v29, 0.0  ;;  %v4692_v36 = vld [vmem:[%s6233_s13 + $0x238] sm:$0xff] }
 0x747   : > { %v1970_v52 = vmax.f32 %v1935_v46, 0.0  ;;  %2663 = vmatpush.bf16.msrb.mxu1 %v4258_v15  ;;  %v1734_v46 = vmax.f32 %v1668_v39, 0.0  ;;  %v1736_v48 = vmax.f32 %v1706_v1, 0.0  ;;  %v1692_v9 = vadd.f32 %v5618_v20, %v5770_v31  ;;  %v4708_v29 = vld [vmem:[%s6233_s13 + $0x2b8] sm:$0xff] }
 0x748   : > { %v1976_v53 = vpack.c.bf16 %v1968_v38, %v1964_v2  ;;  %2645 = vmatpush.bf16.msra.mxu2 %v4238_v8  ;;  %v1753_v25 = vpack.c.bf16 %v1741_v61, %v1737_v4  ;;  %v1694_v38 = vadd.f32 %v5650_v28, %v5770_v31  ;;  %v1730_v22 = vadd.f32 %v5620_v24, %v1607_v56  ;;  %v4714_v61 = vld [vmem:[%s6233_s13 + $0x2e8] sm:$0xff]  ;;  %v4697_v4 = vld [vmem:[%s6233_s13 + $0x260] sm:$0xff] }
 0x749   : > { %v1978_v59 = vpack.c.bf16 %v1970_v52, %v1966_v49  ;;  %v1750_v19 = vpack.c.bf16 %v1738_v0, %v1734_v46  ;;  %v1752_v2 = vpack.c.bf16 %v1740_v43, %v1736_v48  ;;  %v1749_v52 = vmax.f32 %v1732_v7, 0.0  ;;  %v4691_v43 = vld [vmem:[%s6233_s13 + $0x230] sm:$0xff]  ;;  %v4696_v46 = vld [vmem:[%s6233_s13 + $0x258] sm:$0xff] }
 0x74a   : > { %2249 = vmatmul.bf16.gmra.mxu2 %v1976_v53  ;;  %v1747_v49 = vmax.f32 %v1694_v38, 0.0  ;;  %v1743_v53 = vmax.f32 %v1692_v9, 0.0  ;;  %v1745_v33 = vmax.f32 %v1730_v22, 0.0  ;;  %v1713_v18 = vadd.f32 %v5674_v34, %v1606_v13  ;;  %v4690_v9 = vld [vmem:[%s6233_s13 + $0x228] sm:$0xff]  ;;  %v4695_v22 = vld [vmem:[%s6233_s13 + $0x250] sm:$0xff] }
 0x74b   : > { %2287 = vmatmul.bf16.gmra.mxu3 %v1978_v59  ;;  %2664 = vmatpush.bf16.msrb.mxu1 %v4242_v27  ;;  %v1675_v59 = vadd.f32 %v5672_v45, %v1604_v5  ;;  %v1673_v12 = vadd.f32 %v5640_v26, %v1604_v5  ;;  %v1711_v11 = vadd.f32 %v5642_v30, %v1606_v13  ;;  %v4698_v13 = vld [vmem:[%s6233_s13 + $0x268] sm:$0xff] }
 0x74c   : > { %v1755_v28 = vpack.c.bf16 %v1747_v49, %v1743_v53  ;;  %v1757_v37 = vpack.c.bf16 %v1749_v52, %v1745_v33  ;;  %v1748_v6 = vmax.f32 %v1713_v18, 0.0  ;;  %v4706_v49 = vld [vmem:[%s6233_s13 + $0x2a8] sm:$0xff]  ;;  %v4711_v53 = vld [vmem:[%s6233_s13 + $0x2d0] sm:$0xff] }
 0x74d   : > { %v1746_v55 = vmax.f32 %v1675_v59, 0.0  ;;  %v1742_v20 = vmax.f32 %v1673_v12, 0.0  ;;  %v1744_v24 = vmax.f32 %v1711_v11, 0.0  ;;  %v4689_v12 = vld [vmem:[%s6233_s13 + $0x220] sm:$0xff] }
 0x74e   : > { %v4705_v11 = vld [vmem:[%s6233_s13 + $0x2a0] sm:$0xff] }
 0x74f   : > { %v1754_v31 = vpack.c.bf16 %v1746_v55, %v1742_v20  ;;  %v1756_v56 = vpack.c.bf16 %v1748_v6, %v1744_v24  ;;  %v4710_v55 = vld [vmem:[%s6233_s13 + $0x2c8] sm:$0xff]  ;;  %v4688_v24 = vld [vmem:[%s6233_s13 + $0x218] sm:$0xff] }
 0x754   : > { %2531 = vmatmul.bf16.vlgmr.msra.gmra.mxu1 %v1751_v54  ;;  %v4713_v54 = vld [vmem:[%s6233_s13 + $0x2e0] sm:$0xff] }
 0x755   : > { %2569 = vmatmul.bf16.vlgmr.msrb.gmra.mxu0 %v1753_v25  ;;  %3013 = vmatpush.bf16.msra.mxu1 %v4700_v41 }
 0x756   : > { %3051 = vmatpush.bf16.msrb.mxu0 %v4716_v47 }
 0x759   : > { %3014 = vmatpush.bf16.msra.mxu1 %v4699_v17 }
 0x75a   : > { %2512 = vmatmul.bf16.vlgmr.msrb.gmra.mxu2 %v1750_v19  ;;  %3052 = vmatpush.bf16.msrb.mxu0 %v4715_v51  ;;  %v4707_v19 = vld [vmem:[%s6233_s13 + $0x2b0] sm:$0xff] }
 0x75b   : > { %2550 = vmatmul.bf16.vlgmr.msra.gmra.mxu3 %v1752_v2  ;;  %2994 = vmatpush.bf16.msrb.mxu2 %v4692_v36  ;;  %v4712_v2 = vld [vmem:[%s6233_s13 + $0x2d8] sm:$0xff] }
 0x75c   : > { %3032 = vmatpush.bf16.msra.mxu3 %v4708_v29  ;;  %v4421_v29 = vld [vmem:[%s6231_s11 + $0xb0] sm:$0xf] }
 0x75d   : > { %3015 = vmatpush.bf16.msra.mxu1 %v4698_v13 }
 0x75e   : > { %3053 = vmatpush.bf16.msrb.mxu0 %v4714_v61 }
 0x75f   : > { %2995 = vmatpush.bf16.msrb.mxu2 %v4691_v43  ;;  %v4429_v43 = vld [vmem:[%s6231_s11 + $0xb8] sm:$0xf] }
 0x760   : > { %3033 = vmatpush.bf16.msra.mxu3 %v4707_v19 }
 0x761   : > { %3016 = vmatpush.bf16.msra.mxu1 %v4697_v4 }
 0x762   : > { %3054 = vmatpush.bf16.msrb.mxu0 %v4713_v54 }
 0x763   : > { %2996 = vmatpush.bf16.msrb.mxu2 %v4690_v9 }
 0x764   : > { %2536 = vmatmul.bf16.gmra.mxu1 %v1755_v28  ;;  %3034 = vmatpush.bf16.msra.mxu3 %v4706_v49  ;;  %v4694_v28 = vld [vmem:[%s6233_s13 + $0x248] sm:$0xff] }
 0x765   : > { %2574 = vmatmul.bf16.gmra.mxu0 %v1757_v37  ;;  %3017 = vmatpush.bf16.msra.mxu1 %v4696_v46  ;;  %v4724_v46 = vld [vmem:[%s6231_s11 + $0xf4] sm:$0xf0] }
 0x766   : > { %3055 = vmatpush.bf16.msrb.mxu0 %v4712_v2  ;;  %v4430_v2 = vor.u32 %v4724_v46, %v4429_v43 }
 0x767   : > { %2997 = vmatpush.bf16.msrb.mxu2 %v4689_v12 }
 0x768   : > { %3035 = vmatpush.bf16.msra.mxu3 %v4705_v11  ;;  %v4431_v11 = vld [vmem:[%s6231_s11 + $0xf8] sm:$0xf0] }
 0x769   : > { %3018 = vmatpush.bf16.msra.mxu1 %v4695_v22 }
 0x76a   : > { %2517 = vmatmul.bf16.gmra.mxu2 %v1754_v31  ;;  %3056 = vmatpush.bf16.msrb.mxu0 %v4711_v53  ;;  %v4693_v31 = vld [vmem:[%s6233_s13 + $0x240] sm:$0xff]  ;;  %v4721_v53 = vld [vmem:[%s6231_s11 + $0xb4] sm:$0xf] }
 0x76b   : > { %2555 = vmatmul.bf16.gmra.mxu3 %v1756_v56  ;;  %v4704_v56 = vld [vmem:[%s6233_s13 + $0x298] sm:$0xff]  ;;  %2998 = vmatpush.bf16.msrb.mxu2 %v4688_v24 }
 0x76c   : > { %3036 = vmatpush.bf16.msra.mxu3 %v4704_v56 }
 0x76d   : > { %3019 = vmatpush.bf16.msra.mxu1 %v4694_v28 }
 0x76e   : > { %3057 = vmatpush.bf16.msrb.mxu0 %v4710_v55 }
 0x771   : > { %3020 = vmatpush.bf16.msra.mxu1 %v4693_v31 }
 0x774   : > { %4269 = vmatmul.msk.bf16.vlgmr.msrb.gmra.mxu1 %vm640_vm2, %v5408_v50 }
 0x775   : > { %4273 = vmatmul.msk.bf16.vlgmr.msra.gmra.mxu0 %vm640_vm2, %v5408_v50 }
 0x77a   : > { %4267 = vmatmul.msk.bf16.vlgmr.msra.gmra.mxu2 %vm640_vm2, %v5408_v50 }
 0x77b   : > { %4271 = vmatmul.msk.bf16.vlgmr.msrb.gmra.mxu3 %vm640_vm2, %v5408_v50 }
 0x784   : > { %4270 = vmatmul.msk.bf16.gmra.mxu1 %vm640_vm2, %v5480_v32 }
 0x785   : > { %4274 = vmatmul.msk.bf16.gmra.mxu0 %vm640_vm2, %v5480_v32 }
 0x78a   : > { %4268 = vmatmul.msk.bf16.gmra.mxu2 %vm640_vm2, %v5480_v32 }
 0x78b   : > { %4272 = vmatmul.msk.bf16.gmra.mxu3 %vm640_vm2, %v5480_v32 }
 0x7b1   : > { %v2264_v26 = vpop.f32.mrf.mxu1 }
 0x7b2   : > { %v2302_v30 = vpop.f32.mrf.mxu0 }
 0x7b9   : > { %v2266_v45 = vpop.f32.mrf.mxu1 }
 0x7ba   : > { %v2304_v34 = vpop.f32.mrf.mxu0 }
 0x7bd   : > { %v2245_v5 = vpop.f32.mrf.mxu2 }
 0x7be   : > { %v2265_v8 = vadd.f32 %v2264_v26, %v2245_v5  ;;  %v2283_v14 = vpop.f32.mrf.mxu3 }
 0x7c0   : > { %v2284_v10 = vadd.f32 %v2283_v14, %v2265_v8  ;;  %v4687_v8 = vld [vmem:[%s6233_s13 + $0x210] sm:$0xff] }
 0x7c1   : > { %v2269_v15 = vpop.f32.mrf.mxu1  ;;  %v4703_v14 = vld [vmem:[%s6233_s13 + $0x290] sm:$0xff]  ;;  %2999 = vmatpush.bf16.msrb.mxu2 %v4687_v8 }
 0x7c2   : > { %v2307_v16 = vpop.f32.mrf.mxu0  ;;  %v5852_v60 = vadd.f32 %v2302_v30, %v2284_v10  ;;  %v4709_v30 = vld [vmem:[%s6233_s13 + $0x2c0] sm:$0xff]  ;;  %3037 = vmatpush.bf16.msra.mxu3 %v4703_v14 }
 0x7c3   : > { %3058 = vmatpush.bf16.msrb.mxu0 %v4709_v30  ;;  %v4407_v30 = vld [vmem:[%s6231_s11 + $0x70] sm:$0xf0] }
 0x7c5   : > { %v2247_v57 = vpop.f32.mrf.mxu2 }
 0x7c6   : > { %v2267_v62 = vadd.f32 %v2266_v45, %v2247_v57  ;;  %v2285_v23 = vpop.f32.mrf.mxu3 }
 0x7c8   : > { %v2286_v21 = vadd.f32 %v2285_v23, %v2267_v62  ;;  %v4685_v23 = vld [vmem:[%s6233_s13 + $0x200] sm:$0xff] }
 0x7c9   : > { %v2271_v27 = vpop.f32.mrf.mxu1 }
 0x7ca   : > { %v2309_v58 = vpop.f32.mrf.mxu0  ;;  %v5866_v3 = vadd.f32 %v2304_v34, %v2286_v21  ;;  %v4701_v21 = vld [vmem:[%s6233_s13 + $0x280] sm:$0xff] }
 0x7cd   : > { %v2250_v39 = vpop.f32.mrf.mxu2 }
 0x7ce   : > { %v2270_v1 = vadd.f32 %v2269_v15, %v2250_v39  ;;  %v2288_v25 = vpop.f32.mrf.mxu3  ;;  %v4723_v39 = vld [vmem:[%s6231_s11 + $0xec] sm:$0xf0] }
 0x7d0   : > { %v2289_v0 = vadd.f32 %v2288_v25, %v2270_v1  ;;  %v4422_v1 = vor.u32 %v4723_v39, %v4421_v29  ;;  %v2588_v25 = vld [vmem:[%s6232_s12 + $0x8] sm:$0xf] }
 0x7d1   : > { %v2532_v48 = vpop.f32.mrf.mxu1  ;;  %v5974_v9 = vperm.slane %v2588_v25, 3 }
 0x7d2   : > { %v2570_v38 = vpop.f32.mrf.mxu0  ;;  %v5892_v7 = vadd.f32 %v2307_v16, %v2289_v0  ;;  %v4686_v16 = vld [vmem:[%s6233_s13 + $0x208] sm:$0xff] }
 0x7d3   : > { %3000 = vmatpush.bf16.msrb.mxu2 %v4686_v16 }
 0x7d5   : > { %v2252_v52 = vpop.f32.mrf.mxu2 }
 0x7d6   : > { %v2272_v59 = vadd.f32 %v2271_v27, %v2252_v52  ;;  %v2290_v33 = vpop.f32.mrf.mxu3 }
 0x7d7   : > { %3001 = vmatpush.bf16.msrb.mxu2 %v4685_v23 }
 0x7d8   : > { %v2291_v18 = vadd.f32 %v2290_v33, %v2272_v59  ;;  %v4423_v59 = vld [vmem:[%s6231_s11 + $0xf0] sm:$0xf0]  ;;  %v4722_v33 = vld [vmem:[%s6231_s11 + $0xbc] sm:$0xf] }
 0x7d9   : > { %v2534_v37 = vpop.f32.mrf.mxu1  ;;  %v4426_v28 = vor.u32 %v4721_v53, %v4423_v59 }
 0x7da   : > { %v2572_v6 = vpop.f32.mrf.mxu0  ;;  %v2310_v20 = vadd.f32 %v2309_v58, %v2291_v18 }
 0x7db   : > { %3138 = vmatpush.bf16.msra.mxu2 %v4422_v1  ;;  %3157 = vmatpush.bf16.msrb.mxu1 %v4426_v28 }
 0x7dd   : > { %v2513_v26 = vpop.f32.mrf.mxu2 }
 0x7de   : > { %v2514_v45 = vadd.f32 %v2513_v26, %v5852_v60  ;;  %v2551_v34 = vpop.f32.mrf.mxu3  ;;  %v4702_v60 = vld [vmem:[%s6233_s13 + $0x288] sm:$0xff]  ;;  %v4717_v26 = vld [vmem:[%s6231_s11 + $0x34] sm:$0xf] }
 0x7df   : > { %3038 = vmatpush.bf16.msra.mxu3 %v4702_v60  ;;  %v4410_v14 = vor.u32 %v4717_v26, %v4407_v30  ;;  %v4405_v60 = vld [vmem:[%s6231_s11 + $0x30] sm:$0xf] }
 0x7e0   : > { %v2533_v5 = vadd.f32 %v2532_v48, %v2514_v45  ;;  %v4718_v45 = vld [vmem:[%s6231_s11 + $0x3c] sm:$0xf] }
 0x7e1   : > { %v2537_v10 = vpop.f32.mrf.mxu1  ;;  %3158 = vmatpush.bf16.msrb.mxu1 %v4410_v14 }
 0x7e2   : > { %v2552_v41 = vadd.f32 %v2551_v34, %v2533_v5  ;;  %v2575_v47 = vpop.f32.mrf.mxu0 }
 0x7e3   : > { %3039 = vmatpush.bf16.msra.mxu3 %v4701_v21  ;;  %v4413_v21 = vld [vmem:[%s6231_s11 + $0x38] sm:$0xf] }
 0x7e4   : > { %v5937_v15 = vadd.f32 %v2570_v38, %v2552_v41 }
 0x7e5   : > { %v2515_v17 = vpop.f32.mrf.mxu2 }
 0x7e6   : > { %v2516_v51 = vadd.f32 %v2515_v17, %v5866_v3  ;;  %v2553_v57 = vpop.f32.mrf.mxu3  ;;  %v4719_v17 = vld [vmem:[%s6231_s11 + $0x6c] sm:$0xf0] }
 0x7e7   : > { %3176 = vmatpush.bf16.msrb.mxu3 %v4430_v2  ;;  %v4406_v23 = vor.u32 %v4719_v17, %v4405_v60  ;;  %v4739_v60 = vld [vmem:[%s6233_s13 + $0x370] sm:$0xff] }
 0x7e8   : > { %v2535_v62 = vadd.f32 %v2534_v37, %v2516_v51  ;;  %v4755_v17 = vld [vmem:[%s6233_s13 + $0x3f0] sm:$0xff] }
 0x7e9   : > { %v2539_v13 = vpop.f32.mrf.mxu1  ;;  %3139 = vmatpush.bf16.msra.mxu2 %v4406_v23  ;;  %v4736_v23 = vld [vmem:[%s6233_s13 + $0x358] sm:$0xff] }
 0x7ea   : > { %v2554_v61 = vadd.f32 %v2553_v57, %v2535_v62  ;;  %v2577_v27 = vpop.f32.mrf.mxu0 }
 0x7ec   : > { %v5952_v58 = vadd.f32 %v2572_v6, %v2554_v61  ;;  %v4434_v6 = vor.u32 %v4722_v33, %v4431_v11 }
 0x7ed   : > { %v2518_v3 = vpop.f32.mrf.mxu2 }
 0x7ee   : > { %v2519_v36 = vadd.f32 %v2518_v3, %v5892_v7  ;;  %v2556_v4 = vpop.f32.mrf.mxu3  ;;  %v5972_v7 = vperm.slane %v2588_v25, 1  ;;  %3195 = vmatpush.bf16.msra.mxu0 %v4434_v6  ;;  %v2590_v3 = vperm.slane %v2588_v25, 0 }
 0x7f0   : > { %v2538_v54 = vadd.f32 %v2537_v10, %v2519_v36  ;;  %v4415_v10 = vld [vmem:[%s6231_s11 + $0x78] sm:$0xf0]  ;;  %v2592_v36 = vperm.slane %v2588_v25, 2 }
 0x7f1   : > { %v2666_v0 = vpop.f32.mrf.mxu1  ;;  %v4418_v51 = vor.u32 %v4718_v45, %v4415_v10 }
 0x7f2   : > { %v2557_v48 = vadd.f32 %v2556_v4, %v2538_v54  ;;  %v2704_v19 = vpop.f32.mrf.mxu0  ;;  %v2667_v18 = vadd.f32 %v2666_v0, %v5972_v7 }
 0x7f3   : > { %v2705_v37 = vadd.f32 %v2704_v19, %v5974_v9  ;;  %3196 = vmatpush.bf16.msra.mxu0 %v4418_v51  ;;  %v4754_v51 = vld [vmem:[%s6233_s13 + $0x3e8] sm:$0xff] }
 0x7f4   : > { %v5970_v38 = vadd.f32 %v2575_v47, %v2557_v48  ;;  %v2715_v34 = vmax.f32 %v2667_v18, 0.0 }
 0x7f5   : > { %v2520_v22 = vpop.f32.mrf.mxu2  ;;  %v2717_v41 = vmax.f32 %v2705_v37, 0.0 }
 0x7f6   : > { %v2521_v49 = vadd.f32 %v2520_v22, %v2310_v20  ;;  %v2558_v52 = vpop.f32.mrf.mxu3 }
 0x7f8   : > { %v2540_v12 = vadd.f32 %v2539_v13, %v2521_v49  ;;  %v4720_v13 = vld [vmem:[%s6231_s11 + $0x74] sm:$0xf0] }
 0x7f9   : > { %v2668_v55 = vpop.f32.mrf.mxu1 }
 0x7fa   : > { %v2559_v20 = vadd.f32 %v2558_v52, %v2540_v12  ;;  %v2669_v24 = vadd.f32 %v2668_v55, %v5972_v7  ;;  %v2706_v31 = vpop.f32.mrf.mxu0 }
 0x7fb   : > { %v2707_v56 = vadd.f32 %v2706_v31, %v5974_v9 }
 0x7fc   : > { %v6001_v5 = vadd.f32 %v2577_v27, %v2559_v20  ;;  %v2719_v8 = vmax.f32 %v2669_v24, 0.0  ;;  %v4414_v27 = vor.u32 %v4720_v13, %v4413_v21  ;;  %v4752_v21 = vld [vmem:[%s6233_s13 + $0x3d8] sm:$0xff] }
 0x7fd   : > { %v2721_v47 = vmax.f32 %v2707_v56, 0.0  ;;  %v2647_v16 = vpop.f32.mrf.mxu2 }
 0x7fe   : > { %v2731_v57 = vpack.c.bf16 %v2719_v8, %v2715_v34  ;;  %v2685_v62 = vpop.f32.mrf.mxu3  ;;  %3177 = vmatpush.bf16.msrb.mxu3 %v4414_v27  ;;  %v2648_v39 = vadd.f32 %v2647_v16, %v2590_v3  ;;  %v4740_v16 = vld [vmem:[%s6233_s13 + $0x378] sm:$0xff] }
 0x7ff   : > { %v2733_v61 = vpack.c.bf16 %v2721_v47, %v2717_v41  ;;  %v2686_v54 = vadd.f32 %v2685_v62, %v2592_v36  ;;  %v4753_v62 = vld [vmem:[%s6233_s13 + $0x3e0] sm:$0xff]  ;;  %v4732_v27 = vld [vmem:[%s6233_s13 + $0x338] sm:$0xff] }
 0x800   : > { %3021 = vmatmul.bf16.vlgmr.msra.gmra.mxu1 %v2731_v57  ;;  %v2714_v48 = vmax.f32 %v2648_v39, 0.0  ;;  %v4737_v57 = vld [vmem:[%s6233_s13 + $0x360] sm:$0xff]  ;;  %v4747_v39 = vld [vmem:[%s6233_s13 + $0x3b0] sm:$0xff] }
 0x801   : > { %3059 = vmatmul.bf16.vlgmr.msrb.gmra.mxu0 %v2733_v61  ;;  %v2671_v4 = vpop.f32.mrf.mxu1  ;;  %v2716_v22 = vmax.f32 %v2686_v54, 0.0  ;;  %3507 = vmatpush.bf16.msra.mxu1 %v4740_v16  ;;  %v4734_v54 = vld [vmem:[%s6233_s13 + $0x348] sm:$0xff] }
 0x802   : > { %v2709_v29 = vpop.f32.mrf.mxu0  ;;  %v2672_v19 = vadd.f32 %v2671_v4, %v5972_v7  ;;  %v4751_v4 = vld [vmem:[%s6233_s13 + $0x3d0] sm:$0xff] }
 0x803   : > { %v2710_v49 = vadd.f32 %v2709_v29, %v5974_v9  ;;  %v4731_v29 = vld [vmem:[%s6233_s13 + $0x330] sm:$0xff] }
 0x804   : > { %v2723_v28 = vmax.f32 %v2672_v19, 0.0  ;;  %v4733_v19 = vld [vmem:[%s6233_s13 + $0x340] sm:$0xff] }
 0x805   : > { %v2649_v1 = vpop.f32.mrf.mxu2  ;;  %v2725_v37 = vmax.f32 %v2710_v49, 0.0  ;;  %3508 = vmatpush.bf16.msra.mxu1 %v4739_v60  ;;  %v4745_v49 = vld [vmem:[%s6233_s13 + $0x3a0] sm:$0xff] }
 0x806   : > { %v2650_v0 = vadd.f32 %v2649_v1, %v2590_v3  ;;  %v2687_v43 = vpop.f32.mrf.mxu3  ;;  %v4750_v1 = vld [vmem:[%s6233_s13 + $0x3c8] sm:$0xff] }
 0x807   : > { %v2688_v46 = vadd.f32 %v2687_v43, %v2592_v36 }
 0x808   : > { %v2718_v2 = vmax.f32 %v2650_v0, 0.0 }
 0x809   : > { %v2720_v52 = vmax.f32 %v2688_v46, 0.0  ;;  %v2673_v53 = vpop.f32.mrf.mxu1  ;;  %v4730_v46 = vld [vmem:[%s6233_s13 + $0x328] sm:$0xff] }
 0x80a   : > { %v2730_v25 = vpack.c.bf16 %v2718_v2, %v2714_v48  ;;  %v2674_v59 = vadd.f32 %v2673_v53, %v5972_v7  ;;  %v2711_v33 = vpop.f32.mrf.mxu0  ;;  %v4746_v48 = vld [vmem:[%s6233_s13 + $0x3a8] sm:$0xff]  ;;  %v4749_v2 = vld [vmem:[%s6233_s13 + $0x3c0] sm:$0xff] }
 0x80b   : > { %v2732_v18 = vpack.c.bf16 %v2720_v52, %v2716_v22  ;;  %v2712_v12 = vadd.f32 %v2711_v33, %v5974_v9  ;;  %v4729_v22 = vld [vmem:[%s6233_s13 + $0x320] sm:$0xff] }
 0x80c   : > { %v2727_v11 = vmax.f32 %v2674_v59, 0.0  ;;  %3002 = vmatmul.bf16.vlgmr.msrb.gmra.mxu2 %v2730_v25  ;;  %v4728_v25 = vld [vmem:[%s6233_s13 + $0x318] sm:$0xff] }
 0x80d   : > { %v2729_v55 = vmax.f32 %v2712_v12, 0.0  ;;  %3040 = vmatmul.bf16.vlgmr.msra.gmra.mxu3 %v2732_v18  ;;  %v2652_v6 = vpop.f32.mrf.mxu2  ;;  %3488 = vmatpush.bf16.msrb.mxu2 %v4732_v27  ;;  %v4744_v59 = vld [vmem:[%s6233_s13 + $0x398] sm:$0xff] }
 0x80e   : > { %v2735_v20 = vpack.c.bf16 %v2727_v11, %v2723_v28  ;;  %v2690_v24 = vpop.f32.mrf.mxu3  ;;  %v2653_v56 = vadd.f32 %v2652_v6, %v2590_v3  ;;  %v4727_v11 = vld [vmem:[%s6233_s13 + $0x310] sm:$0xff] }
 0x80f   : > { %v2737_v31 = vpack.c.bf16 %v2729_v55, %v2725_v37  ;;  %v2691_v26 = vadd.f32 %v2690_v24, %v2592_v36  ;;  %v4743_v37 = vld [vmem:[%s6233_s13 + $0x390] sm:$0xff] }
 0x810   : > { %3026 = vmatmul.bf16.gmra.mxu1 %v2735_v20  ;;  %v2722_v8 = vmax.f32 %v2653_v56, 0.0  ;;  %v4742_v56 = vld [vmem:[%s6233_s13 + $0x388] sm:$0xff] }
 0x811   : > { %3064 = vmatmul.bf16.gmra.mxu0 %v2737_v31  ;;  %v2724_v14 = vmax.f32 %v2691_v26, 0.0  ;;  %3489 = vmatpush.bf16.msrb.mxu2 %v4731_v29  ;;  %v4726_v31 = vld [vmem:[%s6233_s13 + $0x308] sm:$0xff] }
 0x815   : > { %v2654_v30 = vpop.f32.mrf.mxu2  ;;  %3490 = vmatpush.bf16.msrb.mxu2 %v4730_v46 }
 0x816   : > { %v2655_v7 = vadd.f32 %v2654_v30, %v2590_v3  ;;  %v2692_v45 = vpop.f32.mrf.mxu3  ;;  %v4748_v3 = vld [vmem:[%s6233_s13 + $0x3b8] sm:$0xff] }
 0x817   : > { %v2693_v34 = vadd.f32 %v2692_v45, %v2592_v36  ;;  %3526 = vmatpush.bf16.msra.mxu3 %v4748_v3  ;;  %v4735_v36 = vld [vmem:[%s6233_s13 + $0x350] sm:$0xff] }
 0x818   : > { %v2726_v9 = vmax.f32 %v2655_v7, 0.0 }
 0x819   : > { %v2728_v10 = vmax.f32 %v2693_v34, 0.0  ;;  %3491 = vmatpush.bf16.msrb.mxu2 %v4729_v22  ;;  %v4741_v34 = vld [vmem:[%s6233_s13 + $0x380] sm:$0xff] }
 0x81a   : > { %v2734_v41 = vpack.c.bf16 %v2726_v9, %v2722_v8  ;;  %v3082_v9 = vld [vmem:[%s6232_s12 + $0xc] sm:$0xf] }
 0x81b   : > { %v2736_v47 = vpack.c.bf16 %v2728_v10, %v2724_v14  ;;  %3527 = vmatpush.bf16.msra.mxu3 %v4747_v39  ;;  %v3085_v16 = vperm.slane %v3082_v9, 1 }
 0x81c   : > { %3007 = vmatmul.bf16.gmra.mxu2 %v2734_v41 }
 0x81d   : > { %3045 = vmatmul.bf16.gmra.mxu3 %v2736_v47  ;;  %3492 = vmatpush.bf16.msrb.mxu2 %v4728_v25 }
 0x81f   : > { %3528 = vmatpush.bf16.msra.mxu3 %v4746_v48 }
 0x820   : > { %4437 = vmatmul.msk.bf16.vlgmr.msrb.gmra.mxu1 %vm640_vm2, %v5408_v50 }
 0x821   : > { %4441 = vmatmul.msk.bf16.vlgmr.msra.gmra.mxu0 %vm640_vm2, %v5408_v50  ;;  %3493 = vmatpush.bf16.msrb.mxu2 %v4727_v11 }
 0x823   : > { %3529 = vmatpush.bf16.msra.mxu3 %v4745_v49  ;;  %v3084_v49 = vperm.slane %v3082_v9, 0 }
 0x825   : > { %3494 = vmatpush.bf16.msrb.mxu2 %v4726_v31 }
 0x827   : > { %3530 = vmatpush.bf16.msra.mxu3 %v4744_v59 }
 0x82b   : > { %3531 = vmatpush.bf16.msra.mxu3 %v4743_v37 }
 0x82c   : > { %4435 = vmatmul.msk.bf16.vlgmr.msra.gmra.mxu2 %vm640_vm2, %v5408_v50 }
 0x82d   : > { %4439 = vmatmul.msk.bf16.vlgmr.msrb.gmra.mxu3 %vm640_vm2, %v5408_v50  ;;  %v4756_v50 = vld [vmem:[%s6233_s13 + $0x3f8] sm:$0xff] }
 0x82e   : > { %3545 = vmatpush.bf16.msrb.mxu0 %v4756_v50 }
 0x82f   : > { %3532 = vmatpush.bf16.msra.mxu3 %v4742_v56 }
 0x830   : > { %4438 = vmatmul.msk.bf16.gmra.mxu1 %vm640_vm2, %v5480_v32 }
 0x831   : > { %4442 = vmatmul.msk.bf16.gmra.mxu0 %vm640_vm2, %v5480_v32 }
 0x832   : > { %3546 = vmatpush.bf16.msrb.mxu0 %v4755_v17  ;;  %v3087_v17 = vperm.slane %v3082_v9, 3 }
 0x833   : > { %3533 = vmatpush.bf16.msra.mxu3 %v4741_v34 }
 0x836   : > { %3547 = vmatpush.bf16.msrb.mxu0 %v4754_v51 }
 0x83a   : > { %3548 = vmatpush.bf16.msrb.mxu0 %v4753_v62 }
 0x83c   : > { %4436 = vmatmul.msk.bf16.gmra.mxu2 %vm640_vm2, %v5480_v32 }
 0x83d   : > { %4440 = vmatmul.msk.bf16.gmra.mxu3 %vm640_vm2, %v5480_v32  ;;  %v4738_v32 = vld [vmem:[%s6233_s13 + $0x368] sm:$0xff] }
 0x83e   : > { %3509 = vmatpush.bf16.msra.mxu1 %v4738_v32  ;;  %3549 = vmatpush.bf16.msrb.mxu0 %v4752_v21 }
 0x842   : > { %3510 = vmatpush.bf16.msra.mxu1 %v4737_v57  ;;  %3550 = vmatpush.bf16.msrb.mxu0 %v4751_v4 }
 0x846   : > { %3511 = vmatpush.bf16.msra.mxu1 %v4736_v23  ;;  %3551 = vmatpush.bf16.msrb.mxu0 %v4750_v1 }
 0x84a   : > { %3512 = vmatpush.bf16.msra.mxu1 %v4735_v36  ;;  %3552 = vmatpush.bf16.msrb.mxu0 %v4749_v2 }
 0x84e   : > { %3513 = vmatpush.bf16.msra.mxu1 %v4734_v54 }
 0x852   : > { %3514 = vmatpush.bf16.msra.mxu1 %v4733_v19 }
 0x87d   : > { %v3022_v13 = vpop.f32.mrf.mxu1 }
 0x87e   : > { %v3060_v61 = vpop.f32.mrf.mxu0 }
 0x885   : > { %v3024_v0 = vpop.f32.mrf.mxu1 }
 0x886   : > { %v3062_v43 = vpop.f32.mrf.mxu0 }
 0x88d   : > { %v3027_v52 = vpop.f32.mrf.mxu1 }
 0x88e   : > { %v3065_v53 = vpop.f32.mrf.mxu0 }
 0x88f   : > { %v3003_v33 = vpop.f32.mrf.mxu2 }
 0x890   : > { %v3023_v18 = vadd.f32 %v3022_v13, %v3003_v33  ;;  %v3041_v12 = vpop.f32.mrf.mxu3 }
 0x892   : > { %v3042_v28 = vadd.f32 %v3041_v12, %v3023_v18 }
 0x894   : > { %v3061_v55 = vadd.f32 %v3060_v61, %v3042_v28 }
 0x895   : > { %v3029_v6 = vpop.f32.mrf.mxu1 }
 0x896   : > { %v6123_v20 = vadd.f32 %v3061_v55, %v5937_v15  ;;  %v3067_v24 = vpop.f32.mrf.mxu0  ;;  %v4725_v15 = vld [vmem:[%s6233_s13 + $0x300] sm:$0xff] }
 0x897   : > { %v3005_v26 = vpop.f32.mrf.mxu2  ;;  %3495 = vmatpush.bf16.msrb.mxu2 %v4725_v15 }
 0x898   : > { %v3025_v30 = vadd.f32 %v3024_v0, %v3005_v26  ;;  %v3043_v7 = vpop.f32.mrf.mxu3 }
 0x89a   : > { %v3044_v45 = vadd.f32 %v3043_v7, %v3025_v30 }
 0x89c   : > { %v3063_v8 = vadd.f32 %v3062_v43, %v3044_v45 }
 0x89d   : > { %v3160_v14 = vpop.f32.mrf.mxu1 }
 0x89e   : > { %v6141_v10 = vadd.f32 %v3063_v8, %v5952_v58  ;;  %v3198_v41 = vpop.f32.mrf.mxu0  ;;  %v3161_v51 = vadd.f32 %v3160_v14, %v3085_v16 }
 0x89f   : > { %v3008_v47 = vpop.f32.mrf.mxu2  ;;  %v3199_v62 = vadd.f32 %v3198_v41, %v3087_v17 }
 0x8a0   : > { %v3028_v50 = vadd.f32 %v3027_v52, %v3008_v47  ;;  %v3046_v60 = vpop.f32.mrf.mxu3  ;;  %v3209_v58 = vmax.f32 %v3161_v51, 0.0  ;;  %v3086_v52 = vperm.slane %v3082_v9, 2 }
 0x8a1   : > { %v3211_v39 = vmax.f32 %v3199_v62, 0.0 }
 0x8a2   : > { %v3047_v32 = vadd.f32 %v3046_v60, %v3028_v50 }
 0x8a4   : > { %v3066_v57 = vadd.f32 %v3065_v53, %v3047_v32 }
 0x8a5   : > { %v3162_v23 = vpop.f32.mrf.mxu1 }
 0x8a6   : > { %v6144_v21 = vadd.f32 %v3066_v57, %v5970_v38  ;;  %v3163_v13 = vadd.f32 %v3162_v23, %v3085_v16  ;;  %v3200_v61 = vpop.f32.mrf.mxu0 }
 0x8a7   : > { %v3201_v27 = vadd.f32 %v3200_v61, %v3087_v17  ;;  %v3010_v3 = vpop.f32.mrf.mxu2 }
 0x8a8   : > { %v3213_v36 = vmax.f32 %v3163_v13, 0.0  ;;  %v3030_v4 = vadd.f32 %v3029_v6, %v3010_v3  ;;  %v3048_v29 = vpop.f32.mrf.mxu3 }
 0x8a9   : > { %v3215_v54 = vmax.f32 %v3201_v27, 0.0 }
 0x8aa   : > { %v3225_v1 = vpack.c.bf16 %v3213_v36, %v3209_v58  ;;  %v3049_v0 = vadd.f32 %v3048_v29, %v3030_v4 }
 0x8ab   : > { %v3227_v43 = vpack.c.bf16 %v3215_v54, %v3211_v39 }
 0x8ac   : > { %v3068_v46 = vadd.f32 %v3067_v24, %v3049_v0  ;;  %3515 = vmatmul.bf16.vlgmr.msra.gmra.mxu1 %v3225_v1  ;;  %v4797_v0 = vld [vmem:[%s6234_s14] ss:$0 sm:$0xff] }
 0x8ad   : > { %3553 = vmatmul.bf16.vlgmr.msrb.gmra.mxu0 %v3227_v43  ;;  %v3165_v48 = vpop.f32.mrf.mxu1 }
 0x8ae   : > { %v6147_v38 = vadd.f32 %v3068_v46, %v6001_v5  ;;  %v3203_v19 = vpop.f32.mrf.mxu0  ;;  %v3166_v53 = vadd.f32 %v3165_v48, %v3085_v16 }
 0x8af   : > { %v3141_v2 = vpop.f32.mrf.mxu2  ;;  %v3204_v25 = vadd.f32 %v3203_v19, %v3087_v17 }
 0x8b0   : > { %v3179_v22 = vpop.f32.mrf.mxu3  ;;  %v3142_v33 = vadd.f32 %v3141_v2, %v3084_v49  ;;  %v3217_v55 = vmax.f32 %v3166_v53, 0.0 }
 0x8b1   : > { %v3180_v28 = vadd.f32 %v3179_v22, %v3086_v52  ;;  %v3219_v5 = vmax.f32 %v3204_v25, 0.0 }
 0x8b2   : > { %v3208_v30 = vmax.f32 %v3142_v33, 0.0 }
 0x8b3   : > { %v3210_v15 = vmax.f32 %v3180_v28, 0.0 }
 0x8b5   : > { %v3167_v59 = vpop.f32.mrf.mxu1 }
 0x8b6   : > { %v3168_v18 = vadd.f32 %v3167_v59, %v3085_v16  ;;  %v3205_v12 = vpop.f32.mrf.mxu0 }
 0x8b7   : > { %v3206_v11 = vadd.f32 %v3205_v12, %v3087_v17  ;;  %v3143_v37 = vpop.f32.mrf.mxu2 }
 0x8b8   : > { %v3221_v6 = vmax.f32 %v3168_v18, 0.0  ;;  %v3144_v24 = vadd.f32 %v3143_v37, %v3084_v49  ;;  %v3181_v31 = vpop.f32.mrf.mxu3 }
 0x8b9   : > { %v3223_v56 = vmax.f32 %v3206_v11, 0.0  ;;  %v3182_v26 = vadd.f32 %v3181_v31, %v3086_v52 }
 0x8ba   : > { %v3229_v7 = vpack.c.bf16 %v3221_v6, %v3217_v55  ;;  %v3212_v45 = vmax.f32 %v3144_v24, 0.0 }
 0x8bb   : > { %v3231_v34 = vpack.c.bf16 %v3223_v56, %v3219_v5  ;;  %v3214_v8 = vmax.f32 %v3182_v26, 0.0 }
 0x8bc   : > { %v3224_v9 = vpack.c.bf16 %v3212_v45, %v3208_v30  ;;  %3520 = vmatmul.bf16.gmra.mxu1 %v3229_v7 }
 0x8bd   : > { %v3226_v14 = vpack.c.bf16 %v3214_v8, %v3210_v15  ;;  %3558 = vmatmul.bf16.gmra.mxu0 %v3231_v34 }
 0x8be   : > { %3496 = vmatmul.bf16.vlgmr.msrb.gmra.mxu2 %v3224_v9 }
 0x8bf   : > { %3534 = vmatmul.bf16.vlgmr.msra.gmra.mxu3 %v3226_v14  ;;  %v3146_v41 = vpop.f32.mrf.mxu2 }
 0x8c0   : > { %v3184_v47 = vpop.f32.mrf.mxu3  ;;  %v3147_v16 = vadd.f32 %v3146_v41, %v3084_v49 }
 0x8c1   : > { %v3185_v50 = vadd.f32 %v3184_v47, %v3086_v52 }
 0x8c2   : > { %v3216_v57 = vmax.f32 %v3147_v16, 0.0 }
 0x8c3   : > { %v3218_v23 = vmax.f32 %v3185_v50, 0.0 }
 0x8c7   : > { %v3148_v60 = vpop.f32.mrf.mxu2 }
 0x8c8   : > { %v3149_v17 = vadd.f32 %v3148_v60, %v3084_v49  ;;  %v3186_v32 = vpop.f32.mrf.mxu3 }
 0x8c9   : > { %v3187_v51 = vadd.f32 %v3186_v32, %v3086_v52 }
 0x8ca   : > { %v3220_v62 = vmax.f32 %v3149_v17, 0.0 }
 0x8cb   : > { %v3222_v13 = vmax.f32 %v3187_v51, 0.0 }
 0x8cc   : > { %v3228_v61 = vpack.c.bf16 %v3220_v62, %v3216_v57 }
 0x8cd   : > { %v3230_v27 = vpack.c.bf16 %v3222_v13, %v3218_v23 }
 0x8ce   : > { %3501 = vmatmul.bf16.gmra.mxu2 %v3228_v61 }
 0x8cf   : > { %3539 = vmatmul.bf16.gmra.mxu3 %v3230_v27 }
 0x929   : > { %v3516_v3 = vpop.f32.mrf.mxu1 }
 0x92a   : > { %v3554_v58 = vpop.f32.mrf.mxu0 }
 0x931   : > { %v3518_v54 = vpop.f32.mrf.mxu1 }
 0x932   : > { %v3556_v46 = vpop.f32.mrf.mxu0 }
 0x939   : > { %v3521_v59 = vpop.f32.mrf.mxu1 }
 0x941   : > { %v3497_v36 = vpop.f32.mrf.mxu2  ;;  %v3523_v31 = vpop.f32.mrf.mxu1 }
 0x942   : > { %v3517_v4 = vadd.f32 %v3516_v3, %v3497_v36  ;;  %v3535_v29 = vpop.f32.mrf.mxu3 }
 0x944   : > { %v3536_v39 = vadd.f32 %v3535_v29, %v3517_v4 }
 0x946   : > { %v3555_v1 = vadd.f32 %v3554_v58, %v3536_v39 }
 0x948   : > { %v3564_v43 = vadd.f32 %v3555_v1, %v6123_v20  ;;  %v3559_v20 = vpop.f32.mrf.mxu0 }
 0x949   : > { %v3499_v48 = vpop.f32.mrf.mxu2 }
 0x94a   : > { %v3519_v19 = vadd.f32 %v3518_v54, %v3499_v48  ;;  %v3537_v2 = vpop.f32.mrf.mxu3  ;;  %v3572_v22 = vadd.f32 %v4797_v0, %v3564_v43 }
 0x94c   : > { %v3538_v49 = vadd.f32 %v3537_v2, %v3519_v19  ;;  %v3576_v52 = vadd.f32 %v3572_v22, %v5401_v35 }
 0x94e   : > { %v3557_v53 = vadd.f32 %v3556_v46, %v3538_v49  ;;  %v3582_v25 = vsel %vm640_vm2, %v3576_v52, 0.0 }
 0x94f   : > { %3583 = vadd.xlane.f32.xlu2 %v3582_v25 }
 0x950   : > { %v3565_v33 = vadd.f32 %v3557_v53, %v6141_v10  ;;  %v3561_v45 = vpop.f32.mrf.mxu0 }
 0x951   : > { %v3502_v18 = vpop.f32.mrf.mxu2 }
 0x952   : > { %v3522_v12 = vadd.f32 %v3521_v59, %v3502_v18  ;;  %v3540_v28 = vpop.f32.mrf.mxu3  ;;  %v3573_v11 = vadd.f32 %v4797_v0, %v3565_v33  ;;  %v4798_v59 = vld [vmem:[%s6235_s15] ss:$0 sm:$0xff] }
 0x954   : > { %v3541_v37 = vadd.f32 %v3540_v28, %v3522_v12  ;;  %v3577_v55 = vadd.f32 %v3573_v11, %v5404_v63  ;;  %v4799_v12 = vld [vmem:[%s6236_s16] ss:$0 sm:$0xff] }
 0x956   : > { %v3560_v6 = vadd.f32 %v3559_v20, %v3541_v37  ;;  %v3585_v24 = vsel %vm640_vm2, %v3577_v55, 0.0 }
 0x957   : > { %3586 = vadd.xlane.f32.xlu0 %v3585_v24 }
 0x958   : > { %v3566_v35 = vadd.f32 %v3560_v6, %v6144_v21 }
 0x959   : > { %v3504_v5 = vpop.f32.mrf.mxu2 }
 0x95a   : > { %v3524_v56 = vadd.f32 %v3523_v31, %v3504_v5  ;;  %v3574_v26 = vadd.f32 %v4797_v0, %v3566_v35  ;;  %v3542_v30 = vpop.f32.mrf.mxu3 }
 0x95c   : > { %v3543_v10 = vadd.f32 %v3542_v30, %v3524_v56  ;;  %v3578_v7 = vadd.f32 %v3574_v26, %v5473_v40 }
 0x95e   : > { %v3562_v15 = vadd.f32 %v3561_v45, %v3543_v10  ;;  %v3588_v34 = vsel %vm640_vm2, %v3578_v7, 0.0 }
 0x95f   : > { %3589 = vadd.xlane.f32.xlu1 %v3588_v34 }
 0x960   : > { %v3567_v63 = vadd.f32 %v3562_v15, %v6147_v38 }
 0x962   : > { %v3575_v8 = vadd.f32 %v4797_v0, %v3567_v63 }
 0x964   : > { %v3579_v9 = vadd.f32 %v3575_v8, %v5476_v42 }
 0x966   : > { %v3591_v21 = vsel %vm640_vm2, %v3579_v9, 0.0 }
 0x967   : > { %3592 = vadd.xlane.f32.xlu2 %v3591_v21 }
 0x9c2   : > { %v3584_v14 = vpop.xlane.xlu2 %3583 }
 0x9c3   : > { %v3594_v41 = vmul.f32 %v3584_v14, %v5310_v44 }
 0x9c5   : > { %v3598_v47 = vsub.f32 %v3576_v52, %v3594_v41 }
 0x9c7   : > { %v3602_v16 = vmul.f32 %v3598_v47, %v3598_v47 }
 0x9c9   : > { %v3606_v40 = vsel %vm640_vm2, %v3602_v16, 0.0 }
 0x9ca   : > { %3607 = vadd.xlane.f32.xlu0 %v3606_v40  ;;  %v3587_v50 = vpop.xlane.xlu0 %3586 }
 0x9cb   : > { %v3595_v60 = vmul.f32 %v3587_v50, %v5310_v44 }
 0x9cd   : > { %v6167_v17 = vsub.f32 %v3577_v55, %v3595_v60 }
 0x9cf   : > { %v3603_v38 = vmul.f32 %v6167_v17, %v6167_v17 }
 0x9d1   : > { %v3609_v42 = vsel %vm640_vm2, %v3603_v38, 0.0 }
 0x9d2   : > { %3610 = vadd.xlane.f32.xlu1 %v3609_v42  ;;  %v3590_v32 = vpop.xlane.xlu1 %3589 }
 0x9d3   : > { %v3596_v51 = vmul.f32 %v3590_v32, %v5310_v44 }
 0x9d5   : > { %v6173_v57 = vsub.f32 %v3578_v7, %v3596_v51 }
 0x9d7   : > { %v3604_v62 = vmul.f32 %v6173_v57, %v6173_v57 }
 0x9d9   : > { %v3612_v23 = vsel %vm640_vm2, %v3604_v62, 0.0 }
 0x9da   : > { %v3593_v13 = vpop.xlane.xlu2 %3592  ;;  %3613 = vadd.xlane.f32.xlu2 %v3612_v23 }
 0x9db   : > { %v3597_v61 = vmul.f32 %v3593_v13, %v5310_v44 }
 0x9dd   : > { %v6179_v27 = vsub.f32 %v3579_v9, %v3597_v61 }
 0x9df   : > { %v3605_v3 = vmul.f32 %v6179_v27, %v6179_v27 }
 0x9e1   : > { %v3615_v58 = vsel %vm640_vm2, %v3605_v3, 0.0 }
 0x9e2   : > { %3616 = vadd.xlane.f32.xlu0 %v3615_v58 }
 0xa3d   : > { %v3608_v36 = vpop.xlane.xlu0 %3607 }
 0xa3e   : > { %v3618_v4 = vmul.f32 %v3608_v36, %v5310_v44 }
 0xa40   : > { %v3622_v29 = vadd.f32 1e-05, %v3618_v4 }
 0xa42   : > { %4874 = vrsqrt.f32 %v3622_v29  ;;  %vm3632_vm7 = vweird.f32 %v3622_v29 }
 0xa45   : > { %v3611_v39 = vpop.xlane.xlu1 %3610 }
 0xa46   : > { %v3619_v54 = vmul.f32 %v3611_v39, %v5310_v44 }
 0xa48   : > { %v4875_v1 = vpop.eup %4874  ;;  %v3623_v0 = vadd.f32 1e-05, %v3619_v54 }
 0xa49   : > { %v3627_v43 = vmul.f32 %v4875_v1, %v3622_v29  ;;  %vm3633_vm2 = vweird.f32 %v4875_v1 }
 0xa4a   : > { %4876 = vrsqrt.f32 %v3623_v0  ;;  %vm3634_vm8 = vmor %vm3632_vm7, %vm3633_vm2  ;;  %vm3642_vm10 = vweird.f32 %v3623_v0 }
 0xa4b   : > { %v3628_v46 = vmul.f32 %v4875_v1, %v3627_v43 }
 0xa4d   : > { %v3629_v48 = vmul.f32 0.5, %v3628_v46  ;;  %v3614_v19 = vpop.xlane.xlu2 %3613 }
 0xa4e   : > { %v3620_v2 = vmul.f32 %v3614_v19, %v5310_v44 }
 0xa4f   : > { %v3630_v22 = vsub.f32 1.5, %v3629_v48 }
 0xa50   : > { %v4877_v49 = vpop.eup %4876  ;;  %v3624_v52 = vadd.f32 1e-05, %v3620_v2 }
 0xa51   : > { %v3631_v53 = vmul.f32 %v4875_v1, %v3630_v22  ;;  %v3637_v25 = vmul.f32 %v4877_v49, %v3623_v0  ;;  %vm3643_vm9 = vweird.f32 %v4877_v49 }
 0xa52   : > { %4878 = vrsqrt.f32 %v3624_v52  ;;  %vm3644_vm11 = vmor %vm3642_vm10, %vm3643_vm9  ;;  %vm3652_vm13 = vweird.f32 %v3624_v52 }
 0xa53   : > { %v3635_v33 = vsel %vm3634_vm8, %v4875_v1, %v3631_v53  ;;  %v3638_v18 = vmul.f32 %v4877_v49, %v3637_v25 }
 0xa54   : > { %v3666_v28 = vmul.f32 %v3635_v33, %v3598_v47 }
 0xa55   : > { %v3639_v11 = vmul.f32 0.5, %v3638_v18  ;;  %v3617_v20 = vpop.xlane.xlu0 %3616 }
 0xa56   : > { %v3673_v37 = vmul.f32 %v4798_v59, %v3666_v28  ;;  %v3621_v55 = vmul.f32 %v3617_v20, %v5310_v44 }
 0xa57   : > { %v3640_v6 = vsub.f32 1.5, %v3639_v11 }
 0xa58   : > { %v4879_v24 = vpop.eup %4878  ;;  %v3680_v35 = vadd.f32 %v4799_v12, %v3673_v37  ;;  %v3625_v31 = vadd.f32 1e-05, %v3621_v55 }
 0xa59   : > { %v3641_v5 = vmul.f32 %v4877_v49, %v3640_v6  ;;  %v3647_v56 = vmul.f32 %v4879_v24, %v3624_v52  ;;  %vm3653_vm12 = vweird.f32 %v4879_v24 }
 0xa5a   : > { %v3684_v26 = vpack.c.bf16 %v3680_v35, %v3680_v35  ;;  %4880 = vrsqrt.f32 %v3625_v31  ;;  %vm3654_vm14 = vmor %vm3652_vm13, %vm3653_vm12  ;;  %vm3662_vm0 = vweird.f32 %v3625_v31 }
 0xa5b   : > { %v3645_v30 = vsel %vm3644_vm11, %v4877_v49, %v3641_v5  ;;  %v3648_v10 = vmul.f32 %v4879_v24, %v3647_v56 }
 0xa5c   : > { %3689 = vst.msk [vmem:[%s6198_s20] sm:$0xf] %vm670_vm3, %v3684_v26  ;;  %v3667_v44 = vmul.f32 %v3645_v30, %v6167_v17 }
 0xa5d   : > { %v3649_v7 = vmul.f32 0.5, %v3648_v10 }
 0xa5e   : > { %v3674_v45 = vmul.f32 %v4798_v59, %v3667_v44 }
 0xa5f   : > { %v3650_v15 = vsub.f32 1.5, %v3649_v7 }
 0xa60   : > { %v4881_v34 = vpop.eup %4880  ;;  %v3681_v63 = vadd.f32 %v4799_v12, %v3674_v45 }
 0xa61   : > { %v3651_v8 = vmul.f32 %v4879_v24, %v3650_v15  ;;  %v3657_v9 = vmul.f32 %v4881_v34, %v3625_v31  ;;  %vm3663_vm15 = vweird.f32 %v4881_v34 }
 0xa62   : > { %v3685_v21 = vpack.c.bf16 %v3681_v63, %v3681_v63  ;;  %vm3664_vm1 = vmor %vm3662_vm0, %vm3663_vm15 }
 0xa63   : > { %v3655_v14 = vsel %vm3654_vm14, %v4879_v24, %v3651_v8  ;;  %v3658_v41 = vmul.f32 %v4881_v34, %v3657_v9 }
 0xa64   : > { %3690 = vst.msk [vmem:[%s6198_s20 + $0x4] sm:$0xf] %vm670_vm3, %v3685_v21  ;;  %v3668_v47 = vmul.f32 %v3655_v14, %v6173_v57 }
 0xa65   : > { %v3659_v16 = vmul.f32 0.5, %v3658_v41 }
 0xa66   : > { %v3675_v40 = vmul.f32 %v4798_v59, %v3668_v47 }
 0xa67   : > { %v3660_v50 = vsub.f32 1.5, %v3659_v16 }
 0xa68   : > { %v3682_v60 = vadd.f32 %v4799_v12, %v3675_v40 }
 0xa69   : > { %v3661_v17 = vmul.f32 %v4881_v34, %v3660_v50 }
 0xa6a   : > { %v3686_v38 = vpack.c.bf16 %v3682_v60, %v3682_v60 }
 0xa6b   : > { %v3665_v42 = vsel %vm3664_vm1, %v4881_v34, %v3661_v17 }
 0xa6c   : > { %3691 = vst.msk [vmem:[%s6198_s20 + $0x8] sm:$0xf] %vm670_vm3, %v3686_v38  ;;  %v3669_v32 = vmul.f32 %v3665_v42, %v6179_v27 }
 0xa6e   : > { %v3676_v51 = vmul.f32 %v4798_v59, %v3669_v32 }
 0xa70   : > { %v3683_v62 = vadd.f32 %v4799_v12, %v3676_v51 }
 0xa72   : > { %v3687_v23 = vpack.c.bf16 %v3683_v62, %v3683_v62 }
 0xa74   : > { %3692 = vst.msk [vmem:[%s6198_s20 + $0xc] sm:$0xf] %vm670_vm3, %v3687_v23 }
 0xa75 PF: > { %s27_s26 = sadd.s32 1, %s4904_s26   ;;  %s6244_s24 = smov %s4900_s25 }
 0xa76   : > { %p24_p5 = scmp.ge.s32.totalorder %s27_s26, 4   ;;  %s6245_s25 = smov %s6247_s27 }
 0xa78   :  { %26 = sbr.rel (!%p24_p5) target bundleno = 3 (0x3), region = 123 }

// kernel: simple_3dvit_forward.5
= control target key start
LH: loop header
LB: loop body
LE: loop exit
PB: predicated region body
PF: predicated region fallthrough
CT: control target
= control target key end

     0   :  { %s4904_s18 = smov 0   ;;  %s4906_s19 = smov 0   ;;  %s6052_s0 = inlined_call_operand.vmem [shape: bf16[2,32,32], index: 0, kind: input, shape index: {}]   ;;  %s6053_s1 = inlined_call_operand.vmem [shape: bf16[32,32], index: 1, kind: input, shape index: {}]   ;;  %s6054_s2 = inlined_call_operand.vmem [shape: f32[1,32], index: 2, kind: input, shape index: {}]   ;;  %s6055_s3 = inlined_call_operand.vmem [shape: bf16[32,64], index: 3, kind: input, shape index: {}]   ;;  %s6056_s4 = inlined_call_operand.vmem [shape: f32[1,64], index: 4, kind: input, shape index: {}]   ;;  %s6057_s5 = inlined_call_operand.vmem [shape: bf16[32,32], index: 5, kind: input, shape index: {}]   ;;  %s6058_s6 = inlined_call_operand.vmem [shape: f32[1,32], index: 6, kind: input, shape index: {}]   ;;  %s6059_s7 = inlined_call_operand.vmem [shape: f32[1,32], index: 7, kind: input, shape index: {}]   ;;  %s6060_s8 = inlined_call_operand.vmem [shape: f32[1,32], index: 8, kind: input, shape index: {}]   ;;  %s6061_s9 = inlined_call_operand.vmem [shape: bf16[32,2048], index: 9, kind: input, shape index: {}]   ;;  %s6062_s10 = inlined_call_operand.vmem [shape: f32[1,2048], index: 10, kind: input, shape index: {}]   ;;  %s6063_s11 = inlined_call_operand.vmem [shape: bf16[2048,32], index: 11, kind: input, shape index: {}]   ;;  %s6064_s12 = inlined_call_operand.vmem [shape: f32[1,32], index: 12, kind: input, shape index: {}]   ;;  %s6065_s13 = inlined_call_operand.vmem [shape: f32[1,32], index: 13, kind: input, shape index: {}]   ;;  %s6066_s14 = inlined_call_operand.vmem [shape: f32[1,32], index: 14, kind: input, shape index: {}]   ;;  %s6067_s15 = inlined_call_operand.vmem [shape: bf16[2,32,32], index: 15, kind: output, shape index: {}]  }
   0x1   :  { %s4908_s20 = smov 0  }
   0x2 LB: > { %s37_s21 = sadd.s32 1, %s4810_s19  ;;  %p3675_p0 = scmp.ge.s32.totalorder %s4814_s20, 1  ;;  %s4814_s20 = sphi %s4908_s20, %s25_s20   ;;  %s4810_s19 = sphi %s4906_s19, %s6071_s19   ;;  %s4806_s18 = sphi %s4904_s18, %s6070_s18  }
   0x3   : > { %p39_p1 = scmp.ge.s32.totalorder %s37_s21, 2  ;;  %p451_p2 = scmp.lt.s32.totalorder %s4814_s20, 3 }
   0x5   : > { %s6073_s21 = smov (%p39_p1, %s37_s21), 0  ;;  %p452_p3 = pnand %p3675_p0, %p451_p2 }
   0x6   : > { %p503_p4 = scmp.lt.s32.totalorder (!%p452_p3), %s4806_s18, 1  ;;  %s4816_s25 = smov (!%p452_p3), 96  }
   0x7   : > { %455 = sbr.rel (%p452_p3) target bundleno = 2821 (0xb05), region = 80  ;;  %s4817_s26 = smov (!%p452_p3), 120  }
   0x8   : > { %s4818_s29 = smov (!%p452_p3), 112   ;;  %s4819_s16 = smov (!%p452_p3), 104  }
   0x9   : > { %s4820_s17 = smov (!%p452_p3), 8   ;;  %s4821_s23 = smov (!%p452_p3), 16  }
   0xa   : > { %s4822_s24 = smov (!%p452_p3), 24  }
   0xc   : > { %v4485_v0 = vld [vmem:[%s6055_s3 + $0x8] sm:$0xff]  ;;  %v4484_v2 = vld [vmem:[%s6055_s3] sm:$0xff]  ;;  %s6075_s18 = smov (!%p503_p4, %s4806_s18), 1  ;;  %vm557_vm0 = vcmask 261120   ;;  %vm587_vm1 = vcmask 257024   ;;  %vm701_vm2 = vcmask 64512  }
   0xd   : > { %v4489_v1 = vld [vmem:[%s6053_s1 + $0x8] sm:$0xff]  ;;  %570 = vmatpush.bf16.msra.mxu0 %v4485_v0  ;;  %4668 = vmatpush.bf16.msra.mxu2 %v4485_v0  ;;  %v4488_v3 = vld [vmem:[%s6053_s1] sm:$0xff]  ;;  %s6068_s30 = sshll.u32 %s6075_s18, 4  ;;  %vm986_vm3 = vcmask 130112   ;;  %vm1151_vm4 = vcmask 195712   ;;  %vm1316_vm5 = vcmask 261312  }
   0xe   : > { %668 = vmatpush.bf16.msra.mxu1 %v4489_v1  ;;  %s4942_s22 = scalar_lea.vmem %s6052_s0, %s6068_s30  ;;  %v4702_v8 = vld [vmem:[%s6056_s4] ss:$0 sm:$0xff]  ;;  %s6069_s30 = sshll.u32 %s6075_s18, 4 }
   0xf   : > { %v4482_v4 = vld [vmem:[%s4942_s22] sm:$0xff]  ;;  %v4483_v5 = vld [vmem:[%s4942_s22 + $0x8] sm:$0xff] }
  0x10   : > { %v4486_v6 = vld [vmem:[%s4942_s22] sm:$0xff]  ;;  %v4487_v7 = vld [vmem:[%s4942_s22 + $0x8] sm:$0xff] }
  0x11   : > { %571 = vmatpush.bf16.msra.mxu0 %v4484_v2  ;;  %4669 = vmatpush.bf16.msra.mxu2 %v4484_v2  ;;  %v4703_v26 = vld [vmem:[%s6054_s2] ss:$0 sm:$0xff] }
  0x12   : > { %669 = vmatpush.bf16.msra.mxu1 %v4488_v3 }
  0x14   : > { %3696 = vmatmul.msk.bf16.vlgmr.msra.gmra.mxu0 %vm557_vm0, %v4482_v4  ;;  %3697 = vmatmul.msk.bf16.vlgmr.msra.gmra.mxu2 %vm557_vm0, %v4483_v5 }
  0x15   : > { %3714 = vmatmul.msk.bf16.vlgmr.msra.gmra.mxu1 %vm557_vm0, %v4486_v6 }
  0x25   : > { %3715 = vmatmul.msk.bf16.gmra.mxu1 %vm557_vm0, %v4487_v7 }
  0x91   : > { %v573_v9 = vpop.f32.mrf.mxu0 }
  0x92   : > { %v574_v10 = vadd.f32 %v4702_v8, %v573_v9  ;;  %v671_v21 = vpop.f32.mrf.mxu1 }
  0x93   : > { %v672_v29 = vadd.f32 %v4703_v26, %v671_v21 }
  0x94   : > { %v583_v11 = vpack.c.bf16 %v574_v10, %v574_v10 }
  0x95   : > { %v681_v33 = vmul.f32 0.35355338, %v672_v29 }
  0x96   : > { %588 = vst.msk [vmem:[#allocation2] sm:$0xf] %vm587_vm1, %v583_v11  ;;  %596 = vrot.lane.b32.xlu0 %v583_v11, %s4816_s25 }
  0x97   : > { %v578_v12 = vpop.f32.mrf.mxu2 }
  0x98   : > { %v579_v13 = vadd.f32 %v4702_v8, %v578_v12 }
  0x99   : > { %v575_v14 = vpop.f32.mrf.mxu0 }
  0x9a   : > { %v585_v15 = vpack.c.bf16 %v579_v13, %v579_v13  ;;  %v576_v16 = vadd.f32 %v4702_v8, %v575_v14  ;;  %v673_v24 = vpop.f32.mrf.mxu1 }
  0x9b   : > { %v674_v30 = vadd.f32 %v4703_v26, %v673_v24 }
  0x9c   : > { %590 = vst.msk [vmem:[#allocation2 + $0x8] sm:$0xf] %vm587_vm1, %v585_v15  ;;  %600 = vrot.lane.b32.xlu2 %v585_v15, %s4816_s25  ;;  %v584_v17 = vpack.c.bf16 %v576_v16, %v576_v16 }
  0x9d   : > { %v682_v34 = vmul.f32 0.35355338, %v674_v30 }
  0x9e   : > { %598 = vrot.lane.b32.xlu1 %v584_v17, %s4816_s25  ;;  %589 = vst.msk [vmem:[#allocation2 + $0x4] sm:$0xf] %vm587_vm1, %v584_v17 }
  0x9f   : > { %v580_v18 = vpop.f32.mrf.mxu2  ;;  %v4966_v35 = vpack.c.bf16 %v682_v34, %v681_v33 }
  0xa0   : > { %v581_v19 = vadd.f32 %v4702_v8, %v580_v18 }
  0xa2   : > { %v586_v20 = vpack.c.bf16 %v581_v19, %v581_v19  ;;  %v676_v31 = vpop.f32.mrf.mxu1 }
  0xa3   : > { %v677_v37 = vadd.f32 %v4703_v26, %v676_v31 }
  0xa4   : > { %591 = vst.msk [vmem:[#allocation2 + $0xc] sm:$0xf] %vm587_vm1, %v586_v20  ;;  %602 = vrot.lane.b32.xlu2 %v586_v20, %s4816_s25 }
  0xa5   : > { %v4494_v22 = vld [vmem:[#allocation2] sm:$0xff]  ;;  %v683_v39 = vmul.f32 0.35355338, %v677_v37 }
  0xa6   : > { %v4490_v27 = vld [vmem:[#allocation2] sm:$0xff] }
  0xa7   : > { %v709_v32 = vsel %vm701_vm2, %v4490_v27, 0  ;;  %v4502_v13 = vld [vmem:[#allocation2] sm:$0xff] }
  0xa8   : > { %v4498_v16 = vld [vmem:[#allocation2] sm:$0xff] }
  0xaa   : > { %v678_v36 = vpop.f32.mrf.mxu1 }
  0xab   : > { %v4491_v23 = vld [vmem:[#allocation2 + $0x8] sm:$0xff]  ;;  %v679_v38 = vadd.f32 %v4703_v26, %v678_v36 }
  0xac   : > { %844 = vrot.lane.b32.xlu2 %v4494_v22, %s4817_s26  ;;  %v712_v25 = vsel %vm701_vm2, %v4491_v23, 0  ;;  %v4499_v28 = vld [vmem:[#allocation2 + $0x8] sm:$0xff] }
  0xad   : > { %720 = vmatpush.bf16.xpose.msrb.mxu2 %v712_v25  ;;  %v684_v40 = vmul.f32 0.35355338, %v679_v38  ;;  %v4495_v59 = vld [vmem:[#allocation2 + $0x8] sm:$0xff] }
  0xae   : > { %v4503_v11 = vld [vmem:[#allocation2 + $0x8] sm:$0xff] }
  0xaf   : > { %v4970_v41 = vpack.c.bf16 %v684_v40, %v683_v39 }
  0xb4   : > { %1011 = vrot.lane.b32.xlu2 %v4499_v28, %s4818_s29 }
  0xb5   : > { %721 = vmatpush.bf16.xpose.msrb.mxu2 %v709_v32 }
  0xbc   : > { %3724 = vmatmul.msk.bf16.vlgmr.msrb.gmra.mxu2 %vm701_vm2, %v4966_v35 }
  0xcc   : > { %3725 = vmatmul.msk.bf16.gmra.mxu2 %vm701_vm2, %v4970_v41 }
  0xf6   : > { %v601_v42 = vpop.permute.xlu2 %600 }
  0xf7   : > { %610 = vst.msk [vmem:[#allocation3 + $0x8] sm:$0xf] %vm587_vm1, %v601_v42 }
  0xfe   : > { %v603_v43 = vpop.permute.xlu2 %602 }
  0xff   : > { %611 = vst.msk [vmem:[#allocation3 + $0xc] sm:$0xf] %vm587_vm1, %v603_v43 }
 0x106   : > { %v4493_v44 = vld [vmem:[#allocation3 + $0x8] sm:$0xff]  ;;  %v845_v46 = vpop.permute.xlu2 %844 }
 0x107   : > { %807 = vmatpush.bf16.msra.mxu3 %v4493_v44  ;;  %v855_v17 = vsel %vm701_vm2, %v845_v46, 0 }
 0x108   : > { %v597_v45 = vpop.permute.xlu0 %596 }
 0x109   : > { %608 = vst.msk [vmem:[#allocation3] sm:$0xf] %vm587_vm1, %v597_v45 }
 0x10e   : > { %v1012_v48 = vpop.permute.xlu2 %1011 }
 0x10f   : > { %v1023_v50 = vsel %vm701_vm2, %v1012_v48, 0 }
 0x110   : > { %v599_v47 = vpop.permute.xlu1 %598 }
 0x111   : > { %609 = vst.msk [vmem:[#allocation3 + $0x4] sm:$0xf] %vm587_vm1, %v599_v47 }
 0x118   : > { %v4492_v49 = vld [vmem:[#allocation3] sm:$0xff] }
 0x119   : > { %808 = vmatpush.bf16.msra.mxu3 %v4492_v49 }
 0x11d   : > { %1031 = vmatpush.bf16.xpose.msrb.mxu3 %v1023_v50 }
 0x13f   : > { %v723_v51 = vpop.f32.mrf.mxu2 }
 0x140   : > { %v733_v52 = vsel %vm557_vm0, %v723_v51, -inf }
 0x141   : > { %734 = vmax.xlane.f32.xlu0 %v733_v52 }
 0x147   : > { %v725_v53 = vpop.f32.mrf.mxu2 }
 0x148   : > { %v736_v54 = vsel %vm557_vm0, %v725_v53, -inf }
 0x149   : > { %737 = vmax.xlane.f32.xlu0 %v736_v54 }
 0x14f   : > { %v728_v55 = vpop.f32.mrf.mxu2 }
 0x150   : > { %v739_v56 = vsel %vm557_vm0, %v728_v55, -inf }
 0x151   : > { %740 = vmax.xlane.f32.xlu1 %v739_v56 }
 0x157   : > { %v730_v57 = vpop.f32.mrf.mxu2 }
 0x158   : > { %v742_v58 = vsel %vm557_vm0, %v730_v57, -inf }
 0x159   : > { %743 = vmax.xlane.f32.xlu1 %v742_v58 }
 0x15d   : > { %830 = vrot.lane.b32.xlu0 %v4966_v35, %s4817_s26 }
 0x172   : > { %846 = vrot.lane.b32.xlu1 %v4495_v59, %s4817_s26 }
 0x1b4   : > { %v735_v60 = vpop.xlane.xlu0 %734 }
 0x1b5   : > { %v745_v61 = vsub.f32 %v723_v51, %v735_v60 }
 0x1b7   : > { %v749_v62 = vmul.f32 1.442695, %v745_v61 }
 0x1b9   : > { %4710 = vpow2.f32 %v749_v62 }
 0x1bc   : > { %v738_v63 = vpop.xlane.xlu0 %737 }
 0x1bd   : > { %v746_v0 = vsub.f32 %v725_v53, %v738_v63 }
 0x1bf   : > { %v4711_v1 = vpop.eup %4710  ;;  %v751_v2 = vmul.f32 1.442695, %v746_v0 }
 0x1c0   : > { %v757_v3 = vsel %vm557_vm0, %v4711_v1, 0.0 }
 0x1c1   : > { %4712 = vpow2.f32 %v751_v2  ;;  %758 = vadd.xlane.f32.xlu2 %v757_v3 }
 0x1c4   : > { %v741_v4 = vpop.xlane.xlu1 %740 }
 0x1c5   : > { %v747_v5 = vsub.f32 %v728_v55, %v741_v4 }
 0x1c7   : > { %v4713_v6 = vpop.eup %4712  ;;  %v753_v7 = vmul.f32 1.442695, %v747_v5 }
 0x1c8   : > { %v760_v8 = vsel %vm557_vm0, %v4713_v6, 0.0 }
 0x1c9   : > { %4714 = vpow2.f32 %v753_v7  ;;  %761 = vadd.xlane.f32.xlu0 %v760_v8 }
 0x1cc   : > { %v744_v12 = vpop.xlane.xlu1 %743 }
 0x1cd   : > { %v748_v19 = vsub.f32 %v730_v57, %v744_v12 }
 0x1cf   : > { %v4988_v9 = vpop.eup %4714  ;;  %v831_v18 = vpop.permute.xlu0 %830  ;;  %v755_v20 = vmul.f32 1.442695, %v748_v19 }
 0x1d0   : > { %v763_v10 = vsel %vm557_vm0, %v4988_v9, 0.0 }
 0x1d1   : > { %764 = vadd.xlane.f32.xlu1 %v763_v10  ;;  %4716 = vpow2.f32 %v755_v20 }
 0x1d7   : > { %v4717_v21 = vpop.eup %4716 }
 0x1d8   : > { %v766_v22 = vsel %vm557_vm0, %v4717_v21, 0.0 }
 0x1d9   : > { %832 = vrot.lane.b32.xlu2 %v4970_v41, %s4817_s26 }
 0x1dd   : > { %1176 = vrot.lane.b32.xlu0 %v4503_v11, %s4819_s16 }
 0x1e1   : > { %995 = vrot.lane.b32.xlu2 %v4966_v35, %s4818_s29 }
 0x1e4   : > { %v847_v14 = vpop.permute.xlu1 %846 }
 0x1e5   : > { %1174 = vrot.lane.b32.xlu0 %v4502_v13, %s4819_s16  ;;  %v858_v15 = vsel %vm701_vm2, %v847_v14, 0 }
 0x1e6   : > { %866 = vmatpush.bf16.xpose.msrb.mxu0 %v858_v15  ;;  %v4496_v15 = vld [vmem:[#allocation3] sm:$0xff] }
 0x1ea   : > { %1009 = vrot.lane.b32.xlu1 %v4498_v16, %s4818_s29 }
 0x1ed   : > { %997 = vrot.lane.b32.xlu0 %v4970_v41, %s4818_s29 }
 0x1ee   : > { %867 = vmatpush.bf16.xpose.msrb.mxu0 %v855_v17 }
 0x1f2   : > { %1162 = vrot.lane.b32.xlu1 %v4970_v41, %s4819_s16 }
 0x1f5   : > { %3744 = vmatmul.msk.bf16.vlgmr.msrb.gmra.mxu0 %vm701_vm2, %v831_v18 }
 0x20a   : > { %767 = vadd.xlane.f32.xlu2 %v766_v22 }
 0x222   : > { %1160 = vrot.lane.b32.xlu2 %v4966_v35, %s4819_s16 }
 0x234   : > { %v759_v23 = vpop.xlane.xlu2 %758 }
 0x235   : > { %4718 = vrcp.f32 %v759_v23 }
 0x23b   : > { %v4719_v26 = vpop.eup %4718 }
 0x23c   : > { %v833_v24 = vpop.permute.xlu2 %832  ;;  %v762_v25 = vpop.xlane.xlu0 %761  ;;  %v773_v28 = vmul.f32 %v4719_v26, %v4711_v1 }
 0x23d   : > { %4720 = vrcp.f32 %v762_v25  ;;  %3745 = vmatmul.msk.bf16.gmra.mxu0 %vm701_vm2, %v833_v24 }
 0x243   : > { %v4721_v27 = vpop.eup %4720 }
 0x244   : > { %v774_v29 = vmul.f32 %v4721_v27, %v4713_v6  ;;  %v765_v33 = vpop.xlane.xlu1 %764  ;;  %v996_v40 = vpop.permute.xlu2 %995  ;;  %v4497_v27 = vld [vmem:[#allocation3 + $0x8] sm:$0xff] }
 0x245   : > { %4722 = vrcp.f32 %v765_v33  ;;  %v4501_v33 = vld [vmem:[#allocation3 + $0x8] sm:$0xff] }
 0x246   : > { %v777_v30 = vpack.c.bf16 %v774_v29, %v773_v28 }
 0x248   : > { %3734 = vmatmul.msk.bf16.vlgmr.msra.gmra.mxu3 %vm557_vm0, %v777_v30 }
 0x24b   : > { %v4723_v44 = vpop.eup %4722 }
 0x24c   : > { %v775_v47 = vmul.f32 %v4723_v44, %v4988_v9 }
 0x24f   : > { %v1177_v31 = vpop.permute.xlu0 %1176 }
 0x250   : > { %v1188_v32 = vsel %vm701_vm2, %v1177_v31, 0 }
 0x251   : > { %1196 = vmatpush.bf16.xpose.msra.mxu0 %v1188_v32 }
 0x257   : > { %v1175_v34 = vpop.permute.xlu0 %1174 }
 0x258   : > { %v1185_v35 = vsel %vm701_vm2, %v1175_v34, 0 }
 0x259   : > { %1197 = vmatpush.bf16.xpose.msra.mxu0 %v1185_v35 }
 0x25c   : > { %v1010_v36 = vpop.permute.xlu1 %1009 }
 0x25d   : > { %v1020_v37 = vsel %vm701_vm2, %v1010_v36, 0 }
 0x25e   : > { %1032 = vmatpush.bf16.xpose.msrb.mxu3 %v1020_v37 }
 0x25f   : > { %v998_v51 = vpop.permute.xlu0 %997 }
 0x264   : > { %v1163_v50 = vpop.permute.xlu1 %1162 }
 0x272   : > { %v869_v38 = vpop.f32.mrf.mxu0 }
 0x273   : > { %v879_v39 = vsel %vm557_vm0, %v869_v38, -inf }
 0x274   : > { %880 = vmax.xlane.f32.xlu2 %v879_v39 }
 0x27a   : > { %v871_v41 = vpop.f32.mrf.mxu0 }
 0x27b   : > { %v882_v42 = vsel %vm557_vm0, %v871_v41, -inf }
 0x27c   : > { %883 = vmax.xlane.f32.xlu0 %v882_v42 }
 0x27d   : > { %v768_v43 = vpop.xlane.xlu2 %767 }
 0x27e   : > { %4724 = vrcp.f32 %v768_v43 }
 0x284   : > { %v4725_v45 = vpop.eup %4724 }
 0x285   : > { %v1161_v46 = vpop.permute.xlu2 %1160  ;;  %v776_v48 = vmul.f32 %v4725_v45, %v4717_v21 }
 0x286   : > { %3784 = vmatmul.msk.bf16.vlgmr.msra.gmra.mxu0 %vm701_vm2, %v1161_v46 }
 0x287   : > { %v778_v49 = vpack.c.bf16 %v776_v48, %v775_v47 }
 0x289   : > { %3735 = vmatmul.msk.bf16.gmra.mxu3 %vm557_vm0, %v778_v49 }
 0x296   : > { %3785 = vmatmul.msk.bf16.gmra.mxu0 %vm701_vm2, %v1163_v50 }
 0x299   : > { %3764 = vmatmul.msk.bf16.vlgmr.msrb.gmra.mxu3 %vm701_vm2, %v996_v40 }
 0x2a9   : > { %3765 = vmatmul.msk.bf16.gmra.mxu3 %vm701_vm2, %v998_v51 }
 0x2ba   : > { %v874_v52 = vpop.f32.mrf.mxu0 }
 0x2bb   : > { %v885_v53 = vsel %vm557_vm0, %v874_v52, -inf }
 0x2bc   : > { %886 = vmax.xlane.f32.xlu1 %v885_v53  ;;  %v4500_v53 = vld [vmem:[#allocation3] sm:$0xff] }
 0x2c2   : > { %v876_v54 = vpop.f32.mrf.mxu0 }
 0x2c3   : > { %v888_v55 = vsel %vm557_vm0, %v876_v54, -inf }
 0x2c4   : > { %889 = vmax.xlane.f32.xlu2 %v888_v55 }
 0x2cb   : > { %v810_v56 = vpop.f32.mrf.mxu3 }
 0x2cc   : > { %820 = vst.msk [vmem:[#allocation4] sm:$0xff] %vm701_vm2, %v810_v56 }
 0x2d3   : > { %v812_v57 = vpop.f32.mrf.mxu3 }
 0x2d4   : > { %821 = vst.msk [vmem:[#allocation4 + $0x8] sm:$0xff] %vm701_vm2, %v812_v57 }
 0x2e7   : > { %v881_v58 = vpop.xlane.xlu2 %880 }
 0x2e8   : > { %v891_v59 = vsub.f32 %v869_v38, %v881_v58 }
 0x2ea   : > { %v895_v60 = vmul.f32 1.442695, %v891_v59 }
 0x2ec   : > { %4726 = vpow2.f32 %v895_v60 }
 0x2ef   : > { %v884_v63 = vpop.xlane.xlu0 %883 }
 0x2f0   : > { %v892_v1 = vsub.f32 %v871_v41, %v884_v63 }
 0x2f2   : > { %v5027_v0 = vpop.eup %4726  ;;  %v897_v6 = vmul.f32 1.442695, %v892_v1 }
 0x2f3   : > { %v903_v5 = vsel %vm557_vm0, %v5027_v0, 0.0 }
 0x2f4   : > { %4728 = vpow2.f32 %v897_v6 }
 0x2fa   : > { %v5035_v10 = vpop.eup %4728 }
 0x2fb   : > { %v906_v13 = vsel %vm557_vm0, %v5035_v10, 0.0 }
 0x303   : > { %v1199_v61 = vpop.f32.mrf.mxu0 }
 0x304   : > { %v1209_v62 = vsel %vm557_vm0, %v1199_v61, -inf }
 0x305   : > { %1210 = vmax.xlane.f32.xlu2 %v1209_v62 }
 0x30b   : > { %v1201_v2 = vpop.f32.mrf.mxu0 }
 0x30c   : > { %v815_v3 = vpop.f32.mrf.mxu3  ;;  %v1212_v4 = vsel %vm557_vm0, %v1201_v2, -inf }
 0x30d   : > { %822 = vst.msk [vmem:[#allocation4 + $0x10] sm:$0xff] %vm701_vm2, %v815_v3  ;;  %1213 = vmax.xlane.f32.xlu0 %v1212_v4  ;;  %904 = vadd.xlane.f32.xlu2 %v903_v5 }
 0x313   : > { %v1204_v7 = vpop.f32.mrf.mxu0 }
 0x314   : > { %v817_v8 = vpop.f32.mrf.mxu3  ;;  %v1215_v9 = vsel %vm557_vm0, %v1204_v7, -inf }
 0x315   : > { %823 = vst.msk [vmem:[#allocation4 + $0x18] sm:$0xff] %vm701_vm2, %v817_v8  ;;  %1216 = vmax.xlane.f32.xlu0 %v1215_v9 }
 0x31b   : > { %v1206_v11 = vpop.f32.mrf.mxu0 }
 0x31c   : > { %v5037_v12 = vpop.f32.mrf.mxu3  ;;  %v1218_v14 = vsel %vm557_vm0, %v1206_v11, -inf }
 0x31d   : > { %907 = vadd.xlane.f32.xlu0 %v906_v13  ;;  %1219 = vmax.xlane.f32.xlu1 %v1218_v14  ;;  %v1044_v17 = vsel %vm557_vm0, %v5037_v12, -inf }
 0x324   : > { %v1036_v16 = vpop.f32.mrf.mxu3 }
 0x325   : > { %939 = vrot.lane.b32.xlu2 %v4496_v15, %s4817_s26  ;;  %1045 = vmax.xlane.f32.xlu0 %v1044_v17  ;;  %v1047_v18 = vsel %vm557_vm0, %v1036_v16, -inf }
 0x326   : > { %1048 = vmax.xlane.f32.xlu1 %v1047_v18 }
 0x32c   : > { %v5051_v28 = vpop.f32.mrf.mxu3 }
 0x32d   : > { %v1050_v34 = vsel %vm557_vm0, %v5051_v28, -inf }
 0x32f   : > { %v887_v19 = vpop.xlane.xlu1 %886 }
 0x330   : > { %v893_v20 = vsub.f32 %v874_v52, %v887_v19 }
 0x332   : > { %v899_v21 = vmul.f32 1.442695, %v893_v20 }
 0x334   : > { %4730 = vpow2.f32 %v899_v21  ;;  %v5057_v31 = vpop.f32.mrf.mxu3 }
 0x335   : > { %v1053_v32 = vsel %vm557_vm0, %v5057_v31, -inf }
 0x337   : > { %v890_v22 = vpop.xlane.xlu2 %889 }
 0x338   : > { %v894_v23 = vsub.f32 %v876_v54, %v890_v22 }
 0x33a   : > { %v5046_v24 = vpop.eup %4730  ;;  %v901_v25 = vmul.f32 1.442695, %v894_v23 }
 0x33b   : > { %v909_v26 = vsel %vm557_vm0, %v5046_v24, 0.0 }
 0x33c   : > { %4732 = vpow2.f32 %v901_v25  ;;  %910 = vadd.xlane.f32.xlu0 %v909_v26  ;;  %v4505_v25 = vld [vmem:[#allocation3 + $0x8] sm:$0xff]  ;;  %v4504_v26 = vld [vmem:[#allocation3] sm:$0xff] }
 0x33f   : > { %941 = vrot.lane.b32.xlu1 %v4497_v27, %s4817_s26 }
 0x342   : > { %v5053_v29 = vpop.eup %4732 }
 0x343   : > { %v912_v30 = vsel %vm557_vm0, %v5053_v29, 0.0 }
 0x344   : > { %913 = vadd.xlane.f32.xlu0 %v912_v30 }
 0x34e   : > { %1054 = vmax.xlane.f32.xlu2 %v1053_v32 }
 0x366   : > { %1106 = vrot.lane.b32.xlu2 %v4501_v33, %s4818_s29 }
 0x369   : > { %1051 = vmax.xlane.f32.xlu1 %v1050_v34 }
 0x378   : > { %v1211_v35 = vpop.xlane.xlu2 %1210 }
 0x379   : > { %v1221_v36 = vsub.f32 %v1199_v61, %v1211_v35 }
 0x37b   : > { %v1225_v37 = vmul.f32 1.442695, %v1221_v36 }
 0x37d   : > { %4734 = vpow2.f32 %v1225_v37 }
 0x380   : > { %v1214_v38 = vpop.xlane.xlu0 %1213  ;;  %v905_v63 = vpop.xlane.xlu2 %904 }
 0x381   : > { %v1222_v39 = vsub.f32 %v1201_v2, %v1214_v38 }
 0x383   : > { %v5064_v40 = vpop.eup %4734  ;;  %v1227_v41 = vmul.f32 1.442695, %v1222_v39 }
 0x384   : > { %v1233_v42 = vsel %vm557_vm0, %v5064_v40, 0.0 }
 0x385   : > { %4736 = vpow2.f32 %v1227_v41  ;;  %1234 = vadd.xlane.f32.xlu0 %v1233_v42 }
 0x388   : > { %v1217_v43 = vpop.xlane.xlu0 %1216  ;;  %v940_v8 = vpop.permute.xlu2 %939 }
 0x389   : > { %v1223_v44 = vsub.f32 %v1204_v7, %v1217_v43 }
 0x38b   : > { %v5068_v45 = vpop.eup %4736  ;;  %v1229_v46 = vmul.f32 1.442695, %v1223_v44 }
 0x38c   : > { %v1236_v47 = vsel %vm557_vm0, %v5068_v45, 0.0 }
 0x38d   : > { %4738 = vpow2.f32 %v1229_v46 }
 0x38f   : > { %1237 = vadd.xlane.f32.xlu2 %v1236_v47 }
 0x390   : > { %v1220_v48 = vpop.xlane.xlu1 %1219  ;;  %v908_v58 = vpop.xlane.xlu0 %907 }
 0x391   : > { %v1224_v49 = vsub.f32 %v1206_v11, %v1220_v48 }
 0x393   : > { %v5072_v50 = vpop.eup %4738  ;;  %v1231_v51 = vmul.f32 1.442695, %v1224_v49 }
 0x394   : > { %v1239_v52 = vsel %vm557_vm0, %v5072_v50, 0.0 }
 0x395   : > { %4740 = vpow2.f32 %v1231_v51 }
 0x397   : > { %1240 = vadd.xlane.f32.xlu2 %v1239_v52 }
 0x398   : > { %v1046_v62 = vpop.xlane.xlu0 %1045 }
 0x399   : > { %1104 = vrot.lane.b32.xlu0 %v4500_v53, %s4818_s29  ;;  %v1049_v54 = vpop.xlane.xlu1 %1048  ;;  %v1056_v3 = vsub.f32 %v5037_v12, %v1046_v62  ;;  %s6030_s29 = scalar_lea.vmem %s6067_s15, %s6069_s30 }
 0x39a   : > { %v1057_v55 = vsub.f32 %v1036_v16, %v1049_v54 }
 0x39b   : > { %v5077_v56 = vpop.eup %4740  ;;  %v1060_v9 = vmul.f32 1.442695, %v1056_v3 }
 0x39c   : > { %v1062_v57 = vmul.f32 1.442695, %v1057_v55  ;;  %v1242_v59 = vsel %vm557_vm0, %v5077_v56, 0.0 }
 0x39e   : > { %4742 = vpow2.f32 %v1062_v57 }
 0x39f   : > { %1243 = vadd.xlane.f32.xlu2 %v1242_v59  ;;  %4744 = vrcp.f32 %v908_v58 }
 0x3a0   : > { %4746 = vrcp.f32 %v905_v63 }
 0x3a1   : > { %4748 = vpow2.f32 %v1060_v9 }
 0x3a4   : > { %v5081_v60 = vpop.eup %4742 }
 0x3a5   : > { %v1071_v61 = vsel %vm557_vm0, %v5081_v60, 0.0  ;;  %v4745_v2 = vpop.eup %4744 }
 0x3a6   : > { %1072 = vadd.xlane.f32.xlu1 %v1071_v61  ;;  %v4747_v5 = vpop.eup %4746  ;;  %v920_v6 = vmul.f32 %v4745_v2, %v5035_v10 }
 0x3a7   : > { %v919_v7 = vmul.f32 %v4747_v5, %v5027_v0  ;;  %v4749_v14 = vpop.eup %4748 }
 0x3a8   : > { %v1068_v10 = vsel %vm557_vm0, %v4749_v14, 0.0 }
 0x3a9   : > { %v923_v13 = vpack.c.bf16 %v920_v6, %v919_v7 }
 0x3af   : > { %v911_v1 = vpop.xlane.xlu0 %910 }
 0x3b1   : > { %v942_v4 = vpop.permute.xlu1 %941 }
 0x3b2   : > { %957 = vmatpush.bf16.msrb.mxu1 %v942_v4 }
 0x3b6   : > { %958 = vmatpush.bf16.msrb.mxu1 %v940_v8 }
 0x3b7   : > { %v914_v11 = vpop.xlane.xlu0 %913 }
 0x3b8   : > { %4750 = vrcp.f32 %v914_v11 }
 0x3b9   : > { %3754 = vmatmul.msk.bf16.vlgmr.msrb.gmra.mxu1 %vm557_vm0, %v923_v13  ;;  %4752 = vrcp.f32 %v911_v1 }
 0x3be   : > { %v4751_v15 = vpop.eup %4750 }
 0x3bf   : > { %v4753_v16 = vpop.eup %4752  ;;  %v922_v0 = vmul.f32 %v4751_v15, %v5053_v29  ;;  %v4507_v15 = vld [vmem:[%s6057_s5 + $0x8] sm:$0xff] }
 0x3c0   : > { %v921_v19 = vmul.f32 %v4753_v16, %v5046_v24  ;;  %1359 = vmatpush.bf16.msra.mxu3 %v4507_v15 }
 0x3c1   : > { %v1055_v12 = vpop.xlane.xlu2 %1054 }
 0x3c2   : > { %v1059_v17 = vsub.f32 %v5057_v31, %v1055_v12  ;;  %v924_v20 = vpack.c.bf16 %v922_v0, %v921_v19 }
 0x3c3   : > { %1069 = vadd.xlane.f32.xlu0 %v1068_v10 }
 0x3c4   : > { %v1066_v18 = vmul.f32 1.442695, %v1059_v17  ;;  %v4506_v17 = vld [vmem:[%s6057_s5] sm:$0xff] }
 0x3c5   : > { %1360 = vmatpush.bf16.msra.mxu3 %v4506_v17 }
 0x3c6   : > { %4754 = vpow2.f32 %v1066_v18 }
 0x3c9   : > { %v1107_v21 = vpop.permute.xlu2 %1106  ;;  %3755 = vmatmul.msk.bf16.gmra.mxu1 %vm557_vm0, %v924_v20 }
 0x3ca   : > { %1122 = vmatpush.bf16.msra.mxu2 %v1107_v21 }
 0x3cc   : > { %v4755_v22 = vpop.eup %4754 }
 0x3cd   : > { %v1077_v23 = vsel %vm557_vm0, %v4755_v22, 0.0 }
 0x3ce   : > { %1078 = vadd.xlane.f32.xlu1 %v1077_v23 }
 0x3d7   : > { %1271 = vrot.lane.b32.xlu0 %v4505_v25, %s4819_s16 }
 0x3dc   : > { %v1052_v27 = vpop.xlane.xlu1 %1051 }
 0x3dd   : > { %v1058_v29 = vsub.f32 %v5051_v28, %v1052_v27 }
 0x3df   : > { %v1064_v24 = vmul.f32 1.442695, %v1058_v29 }
 0x3e1   : > { %4756 = vpow2.f32 %v1064_v24 }
 0x3e7   : > { %1269 = vrot.lane.b32.xlu1 %v4504_v26, %s4819_s16  ;;  %v4757_v30 = vpop.eup %4756 }
 0x3e8   : > { %v1074_v31 = vsel %vm557_vm0, %v4757_v30, 0.0 }
 0x3f8   : > { %v1235_v32 = vpop.xlane.xlu0 %1234 }
 0x401   : > { %1075 = vadd.xlane.f32.xlu0 %v1074_v31  ;;  %v617_v31 = vld [vmem:[%s4942_s22] sm:$0xff]  }
 0x402   : > { %v1238_v43 = vpop.xlane.xlu2 %1237 }
 0x40a   : > { %v1241_v46 = vpop.xlane.xlu2 %1240 }
 0x40b   : > { %v1105_v33 = vpop.permute.xlu0 %1104 }
 0x40c   : > { %1123 = vmatpush.bf16.msra.mxu2 %v1105_v33  ;;  %v621_v33 = vunpack.c.l.bf16 %v617_v31 }
 0x412   : > { %v1244_v55 = vpop.xlane.xlu2 %1243 }
 0x419   : > { %v1073_v34 = vpop.xlane.xlu1 %1072 }
 0x41a   : > { %4758 = vrcp.f32 %v1073_v34 }
 0x420   : > { %v4759_v37 = vpop.eup %4758 }
 0x421   : > { %v1085_v28 = vmul.f32 %v4759_v37, %v5081_v60 }
 0x436   : > { %v1070_v35 = vpop.xlane.xlu0 %1069  ;;  %v960_v36 = vpop.f32.mrf.mxu1 }
 0x437   : > { %4760 = vrcp.f32 %v1070_v35  ;;  %974 = vrot.lane.b32.xlu2 %v960_v36, %s4820_s17 }
 0x438   : > { %4762 = vrcp.f32 %v1238_v43  ;;  %v619_v43 = vld [vmem:[%s4942_s22 + $0x8] sm:$0xff]  }
 0x439   : > { %4764 = vrcp.f32 %v1235_v32  ;;  %v4704_v32 = vld [vmem:[%s6058_s6] ss:$0 sm:$0xff] }
 0x43a   : > { %4766 = vrcp.f32 %v1244_v55 }
 0x43b   : > { %4768 = vrcp.f32 %v1241_v46 }
 0x43d   : > { %v4761_v38 = vpop.eup %4760 }
 0x43e   : > { %v1084_v39 = vmul.f32 %v4761_v38, %v4749_v14  ;;  %v962_v41 = vpop.f32.mrf.mxu1  ;;  %v4763_v48 = vpop.eup %4762  ;;  %v622_v38 = vunpack.c.h.bf16 %v617_v31  ;;  %v3808_v31 = vld [vmem:[%s6061_s9] sm:$0xf] }
 0x43f   : > { %976 = vrot.lane.b32.xlu1 %v962_v41, %s4820_s17  ;;  %v4765_v49 = vpop.eup %4764  ;;  %v1250_v51 = vmul.f32 %v4763_v48, %v5068_v45 }
 0x440   : > { %v1088_v42 = vpack.c.bf16 %v1085_v28, %v1084_v39  ;;  %v1249_v52 = vmul.f32 %v4765_v49, %v5064_v40  ;;  %v4767_v57 = vpop.eup %4766 }
 0x441   : > { %v1079_v47 = vpop.xlane.xlu1 %1078  ;;  %v4769_v58 = vpop.eup %4768  ;;  %v1252_v59 = vmul.f32 %v4767_v57, %v5077_v56  ;;  %v4823_v57 = vmov 32.0  }
 0x442   : > { %3774 = vmatmul.msk.bf16.vlgmr.msra.gmra.mxu2 %vm557_vm0, %v1088_v42  ;;  %v1253_v54 = vpack.c.bf16 %v1250_v51, %v1249_v52  ;;  %v1251_v60 = vmul.f32 %v4769_v58, %v5072_v50  ;;  %4770 = vrcp.f32 %v1079_v47  ;;  %v624_v51 = vunpack.c.h.bf16 %v619_v43 }
 0x444   : > { %v1254_v61 = vpack.c.bf16 %v1252_v59, %v1251_v60 }
 0x446   : > { %v965_v4 = vpop.f32.mrf.mxu1 }
 0x448   : > { %v4771_v40 = vpop.eup %4770 }
 0x449   : > { %v1272_v44 = vpop.permute.xlu0 %1271  ;;  %v1087_v1 = vmul.f32 %v4771_v40, %v4755_v22 }
 0x44a   : > { %1287 = vmatpush.bf16.msra.mxu1 %v1272_v44  ;;  %v623_v44 = vunpack.c.l.bf16 %v619_v43 }
 0x44e   : > { %v967_v5 = vpop.f32.mrf.mxu1 }
 0x459   : > { %v1270_v53 = vpop.permute.xlu1 %1269 }
 0x45a   : > { %1288 = vmatpush.bf16.msra.mxu1 %v1270_v53 }
 0x45d   : > { %3794 = vmatmul.msk.bf16.vlgmr.msra.gmra.mxu1 %vm557_vm0, %v1253_v54 }
 0x46d   : > { %3795 = vmatmul.msk.bf16.gmra.mxu1 %vm557_vm0, %v1254_v61 }
 0x474   : > { %v1076_v45 = vpop.xlane.xlu0 %1075 }
 0x475   : > { %4772 = vrcp.f32 %v1076_v45 }
 0x476   : > { %4774 = vrcp.f32 %v4823_v57 }
 0x47b   : > { %v4773_v62 = vpop.eup %4772 }
 0x47c   : > { %v1086_v63 = vmul.f32 %v4773_v62, %v4757_v30  ;;  %v4775_v58 = vpop.eup %4774 }
 0x47d   : > { %v1391_v59 = vmul.f32 32.0, %v4775_v58  ;;  %vm1395_vm6 = vweird.f32 %v4775_v58 }
 0x47e   : > { %v1089_v2 = vpack.c.bf16 %v1087_v1, %v1086_v63 }
 0x47f   : > { %v1392_v60 = vsub.f32 1.0, %v1391_v59 }
 0x480   : > { %3775 = vmatmul.msk.bf16.gmra.mxu2 %vm557_vm0, %v1089_v2 }
 0x481   : > { %v1393_v61 = vmul.f32 %v4775_v58, %v1392_v60 }
 0x483   : > { %v1394_v45 = vadd.f32 %v4775_v58, %v1393_v61 }
 0x485   : > { %v5141_v40 = vsel %vm1395_vm6, %v4775_v58, %v1394_v45  ;;  %v5220_v45 = vld [vmem:[%s6059_s7] ss:$0 sm:$0xff] }
 0x491   : > { %v975_v3 = vpop.permute.xlu2 %974 }
 0x492   : > { %987 = vst.msk [vmem:[#allocation4] sm:$0xff] %vm986_vm3, %v975_v3 }
 0x4b1   : > { %v977_v56 = vpop.permute.xlu1 %976 }
 0x4b2   : > { %988 = vst.msk [vmem:[#allocation4 + $0x8] sm:$0xff] %vm986_vm3, %v977_v56 }
 0x4c5   : > { %v1125_v50 = vpop.f32.mrf.mxu2 }
 0x4c6   : > { %1139 = vrot.lane.b32.xlu0 %v1125_v50, %s4821_s23 }
 0x4cd   : > { %v1127_v7 = vpop.f32.mrf.mxu2 }
 0x4da   : > { %v1290_v6 = vpop.f32.mrf.mxu1 }
 0x4db   : > { %1304 = vrot.lane.b32.xlu1 %v1290_v6, %s4822_s24 }
 0x4e2   : > { %v1292_v8 = vpop.f32.mrf.mxu1 }
 0x4e3   : > { %1141 = vrot.lane.b32.xlu1 %v1127_v7, %s4821_s23  ;;  %1306 = vrot.lane.b32.xlu2 %v1292_v8, %s4822_s24 }
 0x4ea   : > { %v1295_v9 = vpop.f32.mrf.mxu1 }
 0x4eb   : > { %978 = vrot.lane.b32.xlu1 %v965_v4, %s4820_s17  ;;  %980 = vrot.lane.b32.xlu2 %v967_v5, %s4820_s17 }
 0x4f2   : > { %v1297_v13 = vpop.f32.mrf.mxu1 }
 0x4f3   : > { %1308 = vrot.lane.b32.xlu2 %v1295_v9, %s4822_s24 }
 0x503   : > { %v1130_v11 = vpop.f32.mrf.mxu2 }
 0x504   : > { %1143 = vrot.lane.b32.xlu0 %v1130_v11, %s4821_s23 }
 0x50b   : > { %v1132_v14 = vpop.f32.mrf.mxu2 }
 0x50c   : > { %1145 = vrot.lane.b32.xlu1 %v1132_v14, %s4821_s23  ;;  %1310 = vrot.lane.b32.xlu0 %v1297_v13, %s4822_s24 }
 0x538   : > { %v1140_v12 = vpop.permute.xlu0 %1139 }
 0x539   : > { %1152 = vst.msk [vmem:[#allocation4] sm:$0xff] %vm1151_vm4, %v1140_v12 }
 0x53d   : > { %v1307_v16 = vpop.permute.xlu2 %1306 }
 0x545   : > { %v981_v10 = vpop.permute.xlu2 %980 }
 0x546   : > { %990 = vst.msk [vmem:[#allocation4 + $0x18] sm:$0xff] %vm986_vm3, %v981_v10  ;;  %v3824_v10 = vld [vmem:[%s6061_s9 + $0x80] sm:$0xf] }
 0x54d   : > { %v1305_v0 = vpop.permute.xlu1 %1304  ;;  %v1309_v25 = vpop.permute.xlu2 %1308 }
 0x54e   : > { %1317 = vst.msk [vmem:[#allocation4] sm:$0xff] %vm1316_vm5, %v1305_v0  ;;  %v4514_v0 = vld [vmem:[%s6061_s9 + $0xbc] sm:$0xf0] }
 0x555   : > { %v1142_v18 = vpop.permute.xlu1 %1141  ;;  %v1321_v20 = vld [vmem:[#allocation4] sm:$0xff] }
 0x556   : > { %1153 = vst.msk [vmem:[#allocation4 + $0x8] sm:$0xff] %vm1151_vm4, %v1142_v18  ;;  %v4512_v18 = vld [vmem:[%s6061_s9 + $0x84] sm:$0xf] }
 0x557   : > { %1318 = vst.msk [vmem:[#allocation4 + $0x8] sm:$0xff] %vm1316_vm5, %v1307_v16 }
 0x55d   : > { %v979_v19 = vpop.permute.xlu1 %978 }
 0x55e   : > { %989 = vst.msk [vmem:[#allocation4 + $0x10] sm:$0xff] %vm986_vm3, %v979_v19  ;;  %v1322_v21 = vld [vmem:[#allocation4 + $0x8] sm:$0xff]  ;;  %v3825_v19 = vor.u32 %v4514_v0, %v3824_v10 }
 0x55f   : > { %v1325_v22 = vpack.c.bf16 %v1322_v21, %v1321_v20  ;;  %v3826_v20 = vld [vmem:[%s6061_s9 + $0xc0] sm:$0xf0]  ;;  %v3832_v21 = vld [vmem:[%s6061_s9 + $0x88] sm:$0xf] }
 0x560   : > { %1559 = vmatpush.bf16.msrb.mxu2 %v3825_v19  ;;  %v4550_v19 = vld [vmem:[%s6061_s9 + $0x4c] sm:$0xf0] }
 0x561   : > { %3804 = vmatmul.msk.bf16.vlgmr.msra.gmra.mxu3 %vm557_vm0, %v1325_v22  ;;  %v4515_v22 = vld [vmem:[%s6061_s9 + $0xc4] sm:$0xf0] }
 0x576   : > { %v1144_v23 = vpop.permute.xlu0 %1143 }
 0x577   : > { %1154 = vst.msk [vmem:[#allocation4 + $0x10] sm:$0xff] %vm1151_vm4, %v1144_v23 }
 0x578   : > { %1319 = vst.msk [vmem:[#allocation4 + $0x10] sm:$0xff] %vm1316_vm5, %v1309_v25  ;;  %v3829_v25 = vor.u32 %v4512_v18, %v3826_v20  ;;  %v3848_v18 = vld [vmem:[%s6061_s9 + $0x10] sm:$0xf]  ;;  %v4549_v20 = vld [vmem:[%s6061_s9 + $0x1c] sm:$0xf] }
 0x57a   : > { %1578 = vmatpush.bf16.msrb.mxu0 %v3829_v25  ;;  %v4552_v25 = vld [vmem:[%s6061_s9 + $0x94] sm:$0xf] }
 0x57e   : > { %v1311_v26 = vpop.permute.xlu0 %1310  ;;  %v1146_v27 = vpop.permute.xlu1 %1145 }
 0x57f   : > { %1155 = vst.msk [vmem:[#allocation4 + $0x18] sm:$0xff] %vm1151_vm4, %v1146_v27  ;;  %v1323_v29 = vld [vmem:[#allocation4 + $0x10] sm:$0xff]  ;;  %v4513_v27 = vld [vmem:[%s6061_s9 + $0x8c] sm:$0xf] }
 0x580   : > { %1320 = vst.msk [vmem:[#allocation4 + $0x18] sm:$0xff] %vm1316_vm5, %v1311_v26  ;;  %v3833_v26 = vor.u32 %v4515_v22, %v3832_v21  ;;  %v3849_v22 = vor.u32 %v4550_v19, %v3848_v18  ;;  %v4584_v18 = vld [vmem:[%s6063_s11 + $0x1e0] sm:$0xff]  ;;  %v4566_v19 = vld [vmem:[%s6063_s11 + $0x150] sm:$0xff] }
 0x582   : > { %1597 = vmatpush.bf16.msrb.mxu1 %v3833_v26  ;;  %v3866_v26 = vld [vmem:[%s6061_s9 + $0xd0] sm:$0xf0] }
 0x587   : > { %v1324_v24 = vld [vmem:[#allocation4 + $0x18] sm:$0xff] }
 0x588   : > { %v1326_v30 = vpack.c.bf16 %v1324_v24, %v1323_v29  ;;  %v3834_v29 = vld [vmem:[%s6061_s9 + $0xc8] sm:$0xf0] }
 0x58a   : > { %3805 = vmatmul.msk.bf16.gmra.mxu3 %vm557_vm0, %v1326_v30  ;;  %v3837_v30 = vor.u32 %v4513_v27, %v3834_v29  ;;  %v3869_v29 = vor.u32 %v4552_v25, %v3866_v26  ;;  %v4583_v25 = vld [vmem:[%s6063_s11 + $0x1d8] sm:$0xff]  ;;  %v4565_v26 = vld [vmem:[%s6063_s11 + $0x148] sm:$0xff] }
 0x58c   : > { %1616 = vmatpush.bf16.msrb.mxu3 %v3837_v30  ;;  %v4555_v30 = vld [vmem:[%s6061_s9 + $0xd4] sm:$0xf0] }
 0x5e4   : > { %v1362_v34 = vpop.f32.mrf.mxu3 }
 0x5e5   : > { %v1363_v35 = vadd.f32 %v4704_v32, %v1362_v34 }
 0x5e7   : > { %v1372_v36 = vadd.f32 %v1363_v35, %v621_v33  ;;  %v4508_v33 = vld [vmem:[%s6061_s9 + $0x4] sm:$0xf] }
 0x5e9   : > { %v1378_v37 = vsel %vm557_vm0, %v1372_v36, 0.0 }
 0x5ea   : > { %1379 = vadd.xlane.f32.xlu1 %v1378_v37  ;;  %v3816_v37 = vld [vmem:[%s6061_s9 + $0x8] sm:$0xf] }
 0x5ec   : > { %v1364_v28 = vpop.f32.mrf.mxu3 }
 0x5ed   : > { %v1365_v39 = vadd.f32 %v4704_v32, %v1364_v28  ;;  %v4511_v28 = vld [vmem:[%s6061_s9 + $0x44] sm:$0xf0] }
 0x5ef   : > { %v1373_v41 = vadd.f32 %v1365_v39, %v622_v38  ;;  %v4509_v39 = vld [vmem:[%s6061_s9 + $0xc] sm:$0xf] }
 0x5f1   : > { %v1381_v42 = vsel %vm557_vm0, %v1373_v41, 0.0 }
 0x5f2   : > { %1382 = vadd.xlane.f32.xlu2 %v1381_v42  ;;  %v3817_v42 = vor.u32 %v4511_v28, %v3816_v37  ;;  %v4551_v28 = vld [vmem:[%s6061_s9 + $0x54] sm:$0xf0] }
 0x5f4   : > { %1598 = vmatpush.bf16.msrb.mxu1 %v3817_v42 }
 0x60d   : > { %v1367_v46 = vpop.f32.mrf.mxu3 }
 0x60e   : > { %v1368_v47 = vadd.f32 %v4704_v32, %v1367_v46 }
 0x610   : > { %v1374_v48 = vadd.f32 %v1368_v47, %v623_v44 }
 0x612   : > { %v1384_v49 = vsel %vm557_vm0, %v1374_v48, 0.0 }
 0x613   : > { %1385 = vadd.xlane.f32.xlu0 %v1384_v49 }
 0x615   : > { %v1369_v52 = vpop.f32.mrf.mxu3 }
 0x616   : > { %v1370_v53 = vadd.f32 %v4704_v32, %v1369_v52  ;;  %v4510_v32 = vld [vmem:[%s6061_s9 + $0x3c] sm:$0xf0] }
 0x617   : > { %v3809_v35 = vor.u32 %v4510_v32, %v3808_v31  ;;  %v4548_v31 = vld [vmem:[%s6061_s9 + $0x14] sm:$0xf] }
 0x618   : > { %v1375_v54 = vadd.f32 %v1370_v53, %v624_v51 }
 0x619   : > { %1560 = vmatpush.bf16.msrb.mxu2 %v3809_v35  ;;  %v3850_v35 = vld [vmem:[%s6061_s9 + $0x50] sm:$0xf0] }
 0x61a   : > { %v1387_v55 = vsel %vm557_vm0, %v1375_v54, 0.0 }
 0x61b   : > { %1388 = vadd.xlane.f32.xlu1 %v1387_v55 }
 0x65d   : > { %v1380_v62 = vpop.xlane.xlu1 %1379 }
 0x65e   : > { %v1397_v63 = vmul.f32 %v5141_v40, %v1380_v62 }
 0x660   : > { %v5144_v1 = vsub.f32 %v1372_v36, %v1397_v63  ;;  %v3810_v36 = vld [vmem:[%s6061_s9 + $0x40] sm:$0xf0] }
 0x661   : > { %v3813_v38 = vor.u32 %v4508_v33, %v3810_v36  ;;  %v3856_v36 = vld [vmem:[%s6061_s9 + $0x18] sm:$0xf] }
 0x662   : > { %v1405_v2 = vmul.f32 %v5144_v1, %v5144_v1 }
 0x663   : > { %1579 = vmatpush.bf16.msrb.mxu0 %v3813_v38  ;;  %v3853_v38 = vor.u32 %v4548_v31, %v3850_v35  ;;  %v4582_v31 = vld [vmem:[%s6063_s11 + $0x1d0] sm:$0xff]  ;;  %v4581_v35 = vld [vmem:[%s6063_s11 + $0x1c8] sm:$0xff] }
 0x664   : > { %v1409_v3 = vsel %vm557_vm0, %v1405_v2, 0.0 }
 0x665   : > { %v1383_v56 = vpop.xlane.xlu2 %1382  ;;  %1410 = vadd.xlane.f32.xlu2 %v1409_v3  ;;  %v5226_v3 = vld [vmem:[%s6060_s8] ss:$0 sm:$0xff] }
 0x666   : > { %v1398_v50 = vmul.f32 %v5141_v40, %v1383_v56 }
 0x667   : > { %1800 = vmatpush.bf16.msra.mxu0 %v3869_v29 }
 0x668   : > { %v5150_v4 = vsub.f32 %v1373_v41, %v1398_v50  ;;  %v3818_v41 = vld [vmem:[%s6061_s9 + $0x48] sm:$0xf0] }
 0x669   : > { %v3821_v43 = vor.u32 %v4509_v39, %v3818_v41  ;;  %v3857_v39 = vor.u32 %v4551_v28, %v3856_v36  ;;  %v4539_v28 = vld [vmem:[%s6063_s11 + $0xb8] sm:$0xff] }
 0x66a   : > { %v1406_v5 = vmul.f32 %v5150_v4, %v5150_v4 }
 0x66b   : > { %1617 = vmatpush.bf16.msrb.mxu3 %v3821_v43  ;;  %1801 = vmatpush.bf16.msra.mxu0 %v3853_v38  ;;  %v4531_v38 = vld [vmem:[%s6063_s11 + $0x78] sm:$0xff] }
 0x66c   : > { %v1412_v6 = vsel %vm557_vm0, %v1406_v5, 0.0 }
 0x66d   : > { %1413 = vadd.xlane.f32.xlu0 %v1412_v6 }
 0x686   : > { %v1386_v7 = vpop.xlane.xlu0 %1385 }
 0x687   : > { %v1399_v8 = vmul.f32 %v5141_v40, %v1386_v7 }
 0x689   : > { %v5156_v9 = vsub.f32 %v1374_v48, %v1399_v8 }
 0x68b   : > { %v1407_v11 = vmul.f32 %v5156_v9, %v5156_v9 }
 0x68d   : > { %v1415_v13 = vsel %vm557_vm0, %v1407_v11, 0.0 }
 0x68e   : > { %1416 = vadd.xlane.f32.xlu1 %v1415_v13  ;;  %v1389_v14 = vpop.xlane.xlu1 %1388  ;;  %v3864_v13 = vld [vmem:[%s6061_s9 + $0x90] sm:$0xf] }
 0x68f   : > { %v1400_v15 = vmul.f32 %v5141_v40, %v1389_v14  ;;  %v4554_v14 = vld [vmem:[%s6061_s9 + $0xcc] sm:$0xf0] }
 0x691   : > { %v5162_v12 = vsub.f32 %v1375_v54, %v1400_v15  ;;  %v4553_v15 = vld [vmem:[%s6061_s9 + $0x9c] sm:$0xf] }
 0x693   : > { %v1408_v16 = vmul.f32 %v5162_v12, %v5162_v12 }
 0x695   : > { %v1418_v17 = vsel %vm557_vm0, %v1408_v16, 0.0  ;;  %v3865_v16 = vor.u32 %v4554_v14, %v3864_v13  ;;  %v4561_v13 = vld [vmem:[%s6063_s11 + $0x128] sm:$0xff] }
 0x696   : > { %1419 = vadd.xlane.f32.xlu2 %v1418_v17  ;;  %v3874_v17 = vld [vmem:[%s6061_s9 + $0xd8] sm:$0xf0]  ;;  %v4585_v14 = vld [vmem:[%s6063_s11 + $0x1e8] sm:$0xff] }
 0x697   : > { %v3877_v10 = vor.u32 %v4553_v15, %v3874_v17  ;;  %1781 = vmatpush.bf16.msra.mxu2 %v3865_v16  ;;  %v4567_v17 = vld [vmem:[%s6063_s11 + $0x158] sm:$0xff] }
 0x699   : > { %1838 = vmatpush.bf16.msra.mxu3 %v3877_v10  ;;  %v4575_v10 = vld [vmem:[%s6063_s11 + $0x198] sm:$0xff] }
 0x69b   : > { %1782 = vmatpush.bf16.msra.mxu2 %v3849_v22 }
 0x6d8   : > { %v1411_v23 = vpop.xlane.xlu2 %1410 }
 0x6d9   : > { %v1421_v24 = vmul.f32 %v1411_v23, %v5141_v40  ;;  %v3858_v23 = vld [vmem:[%s6061_s9 + $0x58] sm:$0xf0] }
 0x6da   : > { %v3861_v27 = vor.u32 %v4549_v20, %v3858_v23  ;;  %v4574_v20 = vld [vmem:[%s6063_s11 + $0x190] sm:$0xff]  ;;  %v4559_v23 = vld [vmem:[%s6063_s11 + $0x118] sm:$0xff] }
 0x6db   : > { %v1425_v34 = vadd.f32 1e-05, %v1421_v24  ;;  %v3872_v24 = vld [vmem:[%s6061_s9 + $0x98] sm:$0xf] }
 0x6dc   : > { %1839 = vmatpush.bf16.msra.mxu3 %v3861_v27  ;;  %v4573_v27 = vld [vmem:[%s6063_s11 + $0x188] sm:$0xff] }
 0x6dd   : > { %4776 = vrsqrt.f32 %v1425_v34  ;;  %vm1435_vm8 = vweird.f32 %v1425_v34 }
 0x6e0   : > { %v1414_v44 = vpop.xlane.xlu0 %1413 }
 0x6e1   : > { %v1422_v46 = vmul.f32 %v1414_v44, %v5141_v40 }
 0x6e3   : > { %v4777_v47 = vpop.eup %4776  ;;  %v1426_v48 = vadd.f32 1e-05, %v1422_v46 }
 0x6e4   : > { %v1430_v49 = vmul.f32 %v4777_v47, %v1425_v34  ;;  %vm1436_vm7 = vweird.f32 %v4777_v47  ;;  %v3873_v34 = vor.u32 %v4555_v30, %v3872_v24  ;;  %v4558_v30 = vld [vmem:[%s6063_s11 + $0x110] sm:$0xff] }
 0x6e5   : > { %4778 = vrsqrt.f32 %v1426_v48  ;;  %vm1437_vm9 = vmor %vm1435_vm8, %vm1436_vm7  ;;  %vm1445_vm11 = vweird.f32 %v1426_v48 }
 0x6e6   : > { %v1431_v51 = vmul.f32 %v4777_v47, %v1430_v49  ;;  %1819 = vmatpush.bf16.msra.mxu1 %v3873_v34  ;;  %v4557_v34 = vld [vmem:[%s6063_s11 + $0x108] sm:$0xff] }
 0x6e8   : > { %v1432_v52 = vmul.f32 0.5, %v1431_v51 }
 0x6ea   : > { %v1433_v53 = vsub.f32 1.5, %v1432_v52  ;;  %1820 = vmatpush.bf16.msra.mxu1 %v3857_v39 }
 0x6eb   : > { %v4779_v54 = vpop.eup %4778 }
 0x6ec   : > { %v1434_v55 = vmul.f32 %v4777_v47, %v1433_v53  ;;  %v1440_v57 = vmul.f32 %v4779_v54, %v1426_v48  ;;  %vm1446_vm10 = vweird.f32 %v4779_v54 }
 0x6ed   : > { %vm1447_vm12 = vmor %vm1445_vm11, %vm1446_vm10 }
 0x6ee   : > { %v1441_v58 = vmul.f32 %v4779_v54, %v1440_v57  ;;  %v1438_v59 = vsel %vm1437_vm9, %v4777_v47, %v1434_v55 }
 0x6ef   : > { %v1469_v62 = vmul.f32 %v1438_v59, %v5144_v1 }
 0x6f0   : > { %v1442_v60 = vmul.f32 0.5, %v1441_v58 }
 0x6f1   : > { %v1476_v56 = vmul.f32 %v5220_v45, %v1469_v62 }
 0x6f2   : > { %v1443_v61 = vsub.f32 1.5, %v1442_v60 }
 0x6f3   : > { %v5232_v6 = vadd.f32 %v5226_v3, %v1476_v56  ;;  %v4569_v56 = vld [vmem:[%s6063_s11 + $0x168] sm:$0xff] }
 0x6f4   : > { %v1444_v63 = vmul.f32 %v4779_v54, %v1443_v61 }
 0x6f6   : > { %v1448_v2 = vsel %vm1447_vm12, %v4779_v54, %v1444_v63  ;;  %v4578_v63 = vld [vmem:[%s6063_s11 + $0x1b0] sm:$0xff] }
 0x6f7   : > { %v1470_v50 = vmul.f32 %v1448_v2, %v5150_v4  ;;  %v4563_v2 = vld [vmem:[%s6063_s11 + $0x138] sm:$0xff] }
 0x6f9   : > { %v1477_v5 = vmul.f32 %v5220_v45, %v1470_v50  ;;  %v4577_v50 = vld [vmem:[%s6063_s11 + $0x1a8] sm:$0xff] }
 0x6fb   : > { %v5235_v1 = vadd.f32 %v5226_v3, %v1477_v5  ;;  %v4562_v5 = vld [vmem:[%s6063_s11 + $0x130] sm:$0xff] }
 0x6fd   : > { %v5239_v7 = vpack.c.bf16 %v5235_v1, %v5232_v6 }
 0x6ff   : > { %3838 = vmatmul.msk.bf16.vlgmr.msrb.gmra.mxu2 %vm557_vm0, %v5239_v7  ;;  %3840 = vmatmul.msk.bf16.vlgmr.msrb.gmra.mxu0 %vm557_vm0, %v5239_v7 }
 0x700   : > { %3842 = vmatmul.msk.bf16.vlgmr.msrb.gmra.mxu1 %vm557_vm0, %v5239_v7  ;;  %3844 = vmatmul.msk.bf16.vlgmr.msrb.gmra.mxu3 %vm557_vm0, %v5239_v7 }
 0x701   : > { %v1417_v4 = vpop.xlane.xlu1 %1416  ;;  %2131 = vmatpush.bf16.msrb.mxu2 %v4563_v2 }
 0x702   : > { %v1423_v8 = vmul.f32 %v1417_v4, %v5141_v40  ;;  %v4586_v4 = vld [vmem:[%s6063_s11 + $0x1f0] sm:$0xff] }
 0x704   : > { %v1427_v11 = vadd.f32 1e-05, %v1423_v8  ;;  %v4568_v8 = vld [vmem:[%s6063_s11 + $0x160] sm:$0xff] }
 0x705   : > { %2132 = vmatpush.bf16.msrb.mxu2 %v4562_v5 }
 0x706   : > { %4780 = vrsqrt.f32 %v1427_v11  ;;  %vm1455_vm14 = vweird.f32 %v1427_v11 }
 0x709   : > { %v1420_v0 = vpop.xlane.xlu2 %1419  ;;  %2133 = vmatpush.bf16.msrb.mxu2 %v4561_v13  ;;  %v4526_v13 = vld [vmem:[%s6063_s11 + $0x50] sm:$0xff] }
 0x70a   : > { %v1424_v21 = vmul.f32 %v1420_v0, %v5141_v40  ;;  %v4560_v0 = vld [vmem:[%s6063_s11 + $0x120] sm:$0xff] }
 0x70c   : > { %v4781_v32 = vpop.eup %4780  ;;  %v1428_v33 = vadd.f32 1e-05, %v1424_v21 }
 0x70d   : > { %v1450_v37 = vmul.f32 %v4781_v32, %v1427_v11  ;;  %vm1456_vm13 = vweird.f32 %v4781_v32  ;;  %v4576_v11 = vld [vmem:[%s6063_s11 + $0x1a0] sm:$0xff]  ;;  %2134 = vmatpush.bf16.msrb.mxu2 %v4560_v0  ;;  %v4519_v0 = vld [vmem:[%s6063_s11 + $0x18] sm:$0xff] }
 0x70e   : > { %4782 = vrsqrt.f32 %v1428_v33  ;;  %vm1457_vm15 = vmor %vm1455_vm14, %vm1456_vm13  ;;  %vm1465_vm3 = vweird.f32 %v1428_v33 }
 0x70f   : > { %v1451_v41 = vmul.f32 %v4781_v32, %v1450_v37 }
 0x711   : > { %v1452_v42 = vmul.f32 0.5, %v1451_v41  ;;  %2135 = vmatpush.bf16.msrb.mxu2 %v4559_v23  ;;  %v4533_v23 = vld [vmem:[%s6063_s11 + $0x88] sm:$0xff] }
 0x713   : > { %v1453_v43 = vsub.f32 1.5, %v1452_v42  ;;  %v4556_v42 = vld [vmem:[%s6063_s11 + $0x100] sm:$0xff] }
 0x714   : > { %v4783_v44 = vpop.eup %4782 }
 0x715   : > { %v1454_v46 = vmul.f32 %v4781_v32, %v1453_v43  ;;  %v1460_v47 = vmul.f32 %v4783_v44, %v1428_v33  ;;  %vm1466_vm2 = vweird.f32 %v4783_v44  ;;  %2136 = vmatpush.bf16.msrb.mxu2 %v4558_v30  ;;  %v4572_v33 = vld [vmem:[%s6063_s11 + $0x180] sm:$0xff]  ;;  %v4542_v30 = vld [vmem:[%s6063_s11 + $0xd0] sm:$0xff] }
 0x716   : > { %vm1467_vm4 = vmor %vm1465_vm3, %vm1466_vm2  ;;  %v4580_v43 = vld [vmem:[%s6063_s11 + $0x1c0] sm:$0xff] }
 0x717   : > { %v1461_v48 = vmul.f32 %v4783_v44, %v1460_v47  ;;  %v1458_v49 = vsel %vm1457_vm15, %v4781_v32, %v1454_v46  ;;  %v4564_v32 = vld [vmem:[%s6063_s11 + $0x140] sm:$0xff]  ;;  %v4538_v46 = vld [vmem:[%s6063_s11 + $0xb0] sm:$0xff]  ;;  %v4523_v47 = vld [vmem:[%s6063_s11 + $0x38] sm:$0xff] }
 0x718   : > { %v1471_v53 = vmul.f32 %v1458_v49, %v5156_v9  ;;  %v4571_v9 = vld [vmem:[%s6063_s11 + $0x178] sm:$0xff] }
 0x719   : > { %v1462_v51 = vmul.f32 0.5, %v1461_v48  ;;  %2150 = vmatpush.bf16.msrb.mxu0 %v4571_v9  ;;  %2137 = vmatpush.bf16.msrb.mxu2 %v4557_v34  ;;  %v4547_v48 = vld [vmem:[%s6063_s11 + $0xf8] sm:$0xff]  ;;  %v4536_v9 = vld [vmem:[%s6063_s11 + $0xa0] sm:$0xff] }
 0x71a   : > { %v1478_v57 = vmul.f32 %v5220_v45, %v1471_v53  ;;  %v4537_v53 = vld [vmem:[%s6063_s11 + $0xa8] sm:$0xff] }
 0x71b   : > { %v1463_v52 = vsub.f32 1.5, %v1462_v51 }
 0x71c   : > { %v5304_v60 = vadd.f32 %v5226_v3, %v1478_v57  ;;  %v4522_v57 = vld [vmem:[%s6063_s11 + $0x30] sm:$0xff] }
 0x71d   : > { %v1464_v54 = vmul.f32 %v4783_v44, %v1463_v52  ;;  %2138 = vmatpush.bf16.msrb.mxu2 %v4556_v42  ;;  %v4529_v52 = vld [vmem:[%s6063_s11 + $0x68] sm:$0xff] }
 0x71f   : > { %v1468_v55 = vsel %vm1467_vm4, %v4783_v44, %v1464_v54  ;;  %v4530_v44 = vld [vmem:[%s6063_s11 + $0x70] sm:$0xff] }
 0x720   : > { %v1472_v58 = vmul.f32 %v1468_v55, %v5162_v12  ;;  %v4579_v12 = vld [vmem:[%s6063_s11 + $0x1b8] sm:$0xff] }
 0x721   : > { %2169 = vmatpush.bf16.msrb.mxu1 %v4579_v12  ;;  %v4521_v12 = vld [vmem:[%s6063_s11 + $0x28] sm:$0xff] }
 0x722   : > { %v1479_v59 = vmul.f32 %v5220_v45, %v1472_v58  ;;  %v4570_v45 = vld [vmem:[%s6063_s11 + $0x170] sm:$0xff] }
 0x723   : > { %2151 = vmatpush.bf16.msrb.mxu0 %v4570_v45  ;;  %v4546_v58 = vld [vmem:[%s6063_s11 + $0xf0] sm:$0xff]  ;;  %v4545_v45 = vld [vmem:[%s6063_s11 + $0xe8] sm:$0xff] }
 0x724   : > { %v5307_v61 = vadd.f32 %v5226_v3, %v1479_v59  ;;  %v4587_v3 = vld [vmem:[%s6063_s11 + $0x1f8] sm:$0xff]  ;;  %v4528_v59 = vld [vmem:[%s6063_s11 + $0x60] sm:$0xff] }
 0x725   : > { %2170 = vmatpush.bf16.msrb.mxu1 %v4578_v63  ;;  %2188 = vmatpush.bf16.msrb.mxu3 %v4587_v3  ;;  %v4527_v3 = vld [vmem:[%s6063_s11 + $0x58] sm:$0xff] }
 0x726   : > { %v5311_v62 = vpack.c.bf16 %v5307_v61, %v5304_v60 }
 0x727   : > { %2152 = vmatpush.bf16.msrb.mxu0 %v4569_v56  ;;  %v4535_v56 = vld [vmem:[%s6063_s11 + $0x98] sm:$0xff] }
 0x728   : > { %3839 = vmatmul.msk.bf16.gmra.mxu2 %vm557_vm0, %v5311_v62  ;;  %3841 = vmatmul.msk.bf16.gmra.mxu0 %vm557_vm0, %v5311_v62 }
 0x729   : > { %3843 = vmatmul.msk.bf16.gmra.mxu1 %vm557_vm0, %v5311_v62  ;;  %3845 = vmatmul.msk.bf16.gmra.mxu3 %vm557_vm0, %v5311_v62 }
 0x72a   : > { %2171 = vmatpush.bf16.msrb.mxu1 %v4577_v50  ;;  %2189 = vmatpush.bf16.msrb.mxu3 %v4586_v4  ;;  %v1725_v50 = vld [vmem:[%s6062_s10 + $0x4] sm:$0xf] }
 0x72b   : > { %2153 = vmatpush.bf16.msrb.mxu0 %v4568_v8  ;;  %v4520_v8 = vld [vmem:[%s6063_s11 + $0x20] sm:$0xff]  ;;  %v5561_v42 = vperm.slane %v1725_v50, 3 }
 0x72e   : > { %2172 = vmatpush.bf16.msrb.mxu1 %v4576_v11  ;;  %2190 = vmatpush.bf16.msrb.mxu3 %v4585_v14  ;;  %v4544_v11 = vld [vmem:[%s6063_s11 + $0xe0] sm:$0xff]  ;;  %v4534_v14 = vld [vmem:[%s6063_s11 + $0x90] sm:$0xff] }
 0x72f   : > { %2154 = vmatpush.bf16.msrb.mxu0 %v4567_v17  ;;  %v5528_v17 = vperm.slane %v1725_v50, 1 }
 0x732   : > { %2173 = vmatpush.bf16.msrb.mxu1 %v4575_v10  ;;  %2191 = vmatpush.bf16.msrb.mxu3 %v4584_v18  ;;  %v5530_v10 = vperm.slane %v1725_v50, 2  ;;  %v4543_v18 = vld [vmem:[%s6063_s11 + $0xd8] sm:$0xff] }
 0x733   : > { %2155 = vmatpush.bf16.msrb.mxu0 %v4566_v19 }
 0x736   : > { %2174 = vmatpush.bf16.msrb.mxu1 %v4574_v20  ;;  %2192 = vmatpush.bf16.msrb.mxu3 %v4583_v25  ;;  %v4525_v20 = vld [vmem:[%s6063_s11 + $0x48] sm:$0xff] }
 0x737   : > { %2156 = vmatpush.bf16.msrb.mxu0 %v4565_v26 }
 0x738   : > { %3878 = vmatmul.msk.bf16.vlgmr.msra.gmra.mxu2 %vm557_vm0, %v5239_v7  ;;  %3880 = vmatmul.msk.bf16.vlgmr.msra.gmra.mxu0 %vm557_vm0, %v5239_v7 }
 0x739   : > { %3882 = vmatmul.msk.bf16.vlgmr.msra.gmra.mxu1 %vm557_vm0, %v5239_v7  ;;  %3884 = vmatmul.msk.bf16.vlgmr.msra.gmra.mxu3 %vm557_vm0, %v5239_v7 }
 0x73a   : > { %2175 = vmatpush.bf16.msrb.mxu1 %v4573_v27  ;;  %2193 = vmatpush.bf16.msrb.mxu3 %v4582_v31  ;;  %v4518_v27 = vld [vmem:[%s6063_s11 + $0x10] sm:$0xff] }
 0x73b   : > { %2157 = vmatpush.bf16.msrb.mxu0 %v4564_v32  ;;  %2399 = vmatpush.bf16.msra.mxu2 %v4523_v47  ;;  %v4517_v47 = vld [vmem:[%s6063_s11 + $0x8] sm:$0xff] }
 0x73e   : > { %2176 = vmatpush.bf16.msrb.mxu1 %v4572_v33  ;;  %2194 = vmatpush.bf16.msrb.mxu3 %v4581_v35  ;;  %v5552_v33 = vperm.slane %v1725_v50, 0 }
 0x73f   : > { %2418 = vmatpush.bf16.msra.mxu0 %v4531_v38  ;;  %2400 = vmatpush.bf16.msra.mxu2 %v4522_v57  ;;  %v4524_v38 = vld [vmem:[%s6063_s11 + $0x40] sm:$0xff] }
 0x742   : > { %2437 = vmatpush.bf16.msra.mxu1 %v4539_v28  ;;  %2195 = vmatpush.bf16.msrb.mxu3 %v4580_v43  ;;  %v4532_v28 = vld [vmem:[%s6063_s11 + $0x80] sm:$0xff] }
 0x743   : > { %2419 = vmatpush.bf16.msra.mxu0 %v4530_v44  ;;  %2401 = vmatpush.bf16.msra.mxu2 %v4521_v12 }
 0x746   : > { %2438 = vmatpush.bf16.msra.mxu1 %v4538_v46  ;;  %2456 = vmatpush.bf16.msra.mxu3 %v4547_v48 }
 0x747   : > { %2420 = vmatpush.bf16.msra.mxu0 %v4529_v52  ;;  %2402 = vmatpush.bf16.msra.mxu2 %v4520_v8 }
 0x748   : > { %3879 = vmatmul.msk.bf16.gmra.mxu2 %vm557_vm0, %v5311_v62  ;;  %3881 = vmatmul.msk.bf16.gmra.mxu0 %vm557_vm0, %v5311_v62 }
 0x749   : > { %3883 = vmatmul.msk.bf16.gmra.mxu1 %vm557_vm0, %v5311_v62  ;;  %3885 = vmatmul.msk.bf16.gmra.mxu3 %vm557_vm0, %v5311_v62 }
 0x74a   : > { %2439 = vmatpush.bf16.msra.mxu1 %v4537_v53  ;;  %2457 = vmatpush.bf16.msra.mxu3 %v4546_v58  ;;  %v4541_v53 = vld [vmem:[%s6063_s11 + $0xc8] sm:$0xff] }
 0x74b   : > { %2421 = vmatpush.bf16.msra.mxu0 %v4528_v59  ;;  %2403 = vmatpush.bf16.msra.mxu2 %v4519_v0 }
 0x74e   : > { %2440 = vmatpush.bf16.msra.mxu1 %v4536_v9  ;;  %2458 = vmatpush.bf16.msra.mxu3 %v4545_v45 }
 0x74f   : > { %2422 = vmatpush.bf16.msra.mxu0 %v4527_v3  ;;  %2404 = vmatpush.bf16.msra.mxu2 %v4518_v27 }
 0x752   : > { %2441 = vmatpush.bf16.msra.mxu1 %v4535_v56  ;;  %2459 = vmatpush.bf16.msra.mxu3 %v4544_v11 }
 0x753   : > { %2423 = vmatpush.bf16.msra.mxu0 %v4526_v13  ;;  %2405 = vmatpush.bf16.msra.mxu2 %v4517_v47 }
 0x756   : > { %2442 = vmatpush.bf16.msra.mxu1 %v4534_v14  ;;  %2460 = vmatpush.bf16.msra.mxu3 %v4543_v18 }
 0x757   : > { %2424 = vmatpush.bf16.msra.mxu0 %v4525_v20 }
 0x75a   : > { %2443 = vmatpush.bf16.msra.mxu1 %v4533_v23  ;;  %2461 = vmatpush.bf16.msra.mxu3 %v4542_v30  ;;  %v4160_v23 = vld [vmem:[%s6061_s9 + $0xa0] sm:$0xf] }
 0x75b   : > { %2425 = vmatpush.bf16.msra.mxu0 %v4524_v38 }
 0x75e   : > { %2444 = vmatpush.bf16.msra.mxu1 %v4532_v28  ;;  %2462 = vmatpush.bf16.msra.mxu3 %v4541_v53 }
 0x77c   : > { %v5379_v15 = vpop.f32.mrf.mxu0 }
 0x77d   : > { %v5381_v16 = vpop.f32.mrf.mxu1 }
 0x782   : > { %v5401_v21 = vpop.f32.mrf.mxu2 }
 0x783   : > { %v5403_v22 = vpop.f32.mrf.mxu3 }
 0x784   : > { %v5417_v29 = vpop.f32.mrf.mxu0 }
 0x785   : > { %v5419_v24 = vpop.f32.mrf.mxu1 }
 0x78a   : > { %v5439_v36 = vpop.f32.mrf.mxu2 }
 0x78b   : > { %v5441_v37 = vpop.f32.mrf.mxu3 }
 0x7a5   : > { %v5449_v39 = vpop.f32.mrf.mxu0 }
 0x7a6   : > { %v5451_v41 = vpop.f32.mrf.mxu1 }
 0x7ab   : > { %v5471_v49 = vpop.f32.mrf.mxu2 }
 0x7ac   : > { %v5473_v51 = vpop.f32.mrf.mxu3 }
 0x7ad   : > { %v5481_v54 = vpop.f32.mrf.mxu0 }
 0x7ae   : > { %v5483_v55 = vpop.f32.mrf.mxu1 }
 0x7b3   : > { %v5503_v63 = vpop.f32.mrf.mxu2 }
 0x7b4   : > { %v5505_v2 = vpop.f32.mrf.mxu3 }
 0x7b5   : > { %v1803_v5 = vpop.f32.mrf.mxu0 }
 0x7b6   : > { %v1822_v4 = vpop.f32.mrf.mxu1  ;;  %v1804_v25 = vadd.f32 %v1803_v5, %v5528_v17  ;;  %v4516_v5 = vld [vmem:[%s6063_s11] sm:$0xff] }
 0x7b7   : > { %v1823_v31 = vadd.f32 %v1822_v4, %v5530_v10  ;;  %v4540_v4 = vld [vmem:[%s6063_s11 + $0xc0] sm:$0xff]  ;;  %2406 = vmatpush.bf16.msra.mxu2 %v4516_v5 }
 0x7b8   : > { %v1852_v44 = vmax.f32 %v1804_v25, 0.0  ;;  %2463 = vmatpush.bf16.msra.mxu3 %v4540_v4  ;;  %v4594_v25 = vld [vmem:[%s6061_s9 + $0xdc] sm:$0xf0] }
 0x7b9   : > { %v1853_v48 = vmax.f32 %v1823_v31, 0.0  ;;  %v4161_v31 = vor.u32 %v4594_v25, %v4160_v23  ;;  %v4168_v25 = vld [vmem:[%s6061_s9 + $0xa8] sm:$0xf] }
 0x7bb   : > { %v1784_v19 = vpop.f32.mrf.mxu2 }
 0x7bc   : > { %v1841_v26 = vpop.f32.mrf.mxu3  ;;  %v1785_v57 = vadd.f32 %v1784_v19, %v5552_v33 }
 0x7bd   : > { %v1805_v32 = vpop.f32.mrf.mxu0  ;;  %v1842_v59 = vadd.f32 %v1841_v26, %v5561_v42  ;;  %v4593_v26 = vld [vmem:[%s6061_s9 + $0xac] sm:$0xf] }
 0x7be   : > { %v1806_v34 = vadd.f32 %v1805_v32, %v5528_v17  ;;  %v1824_v35 = vpop.f32.mrf.mxu1  ;;  %v1851_v8 = vmax.f32 %v1785_v57, 0.0  ;;  %v4170_v32 = vld [vmem:[%s6061_s9 + $0xe8] sm:$0xf0] }
 0x7bf   : > { %v1825_v43 = vadd.f32 %v1824_v35, %v5530_v10  ;;  %v1854_v14 = vmax.f32 %v1842_v59, 0.0  ;;  %v4173_v38 = vor.u32 %v4593_v26, %v4170_v32  ;;  %v4595_v26 = vld [vmem:[%s6061_s9 + $0xe4] sm:$0xf0]  ;;  %v4154_v32 = vld [vmem:[%s6061_s9 + $0x68] sm:$0xf0] }
 0x7c0   : > { %v1856_v46 = vmax.f32 %v1806_v34, 0.0 }
 0x7c1   : > { %v1857_v52 = vmax.f32 %v1825_v43, 0.0 }
 0x7c2   : > { %v1868_v58 = vpack.c.bf16 %v1856_v46, %v1852_v44 }
 0x7c3   : > { %v1869_v9 = vpack.c.bf16 %v1857_v52, %v1853_v48  ;;  %v1786_v12 = vpop.f32.mrf.mxu2  ;;  %v1497_v48 = vld [vmem:[%s6062_s10] sm:$0xf] }
 0x7c4   : > { %v1787_v45 = vadd.f32 %v1786_v12, %v5552_v33  ;;  %v1843_v3 = vpop.f32.mrf.mxu3  ;;  %2158 = vmatmul.bf16.vlgmr.msrb.gmra.mxu0 %v1868_v58  ;;  %v5601_v12 = vperm.slane %v1497_v48, 1 }
 0x7c5   : > { %v1844_v56 = vadd.f32 %v1843_v3, %v5561_v42  ;;  %2177 = vmatmul.bf16.vlgmr.msrb.gmra.mxu1 %v1869_v9  ;;  %v1808_v50 = vpop.f32.mrf.mxu0 }
 0x7c6   : > { %v1855_v11 = vmax.f32 %v1787_v45, 0.0  ;;  %v1827_v13 = vpop.f32.mrf.mxu1  ;;  %v1809_v27 = vadd.f32 %v1808_v50, %v5528_v17 }
 0x7c7   : > { %v1858_v0 = vmax.f32 %v1844_v56, 0.0  ;;  %v1828_v34 = vadd.f32 %v1827_v13, %v5530_v10  ;;  %v1584_v56 = vadd.f32 %v5417_v29, %v5601_v12  ;;  %v1501_v13 = vperm.slane %v1497_v48, 2  ;;  %v4590_v29 = vld [vmem:[%s6061_s9 + $0x5c] sm:$0xf0] }
 0x7c8   : > { %v1867_v18 = vpack.c.bf16 %v1855_v11, %v1851_v8  ;;  %v1860_v46 = vmax.f32 %v1809_v27, 0.0 }
 0x7c9   : > { %v1870_v19 = vpack.c.bf16 %v1858_v0, %v1854_v14  ;;  %v1861_v52 = vmax.f32 %v1828_v34, 0.0  ;;  %v1499_v0 = vperm.slane %v1497_v48, 0  ;;  %v1601_v27 = vadd.f32 %v5381_v16, %v1501_v13  ;;  %v4588_v34 = vld [vmem:[%s6061_s9 + $0x24] sm:$0xf] }
 0x7ca   : > { %2139 = vmatmul.bf16.vlgmr.msrb.gmra.mxu2 %v1867_v18  ;;  %v1634_v18 = vmax.f32 %v1584_v56, 0.0  ;;  %v4146_v16 = vld [vmem:[%s6061_s9 + $0x60] sm:$0xf0] }
 0x7cb   : > { %2196 = vmatmul.bf16.vlgmr.msrb.gmra.mxu3 %v1870_v19  ;;  %v1789_v20 = vpop.f32.mrf.mxu2  ;;  %2539 = vmatpush.bf16.msrb.mxu2 %v4161_v31  ;;  %v4592_v19 = vld [vmem:[%s6061_s9 + $0xa4] sm:$0xf]  ;;  %v4169_v31 = vor.u32 %v4595_v26, %v4168_v25  ;;  %v4611_v26 = vld [vmem:[%s6063_s11 + $0x278] sm:$0xff] }
 0x7cc   : > { %v1846_v30 = vpop.f32.mrf.mxu3  ;;  %2596 = vmatpush.bf16.msrb.mxu3 %v4173_v38  ;;  %v1790_v57 = vadd.f32 %v1789_v20, %v5552_v33  ;;  %v1582_v20 = vadd.f32 %v5379_v15, %v5601_v12  ;;  %v4589_v15 = vld [vmem:[%s6061_s9 + $0x2c] sm:$0xf]  ;;  %v4152_v38 = vld [vmem:[%s6061_s9 + $0x28] sm:$0xf] }
 0x7cd   : > { %v1810_v35 = vpop.f32.mrf.mxu0  ;;  %v1847_v59 = vadd.f32 %v1846_v30, %v5561_v42  ;;  %2577 = vmatpush.bf16.msrb.mxu1 %v4169_v31 }
 0x7ce   : > { %v1811_v28 = vadd.f32 %v1810_v35, %v5528_v17  ;;  %v1829_v43 = vpop.f32.mrf.mxu1  ;;  %v1859_v50 = vmax.f32 %v1790_v57, 0.0  ;;  %v4157_v35 = vor.u32 %v4589_v15, %v4154_v32  ;;  %v1631_v57 = vmax.f32 %v1601_v27, 0.0  ;;  %v4619_v27 = vld [vmem:[%s6063_s11 + $0x2b8] sm:$0xff]  ;;  %v4610_v32 = vld [vmem:[%s6063_s11 + $0x270] sm:$0xff] }
 0x7cf   : > { %v1830_v44 = vadd.f32 %v1829_v43, %v5530_v10  ;;  %v1862_v4 = vmax.f32 %v1847_v59, 0.0  ;;  %v1502_v43 = vperm.slane %v1497_v48, 3  ;;  %v1563_v59 = vadd.f32 %v5401_v21, %v1499_v0 }
 0x7d0   : > { %v1864_v47 = vmax.f32 %v1811_v28, 0.0  ;;  %v4591_v28 = vld [vmem:[%s6061_s9 + $0x64] sm:$0xf0]  ;;  %2597 = vmatpush.bf16.msrb.mxu3 %v4157_v35  ;;  %v1608_v21 = vadd.f32 %v5483_v55, %v1501_v13 }
 0x7d1   : > { %v1865_v53 = vmax.f32 %v1830_v44, 0.0 }
 0x7d2   : > { %v1872_v58 = vpack.c.bf16 %v1864_v47, %v1860_v46  ;;  %v4149_v46 = vor.u32 %v4588_v34, %v4146_v16  ;;  %v4153_v47 = vor.u32 %v4591_v28, %v4152_v38  ;;  %v4618_v34 = vld [vmem:[%s6063_s11 + $0x2b0] sm:$0xff] }
 0x7d3   : > { %v1791_v9 = vpop.f32.mrf.mxu2  ;;  %v1873_v17 = vpack.c.bf16 %v1865_v53, %v1861_v52  ;;  %v1630_v52 = vmax.f32 %v1582_v20, 0.0  ;;  %v1565_v53 = vadd.f32 %v5439_v36, %v1499_v0 }
 0x7d4   : > { %v1792_v10 = vadd.f32 %v1791_v9, %v5552_v33  ;;  %v1848_v45 = vpop.f32.mrf.mxu3  ;;  %2163 = vmatmul.bf16.gmra.mxu0 %v1872_v58  ;;  %v1603_v33 = vadd.f32 %v5419_v24, %v1501_v13  ;;  %v4162_v24 = vld [vmem:[%s6061_s9 + $0xe0] sm:$0xf0]  ;;  %v1622_v58 = vadd.f32 %v5441_v37, %v1502_v43  ;;  %2578 = vmatpush.bf16.msrb.mxu1 %v4153_v47 }
 0x7d5   : > { %v1849_v3 = vadd.f32 %v1848_v45, %v5561_v42  ;;  %2182 = vmatmul.bf16.gmra.mxu1 %v1873_v17  ;;  %v4144_v42 = vld [vmem:[%s6061_s9 + $0x20] sm:$0xf]  ;;  %v4165_v30 = vor.u32 %v4592_v19, %v4162_v24  ;;  %v1646_v9 = vpack.c.bf16 %v1634_v18, %v1630_v52  ;;  %v1620_v17 = vadd.f32 %v5403_v22, %v1502_v43 }
 0x7d6   : > { %v1863_v5 = vmax.f32 %v1792_v10, 0.0  ;;  %v4145_v23 = vor.u32 %v4590_v29, %v4144_v42  ;;  %v1635_v44 = vmax.f32 %v1603_v33, 0.0  ;;  %v1633_v48 = vmax.f32 %v1565_v53, 0.0  ;;  %v4603_v53 = vld [vmem:[%s6063_s11 + $0x238] sm:$0xff] }
 0x7d7   : > { %v1866_v8 = vmax.f32 %v1849_v3, 0.0  ;;  %2558 = vmatpush.bf16.msrb.mxu0 %v4165_v30  ;;  %v1636_v45 = vmax.f32 %v1622_v58, 0.0  ;;  %v1629_v3 = vmax.f32 %v1563_v59, 0.0  ;;  %v1632_v56 = vmax.f32 %v1620_v17, 0.0  ;;  %v4616_v58 = vld [vmem:[%s6063_s11 + $0x2a0] sm:$0xff] }
 0x7d8   : > { %v1871_v11 = vpack.c.bf16 %v1863_v5, %v1859_v50  ;;  %2540 = vmatpush.bf16.msrb.mxu2 %v4145_v23  ;;  %v1647_v10 = vpack.c.bf16 %v1635_v44, %v1631_v57  ;;  %v1589_v5 = vadd.f32 %v5481_v54, %v5601_v12  ;;  %v1587_v22 = vadd.f32 %v5449_v39, %v5601_v12  ;;  %v4617_v44 = vld [vmem:[%s6063_s11 + $0x2a8] sm:$0xff]  ;;  %v4608_v57 = vld [vmem:[%s6063_s11 + $0x260] sm:$0xff] }
 0x7d9   : > { %v1874_v14 = vpack.c.bf16 %v1866_v8, %v1862_v4  ;;  %v1645_v50 = vpack.c.bf16 %v1633_v48, %v1629_v3  ;;  %v1648_v36 = vpack.c.bf16 %v1636_v45, %v1632_v56  ;;  %v1606_v37 = vadd.f32 %v5451_v41, %v1501_v13  ;;  %v4602_v45 = vld [vmem:[%s6063_s11 + $0x230] sm:$0xff]  ;;  %v4607_v3 = vld [vmem:[%s6063_s11 + $0x258] sm:$0xff] }
 0x7da   : > { %2144 = vmatmul.bf16.gmra.mxu2 %v1871_v11  ;;  %v1642_v4 = vmax.f32 %v1589_v5, 0.0  ;;  %v1643_v8 = vmax.f32 %v1608_v21, 0.0  ;;  %v1638_v11 = vmax.f32 %v1587_v22, 0.0  ;;  %v1627_v33 = vadd.f32 %v5505_v2, %v1502_v43  ;;  %v4601_v22 = vld [vmem:[%s6063_s11 + $0x228] sm:$0xff] }
 0x7db   : > { %2201 = vmatmul.bf16.gmra.mxu3 %v1874_v14  ;;  %2559 = vmatpush.bf16.msrb.mxu0 %v4149_v46  ;;  %v1570_v14 = vadd.f32 %v5503_v63, %v1499_v0  ;;  %v1639_v18 = vmax.f32 %v1606_v37, 0.0  ;;  %v1568_v42 = vadd.f32 %v5471_v49, %v1499_v0  ;;  %v1625_v29 = vadd.f32 %v5473_v51, %v1502_v43  ;;  %v4609_v43 = vld [vmem:[%s6063_s11 + $0x268] sm:$0xff]  ;;  %v4606_v37 = vld [vmem:[%s6063_s11 + $0x250] sm:$0xff] }
 0x7dc   : > { %v1650_v54 = vpack.c.bf16 %v1642_v4, %v1638_v11  ;;  %v1644_v20 = vmax.f32 %v1627_v33, 0.0  ;;  %v4614_v4 = vld [vmem:[%s6063_s11 + $0x290] sm:$0xff]  ;;  %v4625_v11 = vld [vmem:[%s6063_s11 + $0x2e8] sm:$0xff] }
 0x7dd   : > { %v1651_v55 = vpack.c.bf16 %v1643_v8, %v1639_v18  ;;  %v1641_v19 = vmax.f32 %v1570_v14, 0.0  ;;  %v1637_v39 = vmax.f32 %v1568_v42, 0.0  ;;  %v1640_v41 = vmax.f32 %v1625_v29, 0.0  ;;  %v4600_v42 = vld [vmem:[%s6063_s11 + $0x220] sm:$0xff]  ;;  %v4613_v29 = vld [vmem:[%s6063_s11 + $0x288] sm:$0xff] }
 0x7df   : > { %v1649_v12 = vpack.c.bf16 %v1641_v19, %v1637_v39  ;;  %v1652_v13 = vpack.c.bf16 %v1644_v20, %v1640_v41  ;;  %v4624_v19 = vld [vmem:[%s6063_s11 + $0x2e0] sm:$0xff]  ;;  %v4599_v41 = vld [vmem:[%s6063_s11 + $0x218] sm:$0xff] }
 0x7e4   : > { %2426 = vmatmul.bf16.vlgmr.msra.gmra.mxu0 %v1646_v9  ;;  %v4627_v9 = vld [vmem:[%s6063_s11 + $0x2f8] sm:$0xff] }
 0x7e5   : > { %2445 = vmatmul.bf16.vlgmr.msra.gmra.mxu1 %v1647_v10  ;;  %2908 = vmatpush.bf16.msra.mxu0 %v4611_v26 }
 0x7e6   : > { %2927 = vmatpush.bf16.msra.mxu1 %v4619_v27 }
 0x7e9   : > { %2909 = vmatpush.bf16.msra.mxu0 %v4610_v32 }
 0x7ea   : > { %2407 = vmatmul.bf16.vlgmr.msra.gmra.mxu2 %v1645_v50  ;;  %2928 = vmatpush.bf16.msra.mxu1 %v4618_v34  ;;  %v4615_v50 = vld [vmem:[%s6063_s11 + $0x298] sm:$0xff] }
 0x7eb   : > { %2464 = vmatmul.bf16.vlgmr.msra.gmra.mxu3 %v1648_v36  ;;  %2889 = vmatpush.bf16.msra.mxu2 %v4603_v53  ;;  %v4626_v36 = vld [vmem:[%s6063_s11 + $0x2f0] sm:$0xff] }
 0x7ec   : > { %2946 = vmatpush.bf16.msra.mxu3 %v4627_v9 }
 0x7ed   : > { %2910 = vmatpush.bf16.msra.mxu0 %v4609_v43 }
 0x7ee   : > { %2929 = vmatpush.bf16.msra.mxu1 %v4617_v44 }
 0x7ef   : > { %2890 = vmatpush.bf16.msra.mxu2 %v4602_v45 }
 0x7f0   : > { %2947 = vmatpush.bf16.msra.mxu3 %v4626_v36 }
 0x7f1   : > { %2911 = vmatpush.bf16.msra.mxu0 %v4608_v57 }
 0x7f2   : > { %2930 = vmatpush.bf16.msra.mxu1 %v4616_v58 }
 0x7f3   : > { %2891 = vmatpush.bf16.msra.mxu2 %v4601_v22 }
 0x7f4   : > { %2431 = vmatmul.bf16.gmra.mxu0 %v1650_v54  ;;  %2948 = vmatpush.bf16.msra.mxu3 %v4625_v11  ;;  %v4605_v54 = vld [vmem:[%s6063_s11 + $0x248] sm:$0xff]  ;;  %v4632_v11 = vld [vmem:[%s6061_s9 + $0xb4] sm:$0xf] }
 0x7f5   : > { %2450 = vmatmul.bf16.gmra.mxu1 %v1651_v55  ;;  %2912 = vmatpush.bf16.msra.mxu0 %v4607_v3 }
 0x7f6   : > { %2931 = vmatpush.bf16.msra.mxu1 %v4615_v50  ;;  %v4338_v50 = vld [vmem:[%s6061_s9 + $0xf8] sm:$0xf0] }
 0x7f7   : > { %2892 = vmatpush.bf16.msra.mxu2 %v4600_v42 }
 0x7f8   : > { %2949 = vmatpush.bf16.msra.mxu3 %v4624_v19 }
 0x7f9   : > { %2913 = vmatpush.bf16.msra.mxu0 %v4606_v37 }
 0x7fa   : > { %2412 = vmatmul.bf16.gmra.mxu2 %v1649_v12  ;;  %2932 = vmatpush.bf16.msra.mxu1 %v4614_v4  ;;  %v4604_v12 = vld [vmem:[%s6063_s11 + $0x240] sm:$0xff] }
 0x7fb   : > { %2469 = vmatmul.bf16.gmra.mxu3 %v1652_v13  ;;  %v4612_v13 = vld [vmem:[%s6063_s11 + $0x280] sm:$0xff]  ;;  %2893 = vmatpush.bf16.msra.mxu2 %v4599_v41 }
 0x7fd   : > { %2914 = vmatpush.bf16.msra.mxu0 %v4605_v54 }
 0x7fe   : > { %2933 = vmatpush.bf16.msra.mxu1 %v4613_v29  ;;  %v4635_v29 = vld [vmem:[%s6061_s9 + $0xf4] sm:$0xf0] }
 0x801   : > { %2915 = vmatpush.bf16.msra.mxu0 %v4604_v12 }
 0x802   : > { %2934 = vmatpush.bf16.msra.mxu1 %v4612_v13 }
 0x804   : > { %4176 = vmatmul.msk.bf16.vlgmr.msrb.gmra.mxu0 %vm557_vm0, %v5239_v7 }
 0x805   : > { %4178 = vmatmul.msk.bf16.vlgmr.msrb.gmra.mxu1 %vm557_vm0, %v5239_v7 }
 0x80a   : > { %4174 = vmatmul.msk.bf16.vlgmr.msrb.gmra.mxu2 %vm557_vm0, %v5239_v7 }
 0x80b   : > { %4180 = vmatmul.msk.bf16.vlgmr.msrb.gmra.mxu3 %vm557_vm0, %v5239_v7 }
 0x814   : > { %4177 = vmatmul.msk.bf16.gmra.mxu0 %vm557_vm0, %v5311_v62 }
 0x815   : > { %4179 = vmatmul.msk.bf16.gmra.mxu1 %vm557_vm0, %v5311_v62 }
 0x81a   : > { %4175 = vmatmul.msk.bf16.gmra.mxu2 %vm557_vm0, %v5311_v62 }
 0x81b   : > { %4181 = vmatmul.msk.bf16.gmra.mxu3 %vm557_vm0, %v5311_v62 }
 0x841   : > { %v2159_v49 = vpop.f32.mrf.mxu0 }
 0x842   : > { %v2178_v51 = vpop.f32.mrf.mxu1 }
 0x849   : > { %v2161_v63 = vpop.f32.mrf.mxu0 }
 0x84a   : > { %v2180_v2 = vpop.f32.mrf.mxu1 }
 0x84d   : > { %v2140_v0 = vpop.f32.mrf.mxu2 }
 0x84e   : > { %v2160_v23 = vadd.f32 %v2159_v49, %v2140_v0  ;;  %v2197_v24 = vpop.f32.mrf.mxu3 }
 0x850   : > { %v2179_v25 = vadd.f32 %v2178_v51, %v2160_v23  ;;  %v4623_v51 = vld [vmem:[%s6063_s11 + $0x2d8] sm:$0xff]  ;;  %v4598_v23 = vld [vmem:[%s6063_s11 + $0x210] sm:$0xff] }
 0x851   : > { %v2164_v30 = vpop.f32.mrf.mxu0  ;;  %2950 = vmatpush.bf16.msra.mxu3 %v4623_v51  ;;  %2894 = vmatpush.bf16.msra.mxu2 %v4598_v23  ;;  %v4314_v51 = vld [vmem:[%s6061_s9 + $0x70] sm:$0xf0] }
 0x852   : > { %v5683_v31 = vadd.f32 %v2197_v24, %v2179_v25  ;;  %v2183_v15 = vpop.f32.mrf.mxu1  ;;  %v4622_v24 = vld [vmem:[%s6063_s11 + $0x2d0] sm:$0xff] }
 0x855   : > { %v2142_v35 = vpop.f32.mrf.mxu2  ;;  %2951 = vmatpush.bf16.msra.mxu3 %v4622_v24 }
 0x856   : > { %v2162_v16 = vadd.f32 %v2161_v63, %v2142_v35  ;;  %v2199_v38 = vpop.f32.mrf.mxu3 }
 0x858   : > { %v2181_v28 = vadd.f32 %v2180_v2, %v2162_v16 }
 0x859   : > { %v2166_v46 = vpop.f32.mrf.mxu0 }
 0x85a   : > { %v5697_v47 = vadd.f32 %v2199_v38, %v2181_v28  ;;  %v2185_v52 = vpop.f32.mrf.mxu1  ;;  %v4596_v38 = vld [vmem:[%s6063_s11 + $0x200] sm:$0xff] }
 0x85b   : > { %v4620_v28 = vld [vmem:[%s6063_s11 + $0x2c0] sm:$0xff] }
 0x85d   : > { %v2145_v59 = vpop.f32.mrf.mxu2 }
 0x85e   : > { %v2165_v17 = vadd.f32 %v2164_v30, %v2145_v59  ;;  %v2202_v10 = vpop.f32.mrf.mxu3  ;;  %v2483_v59 = vld [vmem:[%s6062_s10 + $0x8] sm:$0xf] }
 0x85f   : > { %v5805_v22 = vperm.slane %v2483_v59, 2 }
 0x860   : > { %v2184_v48 = vadd.f32 %v2183_v15, %v2165_v17  ;;  %v4621_v15 = vld [vmem:[%s6063_s11 + $0x2c8] sm:$0xff]  ;;  %v4328_v17 = vld [vmem:[%s6061_s9 + $0xb0] sm:$0xf] }
 0x861   : > { %v2427_v56 = vpop.f32.mrf.mxu0  ;;  %2952 = vmatpush.bf16.msra.mxu3 %v4621_v15  ;;  %v4312_v15 = vld [vmem:[%s6061_s9 + $0x30] sm:$0xf] }
 0x862   : > { %v5723_v5 = vadd.f32 %v2202_v10, %v2184_v48  ;;  %v2446_v21 = vpop.f32.mrf.mxu1  ;;  %v4634_v10 = vld [vmem:[%s6061_s9 + $0xec] sm:$0xf0]  ;;  %v4633_v48 = vld [vmem:[%s6061_s9 + $0xbc] sm:$0xf] }
 0x863   : > { %v4341_v36 = vor.u32 %v4633_v48, %v4338_v50 }
 0x865   : > { %v2147_v8 = vpop.f32.mrf.mxu2  ;;  %2953 = vmatpush.bf16.msra.mxu3 %v4620_v28 }
 0x866   : > { %v2167_v14 = vadd.f32 %v2166_v46, %v2147_v8  ;;  %v2204_v18 = vpop.f32.mrf.mxu3 }
 0x868   : > { %v2186_v33 = vadd.f32 %v2185_v52, %v2167_v14  ;;  %v4330_v14 = vld [vmem:[%s6061_s9 + $0xf0] sm:$0xf0] }
 0x869   : > { %v2429_v55 = vpop.f32.mrf.mxu0  ;;  %3090 = vmatpush.bf16.msrb.mxu3 %v4341_v36  ;;  %v4333_v54 = vor.u32 %v4632_v11, %v4330_v14 }
 0x86a   : > { %v2205_v20 = vadd.f32 %v2204_v18, %v2186_v33  ;;  %v2448_v39 = vpop.f32.mrf.mxu1  ;;  %v4336_v18 = vld [vmem:[%s6061_s9 + $0xb8] sm:$0xf] }
 0x86b   : > { %3052 = vmatpush.bf16.msrb.mxu0 %v4333_v54 }
 0x86d   : > { %v2408_v49 = vpop.f32.mrf.mxu2 }
 0x86e   : > { %v2409_v63 = vadd.f32 %v2408_v49, %v5683_v31  ;;  %v2465_v2 = vpop.f32.mrf.mxu3  ;;  %v4597_v31 = vld [vmem:[%s6063_s11 + $0x208] sm:$0xff]  ;;  %v4628_v49 = vld [vmem:[%s6061_s9 + $0x34] sm:$0xf] }
 0x86f   : > { %2895 = vmatpush.bf16.msra.mxu2 %v4597_v31  ;;  %v4317_v24 = vor.u32 %v4628_v49, %v4314_v51 }
 0x870   : > { %v2428_v0 = vadd.f32 %v2427_v56, %v2409_v63  ;;  %v4329_v56 = vor.u32 %v4634_v10, %v4328_v17  ;;  %v4320_v63 = vld [vmem:[%s6061_s9 + $0x38] sm:$0xf] }
 0x871   : > { %v2432_v25 = vpop.f32.mrf.mxu0  ;;  %3053 = vmatpush.bf16.msrb.mxu0 %v4317_v24 }
 0x872   : > { %v2447_v26 = vadd.f32 %v2446_v21, %v2428_v0  ;;  %v2451_v27 = vpop.f32.mrf.mxu1  ;;  %v5803_v21 = vperm.slane %v2483_v59, 1 }
 0x873   : > { %2896 = vmatpush.bf16.msra.mxu2 %v4596_v38 }
 0x874   : > { %v5768_v30 = vadd.f32 %v2465_v2, %v2447_v26 }
 0x875   : > { %v2410_v32 = vpop.f32.mrf.mxu2 }
 0x876   : > { %v2411_v34 = vadd.f32 %v2410_v32, %v5697_v47  ;;  %v2467_v35 = vpop.f32.mrf.mxu3  ;;  %v4630_v32 = vld [vmem:[%s6061_s9 + $0x6c] sm:$0xf0] }
 0x877   : > { %3033 = vmatpush.bf16.msrb.mxu2 %v4329_v56  ;;  %v4313_v38 = vor.u32 %v4630_v32, %v4312_v15  ;;  %v4650_v15 = vld [vmem:[%s6063_s11 + $0x370] sm:$0xff] }
 0x878   : > { %v2430_v16 = vadd.f32 %v2429_v55, %v2411_v34  ;;  %v4658_v32 = vld [vmem:[%s6063_s11 + $0x3b0] sm:$0xff] }
 0x879   : > { %v2434_v43 = vpop.f32.mrf.mxu0 }
 0x87a   : > { %v2449_v44 = vadd.f32 %v2448_v39, %v2430_v16  ;;  %v2453_v46 = vpop.f32.mrf.mxu1 }
 0x87b   : > { %3034 = vmatpush.bf16.msrb.mxu2 %v4313_v38  ;;  %v4647_v38 = vld [vmem:[%s6063_s11 + $0x358] sm:$0xff] }
 0x87c   : > { %v5783_v52 = vadd.f32 %v2467_v35, %v2449_v44  ;;  %v2488_v44 = vperm.slane %v2483_v59, 3 }
 0x87d   : > { %v2413_v47 = vpop.f32.mrf.mxu2 }
 0x87e   : > { %v2414_v53 = vadd.f32 %v2413_v47, %v5723_v5  ;;  %v2470_v57 = vpop.f32.mrf.mxu3  ;;  %v4629_v47 = vld [vmem:[%s6061_s9 + $0x3c] sm:$0xf] }
 0x880   : > { %v2433_v58 = vadd.f32 %v2432_v25, %v2414_v53  ;;  %v4631_v25 = vld [vmem:[%s6061_s9 + $0x74] sm:$0xf0]  ;;  %v4322_v53 = vld [vmem:[%s6061_s9 + $0x78] sm:$0xf0] }
 0x881   : > { %v2561_v9 = vpop.f32.mrf.mxu0  ;;  %v4321_v34 = vor.u32 %v4631_v25, %v4320_v63 }
 0x882   : > { %v2452_v45 = vadd.f32 %v2451_v27, %v2433_v58  ;;  %v2580_v3 = vpop.f32.mrf.mxu1  ;;  %v2562_v33 = vadd.f32 %v2561_v9, %v5803_v21  ;;  %v4325_v58 = vor.u32 %v4629_v47, %v4322_v53  ;;  %v4667_v47 = vld [vmem:[%s6063_s11 + $0x3f8] sm:$0xff]  ;;  %v4646_v53 = vld [vmem:[%s6063_s11 + $0x350] sm:$0xff] }
 0x883   : > { %v2581_v55 = vadd.f32 %v2580_v3, %v5805_v22 }
 0x884   : > { %v5801_v5 = vadd.f32 %v2470_v57, %v2452_v45  ;;  %v2610_v2 = vmax.f32 %v2562_v33, 0.0  ;;  %3091 = vmatpush.bf16.msrb.mxu3 %v4325_v58  ;;  %v4642_v58 = vld [vmem:[%s6063_s11 + $0x330] sm:$0xff] }
 0x885   : > { %v2415_v37 = vpop.f32.mrf.mxu2  ;;  %v2611_v26 = vmax.f32 %v2581_v55, 0.0 }
 0x886   : > { %v2416_v4 = vadd.f32 %v2415_v37, %v2205_v20  ;;  %v2472_v8 = vpop.f32.mrf.mxu3  ;;  %v4337_v20 = vor.u32 %v4635_v29, %v4336_v18 }
 0x888   : > { %v2435_v42 = vadd.f32 %v2434_v43, %v2416_v4  ;;  %3071 = vmatpush.bf16.msrb.mxu1 %v4337_v20  ;;  %v2485_v43 = vperm.slane %v2483_v59, 0 }
 0x889   : > { %v2563_v19 = vpop.f32.mrf.mxu0 }
 0x88a   : > { %v2454_v39 = vadd.f32 %v2453_v46, %v2435_v42  ;;  %v2564_v41 = vadd.f32 %v2563_v19, %v5803_v21  ;;  %v2582_v12 = vpop.f32.mrf.mxu1 }
 0x88b   : > { %v2583_v13 = vadd.f32 %v2582_v12, %v5805_v22 }
 0x88c   : > { %v5832_v0 = vadd.f32 %v2472_v8, %v2454_v39  ;;  %v2614_v23 = vmax.f32 %v2564_v41, 0.0  ;;  %3072 = vmatpush.bf16.msrb.mxu1 %v4321_v34  ;;  %v4657_v34 = vld [vmem:[%s6063_s11 + $0x3a8] sm:$0xff] }
 0x88d   : > { %v2615_v27 = vmax.f32 %v2583_v13, 0.0  ;;  %v2542_v31 = vpop.f32.mrf.mxu2 }
 0x88e   : > { %v2626_v35 = vpack.c.bf16 %v2614_v23, %v2610_v2  ;;  %v2599_v16 = vpop.f32.mrf.mxu3  ;;  %v2543_v9 = vadd.f32 %v2542_v31, %v2485_v43  ;;  %v4651_v31 = vld [vmem:[%s6063_s11 + $0x378] sm:$0xff] }
 0x88f   : > { %v2627_v28 = vpack.c.bf16 %v2615_v27, %v2611_v26  ;;  %v2600_v17 = vadd.f32 %v2599_v16, %v2488_v44  ;;  %v4656_v16 = vld [vmem:[%s6063_s11 + $0x3a0] sm:$0xff] }
 0x890   : > { %2916 = vmatmul.bf16.vlgmr.msra.gmra.mxu0 %v2626_v35  ;;  %v2609_v59 = vmax.f32 %v2543_v9, 0.0  ;;  %v4648_v35 = vld [vmem:[%s6063_s11 + $0x360] sm:$0xff]  ;;  %v4666_v9 = vld [vmem:[%s6063_s11 + $0x3f0] sm:$0xff] }
 0x891   : > { %2935 = vmatmul.bf16.vlgmr.msra.gmra.mxu1 %v2627_v28  ;;  %v2566_v46 = vpop.f32.mrf.mxu0  ;;  %v2612_v36 = vmax.f32 %v2600_v17, 0.0  ;;  %3402 = vmatpush.bf16.msra.mxu0 %v4651_v31  ;;  %v4655_v28 = vld [vmem:[%s6063_s11 + $0x398] sm:$0xff]  ;;  %v4645_v17 = vld [vmem:[%s6063_s11 + $0x348] sm:$0xff] }
 0x892   : > { %v2585_v57 = vpop.f32.mrf.mxu1  ;;  %v2567_v56 = vadd.f32 %v2566_v46, %v5803_v21  ;;  %v4643_v46 = vld [vmem:[%s6063_s11 + $0x338] sm:$0xff] }
 0x893   : > { %v2586_v37 = vadd.f32 %v2585_v57, %v5805_v22  ;;  %v4654_v57 = vld [vmem:[%s6063_s11 + $0x390] sm:$0xff] }
 0x894   : > { %v2618_v54 = vmax.f32 %v2567_v56, 0.0  ;;  %v4644_v56 = vld [vmem:[%s6063_s11 + $0x340] sm:$0xff] }
 0x895   : > { %v2544_v10 = vpop.f32.mrf.mxu2  ;;  %v2619_v55 = vmax.f32 %v2586_v37, 0.0  ;;  %3403 = vmatpush.bf16.msra.mxu0 %v4650_v15  ;;  %v4664_v37 = vld [vmem:[%s6063_s11 + $0x3e0] sm:$0xff] }
 0x896   : > { %v2545_v48 = vadd.f32 %v2544_v10, %v2485_v43  ;;  %v2601_v45 = vpop.f32.mrf.mxu3  ;;  %v4653_v10 = vld [vmem:[%s6063_s11 + $0x388] sm:$0xff] }
 0x897   : > { %v2602_v3 = vadd.f32 %v2601_v45, %v2488_v44 }
 0x898   : > { %v2613_v50 = vmax.f32 %v2545_v48, 0.0 }
 0x899   : > { %v2616_v4 = vmax.f32 %v2602_v3, 0.0  ;;  %v2568_v8 = vpop.f32.mrf.mxu0  ;;  %v4641_v3 = vld [vmem:[%s6063_s11 + $0x328] sm:$0xff] }
 0x89a   : > { %v2625_v11 = vpack.c.bf16 %v2613_v50, %v2609_v59  ;;  %v2569_v14 = vadd.f32 %v2568_v8, %v5803_v21  ;;  %v2587_v18 = vpop.f32.mrf.mxu1  ;;  %v4665_v59 = vld [vmem:[%s6063_s11 + $0x3e8] sm:$0xff]  ;;  %v4652_v50 = vld [vmem:[%s6063_s11 + $0x380] sm:$0xff] }
 0x89b   : > { %v2628_v33 = vpack.c.bf16 %v2616_v4, %v2612_v36  ;;  %v2588_v42 = vadd.f32 %v2587_v18, %v5805_v22  ;;  %v4640_v36 = vld [vmem:[%s6063_s11 + $0x320] sm:$0xff] }
 0x89c   : > { %v2622_v29 = vmax.f32 %v2569_v14, 0.0  ;;  %2897 = vmatmul.bf16.vlgmr.msra.gmra.mxu2 %v2625_v11  ;;  %v4639_v11 = vld [vmem:[%s6063_s11 + $0x318] sm:$0xff] }
 0x89d   : > { %v2623_v19 = vmax.f32 %v2588_v42, 0.0  ;;  %2954 = vmatmul.bf16.vlgmr.msra.gmra.mxu3 %v2628_v33  ;;  %v2547_v20 = vpop.f32.mrf.mxu2  ;;  %3383 = vmatpush.bf16.msra.mxu2 %v4643_v46  ;;  %v4663_v14 = vld [vmem:[%s6063_s11 + $0x3d8] sm:$0xff] }
 0x89e   : > { %v2630_v39 = vpack.c.bf16 %v2622_v29, %v2618_v54  ;;  %v2604_v41 = vpop.f32.mrf.mxu3  ;;  %v2548_v13 = vadd.f32 %v2547_v20, %v2485_v43  ;;  %3440 = vmatpush.bf16.msra.mxu3 %v4667_v47  ;;  %v4638_v29 = vld [vmem:[%s6063_s11 + $0x310] sm:$0xff] }
 0x89f   : > { %v2631_v12 = vpack.c.bf16 %v2623_v19, %v2619_v55  ;;  %v2605_v49 = vadd.f32 %v2604_v41, %v2488_v44  ;;  %v4662_v55 = vld [vmem:[%s6063_s11 + $0x3d0] sm:$0xff] }
 0x8a0   : > { %2921 = vmatmul.bf16.gmra.mxu0 %v2630_v39  ;;  %v2617_v23 = vmax.f32 %v2548_v13, 0.0  ;;  %v4661_v13 = vld [vmem:[%s6063_s11 + $0x3c8] sm:$0xff] }
 0x8a1   : > { %2940 = vmatmul.bf16.gmra.mxu1 %v2631_v12  ;;  %v2620_v24 = vmax.f32 %v2605_v49, 0.0  ;;  %3384 = vmatpush.bf16.msra.mxu2 %v4642_v58  ;;  %v4637_v12 = vld [vmem:[%s6063_s11 + $0x308] sm:$0xff] }
 0x8a2   : > { %3441 = vmatpush.bf16.msra.mxu3 %v4666_v9 }
 0x8a5   : > { %v2549_v51 = vpop.f32.mrf.mxu2  ;;  %3385 = vmatpush.bf16.msra.mxu2 %v4641_v3 }
 0x8a6   : > { %v2550_v21 = vadd.f32 %v2549_v51, %v2485_v43  ;;  %v2606_v63 = vpop.f32.mrf.mxu3  ;;  %3442 = vmatpush.bf16.msra.mxu3 %v4665_v59 }
 0x8a7   : > { %v2607_v2 = vadd.f32 %v2606_v63, %v2488_v44 }
 0x8a8   : > { %v2621_v22 = vmax.f32 %v2550_v21, 0.0 }
 0x8a9   : > { %v2624_v25 = vmax.f32 %v2607_v2, 0.0  ;;  %3386 = vmatpush.bf16.msra.mxu2 %v4640_v36  ;;  %v4660_v2 = vld [vmem:[%s6063_s11 + $0x3c0] sm:$0xff] }
 0x8aa   : > { %v2629_v26 = vpack.c.bf16 %v2621_v22, %v2617_v23  ;;  %3443 = vmatpush.bf16.msra.mxu3 %v4664_v37  ;;  %v2977_v22 = vld [vmem:[%s6062_s10 + $0xc] sm:$0xf] }
 0x8ab   : > { %v2632_v27 = vpack.c.bf16 %v2624_v25, %v2620_v24  ;;  %v2980_v31 = vperm.slane %v2977_v22, 1  ;;  %v2979_v37 = vperm.slane %v2977_v22, 0 }
 0x8ac   : > { %2902 = vmatmul.bf16.gmra.mxu2 %v2629_v26 }
 0x8ad   : > { %2959 = vmatmul.bf16.gmra.mxu3 %v2632_v27  ;;  %3387 = vmatpush.bf16.msra.mxu2 %v4639_v11 }
 0x8ae   : > { %3444 = vmatpush.bf16.msra.mxu3 %v4663_v14 }
 0x8b0   : > { %4344 = vmatmul.msk.bf16.vlgmr.msrb.gmra.mxu0 %vm557_vm0, %v5239_v7 }
 0x8b1   : > { %4346 = vmatmul.msk.bf16.vlgmr.msrb.gmra.mxu1 %vm557_vm0, %v5239_v7  ;;  %3388 = vmatpush.bf16.msra.mxu2 %v4638_v29 }
 0x8b2   : > { %3445 = vmatpush.bf16.msra.mxu3 %v4662_v55 }
 0x8b5   : > { %3389 = vmatpush.bf16.msra.mxu2 %v4637_v12 }
 0x8b6   : > { %3446 = vmatpush.bf16.msra.mxu3 %v4661_v13 }
 0x8ba   : > { %3447 = vmatpush.bf16.msra.mxu3 %v4660_v2 }
 0x8bc   : > { %4342 = vmatmul.msk.bf16.vlgmr.msrb.gmra.mxu2 %vm557_vm0, %v5239_v7 }
 0x8bd   : > { %4348 = vmatmul.msk.bf16.vlgmr.msrb.gmra.mxu3 %vm557_vm0, %v5239_v7  ;;  %v4659_v7 = vld [vmem:[%s6063_s11 + $0x3b8] sm:$0xff] }
 0x8be   : > { %3421 = vmatpush.bf16.msra.mxu1 %v4659_v7 }
 0x8c0   : > { %4345 = vmatmul.msk.bf16.gmra.mxu0 %vm557_vm0, %v5311_v62 }
 0x8c1   : > { %4347 = vmatmul.msk.bf16.gmra.mxu1 %vm557_vm0, %v5311_v62 }
 0x8c2   : > { %3422 = vmatpush.bf16.msra.mxu1 %v4658_v32  ;;  %v2981_v32 = vperm.slane %v2977_v22, 2 }
 0x8c6   : > { %3423 = vmatpush.bf16.msra.mxu1 %v4657_v34 }
 0x8ca   : > { %3424 = vmatpush.bf16.msra.mxu1 %v4656_v16 }
 0x8cc   : > { %4343 = vmatmul.msk.bf16.gmra.mxu2 %vm557_vm0, %v5311_v62 }
 0x8cd   : > { %4349 = vmatmul.msk.bf16.gmra.mxu3 %vm557_vm0, %v5311_v62  ;;  %v4649_v62 = vld [vmem:[%s6063_s11 + $0x368] sm:$0xff] }
 0x8ce   : > { %3404 = vmatpush.bf16.msra.mxu0 %v4649_v62  ;;  %3425 = vmatpush.bf16.msra.mxu1 %v4655_v28 }
 0x8d2   : > { %3405 = vmatpush.bf16.msra.mxu0 %v4648_v35  ;;  %3426 = vmatpush.bf16.msra.mxu1 %v4654_v57 }
 0x8d6   : > { %3406 = vmatpush.bf16.msra.mxu0 %v4647_v38  ;;  %3427 = vmatpush.bf16.msra.mxu1 %v4653_v10 }
 0x8da   : > { %3407 = vmatpush.bf16.msra.mxu0 %v4646_v53  ;;  %3428 = vmatpush.bf16.msra.mxu1 %v4652_v50 }
 0x8de   : > { %3408 = vmatpush.bf16.msra.mxu0 %v4645_v17 }
 0x8e2   : > { %3409 = vmatpush.bf16.msra.mxu0 %v4644_v56 }
 0x90d   : > { %v2917_v43 = vpop.f32.mrf.mxu0 }
 0x90e   : > { %v2936_v44 = vpop.f32.mrf.mxu1 }
 0x915   : > { %v2919_v48 = vpop.f32.mrf.mxu0 }
 0x916   : > { %v2938_v45 = vpop.f32.mrf.mxu1 }
 0x91d   : > { %v2922_v4 = vpop.f32.mrf.mxu0 }
 0x91e   : > { %v2941_v8 = vpop.f32.mrf.mxu1 }
 0x91f   : > { %v2898_v18 = vpop.f32.mrf.mxu2 }
 0x920   : > { %v2918_v33 = vadd.f32 %v2917_v43, %v2898_v18  ;;  %v2955_v42 = vpop.f32.mrf.mxu3 }
 0x922   : > { %v2937_v54 = vadd.f32 %v2936_v44, %v2918_v33 }
 0x924   : > { %v2956_v19 = vadd.f32 %v2955_v42, %v2937_v54 }
 0x925   : > { %v2924_v20 = vpop.f32.mrf.mxu0 }
 0x926   : > { %v5954_v39 = vadd.f32 %v2956_v19, %v5768_v30  ;;  %v2943_v41 = vpop.f32.mrf.mxu1  ;;  %v4636_v30 = vld [vmem:[%s6063_s11 + $0x300] sm:$0xff] }
 0x927   : > { %v2900_v49 = vpop.f32.mrf.mxu2  ;;  %3390 = vmatpush.bf16.msra.mxu2 %v4636_v30 }
 0x928   : > { %v2920_v51 = vadd.f32 %v2919_v48, %v2900_v49  ;;  %v2957_v21 = vpop.f32.mrf.mxu3 }
 0x92a   : > { %v2939_v63 = vadd.f32 %v2938_v45, %v2920_v51 }
 0x92c   : > { %v2958_v23 = vadd.f32 %v2957_v21, %v2939_v63 }
 0x92d   : > { %v3055_v24 = vpop.f32.mrf.mxu0 }
 0x92e   : > { %v5972_v25 = vadd.f32 %v2958_v23, %v5783_v52  ;;  %v3074_v26 = vpop.f32.mrf.mxu1  ;;  %v3056_v34 = vadd.f32 %v3055_v24, %v2980_v31 }
 0x92f   : > { %v2903_v27 = vpop.f32.mrf.mxu2  ;;  %v3075_v16 = vadd.f32 %v3074_v26, %v2981_v32 }
 0x930   : > { %v2923_v7 = vadd.f32 %v2922_v4, %v2903_v27  ;;  %v2960_v15 = vpop.f32.mrf.mxu3  ;;  %v3104_v52 = vmax.f32 %v3056_v34, 0.0  ;;  %v2982_v4 = vperm.slane %v2977_v22, 3 }
 0x931   : > { %v3105_v9 = vmax.f32 %v3075_v16, 0.0 }
 0x932   : > { %v2942_v62 = vadd.f32 %v2941_v8, %v2923_v7 }
 0x934   : > { %v2961_v35 = vadd.f32 %v2960_v15, %v2942_v62 }
 0x935   : > { %v3057_v38 = vpop.f32.mrf.mxu0 }
 0x936   : > { %v5975_v28 = vadd.f32 %v2961_v35, %v5801_v5  ;;  %v3058_v43 = vadd.f32 %v3057_v38, %v2980_v31  ;;  %v3076_v44 = vpop.f32.mrf.mxu1 }
 0x937   : > { %v3077_v46 = vadd.f32 %v3076_v44, %v2981_v32  ;;  %v2905_v47 = vpop.f32.mrf.mxu2 }
 0x938   : > { %v3108_v53 = vmax.f32 %v3058_v43, 0.0  ;;  %v2925_v57 = vadd.f32 %v2924_v20, %v2905_v47  ;;  %v2962_v58 = vpop.f32.mrf.mxu3 }
 0x939   : > { %v3109_v17 = vmax.f32 %v3077_v46, 0.0 }
 0x93a   : > { %v3120_v10 = vpack.c.bf16 %v3108_v53, %v3104_v52  ;;  %v2944_v48 = vadd.f32 %v2943_v41, %v2925_v57 }
 0x93b   : > { %v3121_v45 = vpack.c.bf16 %v3109_v17, %v3105_v9 }
 0x93c   : > { %v2963_v3 = vadd.f32 %v2962_v58, %v2944_v48  ;;  %3410 = vmatmul.bf16.vlgmr.msra.gmra.mxu0 %v3120_v10  ;;  %v4707_v48 = vld [vmem:[%s6064_s12] ss:$0 sm:$0xff] }
 0x93d   : > { %3429 = vmatmul.bf16.vlgmr.msra.gmra.mxu1 %v3121_v45  ;;  %v3060_v59 = vpop.f32.mrf.mxu0 }
 0x93e   : > { %v5978_v5 = vadd.f32 %v2963_v3, %v5832_v0  ;;  %v3079_v56 = vpop.f32.mrf.mxu1  ;;  %v3061_v8 = vadd.f32 %v3060_v59, %v2980_v31 }
 0x93f   : > { %v3036_v50 = vpop.f32.mrf.mxu2  ;;  %v3080_v11 = vadd.f32 %v3079_v56, %v2981_v32 }
 0x940   : > { %v3093_v36 = vpop.f32.mrf.mxu3  ;;  %v3037_v18 = vadd.f32 %v3036_v50, %v2979_v37  ;;  %v3112_v19 = vmax.f32 %v3061_v8, 0.0 }
 0x941   : > { %v3094_v54 = vadd.f32 %v3093_v36, %v2982_v4  ;;  %v3113_v0 = vmax.f32 %v3080_v11, 0.0 }
 0x942   : > { %v3103_v51 = vmax.f32 %v3037_v18, 0.0 }
 0x943   : > { %v3106_v30 = vmax.f32 %v3094_v54, 0.0 }
 0x945   : > { %v3062_v14 = vpop.f32.mrf.mxu0 }
 0x946   : > { %v3063_v33 = vadd.f32 %v3062_v14, %v2980_v31  ;;  %v3081_v42 = vpop.f32.mrf.mxu1 }
 0x947   : > { %v3082_v29 = vadd.f32 %v3081_v42, %v2981_v32  ;;  %v3038_v55 = vpop.f32.mrf.mxu2 }
 0x948   : > { %v3116_v20 = vmax.f32 %v3063_v33, 0.0  ;;  %v3039_v41 = vadd.f32 %v3038_v55, %v2979_v37  ;;  %v3095_v12 = vpop.f32.mrf.mxu3 }
 0x949   : > { %v3117_v13 = vmax.f32 %v3082_v29, 0.0  ;;  %v3096_v49 = vadd.f32 %v3095_v12, %v2982_v4 }
 0x94a   : > { %v3124_v21 = vpack.c.bf16 %v3116_v20, %v3112_v19  ;;  %v3107_v63 = vmax.f32 %v3039_v41, 0.0 }
 0x94b   : > { %v3125_v2 = vpack.c.bf16 %v3117_v13, %v3113_v0  ;;  %v3110_v23 = vmax.f32 %v3096_v49, 0.0 }
 0x94c   : > { %v3119_v22 = vpack.c.bf16 %v3107_v63, %v3103_v51  ;;  %3415 = vmatmul.bf16.gmra.mxu0 %v3124_v21 }
 0x94d   : > { %v3122_v24 = vpack.c.bf16 %v3110_v23, %v3106_v30  ;;  %3434 = vmatmul.bf16.gmra.mxu1 %v3125_v2 }
 0x94e   : > { %3391 = vmatmul.bf16.vlgmr.msra.gmra.mxu2 %v3119_v22 }
 0x94f   : > { %3448 = vmatmul.bf16.vlgmr.msra.gmra.mxu3 %v3122_v24  ;;  %v3041_v26 = vpop.f32.mrf.mxu2 }
 0x950   : > { %v3098_v27 = vpop.f32.mrf.mxu3  ;;  %v3042_v31 = vadd.f32 %v3041_v26, %v2979_v37 }
 0x951   : > { %v3099_v7 = vadd.f32 %v3098_v27, %v2982_v4 }
 0x952   : > { %v3111_v35 = vmax.f32 %v3042_v31, 0.0 }
 0x953   : > { %v3114_v38 = vmax.f32 %v3099_v7, 0.0 }
 0x957   : > { %v3043_v15 = vpop.f32.mrf.mxu2 }
 0x958   : > { %v3044_v32 = vadd.f32 %v3043_v15, %v2979_v37  ;;  %v3100_v62 = vpop.f32.mrf.mxu3 }
 0x959   : > { %v3101_v34 = vadd.f32 %v3100_v62, %v2982_v4 }
 0x95a   : > { %v3115_v16 = vmax.f32 %v3044_v32, 0.0 }
 0x95b   : > { %v3118_v43 = vmax.f32 %v3101_v34, 0.0 }
 0x95c   : > { %v3123_v44 = vpack.c.bf16 %v3115_v16, %v3111_v35 }
 0x95d   : > { %v3126_v46 = vpack.c.bf16 %v3118_v43, %v3114_v38 }
 0x95e   : > { %3396 = vmatmul.bf16.gmra.mxu2 %v3123_v44 }
 0x95f   : > { %3453 = vmatmul.bf16.gmra.mxu3 %v3126_v46 }
 0x9b9   : > { %v3411_v47 = vpop.f32.mrf.mxu0 }
 0x9ba   : > { %v3430_v52 = vpop.f32.mrf.mxu1 }
 0x9c1   : > { %v3413_v17 = vpop.f32.mrf.mxu0 }
 0x9c2   : > { %v3432_v45 = vpop.f32.mrf.mxu1 }
 0x9c9   : > { %v3416_v14 = vpop.f32.mrf.mxu0 }
 0x9ca   : > { %v3435_v33 = vpop.f32.mrf.mxu1 }
 0x9d1   : > { %v3392_v53 = vpop.f32.mrf.mxu2  ;;  %v3418_v12 = vpop.f32.mrf.mxu0 }
 0x9d2   : > { %v3412_v57 = vadd.f32 %v3411_v47, %v3392_v53  ;;  %v3449_v58 = vpop.f32.mrf.mxu3  ;;  %v3437_v51 = vpop.f32.mrf.mxu1 }
 0x9d4   : > { %v3431_v9 = vadd.f32 %v3430_v52, %v3412_v57 }
 0x9d6   : > { %v3450_v10 = vadd.f32 %v3449_v58, %v3431_v9 }
 0x9d8   : > { %v3459_v3 = vadd.f32 %v3450_v10, %v5954_v39 }
 0x9d9   : > { %v3394_v59 = vpop.f32.mrf.mxu2 }
 0x9da   : > { %v3414_v56 = vadd.f32 %v3413_v17, %v3394_v59  ;;  %v3451_v50 = vpop.f32.mrf.mxu3  ;;  %v3467_v36 = vadd.f32 %v4707_v48, %v3459_v3 }
 0x9dc   : > { %v3433_v37 = vadd.f32 %v3432_v45, %v3414_v56  ;;  %v3471_v4 = vadd.f32 %v3467_v36, %v5232_v6 }
 0x9de   : > { %v3452_v8 = vadd.f32 %v3451_v50, %v3433_v37  ;;  %v3477_v11 = vsel %vm557_vm0, %v3471_v4, 0.0 }
 0x9df   : > { %3478 = vadd.xlane.f32.xlu0 %v3477_v11 }
 0x9e0   : > { %v3460_v18 = vadd.f32 %v3452_v8, %v5972_v25 }
 0x9e1   : > { %v3397_v42 = vpop.f32.mrf.mxu2 }
 0x9e2   : > { %v3417_v54 = vadd.f32 %v3416_v14, %v3397_v42  ;;  %v3468_v29 = vadd.f32 %v4707_v48, %v3460_v18  ;;  %v3454_v55 = vpop.f32.mrf.mxu3  ;;  %v4708_v14 = vld [vmem:[%s6065_s13] ss:$0 sm:$0xff] }
 0x9e3   : > { %v4709_v42 = vld [vmem:[%s6066_s14] ss:$0 sm:$0xff] }
 0x9e4   : > { %v3436_v39 = vadd.f32 %v3435_v33, %v3417_v54  ;;  %v3472_v19 = vadd.f32 %v3468_v29, %v5235_v1 }
 0x9e6   : > { %v3455_v20 = vadd.f32 %v3454_v55, %v3436_v39  ;;  %v3480_v41 = vsel %vm557_vm0, %v3472_v19, 0.0 }
 0x9e7   : > { %3481 = vadd.xlane.f32.xlu1 %v3480_v41 }
 0x9e8   : > { %v3461_v6 = vadd.f32 %v3455_v20, %v5975_v28 }
 0x9e9   : > { %v3399_v0 = vpop.f32.mrf.mxu2 }
 0x9ea   : > { %v3419_v13 = vadd.f32 %v3418_v12, %v3399_v0  ;;  %v3469_v49 = vadd.f32 %v4707_v48, %v3461_v6  ;;  %v3456_v63 = vpop.f32.mrf.mxu3 }
 0x9ec   : > { %v3438_v25 = vadd.f32 %v3437_v51, %v3419_v13  ;;  %v3473_v21 = vadd.f32 %v3469_v49, %v5304_v60 }
 0x9ee   : > { %v3457_v30 = vadd.f32 %v3456_v63, %v3438_v25  ;;  %v3483_v2 = vsel %vm557_vm0, %v3473_v21, 0.0 }
 0x9ef   : > { %3484 = vadd.xlane.f32.xlu2 %v3483_v2 }
 0x9f0   : > { %v3462_v1 = vadd.f32 %v3457_v30, %v5978_v5 }
 0x9f2   : > { %v3470_v23 = vadd.f32 %v4707_v48, %v3462_v1 }
 0x9f4   : > { %v3474_v22 = vadd.f32 %v3470_v23, %v5307_v61 }
 0x9f6   : > { %v3486_v28 = vsel %vm557_vm0, %v3474_v22, 0.0 }
 0x9f7   : > { %3487 = vadd.xlane.f32.xlu0 %v3486_v28 }
 0xa52   : > { %v3479_v24 = vpop.xlane.xlu0 %3478 }
 0xa53   : > { %v3489_v26 = vmul.f32 %v3479_v24, %v5141_v40 }
 0xa55   : > { %v3493_v27 = vsub.f32 %v3471_v4, %v3489_v26 }
 0xa57   : > { %v3497_v31 = vmul.f32 %v3493_v27, %v3493_v27 }
 0xa59   : > { %v3501_v60 = vsel %vm557_vm0, %v3497_v31, 0.0 }
 0xa5a   : > { %3502 = vadd.xlane.f32.xlu1 %v3501_v60  ;;  %v3482_v7 = vpop.xlane.xlu1 %3481 }
 0xa5b   : > { %v3490_v15 = vmul.f32 %v3482_v7, %v5141_v40 }
 0xa5d   : > { %v5998_v32 = vsub.f32 %v3472_v19, %v3490_v15 }
 0xa5f   : > { %v3498_v5 = vmul.f32 %v5998_v32, %v5998_v32 }
 0xa61   : > { %v3504_v61 = vsel %vm557_vm0, %v3498_v5, 0.0 }
 0xa62   : > { %3505 = vadd.xlane.f32.xlu2 %v3504_v61  ;;  %v3485_v62 = vpop.xlane.xlu2 %3484 }
 0xa63   : > { %v3491_v34 = vmul.f32 %v3485_v62, %v5141_v40 }
 0xa65   : > { %v6004_v35 = vsub.f32 %v3473_v21, %v3491_v34 }
 0xa67   : > { %v3499_v16 = vmul.f32 %v6004_v35, %v6004_v35 }
 0xa69   : > { %v3507_v38 = vsel %vm557_vm0, %v3499_v16, 0.0 }
 0xa6a   : > { %v3488_v43 = vpop.xlane.xlu0 %3487  ;;  %3508 = vadd.xlane.f32.xlu0 %v3507_v38 }
 0xa6b   : > { %v3492_v44 = vmul.f32 %v3488_v43, %v5141_v40 }
 0xa6d   : > { %v6010_v46 = vsub.f32 %v3474_v22, %v3492_v44 }
 0xa6f   : > { %v3500_v47 = vmul.f32 %v6010_v46, %v6010_v46 }
 0xa71   : > { %v3510_v52 = vsel %vm557_vm0, %v3500_v47, 0.0 }
 0xa72   : > { %3511 = vadd.xlane.f32.xlu1 %v3510_v52 }
 0xacd   : > { %v3503_v53 = vpop.xlane.xlu1 %3502 }
 0xace   : > { %v3513_v57 = vmul.f32 %v3503_v53, %v5141_v40 }
 0xad0   : > { %v3517_v58 = vadd.f32 1e-05, %v3513_v57 }
 0xad2   : > { %4784 = vrsqrt.f32 %v3517_v58  ;;  %vm3527_vm5 = vweird.f32 %v3517_v58 }
 0xad5   : > { %v3506_v9 = vpop.xlane.xlu2 %3505 }
 0xad6   : > { %v3514_v17 = vmul.f32 %v3506_v9, %v5141_v40 }
 0xad8   : > { %v4785_v10 = vpop.eup %4784  ;;  %v3518_v48 = vadd.f32 1e-05, %v3514_v17 }
 0xad9   : > { %v3522_v45 = vmul.f32 %v4785_v10, %v3517_v58  ;;  %vm3528_vm0 = vweird.f32 %v4785_v10 }
 0xada   : > { %4786 = vrsqrt.f32 %v3518_v48  ;;  %vm3529_vm6 = vmor %vm3527_vm5, %vm3528_vm0  ;;  %vm3537_vm8 = vweird.f32 %v3518_v48 }
 0xadb   : > { %v3523_v3 = vmul.f32 %v4785_v10, %v3522_v45 }
 0xadd   : > { %v3524_v59 = vmul.f32 0.5, %v3523_v3  ;;  %v3509_v56 = vpop.xlane.xlu0 %3508 }
 0xade   : > { %v3515_v50 = vmul.f32 %v3509_v56, %v5141_v40 }
 0xadf   : > { %v3525_v36 = vsub.f32 1.5, %v3524_v59 }
 0xae0   : > { %v4787_v37 = vpop.eup %4786  ;;  %v3519_v4 = vadd.f32 1e-05, %v3515_v50 }
 0xae1   : > { %v3526_v8 = vmul.f32 %v4785_v10, %v3525_v36  ;;  %v3532_v11 = vmul.f32 %v4787_v37, %v3518_v48  ;;  %vm3538_vm7 = vweird.f32 %v4787_v37 }
 0xae2   : > { %4788 = vrsqrt.f32 %v3519_v4  ;;  %vm3539_vm9 = vmor %vm3537_vm8, %vm3538_vm7  ;;  %vm3547_vm11 = vweird.f32 %v3519_v4 }
 0xae3   : > { %v3530_v18 = vsel %vm3529_vm6, %v4785_v10, %v3526_v8  ;;  %v3533_v33 = vmul.f32 %v4787_v37, %v3532_v11 }
 0xae4   : > { %v3561_v54 = vmul.f32 %v3530_v18, %v3493_v27 }
 0xae5   : > { %v3534_v29 = vmul.f32 0.5, %v3533_v33  ;;  %v3512_v55 = vpop.xlane.xlu1 %3511 }
 0xae6   : > { %v3568_v39 = vmul.f32 %v4708_v14, %v3561_v54  ;;  %v3516_v19 = vmul.f32 %v3512_v55, %v5141_v40 }
 0xae7   : > { %v3535_v20 = vsub.f32 1.5, %v3534_v29 }
 0xae8   : > { %v4789_v41 = vpop.eup %4788  ;;  %v3575_v6 = vadd.f32 %v4709_v42, %v3568_v39  ;;  %v3520_v12 = vadd.f32 1e-05, %v3516_v19 }
 0xae9   : > { %v3536_v0 = vmul.f32 %v4787_v37, %v3535_v20  ;;  %v3542_v13 = vmul.f32 %v4789_v41, %v3519_v4  ;;  %vm3548_vm10 = vweird.f32 %v4789_v41 }
 0xaea   : > { %v3579_v49 = vpack.c.bf16 %v3575_v6, %v3575_v6  ;;  %4790 = vrsqrt.f32 %v3520_v12  ;;  %vm3549_vm12 = vmor %vm3547_vm11, %vm3548_vm10  ;;  %vm3557_vm14 = vweird.f32 %v3520_v12 }
 0xaeb   : > { %v3540_v51 = vsel %vm3539_vm9, %v4787_v37, %v3536_v0  ;;  %v3543_v40 = vmul.f32 %v4789_v41, %v3542_v13 }
 0xaec   : > { %3584 = vst.msk [vmem:[%s6030_s29] sm:$0xf] %vm587_vm1, %v3579_v49  ;;  %v3562_v25 = vmul.f32 %v3540_v51, %v5998_v32 }
 0xaed   : > { %v3544_v21 = vmul.f32 0.5, %v3543_v40 }
 0xaee   : > { %v3569_v63 = vmul.f32 %v4708_v14, %v3562_v25 }
 0xaef   : > { %v3545_v30 = vsub.f32 1.5, %v3544_v21 }
 0xaf0   : > { %v4791_v2 = vpop.eup %4790  ;;  %v3576_v1 = vadd.f32 %v4709_v42, %v3569_v63 }
 0xaf1   : > { %v3546_v23 = vmul.f32 %v4789_v41, %v3545_v30  ;;  %v3552_v22 = vmul.f32 %v4791_v2, %v3520_v12  ;;  %vm3558_vm13 = vweird.f32 %v4791_v2 }
 0xaf2   : > { %v3580_v28 = vpack.c.bf16 %v3576_v1, %v3576_v1  ;;  %vm3559_vm15 = vmor %vm3557_vm14, %vm3558_vm13 }
 0xaf3   : > { %v3550_v24 = vsel %vm3549_vm12, %v4789_v41, %v3546_v23  ;;  %v3553_v26 = vmul.f32 %v4791_v2, %v3552_v22 }
 0xaf4   : > { %3585 = vst.msk [vmem:[%s6030_s29 + $0x4] sm:$0xf] %vm587_vm1, %v3580_v28  ;;  %v3563_v27 = vmul.f32 %v3550_v24, %v6004_v35 }
 0xaf5   : > { %v3554_v31 = vmul.f32 0.5, %v3553_v26 }
 0xaf6   : > { %v3570_v60 = vmul.f32 %v4708_v14, %v3563_v27 }
 0xaf7   : > { %v3555_v7 = vsub.f32 1.5, %v3554_v31 }
 0xaf8   : > { %v3577_v15 = vadd.f32 %v4709_v42, %v3570_v60 }
 0xaf9   : > { %v3556_v32 = vmul.f32 %v4791_v2, %v3555_v7 }
 0xafa   : > { %v3581_v5 = vpack.c.bf16 %v3577_v15, %v3577_v15 }
 0xafb   : > { %v3560_v61 = vsel %vm3559_vm15, %v4791_v2, %v3556_v32 }
 0xafc   : > { %3586 = vst.msk [vmem:[%s6030_s29 + $0x8] sm:$0xf] %vm587_vm1, %v3581_v5  ;;  %v3564_v62 = vmul.f32 %v3560_v61, %v6010_v46 }
 0xafe   : > { %v3571_v34 = vmul.f32 %v4708_v14, %v3564_v62 }
 0xb00   : > { %v3578_v16 = vadd.f32 %v4709_v42, %v3571_v34 }
 0xb02   : > { %v3582_v38 = vpack.c.bf16 %v3578_v16, %v3578_v16 }
 0xb04   : > { %3587 = vst.msk [vmem:[%s6030_s29 + $0xc] sm:$0xf] %vm587_vm1, %v3582_v38 }
 0xb05 PF: > { %s25_s20 = sadd.s32 1, %s4814_s20   ;;  %s6070_s18 = smov %s4810_s19 }
 0xb06   : > { %p22_p5 = scmp.ge.s32.totalorder %s25_s20, 4   ;;  %s6071_s19 = smov %s6073_s21 }
 0xb08   :  { %24 = sbr.rel (!%p22_p5) target bundleno = 2 (0x2), region = 115 }

</bundles_post_ra>
